<compile_context>
chip_gen: v5e
topology: v5e:2x2
jax: 0.10.0
libtpu: 0.0.40
codegen_flags: <defaults>
</compile_context>

<pallas_src>
import jax
import jax.numpy as jnp
from jax import lax
from jax.experimental import pallas as pl
from jax.experimental.pallas import tpu as pltpu


def _conv_relu_hpool(x, w_ref, b_ref, xp_ref, s_ref, *, kh_sz, kw_sz, pad):
    """Conv (stride 1) + bias + ReLU + the H half of the 2x2/s2 max-pool.

    x:      (H, W, Cin)        f32 activations (value, already in vregs)
    w_ref:  (KH*KW*Cin, Cout)  bf16 weights, all taps folded into K
    b_ref:  (1, Cout)          f32 bias
    xp_ref: (H+2p, W+2p, Cin)  f32 VMEM scratch: zero-padded activations
    s_ref:  (Ho//2, Wo, Cout)  f32 VMEM scratch receiving the H-pooled result
    """
    H, W, Cin = x.shape
    Hp, Wp = H + 2 * pad, W + 2 * pad
    Ho = Hp - (kh_sz - 1)                 # conv: stride 1, dilation 1
    Wo = Wp - (kw_sz - 1)
    K, Cout = w_ref.shape
    assert K == kh_sz * kw_sz * Cin
    assert Ho % 2 == 0 and Wo % 2 == 0, "MaxPool2d(2,2) needs even conv dims"
    assert Wo % 8 == 0, "conv W output must be sublane-aligned for free reshapes"
    M = Ho * Wo

    # In-kernel zero padding: memset only the halo (interior is fully
    # overwritten below and the halo is never written by anything else).
    zrow = jnp.zeros((pad, Wp, Cin), jnp.float32)
    zcol = jnp.zeros((H, pad, Cin), jnp.float32)
    xp_ref[0:pad, :, :] = zrow
    xp_ref[Hp - pad:Hp, :, :] = zrow
    xp_ref[pad:pad + H, 0:pad, :] = zcol
    xp_ref[pad:pad + H, Wp - pad:Wp, :] = zcol
    xp_ref[pad:pad + H, pad:pad + W, :] = x

    # Full im2col: lane-concat the KW shifts per kernel row, then concat the
    # KH row-bands -> (Ho, Wo, KH*KW*Cin) slab -> ONE MXU matmul with
    # K = KH*KW*Cin (25 for layer 1, 800 for layer 2).
    bands = []
    for kh in range(kh_sz):
        bands.append(jnp.concatenate(
            [xp_ref[kh:kh + Ho, kw:kw + Wo, :] for kw in range(kw_sz)],
            axis=-1))
    lhs = jnp.concatenate(bands, axis=-1).reshape(M, K)

    acc = jnp.dot(lhs.astype(jnp.bfloat16), w_ref[...],
                  preferred_element_type=jnp.float32)
    acc = jnp.maximum(acc + b_ref[...], 0.0)          # bias + ReLU (f32 VPU)

    # H half of MaxPool2d(2,2): leading-dim max in vregs (the reshape is
    # layout-preserving because Wo % 8 == 0).
    y = acc.reshape(Ho // 2, 2, Wo, Cout)
    s_ref[...] = jnp.maximum(y[:, 0], y[:, 1])


def _make_kernel(*, H, W, Cin0, KH1, KW1, C1, KH2, KW2, C2, pad):
    Wo1 = W + 2 * pad - (KW1 - 1)
    W1 = Wo1 // 2
    Wo2 = W1 + 2 * pad - (KW2 - 1)
    W2 = Wo2 // 2

    def kernel(x_ref, w1_ref, b1_ref, w2_ref, b2_ref, o_ref,
               xp1_ref, s1_ref, xp2_ref, s2_ref):
        # ---------------- block 1 ----------------
        x = x_ref[0]                                        # (H, W, Cin0) f32
        _conv_relu_hpool(x, w1_ref, b1_ref, xp1_ref, s1_ref,
                         kh_sz=KH1, kw_sz=KW1, pad=pad)
        # W half of pool 1 via two stride-2 sublane reads of the scratch.
        p1 = jnp.maximum(s1_ref[:, pl.ds(0, W1, 2), :],
                         s1_ref[:, pl.ds(1, W1, 2), :])     # (H1, W1, C1)

        # ---------------- block 2 ----------------
        _conv_relu_hpool(p1, w2_ref, b2_ref, xp2_ref, s2_ref,
                         kh_sz=KH2, kw_sz=KW2, pad=pad)
        pooled = jnp.maximum(s2_ref[:, pl.ds(0, W2, 2), :],
                             s2_ref[:, pl.ds(1, W2, 2), :])  # (H2, W2, C2)

        # Lane-dense output: (H2, W2*C2) slab, w-major then c on the lanes.
        for w2 in range(W2):
            o_ref[0, :, w2 * C2:(w2 + 1) * C2] = pooled[:, w2, :]

    return kernel


def basic_cnn_forward(x, params, *, padding=2):
    """BasicCNN forward. x: (B, H, W) or (B, 1, H, W) in PyTorch NCHW layout."""
    if x.ndim < 4:
        x = x.reshape(x.shape[0], 1, x.shape[1], x.shape[2])
    x = jnp.transpose(x, (0, 2, 3, 1)).astype(jnp.float32)   # NCHW -> NHWC
    B, H, W, Cin0 = x.shape

    (w1, b1), (w2, b2) = params
    KH1, KW1, Cin1, C1 = w1.shape
    KH2, KW2, Cin2, C2 = w2.shape
    assert Cin1 == Cin0 and Cin2 == C1

    # Layer geometry (stride-1, dilation-1 convs; 2x2/s2 pools, floor mode).
    Ho1 = H + 2 * padding - (KH1 - 1)
    Wo1 = W + 2 * padding - (KW1 - 1)
    H1, W1 = Ho1 // 2, Wo1 // 2
    Ho2 = H1 + 2 * padding - (KH2 - 1)
    Wo2 = W1 + 2 * padding - (KW2 - 1)
    H2, W2 = Ho2 // 2, Wo2 // 2

    # Host-side weight prep: fold all taps into the contraction dim, ship the
    # matmul operands as bf16 (halves weight DMA, avoids multi-pass f32 MXU).
    w1r = w1.reshape(KH1 * KW1 * Cin1, C1).astype(jnp.bfloat16)
    w2r = w2.reshape(KH2 * KW2 * Cin2, C2).astype(jnp.bfloat16)
    b1r = b1.reshape(1, C1).astype(jnp.float32)
    b2r = b2.reshape(1, C2).astype(jnp.float32)

    kernel = _make_kernel(H=H, W=W, Cin0=Cin0, KH1=KH1, KW1=KW1, C1=C1,
                          KH2=KH2, KW2=KW2, C2=C2, pad=padding)

    out2d = pl.pallas_call(
        kernel,
        out_shape=jax.ShapeDtypeStruct((B, H2, W2 * C2), jnp.float32),
        grid_spec=pltpu.PrefetchScalarGridSpec(
            num_scalar_prefetch=0,
            grid=(B,),                             # one image per grid step
            in_specs=[
                pl.BlockSpec((1, H, W, Cin0), lambda b: (b, 0, 0, 0)),
                pl.BlockSpec(w1r.shape, lambda b: (0, 0)),   # resident weights
                pl.BlockSpec(b1r.shape, lambda b: (0, 0)),
                pl.BlockSpec(w2r.shape, lambda b: (0, 0)),
                pl.BlockSpec(b2r.shape, lambda b: (0, 0)),
            ],
            out_specs=pl.BlockSpec((1, H2, W2 * C2), lambda b: (b, 0, 0)),
            scratch_shapes=[
                pltpu.VMEM((H + 2 * padding, W + 2 * padding, Cin0),
                           jnp.float32),
                pltpu.VMEM((Ho1 // 2, Wo1, C1), jnp.float32),
                pltpu.VMEM((H1 + 2 * padding, W1 + 2 * padding, C1),
                           jnp.float32),
                pltpu.VMEM((Ho2 // 2, Wo2, C2), jnp.float32),
            ],
        ),
        compiler_params=pltpu.CompilerParams(
            dimension_semantics=("parallel",)),    # v7x: split batch over TCs
    )(x, w1r, b1r, w2r, b2r)

    out = out2d.reshape(B, H2, W2, C2)             # undo lane-dense packing
    return jnp.transpose(out, (0, 3, 1, 2))        # NHWC -> NCHW


def init_params(key, num_filters=(32, 64), c_kernel_size=(5, 5)):
    """Deterministic PyTorch-style (uniform +-1/sqrt(fan_in)) init, HWIO."""
    params = []
    cin = 1
    for i, cout in enumerate(num_filters):
        k = c_kernel_size[i]
        key, wk, bk = jax.random.split(key, 3)
        bound = 1.0 / float(cin * k * k) ** 0.5
        w = jax.random.uniform(wk, (k, k, cin, cout), jnp.float32, -bound, bound)
        b = jax.random.uniform(bk, (cout,), jnp.float32, -bound, bound)
        params.append((w, b))
        cin = cout
    return params


def basic_cnn_reference(x, params):
    """Pure-JAX reference of the PyTorch forward (f32, HIGHEST precision)."""
    if x.ndim < 4:
        x = x.reshape(x.shape[0], 1, x.shape[1], x.shape[2])
    x = jnp.transpose(x, (0, 2, 3, 1)).astype(jnp.float32)
    for (w, b) in params:
        y = lax.conv_general_dilated(
            x, w, window_strides=(1, 1), padding=((2, 2), (2, 2)),
            dimension_numbers=("NHWC", "HWIO", "NHWC"),
            precision=lax.Precision.HIGHEST)
        y = jnp.maximum(y + b, 0.0)
        y = lax.reduce_window(y, -jnp.inf, lax.max,
                              window_dimensions=(1, 2, 2, 1),
                              window_strides=(1, 2, 2, 1),
                              padding="VALID")
        x = y
    return jnp.transpose(x, (0, 3, 1, 2))


if __name__ == "__main__":
    key = jax.random.PRNGKey(0)
    kx, kp = jax.random.split(key)
    # Forward accepts 3-D input and views it as (B, 1, H, W), like the module.
    x = jax.random.normal(kx, (2, 16, 16), jnp.float32)
    params = init_params(kp)

    out = basic_cnn_forward(x, params)
    out = jax.block_until_ready(out)

    assert out.shape == (2, 64, 4, 4), out.shape
    ref = basic_cnn_reference(x, params)
    max_err = float(jnp.max(jnp.abs(out - ref)))
    # bf16 matmul operands with f32 accumulation vs a HIGHEST-precision f32
    # reference: tolerance sized for bf16 operand rounding.
    assert jnp.allclose(out, ref, atol=2e-2, rtol=2e-2), max_err
    print("KERNEL_OK")
</pallas_src>

<mosaic_0001>
module attributes {stable_mosaic.version = 11 : i64} {
  func.func @kernel(%arg0: i32, %arg1: memref<1x16x16x1xf32, #tpu.memory_space<vmem>>, %arg2: memref<25x32xbf16, #tpu.memory_space<vmem>>, %arg3: memref<1x32xf32, #tpu.memory_space<vmem>>, %arg4: memref<800x64xbf16, #tpu.memory_space<vmem>>, %arg5: memref<1x64xf32, #tpu.memory_space<vmem>>, %arg6: memref<1x4x256xf32, #tpu.memory_space<vmem>>, %arg7: memref<20x20x1xf32, #tpu.memory_space<vmem>>, %arg8: memref<8x16x32xf32, #tpu.memory_space<vmem>>, %arg9: memref<12x12x32xf32, #tpu.memory_space<vmem>>, %arg10: memref<4x8x64xf32, #tpu.memory_space<vmem>>) attributes {dimension_semantics = [#tpu.dimension_semantics<parallel>], iteration_bounds = array<i64: 2>, scalar_prefetch = 0 : i64, scratch_operands = 4 : i64, tpu.core_type = #tpu.core_type<tc>, window_params = [{transform_indices = @transform_0, window_bounds = array<i64: 1, 16, 16, 1>}, {pipeline_mode = #tpu.pipeline_mode<synchronous>, transform_indices = @transform_1, window_bounds = array<i64: 25, 32>}, {pipeline_mode = #tpu.pipeline_mode<synchronous>, transform_indices = @transform_2, window_bounds = array<i64: 1, 32>}, {pipeline_mode = #tpu.pipeline_mode<synchronous>, transform_indices = @transform_3, window_bounds = array<i64: 800, 64>}, {pipeline_mode = #tpu.pipeline_mode<synchronous>, transform_indices = @transform_4, window_bounds = array<i64: 1, 64>}, {transform_indices = @transform_5, window_bounds = array<i64: 1, 4, 256>}]} {
    %c0 = arith.constant 0 : index
    %c0_0 = arith.constant 0 : index
    %c0_1 = arith.constant 0 : index
    %c0_2 = arith.constant 0 : index
    %0 = vector.load %arg1[%c0, %c0_0, %c0_1, %c0_2] : memref<1x16x16x1xf32, #tpu.memory_space<vmem>>, vector<1x16x16x1xf32>
    %1 = vector.shape_cast %0 : vector<1x16x16x1xf32> to vector<16x16x1xf32>
    %cst = arith.constant 0.000000e+00 : f32
    %2 = vector.broadcast %cst : f32 to vector<2x20x1xf32>
    %cst_3 = arith.constant 0.000000e+00 : f32
    %3 = vector.broadcast %cst_3 : f32 to vector<16x2x1xf32>
    %c0_4 = arith.constant 0 : index
    %c0_5 = arith.constant 0 : index
    %c0_6 = arith.constant 0 : index
    %4 = vector.load %arg7[%c0_4, %c0_5, %c0_6] : memref<20x20x1xf32, #tpu.memory_space<vmem>>, vector<2x20x1xf32>
    tpu.vector_store %arg7[%c0_4, %c0_5, %c0_6], %2 {strides = array<i32>} : memref<20x20x1xf32, #tpu.memory_space<vmem>>, vector<2x20x1xf32>,
    %c18 = arith.constant 18 : index
    %c0_7 = arith.constant 0 : index
    %c0_8 = arith.constant 0 : index
    %5 = vector.load %arg7[%c18, %c0_7, %c0_8] : memref<20x20x1xf32, #tpu.memory_space<vmem>>, vector<2x20x1xf32>
    tpu.vector_store %arg7[%c18, %c0_7, %c0_8], %2 {strides = array<i32>} : memref<20x20x1xf32, #tpu.memory_space<vmem>>, vector<2x20x1xf32>,
    %c2 = arith.constant 2 : index
    %c0_9 = arith.constant 0 : index
    %c0_10 = arith.constant 0 : index
    %6 = vector.load %arg7[%c2, %c0_9, %c0_10] : memref<20x20x1xf32, #tpu.memory_space<vmem>>, vector<16x2x1xf32>
    tpu.vector_store %arg7[%c2, %c0_9, %c0_10], %3 {strides = array<i32>} : memref<20x20x1xf32, #tpu.memory_space<vmem>>, vector<16x2x1xf32>,
    %c2_11 = arith.constant 2 : index
    %c18_12 = arith.constant 18 : index
    %c0_13 = arith.constant 0 : index
    %7 = vector.load %arg7[%c2_11, %c18_12, %c0_13] : memref<20x20x1xf32, #tpu.memory_space<vmem>>, vector<16x2x1xf32>
    tpu.vector_store %arg7[%c2_11, %c18_12, %c0_13], %3 {strides = array<i32>} : memref<20x20x1xf32, #tpu.memory_space<vmem>>, vector<16x2x1xf32>,
    %c2_14 = arith.constant 2 : index
    %c2_15 = arith.constant 2 : index
    %c0_16 = arith.constant 0 : index
    %8 = vector.load %arg7[%c2_14, %c2_15, %c0_16] : memref<20x20x1xf32, #tpu.memory_space<vmem>>, vector<16x16x1xf32>
    tpu.vector_store %arg7[%c2_14, %c2_15, %c0_16], %1 {strides = array<i32>} : memref<20x20x1xf32, #tpu.memory_space<vmem>>, vector<16x16x1xf32>,
    %c0_17 = arith.constant 0 : index
    %c0_18 = arith.constant 0 : index
    %c0_19 = arith.constant 0 : index
    %9 = vector.load %arg7[%c0_17, %c0_18, %c0_19] : memref<20x20x1xf32, #tpu.memory_space<vmem>>, vector<16x16x1xf32>
    %c0_20 = arith.constant 0 : index
    %c1 = arith.constant 1 : index
    %c0_21 = arith.constant 0 : index
    %10 = vector.load %arg7[%c0_20, %c1, %c0_21] : memref<20x20x1xf32, #tpu.memory_space<vmem>>, vector<16x16x1xf32>
    %c0_22 = arith.constant 0 : index
    %c2_23 = arith.constant 2 : index
    %c0_24 = arith.constant 0 : index
    %11 = vector.load %arg7[%c0_22, %c2_23, %c0_24] : memref<20x20x1xf32, #tpu.memory_space<vmem>>, vector<16x16x1xf32>
    %c0_25 = arith.constant 0 : index
    %c3 = arith.constant 3 : index
    %c0_26 = arith.constant 0 : index
    %12 = vector.load %arg7[%c0_25, %c3, %c0_26] : memref<20x20x1xf32, #tpu.memory_space<vmem>>, vector<16x16x1xf32>
    %c0_27 = arith.constant 0 : index
    %c4 = arith.constant 4 : index
    %c0_28 = arith.constant 0 : index
    %13 = vector.load %arg7[%c0_27, %c4, %c0_28] : memref<20x20x1xf32, #tpu.memory_space<vmem>>, vector<16x16x1xf32>
    %14 = tpu.concatenate %9, %10, %11, %12, %13 in 2 : vector<16x16x1xf32>, vector<16x16x1xf32>, vector<16x16x1xf32>, vector<16x16x1xf32>, vector<16x16x1xf32> -> vector<16x16x5xf32>
    %c1_29 = arith.constant 1 : index
    %c0_30 = arith.constant 0 : index
    %c0_31 = arith.constant 0 : index
    %15 = vector.load %arg7[%c1_29, %c0_30, %c0_31] : memref<20x20x1xf32, #tpu.memory_space<vmem>>, vector<16x16x1xf32>
    %c1_32 = arith.constant 1 : index
    %c1_33 = arith.constant 1 : index
    %c0_34 = arith.constant 0 : index
    %16 = vector.load %arg7[%c1_32, %c1_33, %c0_34] : memref<20x20x1xf32, #tpu.memory_space<vmem>>, vector<16x16x1xf32>
    %c1_35 = arith.constant 1 : index
    %c2_36 = arith.constant 2 : index
    %c0_37 = arith.constant 0 : index
    %17 = vector.load %arg7[%c1_35, %c2_36, %c0_37] : memref<20x20x1xf32, #tpu.memory_space<vmem>>, vector<16x16x1xf32>
    %c1_38 = arith.constant 1 : index
    %c3_39 = arith.constant 3 : index
    %c0_40 = arith.constant 0 : index
    %18 = vector.load %arg7[%c1_38, %c3_39, %c0_40] : memref<20x20x1xf32, #tpu.memory_space<vmem>>, vector<16x16x1xf32>
    %c1_41 = arith.constant 1 : index
    %c4_42 = arith.constant 4 : index
    %c0_43 = arith.constant 0 : index
    %19 = vector.load %arg7[%c1_41, %c4_42, %c0_43] : memref<20x20x1xf32, #tpu.memory_space<vmem>>, vector<16x16x1xf32>
    %20 = tpu.concatenate %15, %16, %17, %18, %19 in 2 : vector<16x16x1xf32>, vector<16x16x1xf32>, vector<16x16x1xf32>, vector<16x16x1xf32>, vector<16x16x1xf32> -> vector<16x16x5xf32>
    %c2_44 = arith.constant 2 : index
    %c0_45 = arith.constant 0 : index
    %c0_46 = arith.constant 0 : index
    %21 = vector.load %arg7[%c2_44, %c0_45, %c0_46] : memref<20x20x1xf32, #tpu.memory_space<vmem>>, vector<16x16x1xf32>
    %c2_47 = arith.constant 2 : index
    %c1_48 = arith.constant 1 : index
    %c0_49 = arith.constant 0 : index
    %22 = vector.load %arg7[%c2_47, %c1_48, %c0_49] : memref<20x20x1xf32, #tpu.memory_space<vmem>>, vector<16x16x1xf32>
    %c2_50 = arith.constant 2 : index
    %c2_51 = arith.constant 2 : index
    %c0_52 = arith.constant 0 : index
    %23 = vector.load %arg7[%c2_50, %c2_51, %c0_52] : memref<20x20x1xf32, #tpu.memory_space<vmem>>, vector<16x16x1xf32>
    %c2_53 = arith.constant 2 : index
    %c3_54 = arith.constant 3 : index
    %c0_55 = arith.constant 0 : index
    %24 = vector.load %arg7[%c2_53, %c3_54, %c0_55] : memref<20x20x1xf32, #tpu.memory_space<vmem>>, vector<16x16x1xf32>
    %c2_56 = arith.constant 2 : index
    %c4_57 = arith.constant 4 : index
    %c0_58 = arith.constant 0 : index
    %25 = vector.load %arg7[%c2_56, %c4_57, %c0_58] : memref<20x20x1xf32, #tpu.memory_space<vmem>>, vector<16x16x1xf32>
    %26 = tpu.concatenate %21, %22, %23, %24, %25 in 2 : vector<16x16x1xf32>, vector<16x16x1xf32>, vector<16x16x1xf32>, vector<16x16x1xf32>, vector<16x16x1xf32> -> vector<16x16x5xf32>
    %c3_59 = arith.constant 3 : index
    %c0_60 = arith.constant 0 : index
    %c0_61 = arith.constant 0 : index
    %27 = vector.load %arg7[%c3_59, %c0_60, %c0_61] : memref<20x20x1xf32, #tpu.memory_space<vmem>>, vector<16x16x1xf32>
    %c3_62 = arith.constant 3 : index
    %c1_63 = arith.constant 1 : index
    %c0_64 = arith.constant 0 : index
    %28 = vector.load %arg7[%c3_62, %c1_63, %c0_64] : memref<20x20x1xf32, #tpu.memory_space<vmem>>, vector<16x16x1xf32>
    %c3_65 = arith.constant 3 : index
    %c2_66 = arith.constant 2 : index
    %c0_67 = arith.constant 0 : index
    %29 = vector.load %arg7[%c3_65, %c2_66, %c0_67] : memref<20x20x1xf32, #tpu.memory_space<vmem>>, vector<16x16x1xf32>
    %c3_68 = arith.constant 3 : index
    %c3_69 = arith.constant 3 : index
    %c0_70 = arith.constant 0 : index
    %30 = vector.load %arg7[%c3_68, %c3_69, %c0_70] : memref<20x20x1xf32, #tpu.memory_space<vmem>>, vector<16x16x1xf32>
    %c3_71 = arith.constant 3 : index
    %c4_72 = arith.constant 4 : index
    %c0_73 = arith.constant 0 : index
    %31 = vector.load %arg7[%c3_71, %c4_72, %c0_73] : memref<20x20x1xf32, #tpu.memory_space<vmem>>, vector<16x16x1xf32>
    %32 = tpu.concatenate %27, %28, %29, %30, %31 in 2 : vector<16x16x1xf32>, vector<16x16x1xf32>, vector<16x16x1xf32>, vector<16x16x1xf32>, vector<16x16x1xf32> -> vector<16x16x5xf32>
    %c4_74 = arith.constant 4 : index
    %c0_75 = arith.constant 0 : index
    %c0_76 = arith.constant 0 : index
    %33 = vector.load %arg7[%c4_74, %c0_75, %c0_76] : memref<20x20x1xf32, #tpu.memory_space<vmem>>, vector<16x16x1xf32>
    %c4_77 = arith.constant 4 : index
    %c1_78 = arith.constant 1 : index
    %c0_79 = arith.constant 0 : index
    %34 = vector.load %arg7[%c4_77, %c1_78, %c0_79] : memref<20x20x1xf32, #tpu.memory_space<vmem>>, vector<16x16x1xf32>
    %c4_80 = arith.constant 4 : index
    %c2_81 = arith.constant 2 : index
    %c0_82 = arith.constant 0 : index
    %35 = vector.load %arg7[%c4_80, %c2_81, %c0_82] : memref<20x20x1xf32, #tpu.memory_space<vmem>>, vector<16x16x1xf32>
    %c4_83 = arith.constant 4 : index
    %c3_84 = arith.constant 3 : index
    %c0_85 = arith.constant 0 : index
    %36 = vector.load %arg7[%c4_83, %c3_84, %c0_85] : memref<20x20x1xf32, #tpu.memory_space<vmem>>, vector<16x16x1xf32>
    %c4_86 = arith.constant 4 : index
    %c4_87 = arith.constant 4 : index
    %c0_88 = arith.constant 0 : index
    %37 = vector.load %arg7[%c4_86, %c4_87, %c0_88] : memref<20x20x1xf32, #tpu.memory_space<vmem>>, vector<16x16x1xf32>
    %38 = tpu.concatenate %33, %34, %35, %36, %37 in 2 : vector<16x16x1xf32>, vector<16x16x1xf32>, vector<16x16x1xf32>, vector<16x16x1xf32>, vector<16x16x1xf32> -> vector<16x16x5xf32>
    %39 = tpu.concatenate %14, %20, %26, %32, %38 in 2 : vector<16x16x5xf32>, vector<16x16x5xf32>, vector<16x16x5xf32>, vector<16x16x5xf32>, vector<16x16x5xf32> -> vector<16x16x25xf32>
    %40 = vector.shape_cast %39 : vector<16x16x25xf32> to vector<256x25xf32>
    %41 = arith.truncf %40 : vector<256x25xf32> to vector<256x25xbf16>
    %c0_89 = arith.constant 0 : index
    %c0_90 = arith.constant 0 : index
    %42 = vector.load %arg2[%c0_89, %c0_90] : memref<25x32xbf16, #tpu.memory_space<vmem>>, vector<25x32xbf16>
    %cst_91 = arith.constant dense<0.000000e+00> : vector<256x32xf32>
    %43 = tpu.matmul %41, %42, %cst_91 {dimension_numbers = #tpu.dot_dimension_numbers<[1], [0], [0], [1], [0, 0, 1, 1], [], []>} : vector<256x25xbf16>, vector<25x32xbf16>, vector<256x32xf32> -> vector<256x32xf32>
    %c0_92 = arith.constant 0 : index
    %c0_93 = arith.constant 0 : index
    %44 = vector.load %arg3[%c0_92, %c0_93] : memref<1x32xf32, #tpu.memory_space<vmem>>, vector<1x32xf32>
    %45 = vector.broadcast %44 : vector<1x32xf32> to vector<256x32xf32>
    %46 = arith.addf %43, %45 : vector<256x32xf32>
    %cst_94 = arith.constant 0.000000e+00 : f32
    %47 = vector.broadcast %cst_94 : f32 to vector<256x32xf32>
    %48 = arith.maximumf %46, %47 : vector<256x32xf32>
    %49 = vector.shape_cast %48 : vector<256x32xf32> to vector<8x2x16x32xf32>
    %50 = vector.extract_strided_slice %49 {offsets = [0, 0, 0, 0], sizes = [8, 1, 16, 32], strides = [1, 1, 1, 1]} : vector<8x2x16x32xf32> to vector<8x1x16x32xf32>
    %51 = vector.shape_cast %50 : vector<8x1x16x32xf32> to vector<8x16x32xf32>
    %52 = vector.extract_strided_slice %49 {offsets = [0, 1, 0, 0], sizes = [8, 1, 16, 32], strides = [1, 1, 1, 1]} : vector<8x2x16x32xf32> to vector<8x1x16x32xf32>
    %53 = vector.shape_cast %52 : vector<8x1x16x32xf32> to vector<8x16x32xf32>
    %54 = arith.maximumf %51, %53 : vector<8x16x32xf32>
    %c0_95 = arith.constant 0 : index
    %c0_96 = arith.constant 0 : index
    %c0_97 = arith.constant 0 : index
    %55 = vector.load %arg8[%c0_95, %c0_96, %c0_97] : memref<8x16x32xf32, #tpu.memory_space<vmem>>, vector<8x16x32xf32>
    tpu.vector_store %arg8[%c0_95, %c0_96, %c0_97], %54 {strides = array<i32>} : memref<8x16x32xf32, #tpu.memory_space<vmem>>, vector<8x16x32xf32>,
    %c0_98 = arith.constant 0 : index
    %c0_99 = arith.constant 0 : index
    %c0_100 = arith.constant 0 : index
    %56 = tpu.strided_load %arg8[%c0_98, %c0_99, %c0_100] {strides = array<i32: 1, 2, 1>} : memref<8x16x32xf32, #tpu.memory_space<vmem>>, vector<8x8x32xf32>
    %c0_101 = arith.constant 0 : index
    %c1_102 = arith.constant 1 : index
    %c0_103 = arith.constant 0 : index
    %57 = tpu.strided_load %arg8[%c0_101, %c1_102, %c0_103] {strides = array<i32: 1, 2, 1>} : memref<8x16x32xf32, #tpu.memory_space<vmem>>, vector<8x8x32xf32>
    %58 = arith.maximumf %56, %57 : vector<8x8x32xf32>
    %cst_104 = arith.constant 0.000000e+00 : f32
    %59 = vector.broadcast %cst_104 : f32 to vector<2x12x32xf32>
    %cst_105 = arith.constant 0.000000e+00 : f32
    %60 = vector.broadcast %cst_105 : f32 to vector<8x2x32xf32>
    %c0_106 = arith.constant 0 : index
    %c0_107 = arith.constant 0 : index
    %c0_108 = arith.constant 0 : index
    %61 = vector.load %arg9[%c0_106, %c0_107, %c0_108] : memref<12x12x32xf32, #tpu.memory_space<vmem>>, vector<2x12x32xf32>
    tpu.vector_store %arg9[%c0_106, %c0_107, %c0_108], %59 {strides = array<i32>} : memref<12x12x32xf32, #tpu.memory_space<vmem>>, vector<2x12x32xf32>,
    %c10 = arith.constant 10 : index
    %c0_109 = arith.constant 0 : index
    %c0_110 = arith.constant 0 : index
    %62 = vector.load %arg9[%c10, %c0_109, %c0_110] : memref<12x12x32xf32, #tpu.memory_space<vmem>>, vector<2x12x32xf32>
    tpu.vector_store %arg9[%c10, %c0_109, %c0_110], %59 {strides = array<i32>} : memref<12x12x32xf32, #tpu.memory_space<vmem>>, vector<2x12x32xf32>,
    %c2_111 = arith.constant 2 : index
    %c0_112 = arith.constant 0 : index
    %c0_113 = arith.constant 0 : index
    %63 = vector.load %arg9[%c2_111, %c0_112, %c0_113] : memref<12x12x32xf32, #tpu.memory_space<vmem>>, vector<8x2x32xf32>
    tpu.vector_store %arg9[%c2_111, %c0_112, %c0_113], %60 {strides = array<i32>} : memref<12x12x32xf32, #tpu.memory_space<vmem>>, vector<8x2x32xf32>,
    %c2_114 = arith.constant 2 : index
    %c10_115 = arith.constant 10 : index
    %c0_116 = arith.constant 0 : index
    %64 = vector.load %arg9[%c2_114, %c10_115, %c0_116] : memref<12x12x32xf32, #tpu.memory_space<vmem>>, vector<8x2x32xf32>
    tpu.vector_store %arg9[%c2_114, %c10_115, %c0_116], %60 {strides = array<i32>} : memref<12x12x32xf32, #tpu.memory_space<vmem>>, vector<8x2x32xf32>,
    %c2_117 = arith.constant 2 : index
    %c2_118 = arith.constant 2 : index
    %c0_119 = arith.constant 0 : index
    %65 = vector.load %arg9[%c2_117, %c2_118, %c0_119] : memref<12x12x32xf32, #tpu.memory_space<vmem>>, vector<8x8x32xf32>
    tpu.vector_store %arg9[%c2_117, %c2_118, %c0_119], %58 {strides = array<i32>} : memref<12x12x32xf32, #tpu.memory_space<vmem>>, vector<8x8x32xf32>,
    %c0_120 = arith.constant 0 : index
    %c0_121 = arith.constant 0 : index
    %c0_122 = arith.constant 0 : index
    %66 = vector.load %arg9[%c0_120, %c0_121, %c0_122] : memref<12x12x32xf32, #tpu.memory_space<vmem>>, vector<8x8x32xf32>
    %c0_123 = arith.constant 0 : index
    %c1_124 = arith.constant 1 : index
    %c0_125 = arith.constant 0 : index
    %67 = vector.load %arg9[%c0_123, %c1_124, %c0_125] : memref<12x12x32xf32, #tpu.memory_space<vmem>>, vector<8x8x32xf32>
    %c0_126 = arith.constant 0 : index
    %c2_127 = arith.constant 2 : index
    %c0_128 = arith.constant 0 : index
    %68 = vector.load %arg9[%c0_126, %c2_127, %c0_128] : memref<12x12x32xf32, #tpu.memory_space<vmem>>, vector<8x8x32xf32>
    %c0_129 = arith.constant 0 : index
    %c3_130 = arith.constant 3 : index
    %c0_131 = arith.constant 0 : index
    %69 = vector.load %arg9[%c0_129, %c3_130, %c0_131] : memref<12x12x32xf32, #tpu.memory_space<vmem>>, vector<8x8x32xf32>
    %c0_132 = arith.constant 0 : index
    %c4_133 = arith.constant 4 : index
    %c0_134 = arith.constant 0 : index
    %70 = vector.load %arg9[%c0_132, %c4_133, %c0_134] : memref<12x12x32xf32, #tpu.memory_space<vmem>>, vector<8x8x32xf32>
    %71 = tpu.concatenate %66, %67, %68, %69, %70 in 2 : vector<8x8x32xf32>, vector<8x8x32xf32>, vector<8x8x32xf32>, vector<8x8x32xf32>, vector<8x8x32xf32> -> vector<8x8x160xf32>
    %c1_135 = arith.constant 1 : index
    %c0_136 = arith.constant 0 : index
    %c0_137 = arith.constant 0 : index
    %72 = vector.load %arg9[%c1_135, %c0_136, %c0_137] : memref<12x12x32xf32, #tpu.memory_space<vmem>>, vector<8x8x32xf32>
    %c1_138 = arith.constant 1 : index
    %c1_139 = arith.constant 1 : index
    %c0_140 = arith.constant 0 : index
    %73 = vector.load %arg9[%c1_138, %c1_139, %c0_140] : memref<12x12x32xf32, #tpu.memory_space<vmem>>, vector<8x8x32xf32>
    %c1_141 = arith.constant 1 : index
    %c2_142 = arith.constant 2 : index
    %c0_143 = arith.constant 0 : index
    %74 = vector.load %arg9[%c1_141, %c2_142, %c0_143] : memref<12x12x32xf32, #tpu.memory_space<vmem>>, vector<8x8x32xf32>
    %c1_144 = arith.constant 1 : index
    %c3_145 = arith.constant 3 : index
    %c0_146 = arith.constant 0 : index
    %75 = vector.load %arg9[%c1_144, %c3_145, %c0_146] : memref<12x12x32xf32, #tpu.memory_space<vmem>>, vector<8x8x32xf32>
    %c1_147 = arith.constant 1 : index
    %c4_148 = arith.constant 4 : index
    %c0_149 = arith.constant 0 : index
    %76 = vector.load %arg9[%c1_147, %c4_148, %c0_149] : memref<12x12x32xf32, #tpu.memory_space<vmem>>, vector<8x8x32xf32>
    %77 = tpu.concatenate %72, %73, %74, %75, %76 in 2 : vector<8x8x32xf32>, vector<8x8x32xf32>, vector<8x8x32xf32>, vector<8x8x32xf32>, vector<8x8x32xf32> -> vector<8x8x160xf32>
    %c2_150 = arith.constant 2 : index
    %c0_151 = arith.constant 0 : index
    %c0_152 = arith.constant 0 : index
    %78 = vector.load %arg9[%c2_150, %c0_151, %c0_152] : memref<12x12x32xf32, #tpu.memory_space<vmem>>, vector<8x8x32xf32>
    %c2_153 = arith.constant 2 : index
    %c1_154 = arith.constant 1 : index
    %c0_155 = arith.constant 0 : index
    %79 = vector.load %arg9[%c2_153, %c1_154, %c0_155] : memref<12x12x32xf32, #tpu.memory_space<vmem>>, vector<8x8x32xf32>
    %c2_156 = arith.constant 2 : index
    %c2_157 = arith.constant 2 : index
    %c0_158 = arith.constant 0 : index
    %80 = vector.load %arg9[%c2_156, %c2_157, %c0_158] : memref<12x12x32xf32, #tpu.memory_space<vmem>>, vector<8x8x32xf32>
    %c2_159 = arith.constant 2 : index
    %c3_160 = arith.constant 3 : index
    %c0_161 = arith.constant 0 : index
    %81 = vector.load %arg9[%c2_159, %c3_160, %c0_161] : memref<12x12x32xf32, #tpu.memory_space<vmem>>, vector<8x8x32xf32>
    %c2_162 = arith.constant 2 : index
    %c4_163 = arith.constant 4 : index
    %c0_164 = arith.constant 0 : index
    %82 = vector.load %arg9[%c2_162, %c4_163, %c0_164] : memref<12x12x32xf32, #tpu.memory_space<vmem>>, vector<8x8x32xf32>
    %83 = tpu.concatenate %78, %79, %80, %81, %82 in 2 : vector<8x8x32xf32>, vector<8x8x32xf32>, vector<8x8x32xf32>, vector<8x8x32xf32>, vector<8x8x32xf32> -> vector<8x8x160xf32>
    %c3_165 = arith.constant 3 : index
    %c0_166 = arith.constant 0 : index
    %c0_167 = arith.constant 0 : index
    %84 = vector.load %arg9[%c3_165, %c0_166, %c0_167] : memref<12x12x32xf32, #tpu.memory_space<vmem>>, vector<8x8x32xf32>
    %c3_168 = arith.constant 3 : index
    %c1_169 = arith.constant 1 : index
    %c0_170 = arith.constant 0 : index
    %85 = vector.load %arg9[%c3_168, %c1_169, %c0_170] : memref<12x12x32xf32, #tpu.memory_space<vmem>>, vector<8x8x32xf32>
    %c3_171 = arith.constant 3 : index
    %c2_172 = arith.constant 2 : index
    %c0_173 = arith.constant 0 : index
    %86 = vector.load %arg9[%c3_171, %c2_172, %c0_173] : memref<12x12x32xf32, #tpu.memory_space<vmem>>, vector<8x8x32xf32>
    %c3_174 = arith.constant 3 : index
    %c3_175 = arith.constant 3 : index
    %c0_176 = arith.constant 0 : index
    %87 = vector.load %arg9[%c3_174, %c3_175, %c0_176] : memref<12x12x32xf32, #tpu.memory_space<vmem>>, vector<8x8x32xf32>
    %c3_177 = arith.constant 3 : index
    %c4_178 = arith.constant 4 : index
    %c0_179 = arith.constant 0 : index
    %88 = vector.load %arg9[%c3_177, %c4_178, %c0_179] : memref<12x12x32xf32, #tpu.memory_space<vmem>>, vector<8x8x32xf32>
    %89 = tpu.concatenate %84, %85, %86, %87, %88 in 2 : vector<8x8x32xf32>, vector<8x8x32xf32>, vector<8x8x32xf32>, vector<8x8x32xf32>, vector<8x8x32xf32> -> vector<8x8x160xf32>
    %c4_180 = arith.constant 4 : index
    %c0_181 = arith.constant 0 : index
    %c0_182 = arith.constant 0 : index
    %90 = vector.load %arg9[%c4_180, %c0_181, %c0_182] : memref<12x12x32xf32, #tpu.memory_space<vmem>>, vector<8x8x32xf32>
    %c4_183 = arith.constant 4 : index
    %c1_184 = arith.constant 1 : index
    %c0_185 = arith.constant 0 : index
    %91 = vector.load %arg9[%c4_183, %c1_184, %c0_185] : memref<12x12x32xf32, #tpu.memory_space<vmem>>, vector<8x8x32xf32>
    %c4_186 = arith.constant 4 : index
    %c2_187 = arith.constant 2 : index
    %c0_188 = arith.constant 0 : index
    %92 = vector.load %arg9[%c4_186, %c2_187, %c0_188] : memref<12x12x32xf32, #tpu.memory_space<vmem>>, vector<8x8x32xf32>
    %c4_189 = arith.constant 4 : index
    %c3_190 = arith.constant 3 : index
    %c0_191 = arith.constant 0 : index
    %93 = vector.load %arg9[%c4_189, %c3_190, %c0_191] : memref<12x12x32xf32, #tpu.memory_space<vmem>>, vector<8x8x32xf32>
    %c4_192 = arith.constant 4 : index
    %c4_193 = arith.constant 4 : index
    %c0_194 = arith.constant 0 : index
    %94 = vector.load %arg9[%c4_192, %c4_193, %c0_194] : memref<12x12x32xf32, #tpu.memory_space<vmem>>, vector<8x8x32xf32>
    %95 = tpu.concatenate %90, %91, %92, %93, %94 in 2 : vector<8x8x32xf32>, vector<8x8x32xf32>, vector<8x8x32xf32>, vector<8x8x32xf32>, vector<8x8x32xf32> -> vector<8x8x160xf32>
    %96 = tpu.concatenate %71, %77, %83, %89, %95 in 2 : vector<8x8x160xf32>, vector<8x8x160xf32>, vector<8x8x160xf32>, vector<8x8x160xf32>, vector<8x8x160xf32> -> vector<8x8x800xf32>
    %97 = vector.shape_cast %96 : vector<8x8x800xf32> to vector<64x800xf32>
    %98 = arith.truncf %97 : vector<64x800xf32> to vector<64x800xbf16>
    %c0_195 = arith.constant 0 : index
    %c0_196 = arith.constant 0 : index
    %99 = vector.load %arg4[%c0_195, %c0_196] : memref<800x64xbf16, #tpu.memory_space<vmem>>, vector<800x64xbf16>
    %cst_197 = arith.constant dense<0.000000e+00> : vector<64x64xf32>
    %100 = tpu.matmul %98, %99, %cst_197 {dimension_numbers = #tpu.dot_dimension_numbers<[1], [0], [0], [1], [0, 0, 1, 1], [], []>} : vector<64x800xbf16>, vector<800x64xbf16>, vector<64x64xf32> -> vector<64x64xf32>
    %c0_198 = arith.constant 0 : index
    %c0_199 = arith.constant 0 : index
    %101 = vector.load %arg5[%c0_198, %c0_199] : memref<1x64xf32, #tpu.memory_space<vmem>>, vector<1x64xf32>
    %102 = vector.broadcast %101 : vector<1x64xf32> to vector<64x64xf32>
    %103 = arith.addf %100, %102 : vector<64x64xf32>
    %cst_200 = arith.constant 0.000000e+00 : f32
    %104 = vector.broadcast %cst_200 : f32 to vector<64x64xf32>
    %105 = arith.maximumf %103, %104 : vector<64x64xf32>
    %106 = vector.shape_cast %105 : vector<64x64xf32> to vector<4x2x8x64xf32>
    %107 = vector.extract_strided_slice %106 {offsets = [0, 0, 0, 0], sizes = [4, 1, 8, 64], strides = [1, 1, 1, 1]} : vector<4x2x8x64xf32> to vector<4x1x8x64xf32>
    %108 = vector.shape_cast %107 : vector<4x1x8x64xf32> to vector<4x8x64xf32>
    %109 = vector.extract_strided_slice %106 {offsets = [0, 1, 0, 0], sizes = [4, 1, 8, 64], strides = [1, 1, 1, 1]} : vector<4x2x8x64xf32> to vector<4x1x8x64xf32>
    %110 = vector.shape_cast %109 : vector<4x1x8x64xf32> to vector<4x8x64xf32>
    %111 = arith.maximumf %108, %110 : vector<4x8x64xf32>
    %c0_201 = arith.constant 0 : index
    %c0_202 = arith.constant 0 : index
    %c0_203 = arith.constant 0 : index
    %112 = vector.load %arg10[%c0_201, %c0_202, %c0_203] : memref<4x8x64xf32, #tpu.memory_space<vmem>>, vector<4x8x64xf32>
    tpu.vector_store %arg10[%c0_201, %c0_202, %c0_203], %111 {strides = array<i32>} : memref<4x8x64xf32, #tpu.memory_space<vmem>>, vector<4x8x64xf32>,
    %c0_204 = arith.constant 0 : index
    %c0_205 = arith.constant 0 : index
    %c0_206 = arith.constant 0 : index
    %113 = tpu.strided_load %arg10[%c0_204, %c0_205, %c0_206] {strides = array<i32: 1, 2, 1>} : memref<4x8x64xf32, #tpu.memory_space<vmem>>, vector<4x4x64xf32>
    %c0_207 = arith.constant 0 : index
    %c1_208 = arith.constant 1 : index
    %c0_209 = arith.constant 0 : index
    %114 = tpu.strided_load %arg10[%c0_207, %c1_208, %c0_209] {strides = array<i32: 1, 2, 1>} : memref<4x8x64xf32, #tpu.memory_space<vmem>>, vector<4x4x64xf32>
    %115 = arith.maximumf %113, %114 : vector<4x4x64xf32>
    %116 = vector.extract_strided_slice %115 {offsets = [0, 0, 0], sizes = [4, 1, 64], strides = [1, 1, 1]} : vector<4x4x64xf32> to vector<4x1x64xf32>
    %117 = vector.shape_cast %116 : vector<4x1x64xf32> to vector<4x64xf32>
    %c0_210 = arith.constant 0 : index
    %c0_211 = arith.constant 0 : index
    %c0_212 = arith.constant 0 : index
    %118 = vector.load %arg6[%c0_210, %c0_211, %c0_212] : memref<1x4x256xf32, #tpu.memory_space<vmem>>, vector<1x4x64xf32>
    %119 = vector.shape_cast %118 : vector<1x4x64xf32> to vector<4x64xf32>
    %120 = vector.shape_cast %117 : vector<4x64xf32> to vector<1x4x64xf32>
    tpu.vector_store %arg6[%c0_210, %c0_211, %c0_212], %120 {strides = array<i32>} : memref<1x4x256xf32, #tpu.memory_space<vmem>>, vector<1x4x64xf32>,
    %121 = vector.extract_strided_slice %115 {offsets = [0, 1, 0], sizes = [4, 1, 64], strides = [1, 1, 1]} : vector<4x4x64xf32> to vector<4x1x64xf32>
    %122 = vector.shape_cast %121 : vector<4x1x64xf32> to vector<4x64xf32>
    %c0_213 = arith.constant 0 : index
    %c0_214 = arith.constant 0 : index
    %c64 = arith.constant 64 : index
    %123 = vector.load %arg6[%c0_213, %c0_214, %c64] : memref<1x4x256xf32, #tpu.memory_space<vmem>>, vector<1x4x64xf32>
    %124 = vector.shape_cast %123 : vector<1x4x64xf32> to vector<4x64xf32>
    %125 = vector.shape_cast %122 : vector<4x64xf32> to vector<1x4x64xf32>
    tpu.vector_store %arg6[%c0_213, %c0_214, %c64], %125 {strides = array<i32>} : memref<1x4x256xf32, #tpu.memory_space<vmem>>, vector<1x4x64xf32>,
    %126 = vector.extract_strided_slice %115 {offsets = [0, 2, 0], sizes = [4, 1, 64], strides = [1, 1, 1]} : vector<4x4x64xf32> to vector<4x1x64xf32>
    %127 = vector.shape_cast %126 : vector<4x1x64xf32> to vector<4x64xf32>
    %c0_215 = arith.constant 0 : index
    %c0_216 = arith.constant 0 : index
    %c128 = arith.constant 128 : index
    %128 = vector.load %arg6[%c0_215, %c0_216, %c128] : memref<1x4x256xf32, #tpu.memory_space<vmem>>, vector<1x4x64xf32>
    %129 = vector.shape_cast %128 : vector<1x4x64xf32> to vector<4x64xf32>
    %130 = vector.shape_cast %127 : vector<4x64xf32> to vector<1x4x64xf32>
    tpu.vector_store %arg6[%c0_215, %c0_216, %c128], %130 {strides = array<i32>} : memref<1x4x256xf32, #tpu.memory_space<vmem>>, vector<1x4x64xf32>,
    %131 = vector.extract_strided_slice %115 {offsets = [0, 3, 0], sizes = [4, 1, 64], strides = [1, 1, 1]} : vector<4x4x64xf32> to vector<4x1x64xf32>
    %132 = vector.shape_cast %131 : vector<4x1x64xf32> to vector<4x64xf32>
    %c0_217 = arith.constant 0 : index
    %c0_218 = arith.constant 0 : index
    %c192 = arith.constant 192 : index
    %133 = vector.load %arg6[%c0_217, %c0_218, %c192] : memref<1x4x256xf32, #tpu.memory_space<vmem>>, vector<1x4x64xf32>
    %134 = vector.shape_cast %133 : vector<1x4x64xf32> to vector<4x64xf32>
    %135 = vector.shape_cast %132 : vector<4x64xf32> to vector<1x4x64xf32>
    tpu.vector_store %arg6[%c0_217, %c0_218, %c192], %135 {strides = array<i32>} : memref<1x4x256xf32, #tpu.memory_space<vmem>>, vector<1x4x64xf32>,
    return
  }
  func.func @transform_0(%arg0: i32) -> (i32, i32, i32, i32) {
    %c0_i32 = arith.constant 0 : i32
    %c0_i32_0 = arith.constant 0 : i32
    %c0_i32_1 = arith.constant 0 : i32
    %c0_i32_2 = arith.constant 0 : i32
    return %arg0, %c0_i32, %c0_i32_0, %c0_i32_1 : i32, i32, i32, i32
  }
  func.func @transform_1(%arg0: i32) -> (i32, i32) {
    %c0_i32 = arith.constant 0 : i32
    %c0_i32_0 = arith.constant 0 : i32
    %c0_i32_1 = arith.constant 0 : i32
    return %c0_i32, %c0_i32_0 : i32, i32
  }
  func.func @transform_2(%arg0: i32) -> (i32, i32) {
    %c0_i32 = arith.constant 0 : i32
    %c0_i32_0 = arith.constant 0 : i32
    %c0_i32_1 = arith.constant 0 : i32
    return %c0_i32, %c0_i32_0 : i32, i32
  }
  func.func @transform_3(%arg0: i32) -> (i32, i32) {
    %c0_i32 = arith.constant 0 : i32
    %c0_i32_0 = arith.constant 0 : i32
    %c0_i32_1 = arith.constant 0 : i32
    return %c0_i32, %c0_i32_0 : i32, i32
  }
  func.func @transform_4(%arg0: i32) -> (i32, i32) {
    %c0_i32 = arith.constant 0 : i32
    %c0_i32_0 = arith.constant 0 : i32
    %c0_i32_1 = arith.constant 0 : i32
    return %c0_i32, %c0_i32_0 : i32, i32
  }
  func.func @transform_5(%arg0: i32) -> (i32, i32, i32) {
    %c0_i32 = arith.constant 0 : i32
    %c0_i32_0 = arith.constant 0 : i32
    %c0_i32_1 = arith.constant 0 : i32
    return %arg0, %c0_i32, %c0_i32_0 : i32, i32, i32
  }
}

</mosaic_0001>

<bundles_post_ra>
// kernel: tpu_custom_call.1
= control target key start
LH: loop header
LB: loop body
LE: loop exit
PB: predicated region body
PF: predicated region fallthrough
CT: control target
= control target key end

     0   :  { %10 = vsyncpa [#allocation7], 0  ;;  %s14903_s0 = inlined_call_operand.vmem [shape: f32[2,16,16,1], index: 0, kind: input, shape index: {}]   ;;  %s14904_s1 = inlined_call_operand.vmem [shape: bf16[25,32], index: 1, kind: input, shape index: {}]   ;;  %s14905_s2 = inlined_call_operand.vmem [shape: f32[1,32], index: 2, kind: input, shape index: {}]   ;;  %s14906_s3 = inlined_call_operand.vmem [shape: bf16[800,64], index: 3, kind: input, shape index: {}]   ;;  %s14907_s4 = inlined_call_operand.vmem [shape: f32[1,64], index: 4, kind: input, shape index: {}]   ;;  %s14908_s5 = inlined_call_operand.hbm [shape: f32[2,4,256], index: 5, kind: output, shape index: {}]  }
   0x1   :  { %12 = vsyncpa [#allocation7 + $0x1], 0  ;;  %s9977_s18 = smov 0   ;;  %s9979_s19 = smov 0  }
   0x2   :  { %s9981_s20 = smov 0   ;;  %s9983_s21 = smov 0  }
   0x3 LB: > { %s9998_s22 = sadd.s32 4294967295, %s9932_s21   ;;  %s7170_s23 = sadd.s32 4294967294, %s9932_s21   ;;  %s9932_s21 = sphi %s9983_s21, %s15930_s21   ;;  %s9928_s20 = sphi %s9981_s20, %s15929_s20   ;;  %s9924_s19 = sphi %s9979_s19, %s15928_s19   ;;  %s9920_s18 = sphi %s9977_s18, %s15927_s18  }
   0x4   : > { %s10002_s24 = sadd.s32 1, %s9932_s21   ;;  %s135_s25 = sadd.s32 1, %s9928_s20 }
   0x5   : > { %s132_s26 = ssub.s32 %s9932_s21, %s10002_s24  ;;  %p145_p0 = scmp.ne.s32.totalorder %s9928_s20, %s9924_s19 }
   0x6   : > { %p133_p1 = scmp.eq.s32.totalorder %s132_s26, 0  ;;  %p146_p2 = scmp.eq.s32.totalorder %s9998_s22, 1 }
   0x7   : > { %p151_p3 = scmp.ne.s32.totalorder %s9924_s19, %s9920_s18  ;;  %p152_p4 = scmp.eq.s32.totalorder %s7170_s23, 1 }
   0x8   : > { %s10013_s27 = scalar_select %p133_p1, %s9928_s20, %s135_s25  }
   0x9   : > { %p10015_p5 = por %p146_p2, %p145_p0  ;;  %p10019_p6 = por %p152_p4, %p151_p3 }
   0xa   : > { %p7173_p7 = scmp.ge.s32.totalorder %s9932_s21, 1  ;;  %p190_p8 = scmp.lt.s32.totalorder %s9932_s21, 3 }
   0xc   : > { %p191_p9 = pnand %p7173_p7, %p190_p8 }
   0xe   : > { %194 = sbr.rel (%p191_p9) target bundleno = 2245 (0x8c5), region = 40 }
  0x13   : > { %vm256_vm0 = vcmask 7168   ;;  %vm259_vm1 = vcmask 3072   ;;  %p218_p10 = scmp.lt.s32.totalorder %s9998_s22, 1  ;;  %v14909_v0 = vmov 0.0   ;;  %vm272_vm2 = vcmask 1024   ;;  %s9935_s10 = smov 1  }
  0x14   : > { %257 = vst.msk [vmem:[#allocation2] sm:$0xff] %vm256_vm0, %v14909_v0  ;;  %s9936_s11 = smov 2   ;;  %s9937_s12 = smov 3   ;;  %vm1041_vm3 = vcmask 15360   ;;  %vm1074_vm4 = vcmask 23552   ;;  %vm1107_vm5 = vcmask 31744  }
  0x15   : > { %258 = vst.msk [vmem:[#allocation2 + $0x8] sm:$0xff] %vm256_vm0, %v14909_v0  ;;  %s219_s30 = scalar_select %p218_p10, %s9998_s22, 1  ;;  %vm4855_vm6 = vcmask 39936   ;;  %vm4888_vm7 = vcmask 80896   ;;  %vm5071_vm8 = vcmask 1043456   ;;  %vm5072_vm9 = vcmask 1044480  }
  0x16   : > { %260 = vst.msk [vmem:[#allocation2 + $0x10] sm:$0xf] %vm259_vm1, %v14909_v0  ;;  %s9938_s13 = smov 4   ;;  %s9939_s14 = smov 5   ;;  %vm4921_vm10 = vcmask 121856   ;;  %vm4954_vm11 = vcmask 162816  }
  0x17   : > { %261 = vst.msk [vmem:[#allocation2 + $0x18] sm:$0xff] %vm256_vm0, %v14909_v0  ;;  %s7410_s6 = sshll.u32 %s219_s30, 8  ;;  %s9940_s15 = smov 10   ;;  %vm5022_vm12 = vcmask 203776   ;;  %vm5215_vm13 = vcmask 261120   ;;  %vm5282_vm14 = vcmask 254976  }
  0x18   : > { %262 = vst.msk [vmem:[#allocation2 + $0x20] sm:$0xff] %vm256_vm0, %v14909_v0  ;;  %s10046_s9 = scalar_lea.vmem %s14903_s0, %s7410_s6  ;;  %s9941_s16 = smov 15   ;;  %vm5272_vm15 = vcmask 257024  }
  0x19   : > { %263 = vst.msk [vmem:[#allocation2 + $0x28] sm:$0xf] %vm259_vm1, %v14909_v0  ;;  %v228_v4 = vld [vmem:[%s10046_s9 + $0x20] sm:$0xff]  ;;  %v229_v5 = vld [vmem:[%s10046_s9 + $0x28] sm:$0xff]  ;;  %v230_v14 = vld [vmem:[%s10046_s9 + $0x30] sm:$0xff]  ;;  %s9942_s17 = smov 20  }
  0x1a   : > { %265 = vst.msk [vmem:[#allocation2 + $0x1b0] sm:$0xff] %vm256_vm0, %v14909_v0  ;;  %v224_v12 = vld [vmem:[%s10046_s9] sm:$0xff]  ;;  %v225_v13 = vld [vmem:[%s10046_s9 + $0x8] sm:$0xff]  ;;  %v231_v15 = vld [vmem:[%s10046_s9 + $0x38] sm:$0xff]  ;;  %s215_s30 = sand.u32 1, %s9924_s19  }
  0x1b   : > { %266 = vst.msk [vmem:[#allocation2 + $0x1b8] sm:$0xff] %vm256_vm0, %v14909_v0  ;;  %v226_v16 = vld [vmem:[%s10046_s9 + $0x10] sm:$0xff]  ;;  %v227_v17 = vld [vmem:[%s10046_s9 + $0x18] sm:$0xff]  ;;  %v232_v18 = vld [vmem:[%s10046_s9 + $0x40] sm:$0xff]  ;;  %s7174_s6 = sshll.u32 %s215_s30, 3 }
  0x1c   : > { %v369_v1 = vld [vmem:[#allocation2 + $0x1] sm:$0xff]  ;;  %267 = vst.msk [vmem:[#allocation2 + $0x1c0] sm:$0xf] %vm259_vm1, %v14909_v0  ;;  %v234_v23 = vld [vmem:[%s10046_s9 + $0x50] sm:$0xff]  ;;  %v235_v25 = vld [vmem:[%s10046_s9 + $0x58] sm:$0xff]  ;;  %s217_s7 = scalar_lea.vmem [#allocation6], %s7174_s6 }
  0x1d   : > { %v370_v2 = vld [vmem:[#allocation2 + $0x9] sm:$0xff]  ;;  %268 = vst.msk [vmem:[#allocation2 + $0x1c8] sm:$0xff] %vm256_vm0, %v14909_v0  ;;  %v236_v20 = vld [vmem:[%s10046_s9 + $0x60] sm:$0xff]  ;;  %v239_v30 = vld [vmem:[%s10046_s9 + $0x78] sm:$0xff] }
  0x1e   : > { %v7526_v3 = vpack.i.bf16 %v370_v2, %v369_v1  ;;  %269 = vst.msk [vmem:[#allocation2 + $0x1d0] sm:$0xff] %vm256_vm0, %v14909_v0  ;;  %v233_v19 = vld [vmem:[%s10046_s9 + $0x48] sm:$0xff]  ;;  %v238_v28 = vld [vmem:[%s10046_s9 + $0x70] sm:$0xff]  ;;  %v243_v35 = vld [vmem:[%s10046_s9 + $0x98] sm:$0xff] }
  0x1f   : > { %270 = vst.msk [vmem:[#allocation2 + $0x1d8] sm:$0xf] %vm259_vm1, %v14909_v0  ;;  %v371_v9 = vld [vmem:[#allocation2 + $0x19] sm:$0xff]  ;;  %v237_v21 = vld [vmem:[%s10046_s9 + $0x68] sm:$0xff]  ;;  %v242_v32 = vld [vmem:[%s10046_s9 + $0x90] sm:$0xff]  ;;  %vm5460_vm1 = vcmask 785408  }
  0x20   : > { %7527 = vrot.lane.b32.xlu0 %v7526_v3, %s9935_s10  ;;  %275 = vst.msk [vmem:[#allocation2 + $0x60] sm:$0x3] %vm272_vm2, %v14909_v0  ;;  %v372_v10 = vld [vmem:[#allocation2 + $0x21] sm:$0xff]  ;;  %v246_v50 = vld [vmem:[%s10046_s9 + $0xb0] sm:$0xff]  ;;  %v247_v51 = vld [vmem:[%s10046_s9 + $0xb8] sm:$0xff] }
  0x21   : > { %309 = vst.msk [vmem:[#allocation2 + $0x62] sm:$0xff] %vm256_vm0, %v228_v4  ;;  %v10086_v11 = vpack.i.bf16 %v372_v10, %v371_v9  ;;  %v240_v37 = vld [vmem:[%s10046_s9 + $0x80] sm:$0xff]  ;;  %v241_v39 = vld [vmem:[%s10046_s9 + $0x88] sm:$0xff]  ;;  %v250_v56 = vld [vmem:[%s10046_s9 + $0xd0] sm:$0xff] }
  0x22   : > { %310 = vst.msk [vmem:[#allocation2 + $0x6a] sm:$0xff] %vm256_vm0, %v229_v5  ;;  %v244_v43 = vld [vmem:[%s10046_s9 + $0xa0] sm:$0xff]  ;;  %v245_v45 = vld [vmem:[%s10046_s9 + $0xa8] sm:$0xff]  ;;  %v251_v59 = vld [vmem:[%s10046_s9 + $0xd8] sm:$0xff] }
  0x23   : > { %273 = vst.msk [vmem:[#allocation2 + $0x30] sm:$0x3] %vm272_vm2, %v14909_v0  ;;  %v248_v47 = vld [vmem:[%s10046_s9 + $0xc0] sm:$0xff]  ;;  %v249_v48 = vld [vmem:[%s10046_s9 + $0xc8] sm:$0xff] }
  0x24   : > { %274 = vst.msk [vmem:[#allocation2 + $0x48] sm:$0x3] %vm272_vm2, %v14909_v0 }
  0x25   : > { %276 = vst.msk [vmem:[#allocation2 + $0x78] sm:$0x3] %vm272_vm2, %v14909_v0 }
  0x26   : > { %277 = vst.msk [vmem:[#allocation2 + $0x90] sm:$0x3] %vm272_vm2, %v14909_v0 }
  0x27   : > { %278 = vst.msk [vmem:[#allocation2 + $0xa8] sm:$0x3] %vm272_vm2, %v14909_v0 }
  0x28   : > { %v377_v6 = vld [vmem:[#allocation2 + $0x61] sm:$0xff]  ;;  %279 = vst.msk [vmem:[#allocation2 + $0xc0] sm:$0x3] %vm272_vm2, %v14909_v0  ;;  %7532 = vrot.lane.b32.xlu0 %v10086_v11, %s9935_s10 }
  0x29   : > { %v378_v7 = vld [vmem:[#allocation2 + $0x69] sm:$0xff]  ;;  %280 = vst.msk [vmem:[#allocation2 + $0xd8] sm:$0x3] %vm272_vm2, %v14909_v0 }
  0x2a   : > { %v7546_v8 = vpack.i.bf16 %v378_v7, %v377_v6  ;;  %281 = vst.msk [vmem:[#allocation2 + $0xf0] sm:$0x3] %vm272_vm2, %v14909_v0 }
  0x2b   : > { %282 = vst.msk [vmem:[#allocation2 + $0x108] sm:$0x3] %vm272_vm2, %v14909_v0 }
  0x2c   : > { %7547 = vrot.lane.b32.xlu2 %v7546_v8, %s9935_s10  ;;  %283 = vst.msk [vmem:[#allocation2 + $0x120] sm:$0x3] %vm272_vm2, %v14909_v0 }
  0x2d   : > { %284 = vst.msk [vmem:[#allocation2 + $0x138] sm:$0x3] %vm272_vm2, %v14909_v0 }
  0x2e   : > { %285 = vst.msk [vmem:[#allocation2 + $0x150] sm:$0x3] %vm272_vm2, %v14909_v0 }
  0x2f   : > { %286 = vst.msk [vmem:[#allocation2 + $0x168] sm:$0x3] %vm272_vm2, %v14909_v0 }
  0x30   : > { %287 = vst.msk [vmem:[#allocation2 + $0x180] sm:$0x3] %vm272_vm2, %v14909_v0 }
  0x31   : > { %288 = vst.msk [vmem:[#allocation2 + $0x198] sm:$0x3] %vm272_vm2, %v14909_v0 }
  0x32   : > { %289 = vst.msk [vmem:[#allocation2 + $0x42] sm:$0x3] %vm272_vm2, %v14909_v0 }
  0x33   : > { %290 = vst.msk [vmem:[#allocation2 + $0x5a] sm:$0x3] %vm272_vm2, %v14909_v0 }
  0x34   : > { %291 = vst.msk [vmem:[#allocation2 + $0x72] sm:$0x3] %vm272_vm2, %v14909_v0 }
  0x35   : > { %292 = vst.msk [vmem:[#allocation2 + $0x8a] sm:$0x3] %vm272_vm2, %v14909_v0 }
  0x36   : > { %293 = vst.msk [vmem:[#allocation2 + $0xa2] sm:$0x3] %vm272_vm2, %v14909_v0 }
  0x37   : > { %294 = vst.msk [vmem:[#allocation2 + $0xba] sm:$0x3] %vm272_vm2, %v14909_v0 }
  0x38   : > { %295 = vst.msk [vmem:[#allocation2 + $0xd2] sm:$0x3] %vm272_vm2, %v14909_v0 }
  0x39   : > { %296 = vst.msk [vmem:[#allocation2 + $0xea] sm:$0x3] %vm272_vm2, %v14909_v0 }
  0x3a   : > { %297 = vst.msk [vmem:[#allocation2 + $0x102] sm:$0x3] %vm272_vm2, %v14909_v0 }
  0x3b   : > { %298 = vst.msk [vmem:[#allocation2 + $0x11a] sm:$0x3] %vm272_vm2, %v14909_v0 }
  0x3c   : > { %299 = vst.msk [vmem:[#allocation2 + $0x132] sm:$0x3] %vm272_vm2, %v14909_v0 }
  0x3d   : > { %300 = vst.msk [vmem:[#allocation2 + $0x14a] sm:$0x3] %vm272_vm2, %v14909_v0 }
  0x3e   : > { %301 = vst.msk [vmem:[#allocation2 + $0x162] sm:$0x3] %vm272_vm2, %v14909_v0 }
  0x3f   : > { %302 = vst.msk [vmem:[#allocation2 + $0x17a] sm:$0x3] %vm272_vm2, %v14909_v0 }
  0x40   : > { %303 = vst.msk [vmem:[#allocation2 + $0x192] sm:$0x3] %vm272_vm2, %v14909_v0 }
  0x41   : > { %304 = vst.msk [vmem:[#allocation2 + $0x1aa] sm:$0x3] %vm272_vm2, %v14909_v0  ;;  %vm7039_vm2 = vcmask 1041409  }
  0x42   : > { %305 = vst.msk [vmem:[#allocation2 + $0x32] sm:$0xff] %vm256_vm0, %v224_v12 }
  0x43   : > { %306 = vst.msk [vmem:[#allocation2 + $0x3a] sm:$0xff] %vm256_vm0, %v225_v13 }
  0x44   : > { %311 = vst.msk [vmem:[#allocation2 + $0x7a] sm:$0xff] %vm256_vm0, %v230_v14  ;;  %v403_v14 = vld [vmem:[#allocation2 + $0x1a] sm:$0xff] }
  0x45   : > { %312 = vst.msk [vmem:[#allocation2 + $0x82] sm:$0xff] %vm256_vm0, %v231_v15  ;;  %v404_v15 = vld [vmem:[#allocation2 + $0x22] sm:$0xff] }
  0x46   : > { %307 = vst.msk [vmem:[#allocation2 + $0x4a] sm:$0xff] %vm256_vm0, %v226_v16 }
  0x47   : > { %308 = vst.msk [vmem:[#allocation2 + $0x52] sm:$0xff] %vm256_vm0, %v227_v17  ;;  %v10232_v17 = vpack.i.bf16 %v404_v15, %v403_v14  ;;  %v436_v14 = vld [vmem:[#allocation2 + $0x23] sm:$0xff] }
  0x48   : > { %313 = vst.msk [vmem:[#allocation2 + $0x92] sm:$0xff] %vm256_vm0, %v232_v18 }
  0x49   : > { %v373_v22 = vld [vmem:[#allocation2 + $0x31] sm:$0xff]  ;;  %314 = vst.msk [vmem:[#allocation2 + $0x9a] sm:$0xff] %vm256_vm0, %v233_v19 }
  0x4a   : > { %v374_v24 = vld [vmem:[#allocation2 + $0x39] sm:$0xff]  ;;  %317 = vst.msk [vmem:[#allocation2 + $0xc2] sm:$0xff] %vm256_vm0, %v236_v20  ;;  %v401_v20 = vld [vmem:[#allocation2 + $0x2] sm:$0xff] }
  0x4b   : > { %v10151_v26 = vpack.i.bf16 %v374_v24, %v373_v22  ;;  %v379_v27 = vld [vmem:[#allocation2 + $0x79] sm:$0xff]  ;;  %318 = vst.msk [vmem:[#allocation2 + $0xca] sm:$0xff] %vm256_vm0, %v237_v21  ;;  %v402_v21 = vld [vmem:[#allocation2 + $0xa] sm:$0xff] }
  0x4c   : > { %v380_v29 = vld [vmem:[#allocation2 + $0x81] sm:$0xff]  ;;  %315 = vst.msk [vmem:[#allocation2 + $0xaa] sm:$0xff] %vm256_vm0, %v234_v23  ;;  %v405_v18 = vld [vmem:[#allocation2 + $0x32] sm:$0xff]  ;;  %v410_v24 = vld [vmem:[#allocation2 + $0x6a] sm:$0xff] }
  0x4d   : > { %7537 = vrot.lane.b32.xlu1 %v10151_v26, %s9935_s10  ;;  %v10159_v31 = vpack.i.bf16 %v380_v29, %v379_v27  ;;  %316 = vst.msk [vmem:[#allocation2 + $0xb2] sm:$0xff] %vm256_vm0, %v235_v25  ;;  %v375_v33 = vld [vmem:[#allocation2 + $0x49] sm:$0xff]  ;;  %v406_v19 = vld [vmem:[#allocation2 + $0x3a] sm:$0xff]  ;;  %v7606_v25 = vpack.i.bf16 %v402_v21, %v401_v20 }
  0x4e   : > { %v376_v34 = vld [vmem:[#allocation2 + $0x51] sm:$0xff]  ;;  %319 = vst.msk [vmem:[#allocation2 + $0xda] sm:$0xff] %vm256_vm0, %v238_v28  ;;  %v10238_v22 = vpack.i.bf16 %v406_v19, %v405_v18  ;;  %v409_v23 = vld [vmem:[#allocation2 + $0x62] sm:$0xff]  ;;  %v411_v28 = vld [vmem:[#allocation2 + $0x7a] sm:$0xff] }
  0x4f   : > { %7552 = vrot.lane.b32.xlu2 %v10159_v31, %s9935_s10  ;;  %v381_v36 = vld [vmem:[#allocation2 + $0x91] sm:$0xff]  ;;  %320 = vst.msk [vmem:[#allocation2 + $0xe2] sm:$0xff] %vm256_vm0, %v239_v30  ;;  %v10171_v40 = vpack.i.bf16 %v376_v34, %v375_v33  ;;  %v10242_v27 = vpack.i.bf16 %v410_v24, %v409_v23  ;;  %v412_v29 = vld [vmem:[#allocation2 + $0x82] sm:$0xff] }
  0x50   : > { %v382_v38 = vld [vmem:[#allocation2 + $0x99] sm:$0xff]  ;;  %323 = vst.msk [vmem:[#allocation2 + $0x10a] sm:$0xff] %vm256_vm0, %v242_v32  ;;  %v407_v30 = vld [vmem:[#allocation2 + $0x4a] sm:$0xff]  ;;  %v7631_v33 = vpack.i.bf16 %v412_v29, %v411_v28 }
  0x51   : > { %v10173_v41 = vpack.i.bf16 %v382_v38, %v381_v36  ;;  %v385_v42 = vld [vmem:[#allocation2 + $0xc1] sm:$0xff]  ;;  %324 = vst.msk [vmem:[#allocation2 + $0x112] sm:$0xff] %vm256_vm0, %v243_v35  ;;  %v408_v32 = vld [vmem:[#allocation2 + $0x52] sm:$0xff] }
  0x52   : > { %v386_v44 = vld [vmem:[#allocation2 + $0xc9] sm:$0xff]  ;;  %321 = vst.msk [vmem:[#allocation2 + $0xf2] sm:$0xff] %vm256_vm0, %v240_v37  ;;  %v10247_v36 = vpack.i.bf16 %v408_v32, %v407_v30  ;;  %v440_v21 = vld [vmem:[#allocation2 + $0x53] sm:$0xff]  ;;  %v438_v30 = vld [vmem:[#allocation2 + $0x3b] sm:$0xff] }
  0x53   : > { %7557 = vrot.lane.b32.xlu0 %v10173_v41, %s9935_s10  ;;  %v10181_v46 = vpack.i.bf16 %v386_v44, %v385_v42  ;;  %322 = vst.msk [vmem:[#allocation2 + $0xfa] sm:$0xff] %vm256_vm0, %v241_v39  ;;  %v383_v52 = vld [vmem:[#allocation2 + $0xa9] sm:$0xff]  ;;  %v413_v42 = vld [vmem:[#allocation2 + $0x92] sm:$0xff] }
  0x54   : > { %325 = vst.msk [vmem:[#allocation2 + $0x122] sm:$0xff] %vm256_vm0, %v244_v43  ;;  %v384_v53 = vld [vmem:[#allocation2 + $0xb1] sm:$0xff]  ;;  %v417_v38 = vld [vmem:[#allocation2 + $0xc2] sm:$0xff]  ;;  %v414_v43 = vld [vmem:[#allocation2 + $0x9a] sm:$0xff] }
  0x55   : > { %7542 = vrot.lane.b32.xlu1 %v10171_v40, %s9935_s10  ;;  %v387_v49 = vld [vmem:[#allocation2 + $0xd9] sm:$0xff]  ;;  %326 = vst.msk [vmem:[#allocation2 + $0x12a] sm:$0xff] %vm256_vm0, %v245_v45  ;;  %v10201_v60 = vpack.i.bf16 %v384_v53, %v383_v52  ;;  %v415_v34 = vld [vmem:[#allocation2 + $0xaa] sm:$0xff] }
  0x56   : > { %v388_v54 = vld [vmem:[#allocation2 + $0xe1] sm:$0xff]  ;;  %329 = vst.msk [vmem:[#allocation2 + $0x152] sm:$0xff] %vm256_vm0, %v248_v47  ;;  %v416_v35 = vld [vmem:[#allocation2 + $0xb2] sm:$0xff]  ;;  %v418_v39 = vld [vmem:[#allocation2 + $0xca] sm:$0xff] }
  0x57   : > { %7567 = vrot.lane.b32.xlu2 %v10181_v46, %s9935_s10  ;;  %v10195_v55 = vpack.i.bf16 %v388_v54, %v387_v49  ;;  %330 = vst.msk [vmem:[#allocation2 + $0x15a] sm:$0xff] %vm256_vm0, %v249_v48  ;;  %v391_v57 = vld [vmem:[#allocation2 + $0x109] sm:$0xff]  ;;  %v7641_v37 = vpack.i.bf16 %v416_v35, %v415_v34  ;;  %v7646_v44 = vpack.i.bf16 %v418_v39, %v417_v38  ;;  %v419_v52 = vld [vmem:[#allocation2 + $0xda] sm:$0xff] }
  0x58   : > { %v392_v58 = vld [vmem:[#allocation2 + $0x111] sm:$0xff]  ;;  %327 = vst.msk [vmem:[#allocation2 + $0x13a] sm:$0xff] %vm256_vm0, %v246_v50  ;;  %v7636_v48 = vpack.i.bf16 %v414_v43, %v413_v42  ;;  %v420_v53 = vld [vmem:[#allocation2 + $0xe2] sm:$0xff] }
  0x59   : > { %328 = vst.msk [vmem:[#allocation2 + $0x142] sm:$0xff] %vm256_vm0, %v247_v51  ;;  %v10207_v61 = vpack.i.bf16 %v392_v58, %v391_v57  ;;  %v389_v1 = vld [vmem:[#allocation2 + $0xf1] sm:$0xff]  ;;  %v7651_v58 = vpack.i.bf16 %v420_v53, %v419_v52  ;;  %v446_v35 = vld [vmem:[#allocation2 + $0x9b] sm:$0xff] }
  0x5a   : > { %331 = vst.msk [vmem:[#allocation2 + $0x16a] sm:$0xff] %vm256_vm0, %v250_v56  ;;  %v390_v2 = vld [vmem:[#allocation2 + $0xf9] sm:$0xff]  ;;  %v423_v50 = vld [vmem:[#allocation2 + $0x10a] sm:$0xff] }
  0x5b   : > { %7572 = vrot.lane.b32.xlu0 %v10195_v55, %s9935_s10  ;;  %332 = vst.msk [vmem:[#allocation2 + $0x172] sm:$0xff] %vm256_vm0, %v251_v59  ;;  %v393_v62 = vld [vmem:[#allocation2 + $0x121] sm:$0xff]  ;;  %v10216_v6 = vpack.i.bf16 %v390_v2, %v389_v1  ;;  %v421_v45 = vld [vmem:[#allocation2 + $0xf2] sm:$0xff] }
  0x5c   : > { %v394_v63 = vld [vmem:[#allocation2 + $0x129] sm:$0xff]  ;;  %v422_v47 = vld [vmem:[#allocation2 + $0xfa] sm:$0xff]  ;;  %v424_v51 = vld [vmem:[#allocation2 + $0x112] sm:$0xff] }
  0x5d   : > { %7562 = vrot.lane.b32.xlu1 %v10201_v60, %s9935_s10  ;;  %v10214_v3 = vpack.i.bf16 %v394_v63, %v393_v62  ;;  %v397_v4 = vld [vmem:[#allocation2 + $0x151] sm:$0xff]  ;;  %v7656_v49 = vpack.i.bf16 %v422_v47, %v421_v45  ;;  %v7661_v54 = vpack.i.bf16 %v424_v51, %v423_v50  ;;  %v425_v1 = vld [vmem:[#allocation2 + $0x122] sm:$0xff] }
  0x5e   : > { %v398_v5 = vld [vmem:[#allocation2 + $0x159] sm:$0xff]  ;;  %v426_v2 = vld [vmem:[#allocation2 + $0x12a] sm:$0xff]  ;;  %v1227_v0 = vld [vmem:[#allocation2 + $0x122] sm:$0xff] }
  0x5f   : > { %7582 = vrot.lane.b32.xlu2 %v10207_v61, %s9935_s10  ;;  %v10220_v7 = vpack.i.bf16 %v398_v5, %v397_v4  ;;  %v395_v10 = vld [vmem:[#allocation2 + $0x139] sm:$0xff]  ;;  %v433_v5 = vld [vmem:[#allocation2 + $0x3] sm:$0xff]  ;;  %v439_v20 = vld [vmem:[#allocation2 + $0x4b] sm:$0xff] }
  0x60   : > { %v396_v12 = vld [vmem:[#allocation2 + $0x141] sm:$0xff]  ;;  %v429_v62 = vld [vmem:[#allocation2 + $0x152] sm:$0xff]  ;;  %v7701_v24 = vpack.i.bf16 %v440_v21, %v439_v20 }
  0x61   : > { %v399_v8 = vld [vmem:[#allocation2 + $0x169] sm:$0xff]  ;;  %v10228_v16 = vpack.i.bf16 %v396_v12, %v395_v10  ;;  %v427_v56 = vld [vmem:[#allocation2 + $0x13a] sm:$0xff] }
  0x62   : > { %v400_v9 = vld [vmem:[#allocation2 + $0x171] sm:$0xff]  ;;  %v428_v57 = vld [vmem:[#allocation2 + $0x142] sm:$0xff]  ;;  %v430_v63 = vld [vmem:[#allocation2 + $0x15a] sm:$0xff] }
  0x63   : > { %7587 = vrot.lane.b32.xlu0 %v10214_v3, %s9935_s10  ;;  %v10226_v13 = vpack.i.bf16 %v400_v9, %v399_v8  ;;  %v7671_v59 = vpack.i.bf16 %v428_v57, %v427_v56  ;;  %v7676_v4 = vpack.i.bf16 %v430_v63, %v429_v62  ;;  %v434_v8 = vld [vmem:[#allocation2 + $0xb] sm:$0xff]  ;;  %v7666_v9 = vpack.i.bf16 %v426_v2, %v425_v1  ;;  %v435_v12 = vld [vmem:[#allocation2 + $0x1b] sm:$0xff]  ;;  %v437_v29 = vld [vmem:[#allocation2 + $0x33] sm:$0xff] }
  0x64   : > { %v7686_v10 = vpack.i.bf16 %v434_v8, %v433_v5  ;;  %v431_v15 = vld [vmem:[#allocation2 + $0x16a] sm:$0xff]  ;;  %v432_v18 = vld [vmem:[#allocation2 + $0x172] sm:$0xff]  ;;  %v7691_v19 = vpack.i.bf16 %v436_v14, %v435_v12  ;;  %v443_v43 = vld [vmem:[#allocation2 + $0x7b] sm:$0xff] }
  0x65   : > { %7577 = vrot.lane.b32.xlu1 %v10216_v6, %s9935_s10  ;;  %v7681_v23 = vpack.i.bf16 %v432_v18, %v431_v15  ;;  %v442_v28 = vld [vmem:[#allocation2 + $0x6b] sm:$0xff]  ;;  %v445_v34 = vld [vmem:[#allocation2 + $0x93] sm:$0xff]  ;;  %v451_v47 = vld [vmem:[#allocation2 + $0xdb] sm:$0xff] }
  0x66   : > { %v7716_v38 = vpack.i.bf16 %v446_v35, %v445_v34  ;;  %v447_v39 = vld [vmem:[#allocation2 + $0xab] sm:$0xff]  ;;  %v448_v42 = vld [vmem:[#allocation2 + $0xb3] sm:$0xff]  ;;  %v454_v53 = vld [vmem:[#allocation2 + $0xfb] sm:$0xff] }
  0x67   : > { %7597 = vrot.lane.b32.xlu2 %v10220_v7, %s9935_s10  ;;  %v7721_v45 = vpack.i.bf16 %v448_v42, %v447_v39  ;;  %v453_v52 = vld [vmem:[#allocation2 + $0xf3] sm:$0xff]  ;;  %v450_v56 = vld [vmem:[#allocation2 + $0xcb] sm:$0xff]  ;;  %v460_v5 = vld [vmem:[#allocation2 + $0x143] sm:$0xff] }
  0x68   : > { %v7736_v57 = vpack.i.bf16 %v454_v53, %v453_v52  ;;  %v455_v8 = vld [vmem:[#allocation2 + $0x10b] sm:$0xff]  ;;  %v464_v14 = vld [vmem:[#allocation2 + $0x173] sm:$0xff] }
  0x69   : > { %v463_v12 = vld [vmem:[#allocation2 + $0x16b] sm:$0xff]  ;;  %v472_v39 = vld [vmem:[#allocation2 + $0x54] sm:$0xff] }
  0x6a   : > { %v7761_v20 = vpack.i.bf16 %v464_v14, %v463_v12  ;;  %v465_v21 = vld [vmem:[#allocation2 + $0x4] sm:$0xff]  ;;  %v483_v12 = vld [vmem:[#allocation2 + $0xdc] sm:$0xff] }
  0x6b   : > { %7602 = vrot.lane.b32.xlu0 %v10226_v13, %s9935_s10  ;;  %v484_v14 = vld [vmem:[#allocation2 + $0xe4] sm:$0xff] }
  0x6d   : > { %7592 = vrot.lane.b32.xlu1 %v10228_v16, %s9935_s10 }
  0x6f   : > { %7612 = vrot.lane.b32.xlu2 %v10232_v17, %s9936_s11 }
  0x73   : > { %7617 = vrot.lane.b32.xlu0 %v10238_v22, %s9936_s11 }
  0x75   : > { %7607 = vrot.lane.b32.xlu1 %v7606_v25, %s9936_s11  ;;  %v441_v25 = vld [vmem:[#allocation2 + $0x63] sm:$0xff] }
  0x77   : > { %7627 = vrot.lane.b32.xlu2 %v10242_v27, %s9936_s11 }
  0x7b   : > { %7632 = vrot.lane.b32.xlu0 %v7631_v33, %s9936_s11  ;;  %v7706_v33 = vpack.i.bf16 %v442_v28, %v441_v25  ;;  %v462_v25 = vld [vmem:[#allocation2 + $0x15b] sm:$0xff] }
  0x7d   : > { %7622 = vrot.lane.b32.xlu1 %v10247_v36, %s9936_s11 }
  0x7f   : > { %7642 = vrot.lane.b32.xlu2 %v7641_v37, %s9936_s11  ;;  %v7696_v37 = vpack.i.bf16 %v438_v30, %v437_v29  ;;  %v469_v30 = vld [vmem:[#allocation2 + $0x34] sm:$0xff] }
  0x83   : > { %7647 = vrot.lane.b32.xlu0 %v7646_v44, %s9936_s11  ;;  %v444_v44 = vld [vmem:[#allocation2 + $0x83] sm:$0xff] }
  0x85   : > { %7637 = vrot.lane.b32.xlu1 %v7636_v48, %s9936_s11  ;;  %v452_v48 = vld [vmem:[#allocation2 + $0xe3] sm:$0xff] }
  0x86   : > { %v10265_v32 = vpop.permute.xlu2 %7547  ;;  %v7731_v51 = vpack.i.bf16 %v452_v48, %v451_v47  ;;  %v475_v48 = vld [vmem:[#allocation2 + $0x7c] sm:$0xff] }
  0x87   : > { %7657 = vrot.lane.b32.xlu2 %v7656_v49, %s9936_s11  ;;  %v7711_v49 = vpack.i.bf16 %v444_v44, %v443_v43  ;;  %v467_v43 = vld [vmem:[#allocation2 + $0x1c] sm:$0xff]  ;;  %v468_v44 = vld [vmem:[#allocation2 + $0x24] sm:$0xff] }
  0x8b   : > { %7662 = vrot.lane.b32.xlu0 %v7661_v54, %s9936_s11  ;;  %v449_v54 = vld [vmem:[#allocation2 + $0xc3] sm:$0xff] }
  0x8c   : > { %v7726_v62 = vpack.i.bf16 %v450_v56, %v449_v54  ;;  %v477_v54 = vld [vmem:[#allocation2 + $0x94] sm:$0xff]  ;;  %v478_v56 = vld [vmem:[#allocation2 + $0x9c] sm:$0xff] }
  0x8d   : > { %7652 = vrot.lane.b32.xlu1 %v7651_v58, %s9936_s11  ;;  %v457_v58 = vld [vmem:[#allocation2 + $0x123] sm:$0xff] }
  0x8f   : > { %7672 = vrot.lane.b32.xlu2 %v7671_v59, %s9936_s11  ;;  %v458_v59 = vld [vmem:[#allocation2 + $0x12b] sm:$0xff] }
  0x90   : > { %v7746_v2 = vpack.i.bf16 %v458_v59, %v457_v58  ;;  %v473_v58 = vld [vmem:[#allocation2 + $0x64] sm:$0xff]  ;;  %v474_v59 = vld [vmem:[#allocation2 + $0x6c] sm:$0xff] }
  0x92   : > { %v10277_v1 = vpop.permute.xlu0 %7527 }
  0x93   : > { %7677 = vrot.lane.b32.xlu0 %v7676_v4, %s9936_s11  ;;  %v459_v4 = vld [vmem:[#allocation2 + $0x13b] sm:$0xff] }
  0x95   : > { %7667 = vrot.lane.b32.xlu1 %v7666_v9, %s9936_s11  ;;  %v456_v9 = vld [vmem:[#allocation2 + $0x113] sm:$0xff] }
  0x96   : > { %v7741_v15 = vpack.i.bf16 %v456_v9, %v455_v8  ;;  %v7786_v8 = vpack.i.bf16 %v474_v59, %v473_v58  ;;  %v495_v58 = vld [vmem:[#allocation2 + $0x16c] sm:$0xff]  ;;  %v496_v59 = vld [vmem:[#allocation2 + $0x174] sm:$0xff] }
  0x97   : > { %7687 = vrot.lane.b32.xlu2 %v7686_v10, %s9937_s12  ;;  %v7751_v10 = vpack.i.bf16 %v460_v5, %v459_v4  ;;  %v481_v4 = vld [vmem:[#allocation2 + $0xc4] sm:$0xff]  ;;  %v482_v5 = vld [vmem:[#allocation2 + $0xcc] sm:$0xff] }
  0x9b   : > { %7692 = vrot.lane.b32.xlu0 %v7691_v19, %s9937_s12  ;;  %v10285_v19 = vpop.permute.xlu0 %7532 }
  0x9d   : > { %7682 = vrot.lane.b32.xlu1 %v7681_v23, %s9936_s11  ;;  %v466_v23 = vld [vmem:[#allocation2 + $0xc] sm:$0xff] }
  0x9e   : > { %v7766_v29 = vpack.i.bf16 %v466_v23, %v465_v21  ;;  %v480_v21 = vld [vmem:[#allocation2 + $0xb4] sm:$0xff] }
  0x9f   : > { %7702 = vrot.lane.b32.xlu2 %v7701_v24, %s9937_s12  ;;  %v461_v24 = vld [vmem:[#allocation2 + $0x153] sm:$0xff] }
  0xa0   : > { %v7756_v34 = vpack.i.bf16 %v462_v25, %v461_v24  ;;  %v7811_v24 = vpack.i.bf16 %v484_v14, %v483_v12  ;;  %v487_v25 = vld [vmem:[#allocation2 + $0x10c] sm:$0xff] }
  0xa3   : > { %7707 = vrot.lane.b32.xlu0 %v7706_v33, %s9937_s12  ;;  %v470_v33 = vld [vmem:[#allocation2 + $0x3c] sm:$0xff] }
  0xa5   : > { %7697 = vrot.lane.b32.xlu1 %v7696_v37, %s9937_s12  ;;  %v7776_v37 = vpack.i.bf16 %v470_v33, %v469_v30 }
  0xa7   : > { %7717 = vrot.lane.b32.xlu2 %v7716_v38, %s9937_s12  ;;  %v471_v38 = vld [vmem:[#allocation2 + $0x4c] sm:$0xff] }
  0xa8   : > { %v7781_v47 = vpack.i.bf16 %v472_v39, %v471_v38  ;;  %v490_v38 = vld [vmem:[#allocation2 + $0x12c] sm:$0xff] }
  0xa9   : > { %v10270_v50 = vpop.permute.xlu2 %7552 }
  0xab   : > { %7722 = vrot.lane.b32.xlu0 %v7721_v45, %s9937_s12 }
  0xad   : > { %7712 = vrot.lane.b32.xlu1 %v7711_v49, %s9937_s12  ;;  %v476_v49 = vld [vmem:[#allocation2 + $0x84] sm:$0xff] }
  0xae   : > { %v7791_v53 = vpack.i.bf16 %v476_v49, %v475_v48  ;;  %v493_v49 = vld [vmem:[#allocation2 + $0x154] sm:$0xff] }
  0xaf   : > { %7732 = vrot.lane.b32.xlu2 %v7731_v51, %s9937_s12  ;;  %v7771_v51 = vpack.i.bf16 %v468_v44, %v467_v43  ;;  %v485_v43 = vld [vmem:[#allocation2 + $0xf4] sm:$0xff]  ;;  %v486_v44 = vld [vmem:[#allocation2 + $0xfc] sm:$0xff] }
  0xb1   : > { %v10275_v63 = vpop.permute.xlu2 %7567 }
  0xb3   : > { %7737 = vrot.lane.b32.xlu0 %v7736_v57, %s9937_s12 }
  0xb5   : > { %7727 = vrot.lane.b32.xlu1 %v7726_v62, %s9937_s12 }
  0xb7   : > { %7747 = vrot.lane.b32.xlu2 %v7746_v2, %s9937_s12  ;;  %v7796_v2 = vpack.i.bf16 %v478_v56, %v477_v54 }
  0xb9   : > { %v10282_v18 = vpop.permute.xlu2 %7582 }
  0xba   : > { %15225 = vst [vmem:[#allocation9_spill] sm:$0xff] %v10282_v18 }
  0xbb   : > { %7752 = vrot.lane.b32.xlu0 %v7751_v10, %s9937_s12  ;;  %v7806_v10 = vpack.i.bf16 %v482_v5, %v481_v4  ;;  %v491_v4 = vld [vmem:[#allocation2 + $0x13c] sm:$0xff]  ;;  %v492_v5 = vld [vmem:[#allocation2 + $0x144] sm:$0xff] }
  0xbc   : > { %v7831_v12 = vpack.i.bf16 %v492_v5, %v491_v4 }
  0xbd   : > { %7742 = vrot.lane.b32.xlu1 %v7741_v15, %s9937_s12 }
  0xbf   : > { %v10288_v28 = vpop.permute.xlu1 %7537  ;;  %7762 = vrot.lane.b32.xlu2 %v7761_v20, %s9937_s12  ;;  %v479_v20 = vld [vmem:[#allocation2 + $0xac] sm:$0xff] }
  0xc0   : > { %15226 = vst [vmem:[#allocation10_spill] sm:$0xff] %v10288_v28  ;;  %v7801_v30 = vpack.i.bf16 %v480_v21, %v479_v20 }
  0xc1   : > { %v10291_v35 = vpop.permute.xlu2 %7597 }
  0xc2   : > { %15227 = vst [vmem:[#allocation11_spill] sm:$0xff] %v10291_v35  ;;  %v1239_v35 = vld [vmem:[#allocation2 + $0x33] sm:$0xff] }
  0xc3   : > { %7767 = vrot.lane.b32.xlu0 %v7766_v29, %s9938_s13  ;;  %v488_v29 = vld [vmem:[#allocation2 + $0x114] sm:$0xff] }
  0xc5   : > { %7757 = vrot.lane.b32.xlu1 %v7756_v34, %s9937_s12  ;;  %v10295_v42 = vpop.permute.xlu0 %7557  ;;  %v7821_v34 = vpack.i.bf16 %v488_v29, %v487_v25  ;;  %v252_v25 = vld [vmem:[%s10046_s9 + $0xe0] sm:$0xff]  ;;  %v253_v29 = vld [vmem:[%s10046_s9 + $0xe8] sm:$0xff] }
  0xc6   : > { %333 = vst.msk [vmem:[#allocation2 + $0x182] sm:$0xff] %vm256_vm0, %v252_v25  ;;  %v1215_v25 = vld [vmem:[#allocation2 + $0x92] sm:$0xff] }
  0xc7   : > { %v10297_v45 = vpop.permute.xlu1 %7542  ;;  %7777 = vrot.lane.b32.xlu2 %v7776_v37, %s9938_s13  ;;  %v489_v37 = vld [vmem:[#allocation2 + $0x124] sm:$0xff]  ;;  %334 = vst.msk [vmem:[#allocation2 + $0x18a] sm:$0xff] %vm256_vm0, %v253_v29  ;;  %v1216_v29 = vld [vmem:[#allocation2 + $0x9a] sm:$0xff] }
  0xc8   : > { %15228 = vst [vmem:[#allocation12_spill] sm:$0xff] %v10297_v45  ;;  %v7826_v48 = vpack.i.bf16 %v490_v38, %v489_v37  ;;  %v1180_v37 = vld [vmem:[#allocation2 + $0x69] sm:$0xff]  ;;  %v1287_v45 = vld [vmem:[#allocation2 + $0xf4] sm:$0xff] }
  0xc9   : > { %v10300_v52 = vpop.permute.xlu2 %7612 }
  0xca   : > { %15229 = vst [vmem:[#allocation13_spill] sm:$0xff] %v10300_v52 }
  0xcb   : > { %7782 = vrot.lane.b32.xlu0 %v7781_v47, %s9938_s13 }
  0xcd   : > { %7772 = vrot.lane.b32.xlu1 %v7771_v51, %s9938_s13  ;;  %v10304_v57 = vpop.permute.xlu0 %7572  ;;  %v494_v51 = vld [vmem:[#allocation2 + $0x15c] sm:$0xff] }
  0xce   : > { %15230 = vst [vmem:[#allocation14_spill] sm:$0xff] %v10304_v57  ;;  %v7836_v56 = vpack.i.bf16 %v494_v51, %v493_v49  ;;  %v1204_v49 = vld [vmem:[#allocation2 + $0x189] sm:$0xff] }
  0xcf   : > { %v10306_v62 = vpop.permute.xlu1 %7562  ;;  %7792 = vrot.lane.b32.xlu2 %v7791_v53, %s9938_s13  ;;  %v7816_v53 = vpack.i.bf16 %v486_v44, %v485_v43  ;;  %v1146_v57 = vld [vmem:[#allocation2 + $0x50] sm:$0xff] }
  0xd0   : > { %15231 = vst [vmem:[#allocation15_spill] sm:$0xff] %v10306_v62 }
  0xd1   : > { %v10309_v9 = vpop.permute.xlu2 %7627 }
  0xd3   : > { %7797 = vrot.lane.b32.xlu0 %v7796_v2, %s9938_s13 }
  0xd5   : > { %7787 = vrot.lane.b32.xlu1 %v7786_v8, %s9938_s13  ;;  %v10313_v15 = vpop.permute.xlu0 %7587 }
  0xd6   : > { %15232 = vst [vmem:[#allocation16_spill] sm:$0xff] %v10313_v15 }
  0xd7   : > { %v10315_v23 = vpop.permute.xlu1 %7577  ;;  %7807 = vrot.lane.b32.xlu2 %v7806_v10, %s9938_s13  ;;  %v7841_v10 = vpack.i.bf16 %v496_v59, %v495_v58  ;;  %v1217_v59 = vld [vmem:[#allocation2 + $0xaa] sm:$0xff] }
  0xd8   : > { %15233 = vst [vmem:[#allocation17_spill] sm:$0xff] %v10315_v23  ;;  %v1988_v23 = vld [vmem:[#allocation2 + $0xe1] sm:$0xff] }
  0xd9   : > { %v10318_v33 = vpop.permute.xlu2 %7642 }
  0xda   : > { %15234 = vst [vmem:[#allocation18_spill] sm:$0xff] %v10318_v33 }
  0xdb   : > { %7812 = vrot.lane.b32.xlu0 %v7811_v24, %s9938_s13 }
  0xdd   : > { %7802 = vrot.lane.b32.xlu1 %v7801_v30, %s9938_s13  ;;  %v10322_v39 = vpop.permute.xlu0 %7602 }
  0xde   : > { %15235 = vst [vmem:[#allocation19_spill] sm:$0xff] %v10322_v39  ;;  %v1233_v39 = vld [vmem:[#allocation2 + $0x16a] sm:$0xff] }
  0xdf   : > { %v10324_v47 = vpop.permute.xlu1 %7592  ;;  %7822 = vrot.lane.b32.xlu2 %v7821_v34, %s9938_s13  ;;  %v1179_v34 = vld [vmem:[#allocation2 + $0x61] sm:$0xff] }
  0xe0   : > { %15236 = vst [vmem:[#allocation20_spill] sm:$0xff] %v10324_v47  ;;  %v1246_v47 = vld [vmem:[#allocation2 + $0x83] sm:$0xff] }
  0xe1   : > { %v10327_v54 = vpop.permute.xlu2 %7657 }
  0xe2   : > { %15237 = vst [vmem:[#allocation21_spill] sm:$0xff] %v10327_v54  ;;  %v1300_v54 = vld [vmem:[#allocation2 + $0x18c] sm:$0xff] }
  0xe3   : > { %7827 = vrot.lane.b32.xlu0 %v7826_v48, %s9938_s13 }
  0xe5   : > { %7817 = vrot.lane.b32.xlu1 %v7816_v53, %s9938_s13  ;;  %v10331_v2 = vpop.permute.xlu0 %7617 }
  0xe6   : > { %15238 = vst [vmem:[#allocation22_spill] sm:$0xff] %v10331_v2  ;;  %v1281_v2 = vld [vmem:[#allocation2 + $0xac] sm:$0xff] }
  0xe7   : > { %v10333_v8 = vpop.permute.xlu1 %7607  ;;  %7837 = vrot.lane.b32.xlu2 %v7836_v56, %s9938_s13 }
  0xe8   : > { %15239 = vst [vmem:[#allocation23_spill] sm:$0xff] %v10333_v8 }
  0xe9   : > { %v10336_v14 = vpop.permute.xlu2 %7672 }
  0xea   : > { %15240 = vst [vmem:[#allocation24_spill] sm:$0xff] %v10336_v14 }
  0xeb   : > { %7842 = vrot.lane.b32.xlu0 %v7841_v10, %s9938_s13  ;;  %v1220_v10 = vld [vmem:[#allocation2 + $0xca] sm:$0xff] }
  0xed   : > { %7832 = vrot.lane.b32.xlu1 %v7831_v12, %s9938_s13  ;;  %v10340_v20 = vpop.permute.xlu0 %7632 }
  0xef   : > { %v10342_v21 = vpop.permute.xlu1 %7622  ;;  %7852 = vrot.lane.b32.xlu2 %v10151_v26, %s9935_s10  ;;  %v7861_v26 = vpack.i.bf16 %v1180_v37, %v1179_v34  ;;  %v1223_v37 = vld [vmem:[#allocation2 + $0xf2] sm:$0xff] }
  0xf0   : > { %15241 = vst [vmem:[#allocation25_spill] sm:$0xff] %v10342_v21 }
  0xf1   : > { %v10346_v24 = vpop.permute.xlu2 %7687 }
  0xf2   : > { %15242 = vst [vmem:[#allocation26_spill] sm:$0xff] %v10346_v24  ;;  %v1982_v24 = vld [vmem:[#allocation2 + $0x99] sm:$0xff] }
  0xf3   : > { %7857 = vrot.lane.b32.xlu0 %v10171_v40, %s9935_s10 }
  0xf5   : > { %7847 = vrot.lane.b32.xlu1 %v10086_v11, %s9935_s10  ;;  %v10356_v30 = vpop.permute.xlu0 %7647 }
  0xf6   : > { %15243 = vst [vmem:[#allocation27_spill] sm:$0xff] %v10356_v30  ;;  %v255_v30 = vld [vmem:[%s10046_s9 + $0xf8] sm:$0xff] }
  0xf7   : > { %v10358_v38 = vpop.permute.xlu1 %7637  ;;  %7867 = vrot.lane.b32.xlu2 %v10159_v31, %s9935_s10  ;;  %336 = vst.msk [vmem:[#allocation2 + $0x1a2] sm:$0xff] %vm256_vm0, %v255_v30 }
  0xf9   : > { %v10362_v43 = vpop.permute.xlu2 %7702 }
  0xfa   : > { %15244 = vst [vmem:[#allocation28_spill] sm:$0xff] %v10362_v43  ;;  %v1258_v43 = vld [vmem:[#allocation2 + $0x113] sm:$0xff] }
  0xfb   : > { %7872 = vrot.lane.b32.xlu0 %v10173_v41, %s9935_s10 }
  0xfd   : > { %7862 = vrot.lane.b32.xlu1 %v7861_v26, %s9935_s10  ;;  %v10367_v40 = vpop.permute.xlu0 %7662  ;;  %v1224_v26 = vld [vmem:[#allocation2 + $0xfa] sm:$0xff] }
  0xfe   : > { %15245 = vst [vmem:[#allocation29_spill] sm:$0xff] %v10367_v40 }
  0xff   : > { %v10369_v11 = vpop.permute.xlu1 %7652  ;;  %7882 = vrot.lane.b32.xlu2 %v10181_v46, %s9935_s10 }
 0x100   : > { %15246 = vst [vmem:[#allocation30_spill] sm:$0xff] %v10369_v11  ;;  %v1294_v11 = vld [vmem:[#allocation2 + $0x144] sm:$0xff] }
 0x101   : > { %v10373_v44 = vpop.permute.xlu2 %7717 }
 0x103   : > { %7887 = vrot.lane.b32.xlu0 %v10195_v55, %s9935_s10 }
 0x105   : > { %7877 = vrot.lane.b32.xlu1 %v10201_v60, %s9935_s10  ;;  %v10379_v31 = vpop.permute.xlu0 %7677 }
 0x106   : > { %15247 = vst [vmem:[#allocation31_spill] sm:$0xff] %v10379_v31  ;;  %v1234_v31 = vld [vmem:[#allocation2 + $0x172] sm:$0xff] }
 0x107   : > { %v10381_v41 = vpop.permute.xlu1 %7667  ;;  %7897 = vrot.lane.b32.xlu2 %v10207_v61, %s9935_s10 }
 0x108   : > { %15248 = vst [vmem:[#allocation32_spill] sm:$0xff] %v10381_v41  ;;  %v1251_v41 = vld [vmem:[#allocation2 + $0xc3] sm:$0xff] }
 0x109   : > { %v10385_v48 = vpop.permute.xlu2 %7732 }
 0x10a   : > { %15249 = vst [vmem:[#allocation33_spill] sm:$0xff] %v10385_v48  ;;  %v1293_v48 = vld [vmem:[#allocation2 + $0x13c] sm:$0xff] }
 0x10b   : > { %7902 = vrot.lane.b32.xlu0 %v10214_v3, %s9935_s10  ;;  %v1203_v3 = vld [vmem:[#allocation2 + $0x181] sm:$0xff] }
 0x10c   : > { %v7921_v51 = vpack.i.bf16 %v1204_v49, %v1203_v3  ;;  %v7951_v3 = vpack.i.bf16 %v1216_v29, %v1215_v25 }
 0x10d   : > { %7892 = vrot.lane.b32.xlu1 %v10216_v6, %s9935_s10  ;;  %v10391_v46 = vpop.permute.xlu0 %7692 }
 0x10e   : > { %15250 = vst [vmem:[#allocation34_spill] sm:$0xff] %v10391_v46 }
 0x10f   : > { %v10393_v55 = vpop.permute.xlu1 %7682  ;;  %7912 = vrot.lane.b32.xlu2 %v10220_v7, %s9935_s10  ;;  %v1213_v7 = vld [vmem:[#allocation2 + $0x7a] sm:$0xff] }
 0x110   : > { %15251 = vst [vmem:[#allocation35_spill] sm:$0xff] %v10393_v55 }
 0x111   : > { %v10397_v60 = vpop.permute.xlu2 %7747 }
 0x112   : > { %15252 = vst [vmem:[#allocation36_spill] sm:$0xff] %v10397_v60 }
 0x113   : > { %7917 = vrot.lane.b32.xlu0 %v10226_v13, %s9935_s10  ;;  %v1214_v13 = vld [vmem:[#allocation2 + $0x82] sm:$0xff] }
 0x114   : > { %v7946_v58 = vpack.i.bf16 %v1214_v13, %v1213_v7  ;;  %v1225_v7 = vld [vmem:[#allocation2 + $0x10a] sm:$0xff]  ;;  %v1226_v13 = vld [vmem:[#allocation2 + $0x112] sm:$0xff] }
 0x115   : > { %7907 = vrot.lane.b32.xlu1 %v10228_v16, %s9935_s10  ;;  %v10403_v61 = vpop.permute.xlu0 %7707 }
 0x117   : > { %v10405_v6 = vpop.permute.xlu1 %7697  ;;  %7927 = vrot.lane.b32.xlu2 %v10232_v17, %s9936_s11  ;;  %v1218_v17 = vld [vmem:[#allocation2 + $0xb2] sm:$0xff] }
 0x118   : > { %15253 = vst [vmem:[#allocation37_spill] sm:$0xff] %v10405_v6  ;;  %v7956_v5 = vpack.i.bf16 %v1218_v17, %v1217_v59  ;;  %v1222_v59 = vld [vmem:[#allocation2 + $0xe2] sm:$0xff]  ;;  %v1276_v6 = vld [vmem:[#allocation2 + $0x6c] sm:$0xff] }
 0x119   : > { %v10409_v53 = vpop.permute.xlu2 %7762 }
 0x11a   : > { %15254 = vst [vmem:[#allocation38_spill] sm:$0xff] %v10409_v53  ;;  %v1228_v53 = vld [vmem:[#allocation2 + $0x12a] sm:$0xff] }
 0x11b   : > { %7932 = vrot.lane.b32.xlu0 %v10238_v22, %s9936_s11  ;;  %v1219_v22 = vld [vmem:[#allocation2 + $0xc2] sm:$0xff] }
 0x11d   : > { %7922 = vrot.lane.b32.xlu1 %v7921_v51, %s9935_s10  ;;  %v10414_v16 = vpop.permute.xlu0 %7722  ;;  %v7971_v51 = vpack.i.bf16 %v1224_v26, %v1223_v37  ;;  %v1231_v37 = vld [vmem:[#allocation2 + $0x152] sm:$0xff]  ;;  %v1232_v26 = vld [vmem:[#allocation2 + $0x15a] sm:$0xff] }
 0x11e   : > { %15255 = vst [vmem:[#allocation39_spill] sm:$0xff] %v10414_v16  ;;  %v1984_v16 = vld [vmem:[#allocation2 + $0xb1] sm:$0xff] }
 0x11f   : > { %v10416_v56 = vpop.permute.xlu1 %7712  ;;  %7942 = vrot.lane.b32.xlu2 %v10242_v27, %s9936_s11  ;;  %v7961_v27 = vpack.i.bf16 %v1220_v10, %v1219_v22  ;;  %v1229_v22 = vld [vmem:[#allocation2 + $0x13a] sm:$0xff]  ;;  %v1230_v10 = vld [vmem:[#allocation2 + $0x142] sm:$0xff] }
 0x121   : > { %v10420_v4 = vpop.permute.xlu2 %7777 }
 0x122   : > { %15256 = vst [vmem:[#allocation40_spill] sm:$0xff] %v10420_v4  ;;  %v1275_v4 = vld [vmem:[#allocation2 + $0x64] sm:$0xff] }
 0x123   : > { %7947 = vrot.lane.b32.xlu0 %v7946_v58, %s9936_s11  ;;  %v1221_v58 = vld [vmem:[#allocation2 + $0xda] sm:$0xff] }
 0x124   : > { %v7966_v25 = vpack.i.bf16 %v1222_v59, %v1221_v58  ;;  %v7981_v58 = vpack.i.bf16 %v1228_v53, %v1227_v0  ;;  %v1242_v0 = vld [vmem:[#allocation2 + $0x53] sm:$0xff]  ;;  %v7996_v53 = vpack.i.bf16 %v1234_v31, %v1233_v39  ;;  %v1248_v39 = vld [vmem:[#allocation2 + $0x9b] sm:$0xff] }
 0x125   : > { %7937 = vrot.lane.b32.xlu1 %v10247_v36, %s9936_s11  ;;  %v10425_v12 = vpop.permute.xlu0 %7737 }
 0x126   : > { %15257 = vst [vmem:[#allocation41_spill] sm:$0xff] %v10425_v12 }
 0x127   : > { %v10427_v34 = vpop.permute.xlu1 %7727  ;;  %7957 = vrot.lane.b32.xlu2 %v7956_v5, %s9936_s11  ;;  %v7976_v5 = vpack.i.bf16 %v1226_v13, %v1225_v7  ;;  %v1235_v7 = vld [vmem:[#allocation2 + $0x182] sm:$0xff]  ;;  %v1236_v13 = vld [vmem:[#allocation2 + $0x18a] sm:$0xff] }
 0x128   : > { %15258 = vst [vmem:[#allocation42_spill] sm:$0xff] %v10427_v34  ;;  %v1299_v34 = vld [vmem:[#allocation2 + $0x184] sm:$0xff] }
 0x129   : > { %v10430_v49 = vpop.permute.xlu2 %7792 }
 0x12b   : > { %7962 = vrot.lane.b32.xlu0 %v7961_v27, %s9936_s11  ;;  %v7986_v27 = vpack.i.bf16 %v1230_v10, %v1229_v22  ;;  %v1237_v22 = vld [vmem:[#allocation2 + $0x1b] sm:$0xff]  ;;  %v1238_v10 = vld [vmem:[#allocation2 + $0x23] sm:$0xff] }
 0x12d   : > { %7952 = vrot.lane.b32.xlu1 %v7951_v3, %s9936_s11  ;;  %v10434_v36 = vpop.permute.xlu0 %7752 }
 0x12e   : > { %15259 = vst [vmem:[#allocation43_spill] sm:$0xff] %v10434_v36  ;;  %v1240_v36 = vld [vmem:[#allocation2 + $0x3b] sm:$0xff] }
 0x12f   : > { %v10436_v17 = vpop.permute.xlu1 %7742  ;;  %7972 = vrot.lane.b32.xlu2 %v7971_v51, %s9936_s11  ;;  %v7991_v51 = vpack.i.bf16 %v1232_v26, %v1231_v37  ;;  %v1241_v37 = vld [vmem:[#allocation2 + $0x4b] sm:$0xff]  ;;  %v8011_v31 = vpack.i.bf16 %v1240_v36, %v1239_v35  ;;  %v1254_v35 = vld [vmem:[#allocation2 + $0xe3] sm:$0xff] }
 0x130   : > { %15260 = vst [vmem:[#allocation44_spill] sm:$0xff] %v10436_v17  ;;  %v1269_v17 = vld [vmem:[#allocation2 + $0x1c] sm:$0xff] }
 0x131   : > { %v10439_v29 = vpop.permute.xlu2 %7807 }
 0x132   : > { %15261 = vst [vmem:[#allocation45_spill] sm:$0xff] %v10439_v29 }
 0x133   : > { %7977 = vrot.lane.b32.xlu0 %v7976_v5, %s9936_s11  ;;  %v8001_v5 = vpack.i.bf16 %v1236_v13, %v1235_v7  ;;  %v1243_v7 = vld [vmem:[#allocation2 + $0x63] sm:$0xff]  ;;  %v1244_v13 = vld [vmem:[#allocation2 + $0x6b] sm:$0xff] }
 0x135   : > { %7967 = vrot.lane.b32.xlu1 %v7966_v25, %s9936_s11  ;;  %v10443_v3 = vpop.permute.xlu0 %7767 }
 0x136   : > { %15262 = vst [vmem:[#allocation46_spill] sm:$0xff] %v10443_v3 }
 0x137   : > { %v10445_v55 = vpop.permute.xlu1 %7757  ;;  %7987 = vrot.lane.b32.xlu2 %v7986_v27, %s9936_s11  ;;  %v8006_v27 = vpack.i.bf16 %v1238_v10, %v1237_v22  ;;  %v1247_v22 = vld [vmem:[#allocation2 + $0x93] sm:$0xff] }
 0x138   : > { %15263 = vst [vmem:[#allocation47_spill] sm:$0xff] %v10445_v55 }
 0x139   : > { %v10448_v59 = vpop.permute.xlu2 %7822 }
 0x13a   : > { %15264 = vst [vmem:[#allocation48_spill] sm:$0xff] %v10448_v59  ;;  %v1264_v59 = vld [vmem:[#allocation2 + $0x15b] sm:$0xff] }
 0x13b   : > { %7992 = vrot.lane.b32.xlu0 %v7991_v51, %s9936_s11  ;;  %v8016_v51 = vpack.i.bf16 %v1242_v0, %v1241_v37  ;;  %v1249_v37 = vld [vmem:[#allocation2 + $0xab] sm:$0xff]  ;;  %v1250_v0 = vld [vmem:[#allocation2 + $0xb3] sm:$0xff] }
 0x13d   : > { %7982 = vrot.lane.b32.xlu1 %v7981_v58, %s9936_s11  ;;  %v10452_v25 = vpop.permute.xlu0 %7782 }
 0x13e   : > { %15265 = vst [vmem:[#allocation49_spill] sm:$0xff] %v10452_v25  ;;  %v1252_v25 = vld [vmem:[#allocation2 + $0xcb] sm:$0xff] }
 0x13f   : > { %v10454_v55 = vpop.permute.xlu1 %7772  ;;  %8002 = vrot.lane.b32.xlu2 %v8001_v5, %s9936_s11  ;;  %v8021_v5 = vpack.i.bf16 %v1244_v13, %v1243_v7  ;;  %v1253_v7 = vld [vmem:[#allocation2 + $0xdb] sm:$0xff] }
 0x140   : > { %15266 = vst [vmem:[#allocation50_spill] sm:$0xff] %v10454_v55  ;;  %v1282_v55 = vld [vmem:[#allocation2 + $0xb4] sm:$0xff] }
 0x141   : > { %v10457_v26 = vpop.permute.xlu2 %7837 }
 0x142   : > { %15267 = vst [vmem:[#allocation51_spill] sm:$0xff] %v10457_v26  ;;  %v1245_v26 = vld [vmem:[#allocation2 + $0x7b] sm:$0xff] }
 0x143   : > { %8007 = vrot.lane.b32.xlu0 %v8006_v27, %s9937_s12  ;;  %v8031_v27 = vpack.i.bf16 %v1248_v39, %v1247_v22  ;;  %v8026_v36 = vpack.i.bf16 %v1246_v47, %v1245_v26  ;;  %v1255_v22 = vld [vmem:[#allocation2 + $0xf3] sm:$0xff]  ;;  %v1256_v39 = vld [vmem:[#allocation2 + $0xfb] sm:$0xff]  ;;  %v1260_v47 = vld [vmem:[#allocation2 + $0x12b] sm:$0xff]  ;;  %v8041_v26 = vpack.i.bf16 %v1252_v25, %v1251_v41 }
 0x144   : > { %v1266_v41 = vld [vmem:[#allocation2 + $0x173] sm:$0xff] }
 0x145   : > { %7997 = vrot.lane.b32.xlu1 %v7996_v53, %s9936_s11  ;;  %v10461_v58 = vpop.permute.xlu0 %7797 }
 0x147   : > { %v10463_v14 = vpop.permute.xlu1 %7787  ;;  %8017 = vrot.lane.b32.xlu2 %v8016_v51, %s9937_s12  ;;  %v8036_v51 = vpack.i.bf16 %v1250_v0, %v1249_v37  ;;  %v1259_v37 = vld [vmem:[#allocation2 + $0x123] sm:$0xff] }
 0x149   : > { %v10466_v10 = vpop.permute.xlu2 %7852 }
 0x14b   : > { %8022 = vrot.lane.b32.xlu0 %v8021_v5, %s9937_s12  ;;  %v8046_v5 = vpack.i.bf16 %v1254_v35, %v1253_v7  ;;  %v1261_v7 = vld [vmem:[#allocation2 + $0x13b] sm:$0xff]  ;;  %v1262_v35 = vld [vmem:[#allocation2 + $0x143] sm:$0xff] }
 0x14d   : > { %8012 = vrot.lane.b32.xlu1 %v8011_v31, %s9937_s12  ;;  %v10470_v53 = vpop.permute.xlu0 %7812 }
 0x14e   : > { %15268 = vst [vmem:[#allocation52_spill] sm:$0xff] %v10470_v53  ;;  %v1288_v53 = vld [vmem:[#allocation2 + $0xfc] sm:$0xff] }
 0x14f   : > { %v10472_v60 = vpop.permute.xlu1 %7802  ;;  %8032 = vrot.lane.b32.xlu2 %v8031_v27, %s9937_s12  ;;  %v8051_v27 = vpack.i.bf16 %v1256_v39, %v1255_v22  ;;  %v1265_v22 = vld [vmem:[#allocation2 + $0x16b] sm:$0xff] }
 0x150   : > { %15269 = vst [vmem:[#allocation53_spill] sm:$0xff] %v10472_v60  ;;  %v1983_v60 = vld [vmem:[#allocation2 + $0xa9] sm:$0xff] }
 0x151   : > { %v10475_v13 = vpop.permute.xlu2 %7867 }
 0x153   : > { %8037 = vrot.lane.b32.xlu0 %v8036_v51, %s9937_s12  ;;  %v8061_v51 = vpack.i.bf16 %v1260_v47, %v1259_v37  ;;  %v1267_v37 = vld [vmem:[#allocation2 + $0x183] sm:$0xff]  ;;  %v1268_v47 = vld [vmem:[#allocation2 + $0x18b] sm:$0xff] }
 0x155   : > { %8027 = vrot.lane.b32.xlu1 %v8026_v36, %s9937_s12  ;;  %v10479_v31 = vpop.permute.xlu0 %7827 }
 0x156   : > { %15270 = vst [vmem:[#allocation54_spill] sm:$0xff] %v10479_v31  ;;  %v1257_v31 = vld [vmem:[#allocation2 + $0x10b] sm:$0xff] }
 0x157   : > { %v10481_v15 = vpop.permute.xlu1 %7817  ;;  %8047 = vrot.lane.b32.xlu2 %v8046_v5, %s9937_s12  ;;  %v8066_v5 = vpack.i.bf16 %v1262_v35, %v1261_v7  ;;  %v8056_v25 = vpack.i.bf16 %v1258_v43, %v1257_v31  ;;  %v1271_v7 = vld [vmem:[#allocation2 + $0x34] sm:$0xff]  ;;  %v1272_v43 = vld [vmem:[#allocation2 + $0x3c] sm:$0xff] }
 0x158   : > { %15271 = vst [vmem:[#allocation55_spill] sm:$0xff] %v10481_v15  ;;  %v1270_v15 = vld [vmem:[#allocation2 + $0x24] sm:$0xff] }
 0x159   : > { %v10484_v0 = vpop.permute.xlu2 %7882 }
 0x15b   : > { %8052 = vrot.lane.b32.xlu0 %v8051_v27, %s9937_s12  ;;  %v8076_v27 = vpack.i.bf16 %v1266_v41, %v1265_v22  ;;  %v1273_v22 = vld [vmem:[#allocation2 + $0x4c] sm:$0xff]  ;;  %v1274_v41 = vld [vmem:[#allocation2 + $0x54] sm:$0xff] }
 0x15d   : > { %8042 = vrot.lane.b32.xlu1 %v8041_v26, %s9937_s12  ;;  %v10488_v36 = vpop.permute.xlu0 %7842 }
 0x15e   : > { %15272 = vst [vmem:[#allocation56_spill] sm:$0xff] %v10488_v36  ;;  %v1263_v36 = vld [vmem:[#allocation2 + $0x153] sm:$0xff] }
 0x15f   : > { %v10490_v21 = vpop.permute.xlu1 %7832  ;;  %8062 = vrot.lane.b32.xlu2 %v8061_v51, %s9937_s12  ;;  %v8081_v51 = vpack.i.bf16 %v1268_v47, %v1267_v37  ;;  %v8071_v31 = vpack.i.bf16 %v1264_v59, %v1263_v36  ;;  %v1277_v37 = vld [vmem:[#allocation2 + $0x7c] sm:$0xff]  ;;  %v1278_v59 = vld [vmem:[#allocation2 + $0x84] sm:$0xff]  ;;  %v8086_v36 = vpack.i.bf16 %v1270_v15, %v1269_v17  ;;  %v1284_v15 = vld [vmem:[#allocation2 + $0xcc] sm:$0xff]  ;;  %v8101_v17 = vpack.i.bf16 %v1276_v6, %v1275_v4 }
 0x160   : > { %15273 = vst [vmem:[#allocation57_spill] sm:$0xff] %v10490_v21  ;;  %v1290_v6 = vld [vmem:[#allocation2 + $0x114] sm:$0xff]  ;;  %v8116_v4 = vpack.i.bf16 %v1282_v55, %v1281_v2  ;;  %v1296_v2 = vld [vmem:[#allocation2 + $0x15c] sm:$0xff]  ;;  %v8131_v55 = vpack.i.bf16 %v1288_v53, %v1287_v45  ;;  %v8146_v53 = vpack.i.bf16 %v1294_v11, %v1293_v48 }
 0x161   : > { %v10493_v39 = vpop.permute.xlu2 %7897  ;;  %v1974_v45 = vld [vmem:[#allocation2 + $0x39] sm:$0xff] }
 0x162   : > { %v1979_v48 = vld [vmem:[#allocation2 + $0x79] sm:$0xff] }
 0x163   : > { %8067 = vrot.lane.b32.xlu0 %v8066_v5, %s9937_s12  ;;  %v8091_v5 = vpack.i.bf16 %v1272_v43, %v1271_v7  ;;  %v1279_v7 = vld [vmem:[#allocation2 + $0x94] sm:$0xff]  ;;  %v1280_v43 = vld [vmem:[#allocation2 + $0x9c] sm:$0xff] }
 0x165   : > { %8057 = vrot.lane.b32.xlu1 %v8056_v25, %s9937_s12  ;;  %v10497_v26 = vpop.permute.xlu0 %7857 }
 0x167   : > { %v10499_v21 = vpop.permute.xlu1 %7847  ;;  %8077 = vrot.lane.b32.xlu2 %v8076_v27, %s9937_s12  ;;  %v8096_v27 = vpack.i.bf16 %v1274_v41, %v1273_v22  ;;  %v1283_v22 = vld [vmem:[#allocation2 + $0xc4] sm:$0xff] }
 0x169   : > { %v10502_v35 = vpop.permute.xlu2 %7912 }
 0x16a   : > { %v7915_v52 = vunpack.i.h.bf16 %v10502_v35 }
 0x16b   : > { %8082 = vrot.lane.b32.xlu0 %v8081_v51, %s9937_s12  ;;  %v8106_v51 = vpack.i.bf16 %v1278_v59, %v1277_v37  ;;  %v1285_v37 = vld [vmem:[#allocation2 + $0xdc] sm:$0xff]  ;;  %v1286_v59 = vld [vmem:[#allocation2 + $0xe4] sm:$0xff] }
 0x16d   : > { %8072 = vrot.lane.b32.xlu1 %v8071_v31, %s9937_s12  ;;  %v10506_v25 = vpop.permute.xlu0 %7872 }
 0x16f   : > { %v10508_v12 = vpop.permute.xlu1 %7862  ;;  %8092 = vrot.lane.b32.xlu2 %v8091_v5, %s9938_s13  ;;  %v8111_v5 = vpack.i.bf16 %v1280_v43, %v1279_v7  ;;  %v1289_v7 = vld [vmem:[#allocation2 + $0x10c] sm:$0xff] }
 0x171   : > { %v10511_v47 = vpop.permute.xlu2 %7927 }
 0x173   : > { %8097 = vrot.lane.b32.xlu0 %v8096_v27, %s9938_s13  ;;  %v8121_v27 = vpack.i.bf16 %v1284_v15, %v1283_v22  ;;  %v1291_v22 = vld [vmem:[#allocation2 + $0x124] sm:$0xff]  ;;  %v1292_v15 = vld [vmem:[#allocation2 + $0x12c] sm:$0xff] }
 0x175   : > { %8087 = vrot.lane.b32.xlu1 %v8086_v36, %s9938_s13  ;;  %v10515_v31 = vpop.permute.xlu0 %7887 }
 0x177   : > { %v10517_v40 = vpop.permute.xlu1 %7877  ;;  %8107 = vrot.lane.b32.xlu2 %v8106_v51, %s9938_s13  ;;  %v8126_v51 = vpack.i.bf16 %v1286_v59, %v1285_v37  ;;  %v1295_v37 = vld [vmem:[#allocation2 + $0x154] sm:$0xff] }
 0x179   : > { %v10520_v41 = vpop.permute.xlu2 %7942 }
 0x17a   : > { %v7945_v62 = vunpack.i.h.bf16 %v10520_v41 }
 0x17b   : > { %8112 = vrot.lane.b32.xlu0 %v8111_v5, %s9938_s13  ;;  %v8136_v5 = vpack.i.bf16 %v1290_v6, %v1289_v7  ;;  %v1297_v7 = vld [vmem:[#allocation2 + $0x16c] sm:$0xff]  ;;  %v1298_v6 = vld [vmem:[#allocation2 + $0x174] sm:$0xff] }
 0x17d   : > { %8102 = vrot.lane.b32.xlu1 %v8101_v17, %s9938_s13  ;;  %v10524_v36 = vpop.permute.xlu0 %7902 }
 0x17f   : > { %v10526_v46 = vpop.permute.xlu1 %7892  ;;  %8122 = vrot.lane.b32.xlu2 %v8121_v27, %s9938_s13  ;;  %v8141_v27 = vpack.i.bf16 %v1292_v15, %v1291_v22  ;;  %v1973_v22 = vld [vmem:[#allocation2 + $0x31] sm:$0xff] }
 0x181   : > { %v10529_v43 = vpop.permute.xlu2 %7957 }
 0x183   : > { %8127 = vrot.lane.b32.xlu0 %v8126_v51, %s9938_s13  ;;  %v8151_v51 = vpack.i.bf16 %v1296_v2, %v1295_v37  ;;  %v1975_v37 = vld [vmem:[#allocation2 + $0x49] sm:$0xff]  ;;  %v1976_v2 = vld [vmem:[#allocation2 + $0x51] sm:$0xff] }
 0x184   : > { %v8171_v11 = vpack.i.bf16 %v1976_v2, %v1975_v37  ;;  %v1978_v37 = vld [vmem:[#allocation2 + $0x69] sm:$0xff]  ;;  %v1985_v2 = vld [vmem:[#allocation2 + $0xc1] sm:$0xff] }
 0x185   : > { %8117 = vrot.lane.b32.xlu1 %v8116_v4, %s9938_s13  ;;  %v10533_v17 = vpop.permute.xlu0 %7917 }
 0x187   : > { %v10535_v3 = vpop.permute.xlu1 %7907  ;;  %8137 = vrot.lane.b32.xlu2 %v8136_v5, %s9938_s13  ;;  %v8156_v5 = vpack.i.bf16 %v1298_v6, %v1297_v7  ;;  %v1980_v7 = vld [vmem:[#allocation2 + $0x81] sm:$0xff]  ;;  %v8161_v6 = vpack.i.bf16 %v1300_v54, %v1299_v34 }
 0x189   : > { %v10538_v59 = vpop.permute.xlu2 %7972 }
 0x18b   : > { %8142 = vrot.lane.b32.xlu0 %v8141_v27, %s9938_s13  ;;  %v8166_v27 = vpack.i.bf16 %v1974_v45, %v1973_v22  ;;  %v8181_v22 = vpack.i.bf16 %v1980_v7, %v1979_v48  ;;  %v254_v45 = vld [vmem:[%s10046_s9 + $0xf0] sm:$0xff] }
 0x18c   : > { %335 = vst.msk [vmem:[#allocation2 + $0x19a] sm:$0xff] %vm256_vm0, %v254_v45 }
 0x18d   : > { %8132 = vrot.lane.b32.xlu1 %v8131_v55, %s9938_s13  ;;  %v10542_v4 = vpop.permute.xlu0 %7932 }
 0x18e   : > { %15274 = vst [vmem:[#allocation58_spill] sm:$0xff] %v10542_v4  ;;  %v354_v4 = vld [vmem:[#allocation2 + $0xc8] sm:$0xff] }
 0x18f   : > { %v10544_v29 = vpop.permute.xlu1 %7922  ;;  %8152 = vrot.lane.b32.xlu2 %v8151_v51, %s9938_s13 }
 0x190   : > { %15275 = vst [vmem:[#allocation59_spill] sm:$0xff] %v10544_v29  ;;  %v3605_v29 = vld [vmem:[#allocation2 + $0x1c9] sm:$0xff] }
 0x191   : > { %v10547_v15 = vpop.permute.xlu2 %7987 }
 0x192   : > { %15276 = vst [vmem:[#allocation60_spill] sm:$0xff] %v10547_v15  ;;  %v7569_v15 = vunpack.i.l.bf16 %v10275_v63 }
 0x193   : > { %8157 = vrot.lane.b32.xlu0 %v8156_v5, %s9938_s13 }
 0x195   : > { %8147 = vrot.lane.b32.xlu1 %v8146_v53, %s9938_s13  ;;  %v10551_v55 = vpop.permute.xlu0 %7947  ;;  %v1981_v53 = vld [vmem:[#allocation2 + $0x91] sm:$0xff] }
 0x196   : > { %15277 = vst [vmem:[#allocation61_spill] sm:$0xff] %v10551_v55  ;;  %v8186_v34 = vpack.i.bf16 %v1982_v24, %v1981_v53  ;;  %v1992_v53 = vld [vmem:[#allocation2 + $0x111] sm:$0xff] }
 0x197   : > { %v10553_v51 = vpop.permute.xlu1 %7937  ;;  %8167 = vrot.lane.b32.xlu2 %v8166_v27, %s9935_s10  ;;  %v1977_v27 = vld [vmem:[#allocation2 + $0x61] sm:$0xff]  ;;  %v339_v55 = vld [vmem:[#allocation2 + $0x18] sm:$0xff] }
 0x198   : > { %15278 = vst [vmem:[#allocation62_spill] sm:$0xff] %v10553_v51  ;;  %v8176_v48 = vpack.i.bf16 %v1978_v37, %v1977_v27  ;;  %v8191_v27 = vpack.i.bf16 %v1984_v16, %v1983_v60  ;;  %v1998_v60 = vld [vmem:[#allocation2 + $0x159] sm:$0xff]  ;;  %v7554_v51 = vunpack.i.l.bf16 %v10270_v50 }
 0x199   : > { %v10556_v5 = vpop.permute.xlu2 %8002 }
 0x19a   : > { %15279 = vst [vmem:[#allocation63_spill] sm:$0xff] %v10556_v5  ;;  %v348_v5 = vld [vmem:[#allocation2 + $0x80] sm:$0xff] }
 0x19b   : > { %8172 = vrot.lane.b32.xlu0 %v8171_v11, %s9935_s10  ;;  %v1986_v11 = vld [vmem:[#allocation2 + $0xc9] sm:$0xff] }
 0x19c   : > { %v8196_v45 = vpack.i.bf16 %v1986_v11, %v1985_v2  ;;  %v1993_v2 = vld [vmem:[#allocation2 + $0x121] sm:$0xff]  ;;  %v1994_v11 = vld [vmem:[#allocation2 + $0x129] sm:$0xff] }
 0x19d   : > { %8162 = vrot.lane.b32.xlu1 %v8161_v6, %s9938_s13  ;;  %v10563_v8 = vpop.permute.xlu0 %7962  ;;  %v1987_v6 = vld [vmem:[#allocation2 + $0xd9] sm:$0xff] }
 0x19e   : > { %15280 = vst [vmem:[#allocation64_spill] sm:$0xff] %v10563_v8  ;;  %v8201_v24 = vpack.i.bf16 %v1988_v23, %v1987_v6  ;;  %v8216_v23 = vpack.i.bf16 %v1994_v11, %v1993_v2  ;;  %v2003_v2 = vld [vmem:[#allocation2 + $0x199] sm:$0xff]  ;;  %v7529_v8 = vunpack.i.l.bf16 %v10277_v1 }
 0x19f   : > { %v10566_v54 = vpop.permute.xlu1 %7952  ;;  %8182 = vrot.lane.b32.xlu2 %v8181_v22, %s9935_s10  ;;  %v1991_v22 = vld [vmem:[#allocation2 + $0x109] sm:$0xff] }
 0x1a0   : > { %15281 = vst [vmem:[#allocation65_spill] sm:$0xff] %v10566_v54 }
 0x1a1   : > { %v10569_v7 = vpop.permute.xlu2 %8017 }
 0x1a2   : > { %15282 = vst [vmem:[#allocation66_spill] sm:$0xff] %v10569_v7  ;;  %v1990_v7 = vld [vmem:[#allocation2 + $0xf9] sm:$0xff] }
 0x1a3   : > { %8187 = vrot.lane.b32.xlu0 %v8186_v34, %s9935_s10  ;;  %v8211_v34 = vpack.i.bf16 %v1992_v53, %v1991_v22  ;;  %v1999_v22 = vld [vmem:[#allocation2 + $0x169] sm:$0xff]  ;;  %v2000_v53 = vld [vmem:[#allocation2 + $0x171] sm:$0xff] }
 0x1a5   : > { %8177 = vrot.lane.b32.xlu1 %v8176_v48, %s9935_s10  ;;  %v10573_v30 = vpop.permute.xlu0 %7977 }
 0x1a6   : > { %15283 = vst [vmem:[#allocation67_spill] sm:$0xff] %v10573_v30  ;;  %v1989_v30 = vld [vmem:[#allocation2 + $0xf1] sm:$0xff] }
 0x1a7   : > { %v10575_v33 = vpop.permute.xlu1 %7967  ;;  %8197 = vrot.lane.b32.xlu2 %v8196_v45, %s9935_s10  ;;  %v1997_v45 = vld [vmem:[#allocation2 + $0x151] sm:$0xff]  ;;  %v8206_v16 = vpack.i.bf16 %v1990_v7, %v1989_v30  ;;  %v2004_v7 = vld [vmem:[#allocation2 + $0x1a1] sm:$0xff] }
 0x1a8   : > { %15284 = vst [vmem:[#allocation68_spill] sm:$0xff] %v10575_v33 }
 0x1a9   : > { %v10578_v37 = vpop.permute.xlu2 %8032 }
 0x1aa   : > { %15285 = vst [vmem:[#allocation69_spill] sm:$0xff] %v10578_v37  ;;  %v1996_v37 = vld [vmem:[#allocation2 + $0x141] sm:$0xff] }
 0x1ab   : > { %8202 = vrot.lane.b32.xlu0 %v8201_v24, %s9935_s10  ;;  %v8226_v24 = vpack.i.bf16 %v1998_v60, %v1997_v45  ;;  %v2005_v45 = vld [vmem:[#allocation2 + $0x32] sm:$0xff]  ;;  %v2006_v60 = vld [vmem:[#allocation2 + $0x3a] sm:$0xff] }
 0x1ad   : > { %8192 = vrot.lane.b32.xlu1 %v8191_v27, %s9935_s10  ;;  %v10582_v48 = vpop.permute.xlu0 %7992 }
 0x1ae   : > { %15286 = vst [vmem:[#allocation70_spill] sm:$0xff] %v10582_v48  ;;  %v1995_v48 = vld [vmem:[#allocation2 + $0x139] sm:$0xff] }
 0x1af   : > { %v10584_v33 = vpop.permute.xlu1 %7982  ;;  %8212 = vrot.lane.b32.xlu2 %v8211_v34, %s9935_s10  ;;  %v8231_v34 = vpack.i.bf16 %v2000_v53, %v1999_v22  ;;  %v8221_v30 = vpack.i.bf16 %v1996_v37, %v1995_v48  ;;  %v2009_v22 = vld [vmem:[#allocation2 + $0x62] sm:$0xff]  ;;  %v2010_v37 = vld [vmem:[#allocation2 + $0x6a] sm:$0xff] }
 0x1b0   : > { %15287 = vst [vmem:[#allocation71_spill] sm:$0xff] %v10584_v33 }
 0x1b1   : > { %v10587_v6 = vpop.permute.xlu2 %8047 }
 0x1b2   : > { %15288 = vst [vmem:[#allocation72_spill] sm:$0xff] %v10587_v6  ;;  %v2002_v6 = vld [vmem:[#allocation2 + $0x189] sm:$0xff] }
 0x1b3   : > { %8217 = vrot.lane.b32.xlu0 %v8216_v23, %s9935_s10  ;;  %v8241_v23 = vpack.i.bf16 %v2004_v7, %v2003_v2  ;;  %v2011_v2 = vld [vmem:[#allocation2 + $0x7a] sm:$0xff]  ;;  %v2012_v7 = vld [vmem:[#allocation2 + $0x82] sm:$0xff] }
 0x1b5   : > { %8207 = vrot.lane.b32.xlu1 %v8206_v16, %s9935_s10  ;;  %v10591_v27 = vpop.permute.xlu0 %8007 }
 0x1b6   : > { %15289 = vst [vmem:[#allocation73_spill] sm:$0xff] %v10591_v27  ;;  %v2001_v27 = vld [vmem:[#allocation2 + $0x181] sm:$0xff] }
 0x1b7   : > { %v10593_v33 = vpop.permute.xlu1 %7997  ;;  %8227 = vrot.lane.b32.xlu2 %v8226_v24, %s9935_s10  ;;  %v8246_v24 = vpack.i.bf16 %v2006_v60, %v2005_v45  ;;  %v8236_v48 = vpack.i.bf16 %v2002_v6, %v2001_v27  ;;  %v2015_v45 = vld [vmem:[#allocation2 + $0xaa] sm:$0xff]  ;;  %v2016_v6 = vld [vmem:[#allocation2 + $0xb2] sm:$0xff] }
 0x1b8   : > { %15290 = vst [vmem:[#allocation74_spill] sm:$0xff] %v10593_v33 }
 0x1b9   : > { %v10596_v11 = vpop.permute.xlu2 %8062 }
 0x1ba   : > { %15291 = vst [vmem:[#allocation75_spill] sm:$0xff] %v10596_v11  ;;  %v2008_v11 = vld [vmem:[#allocation2 + $0x52] sm:$0xff] }
 0x1bb   : > { %8232 = vrot.lane.b32.xlu0 %v8231_v34, %s9935_s10  ;;  %v8256_v34 = vpack.i.bf16 %v2010_v37, %v2009_v22  ;;  %v2017_v22 = vld [vmem:[#allocation2 + $0xc2] sm:$0xff]  ;;  %v2018_v37 = vld [vmem:[#allocation2 + $0xca] sm:$0xff] }
 0x1bd   : > { %8222 = vrot.lane.b32.xlu1 %v8221_v30, %s9935_s10  ;;  %v10600_v16 = vpop.permute.xlu0 %8022 }
 0x1be   : > { %15292 = vst [vmem:[#allocation76_spill] sm:$0xff] %v10600_v16  ;;  %v2007_v16 = vld [vmem:[#allocation2 + $0x4a] sm:$0xff] }
 0x1bf   : > { %v10602_v33 = vpop.permute.xlu1 %8012  ;;  %8242 = vrot.lane.b32.xlu2 %v8241_v23, %s9935_s10  ;;  %v8261_v23 = vpack.i.bf16 %v2012_v7, %v2011_v2  ;;  %v8251_v27 = vpack.i.bf16 %v2008_v11, %v2007_v16  ;;  %v2021_v2 = vld [vmem:[#allocation2 + $0xf2] sm:$0xff]  ;;  %v2022_v11 = vld [vmem:[#allocation2 + $0xfa] sm:$0xff] }
 0x1c0   : > { %15293 = vst [vmem:[#allocation77_spill] sm:$0xff] %v10602_v33 }
 0x1c1   : > { %v10605_v53 = vpop.permute.xlu2 %8077 }
 0x1c2   : > { %15294 = vst [vmem:[#allocation78_spill] sm:$0xff] %v10605_v53  ;;  %v2014_v53 = vld [vmem:[#allocation2 + $0x9a] sm:$0xff] }
 0x1c3   : > { %8247 = vrot.lane.b32.xlu0 %v8246_v24, %s9936_s11  ;;  %v8271_v24 = vpack.i.bf16 %v2016_v6, %v2015_v45  ;;  %v2023_v45 = vld [vmem:[#allocation2 + $0x10a] sm:$0xff]  ;;  %v2024_v6 = vld [vmem:[#allocation2 + $0x112] sm:$0xff] }
 0x1c5   : > { %8237 = vrot.lane.b32.xlu1 %v8236_v48, %s9935_s10  ;;  %v10609_v30 = vpop.permute.xlu0 %8037 }
 0x1c6   : > { %15295 = vst [vmem:[#allocation79_spill] sm:$0xff] %v10609_v30  ;;  %v2013_v30 = vld [vmem:[#allocation2 + $0x92] sm:$0xff] }
 0x1c7   : > { %v10611_v33 = vpop.permute.xlu1 %8027  ;;  %8257 = vrot.lane.b32.xlu2 %v8256_v34, %s9936_s11  ;;  %v8276_v34 = vpack.i.bf16 %v2018_v37, %v2017_v22  ;;  %v8266_v16 = vpack.i.bf16 %v2014_v53, %v2013_v30  ;;  %v2027_v22 = vld [vmem:[#allocation2 + $0x13a] sm:$0xff]  ;;  %v2028_v53 = vld [vmem:[#allocation2 + $0x142] sm:$0xff] }
 0x1c8   : > { %15296 = vst [vmem:[#allocation80_spill] sm:$0xff] %v10611_v33 }
 0x1c9   : > { %v10614_v60 = vpop.permute.xlu2 %8092 }
 0x1ca   : > { %15297 = vst [vmem:[#allocation81_spill] sm:$0xff] %v10614_v60  ;;  %v2020_v60 = vld [vmem:[#allocation2 + $0xe2] sm:$0xff] }
 0x1cb   : > { %8262 = vrot.lane.b32.xlu0 %v8261_v23, %s9936_s11  ;;  %v8286_v23 = vpack.i.bf16 %v2022_v11, %v2021_v2  ;;  %v2029_v2 = vld [vmem:[#allocation2 + $0x152] sm:$0xff]  ;;  %v2030_v11 = vld [vmem:[#allocation2 + $0x15a] sm:$0xff] }
 0x1cd   : > { %8252 = vrot.lane.b32.xlu1 %v8251_v27, %s9936_s11  ;;  %v10618_v48 = vpop.permute.xlu0 %8052 }
 0x1ce   : > { %15298 = vst [vmem:[#allocation82_spill] sm:$0xff] %v10618_v48  ;;  %v2019_v48 = vld [vmem:[#allocation2 + $0xda] sm:$0xff] }
 0x1cf   : > { %v10620_v33 = vpop.permute.xlu1 %8042  ;;  %8272 = vrot.lane.b32.xlu2 %v8271_v24, %s9936_s11  ;;  %v8291_v24 = vpack.i.bf16 %v2024_v6, %v2023_v45  ;;  %v8281_v30 = vpack.i.bf16 %v2020_v60, %v2019_v48  ;;  %v2033_v45 = vld [vmem:[#allocation2 + $0x182] sm:$0xff]  ;;  %v2034_v60 = vld [vmem:[#allocation2 + $0x18a] sm:$0xff] }
 0x1d0   : > { %15299 = vst [vmem:[#allocation83_spill] sm:$0xff] %v10620_v33 }
 0x1d1   : > { %v10623_v7 = vpop.permute.xlu2 %8107 }
 0x1d2   : > { %15300 = vst [vmem:[#allocation84_spill] sm:$0xff] %v10623_v7  ;;  %v2026_v7 = vld [vmem:[#allocation2 + $0x12a] sm:$0xff] }
 0x1d3   : > { %8277 = vrot.lane.b32.xlu0 %v8276_v34, %s9936_s11  ;;  %v8301_v34 = vpack.i.bf16 %v2028_v53, %v2027_v22  ;;  %v2035_v22 = vld [vmem:[#allocation2 + $0x19a] sm:$0xff]  ;;  %v2036_v53 = vld [vmem:[#allocation2 + $0x1a2] sm:$0xff] }
 0x1d5   : > { %8267 = vrot.lane.b32.xlu1 %v8266_v16, %s9936_s11  ;;  %v10627_v27 = vpop.permute.xlu0 %8067 }
 0x1d6   : > { %15301 = vst [vmem:[#allocation85_spill] sm:$0xff] %v10627_v27  ;;  %v2025_v27 = vld [vmem:[#allocation2 + $0x122] sm:$0xff] }
 0x1d7   : > { %v10629_v33 = vpop.permute.xlu1 %8057  ;;  %8287 = vrot.lane.b32.xlu2 %v8286_v23, %s9936_s11  ;;  %v8306_v23 = vpack.i.bf16 %v2030_v11, %v2029_v2  ;;  %v8296_v48 = vpack.i.bf16 %v2026_v7, %v2025_v27  ;;  %v2039_v2 = vld [vmem:[#allocation2 + $0x4b] sm:$0xff]  ;;  %v2040_v7 = vld [vmem:[#allocation2 + $0x53] sm:$0xff] }
 0x1d8   : > { %15302 = vst [vmem:[#allocation86_spill] sm:$0xff] %v10629_v33 }
 0x1d9   : > { %v10632_v37 = vpop.permute.xlu2 %8122 }
 0x1da   : > { %15303 = vst [vmem:[#allocation87_spill] sm:$0xff] %v10632_v37  ;;  %v2032_v37 = vld [vmem:[#allocation2 + $0x172] sm:$0xff] }
 0x1db   : > { %8292 = vrot.lane.b32.xlu0 %v8291_v24, %s9936_s11  ;;  %v8316_v24 = vpack.i.bf16 %v2034_v60, %v2033_v45  ;;  %v2041_v45 = vld [vmem:[#allocation2 + $0x63] sm:$0xff]  ;;  %v2042_v60 = vld [vmem:[#allocation2 + $0x6b] sm:$0xff] }
 0x1dd   : > { %8282 = vrot.lane.b32.xlu1 %v8281_v30, %s9936_s11  ;;  %v10636_v16 = vpop.permute.xlu0 %8082 }
 0x1de   : > { %15304 = vst [vmem:[#allocation88_spill] sm:$0xff] %v10636_v16  ;;  %v2031_v16 = vld [vmem:[#allocation2 + $0x16a] sm:$0xff] }
 0x1df   : > { %v10638_v33 = vpop.permute.xlu1 %8072  ;;  %8302 = vrot.lane.b32.xlu2 %v8301_v34, %s9936_s11  ;;  %v8321_v34 = vpack.i.bf16 %v2036_v53, %v2035_v22  ;;  %v8311_v27 = vpack.i.bf16 %v2032_v37, %v2031_v16  ;;  %v2045_v22 = vld [vmem:[#allocation2 + $0x93] sm:$0xff]  ;;  %v2046_v37 = vld [vmem:[#allocation2 + $0x9b] sm:$0xff] }
 0x1e0   : > { %15305 = vst [vmem:[#allocation89_spill] sm:$0xff] %v10638_v33 }
 0x1e1   : > { %v10641_v6 = vpop.permute.xlu2 %8137 }
 0x1e2   : > { %15306 = vst [vmem:[#allocation90_spill] sm:$0xff] %v10641_v6  ;;  %v2038_v6 = vld [vmem:[#allocation2 + $0x3b] sm:$0xff] }
 0x1e3   : > { %8307 = vrot.lane.b32.xlu0 %v8306_v23, %s9936_s11  ;;  %v8331_v23 = vpack.i.bf16 %v2040_v7, %v2039_v2  ;;  %v2047_v2 = vld [vmem:[#allocation2 + $0xab] sm:$0xff]  ;;  %v2048_v7 = vld [vmem:[#allocation2 + $0xb3] sm:$0xff] }
 0x1e5   : > { %8297 = vrot.lane.b32.xlu1 %v8296_v48, %s9936_s11  ;;  %v10645_v30 = vpop.permute.xlu0 %8097 }
 0x1e6   : > { %15307 = vst [vmem:[#allocation91_spill] sm:$0xff] %v10645_v30  ;;  %v2037_v30 = vld [vmem:[#allocation2 + $0x33] sm:$0xff] }
 0x1e7   : > { %v10647_v33 = vpop.permute.xlu1 %8087  ;;  %8317 = vrot.lane.b32.xlu2 %v8316_v24, %s9936_s11  ;;  %v8336_v24 = vpack.i.bf16 %v2042_v60, %v2041_v45  ;;  %v8326_v16 = vpack.i.bf16 %v2038_v6, %v2037_v30  ;;  %v2051_v45 = vld [vmem:[#allocation2 + $0xdb] sm:$0xff]  ;;  %v2052_v6 = vld [vmem:[#allocation2 + $0xe3] sm:$0xff] }
 0x1e8   : > { %15308 = vst [vmem:[#allocation92_spill] sm:$0xff] %v10647_v33 }
 0x1e9   : > { %v10650_v11 = vpop.permute.xlu2 %8152 }
 0x1ea   : > { %15309 = vst [vmem:[#allocation93_spill] sm:$0xff] %v10650_v11  ;;  %v2044_v11 = vld [vmem:[#allocation2 + $0x83] sm:$0xff] }
 0x1eb   : > { %8322 = vrot.lane.b32.xlu0 %v8321_v34, %s9936_s11  ;;  %v8346_v34 = vpack.i.bf16 %v2046_v37, %v2045_v22  ;;  %v2053_v22 = vld [vmem:[#allocation2 + $0xf3] sm:$0xff]  ;;  %v2054_v37 = vld [vmem:[#allocation2 + $0xfb] sm:$0xff] }
 0x1ed   : > { %8312 = vrot.lane.b32.xlu1 %v8311_v27, %s9936_s11  ;;  %v10654_v48 = vpop.permute.xlu0 %8112 }
 0x1ee   : > { %15310 = vst [vmem:[#allocation94_spill] sm:$0xff] %v10654_v48  ;;  %v2043_v48 = vld [vmem:[#allocation2 + $0x7b] sm:$0xff] }
 0x1ef   : > { %v10656_v33 = vpop.permute.xlu1 %8102  ;;  %8332 = vrot.lane.b32.xlu2 %v8331_v23, %s9937_s12  ;;  %v8351_v23 = vpack.i.bf16 %v2048_v7, %v2047_v2  ;;  %v8341_v30 = vpack.i.bf16 %v2044_v11, %v2043_v48  ;;  %v2057_v2 = vld [vmem:[#allocation2 + $0x123] sm:$0xff]  ;;  %v2058_v11 = vld [vmem:[#allocation2 + $0x12b] sm:$0xff] }
 0x1f0   : > { %15311 = vst [vmem:[#allocation95_spill] sm:$0xff] %v10656_v33 }
 0x1f1   : > { %v10659_v53 = vpop.permute.xlu2 %8167 }
 0x1f2   : > { %15312 = vst [vmem:[#allocation96_spill] sm:$0xff] %v10659_v53  ;;  %v2049_v53 = vld [vmem:[#allocation2 + $0xc3] sm:$0xff] }
 0x1f3   : > { %8337 = vrot.lane.b32.xlu0 %v8336_v24, %s9937_s12  ;;  %v8361_v24 = vpack.i.bf16 %v2052_v6, %v2051_v45  ;;  %v2059_v45 = vld [vmem:[#allocation2 + $0x13b] sm:$0xff]  ;;  %v2060_v6 = vld [vmem:[#allocation2 + $0x143] sm:$0xff] }
 0x1f5   : > { %8327 = vrot.lane.b32.xlu1 %v8326_v16, %s9937_s12  ;;  %v10663_v27 = vpop.permute.xlu0 %8127 }
 0x1f6   : > { %15313 = vst [vmem:[#allocation97_spill] sm:$0xff] %v10663_v27  ;;  %v2050_v27 = vld [vmem:[#allocation2 + $0xcb] sm:$0xff] }
 0x1f7   : > { %v10665_v33 = vpop.permute.xlu1 %8117  ;;  %8347 = vrot.lane.b32.xlu2 %v8346_v34, %s9937_s12  ;;  %v8366_v34 = vpack.i.bf16 %v2054_v37, %v2053_v22  ;;  %v8356_v48 = vpack.i.bf16 %v2050_v27, %v2049_v53  ;;  %v2063_v22 = vld [vmem:[#allocation2 + $0x16b] sm:$0xff]  ;;  %v2064_v53 = vld [vmem:[#allocation2 + $0x173] sm:$0xff] }
 0x1f8   : > { %15314 = vst [vmem:[#allocation98_spill] sm:$0xff] %v10665_v33 }
 0x1f9   : > { %v10668_v60 = vpop.permute.xlu2 %8182 }
 0x1fa   : > { %15315 = vst [vmem:[#allocation99_spill] sm:$0xff] %v10668_v60  ;;  %v2055_v60 = vld [vmem:[#allocation2 + $0x10b] sm:$0xff] }
 0x1fb   : > { %8352 = vrot.lane.b32.xlu0 %v8351_v23, %s9937_s12  ;;  %v8376_v23 = vpack.i.bf16 %v2058_v11, %v2057_v2  ;;  %v2065_v2 = vld [vmem:[#allocation2 + $0x183] sm:$0xff]  ;;  %v2066_v11 = vld [vmem:[#allocation2 + $0x18b] sm:$0xff] }
 0x1fd   : > { %8342 = vrot.lane.b32.xlu1 %v8341_v30, %s9937_s12  ;;  %v10672_v16 = vpop.permute.xlu0 %8142 }
 0x1fe   : > { %15316 = vst [vmem:[#allocation100_spill] sm:$0xff] %v10672_v16  ;;  %v2056_v16 = vld [vmem:[#allocation2 + $0x113] sm:$0xff] }
 0x1ff   : > { %v10674_v33 = vpop.permute.xlu1 %8132  ;;  %8362 = vrot.lane.b32.xlu2 %v8361_v24, %s9937_s12  ;;  %v8381_v24 = vpack.i.bf16 %v2060_v6, %v2059_v45  ;;  %v8371_v27 = vpack.i.bf16 %v2056_v16, %v2055_v60  ;;  %v2069_v45 = vld [vmem:[#allocation2 + $0x34] sm:$0xff]  ;;  %v2070_v60 = vld [vmem:[#allocation2 + $0x3c] sm:$0xff] }
 0x200   : > { %15317 = vst [vmem:[#allocation101_spill] sm:$0xff] %v10674_v33 }
 0x201   : > { %v10677_v7 = vpop.permute.xlu2 %8197 }
 0x202   : > { %15318 = vst [vmem:[#allocation102_spill] sm:$0xff] %v10677_v7  ;;  %v2061_v7 = vld [vmem:[#allocation2 + $0x153] sm:$0xff] }
 0x203   : > { %8367 = vrot.lane.b32.xlu0 %v8366_v34, %s9937_s12  ;;  %v8391_v34 = vpack.i.bf16 %v2064_v53, %v2063_v22  ;;  %v2071_v22 = vld [vmem:[#allocation2 + $0x4c] sm:$0xff]  ;;  %v2072_v53 = vld [vmem:[#allocation2 + $0x54] sm:$0xff] }
 0x205   : > { %8357 = vrot.lane.b32.xlu1 %v8356_v48, %s9937_s12  ;;  %v10681_v30 = vpop.permute.xlu0 %8157 }
 0x206   : > { %15319 = vst [vmem:[#allocation103_spill] sm:$0xff] %v10681_v30  ;;  %v2062_v30 = vld [vmem:[#allocation2 + $0x15b] sm:$0xff] }
 0x207   : > { %v10683_v33 = vpop.permute.xlu1 %8147  ;;  %8377 = vrot.lane.b32.xlu2 %v8376_v23, %s9937_s12  ;;  %v8396_v23 = vpack.i.bf16 %v2066_v11, %v2065_v2  ;;  %v8386_v16 = vpack.i.bf16 %v2062_v30, %v2061_v7  ;;  %v2075_v2 = vld [vmem:[#allocation2 + $0x7c] sm:$0xff]  ;;  %v2076_v7 = vld [vmem:[#allocation2 + $0x84] sm:$0xff] }
 0x208   : > { %15320 = vst [vmem:[#allocation104_spill] sm:$0xff] %v10683_v33 }
 0x209   : > { %v10686_v37 = vpop.permute.xlu2 %8212 }
 0x20a   : > { %15321 = vst [vmem:[#allocation105_spill] sm:$0xff] %v10686_v37  ;;  %v2068_v37 = vld [vmem:[#allocation2 + $0x1a3] sm:$0xff] }
 0x20b   : > { %8382 = vrot.lane.b32.xlu0 %v8381_v24, %s9937_s12  ;;  %v8406_v24 = vpack.i.bf16 %v2070_v60, %v2069_v45  ;;  %v2077_v45 = vld [vmem:[#allocation2 + $0x94] sm:$0xff]  ;;  %v2078_v60 = vld [vmem:[#allocation2 + $0x9c] sm:$0xff] }
 0x20d   : > { %8372 = vrot.lane.b32.xlu1 %v8371_v27, %s9937_s12  ;;  %v10690_v48 = vpop.permute.xlu0 %8172 }
 0x20e   : > { %15322 = vst [vmem:[#allocation106_spill] sm:$0xff] %v10690_v48  ;;  %v2067_v48 = vld [vmem:[#allocation2 + $0x19b] sm:$0xff] }
 0x20f   : > { %v10692_v33 = vpop.permute.xlu1 %8162  ;;  %8392 = vrot.lane.b32.xlu2 %v8391_v34, %s9937_s12  ;;  %v8411_v34 = vpack.i.bf16 %v2072_v53, %v2071_v22  ;;  %v8401_v30 = vpack.i.bf16 %v2068_v37, %v2067_v48  ;;  %v2081_v22 = vld [vmem:[#allocation2 + $0xc4] sm:$0xff]  ;;  %v2082_v37 = vld [vmem:[#allocation2 + $0xcc] sm:$0xff] }
 0x210   : > { %15323 = vst [vmem:[#allocation107_spill] sm:$0xff] %v10692_v33 }
 0x211   : > { %v10695_v6 = vpop.permute.xlu2 %8227 }
 0x212   : > { %15324 = vst [vmem:[#allocation108_spill] sm:$0xff] %v10695_v6  ;;  %v2074_v6 = vld [vmem:[#allocation2 + $0x6c] sm:$0xff] }
 0x213   : > { %8397 = vrot.lane.b32.xlu0 %v8396_v23, %s9937_s12  ;;  %v8421_v23 = vpack.i.bf16 %v2076_v7, %v2075_v2  ;;  %v2083_v2 = vld [vmem:[#allocation2 + $0xdc] sm:$0xff]  ;;  %v2084_v7 = vld [vmem:[#allocation2 + $0xe4] sm:$0xff] }
 0x215   : > { %8387 = vrot.lane.b32.xlu1 %v8386_v16, %s9937_s12  ;;  %v10699_v27 = vpop.permute.xlu0 %8187 }
 0x216   : > { %15325 = vst [vmem:[#allocation109_spill] sm:$0xff] %v10699_v27  ;;  %v2073_v27 = vld [vmem:[#allocation2 + $0x64] sm:$0xff] }
 0x217   : > { %v10701_v33 = vpop.permute.xlu1 %8177  ;;  %8407 = vrot.lane.b32.xlu2 %v8406_v24, %s9938_s13  ;;  %v8426_v24 = vpack.i.bf16 %v2078_v60, %v2077_v45  ;;  %v8416_v48 = vpack.i.bf16 %v2074_v6, %v2073_v27  ;;  %v2087_v45 = vld [vmem:[#allocation2 + $0x10c] sm:$0xff]  ;;  %v2088_v6 = vld [vmem:[#allocation2 + $0x114] sm:$0xff] }
 0x218   : > { %15326 = vst [vmem:[#allocation110_spill] sm:$0xff] %v10701_v33 }
 0x219   : > { %v10704_v11 = vpop.permute.xlu2 %8242 }
 0x21a   : > { %15327 = vst [vmem:[#allocation111_spill] sm:$0xff] %v10704_v11  ;;  %v2079_v11 = vld [vmem:[#allocation2 + $0xac] sm:$0xff] }
 0x21b   : > { %8412 = vrot.lane.b32.xlu0 %v8411_v34, %s9938_s13  ;;  %v8436_v34 = vpack.i.bf16 %v2082_v37, %v2081_v22  ;;  %v2089_v22 = vld [vmem:[#allocation2 + $0x124] sm:$0xff]  ;;  %v2090_v37 = vld [vmem:[#allocation2 + $0x12c] sm:$0xff] }
 0x21d   : > { %8402 = vrot.lane.b32.xlu1 %v8401_v30, %s9937_s12  ;;  %v10708_v16 = vpop.permute.xlu0 %8202 }
 0x21e   : > { %15328 = vst [vmem:[#allocation112_spill] sm:$0xff] %v10708_v16  ;;  %v2080_v16 = vld [vmem:[#allocation2 + $0xb4] sm:$0xff] }
 0x21f   : > { %v10710_v33 = vpop.permute.xlu1 %8192  ;;  %8422 = vrot.lane.b32.xlu2 %v8421_v23, %s9938_s13  ;;  %v8441_v23 = vpack.i.bf16 %v2084_v7, %v2083_v2  ;;  %v8431_v27 = vpack.i.bf16 %v2080_v16, %v2079_v11  ;;  %v2093_v2 = vld [vmem:[#allocation2 + $0x154] sm:$0xff]  ;;  %v2094_v11 = vld [vmem:[#allocation2 + $0x15c] sm:$0xff] }
 0x220   : > { %15329 = vst [vmem:[#allocation113_spill] sm:$0xff] %v10710_v33 }
 0x221   : > { %v10713_v53 = vpop.permute.xlu2 %8257 }
 0x222   : > { %15330 = vst [vmem:[#allocation114_spill] sm:$0xff] %v10713_v53  ;;  %v2086_v53 = vld [vmem:[#allocation2 + $0xfc] sm:$0xff] }
 0x223   : > { %8427 = vrot.lane.b32.xlu0 %v8426_v24, %s9938_s13  ;;  %v8451_v24 = vpack.i.bf16 %v2088_v6, %v2087_v45  ;;  %v2095_v45 = vld [vmem:[#allocation2 + $0x16c] sm:$0xff]  ;;  %v2096_v6 = vld [vmem:[#allocation2 + $0x174] sm:$0xff] }
 0x225   : > { %8417 = vrot.lane.b32.xlu1 %v8416_v48, %s9938_s13  ;;  %v10717_v30 = vpop.permute.xlu0 %8217 }
 0x226   : > { %15331 = vst [vmem:[#allocation115_spill] sm:$0xff] %v10717_v30  ;;  %v2085_v30 = vld [vmem:[#allocation2 + $0xf4] sm:$0xff] }
 0x227   : > { %v10719_v33 = vpop.permute.xlu1 %8207  ;;  %8437 = vrot.lane.b32.xlu2 %v8436_v34, %s9938_s13  ;;  %v8456_v34 = vpack.i.bf16 %v2090_v37, %v2089_v22  ;;  %v8446_v16 = vpack.i.bf16 %v2086_v53, %v2085_v30  ;;  %v2099_v22 = vld [vmem:[#allocation2 + $0x19c] sm:$0xff]  ;;  %v2100_v53 = vld [vmem:[#allocation2 + $0x1a4] sm:$0xff] }
 0x228   : > { %15332 = vst [vmem:[#allocation116_spill] sm:$0xff] %v10719_v33 }
 0x229   : > { %v10722_v60 = vpop.permute.xlu2 %8272 }
 0x22a   : > { %15333 = vst [vmem:[#allocation117_spill] sm:$0xff] %v10722_v60  ;;  %v2092_v60 = vld [vmem:[#allocation2 + $0x144] sm:$0xff] }
 0x22b   : > { %8442 = vrot.lane.b32.xlu0 %v8441_v23, %s9938_s13  ;;  %v8466_v23 = vpack.i.bf16 %v2094_v11, %v2093_v2  ;;  %v2774_v2 = vld [vmem:[#allocation2 + $0x49] sm:$0xff]  ;;  %v2775_v11 = vld [vmem:[#allocation2 + $0x51] sm:$0xff] }
 0x22d   : > { %8432 = vrot.lane.b32.xlu1 %v8431_v27, %s9938_s13  ;;  %v10726_v48 = vpop.permute.xlu0 %8232 }
 0x22e   : > { %15334 = vst [vmem:[#allocation118_spill] sm:$0xff] %v10726_v48  ;;  %v2091_v48 = vld [vmem:[#allocation2 + $0x13c] sm:$0xff] }
 0x22f   : > { %v10728_v33 = vpop.permute.xlu1 %8222  ;;  %8452 = vrot.lane.b32.xlu2 %v8451_v24, %s9938_s13  ;;  %v8471_v24 = vpack.i.bf16 %v2096_v6, %v2095_v45  ;;  %v8461_v30 = vpack.i.bf16 %v2092_v60, %v2091_v48  ;;  %v2778_v45 = vld [vmem:[#allocation2 + $0x79] sm:$0xff]  ;;  %v2779_v60 = vld [vmem:[#allocation2 + $0x81] sm:$0xff] }
 0x230   : > { %15335 = vst [vmem:[#allocation119_spill] sm:$0xff] %v10728_v33 }
 0x231   : > { %v10731_v7 = vpop.permute.xlu2 %8287 }
 0x232   : > { %15336 = vst [vmem:[#allocation120_spill] sm:$0xff] %v10731_v7  ;;  %v2098_v7 = vld [vmem:[#allocation2 + $0x18c] sm:$0xff] }
 0x233   : > { %8457 = vrot.lane.b32.xlu0 %v8456_v34, %s9938_s13  ;;  %v8481_v34 = vpack.i.bf16 %v2100_v53, %v2099_v22  ;;  %v2780_v22 = vld [vmem:[#allocation2 + $0x91] sm:$0xff]  ;;  %v2781_v53 = vld [vmem:[#allocation2 + $0x99] sm:$0xff] }
 0x235   : > { %8447 = vrot.lane.b32.xlu1 %v8446_v16, %s9938_s13  ;;  %v10735_v27 = vpop.permute.xlu0 %8247 }
 0x236   : > { %15337 = vst [vmem:[#allocation121_spill] sm:$0xff] %v10735_v27  ;;  %v2097_v27 = vld [vmem:[#allocation2 + $0x184] sm:$0xff] }
 0x237   : > { %v10737_v33 = vpop.permute.xlu1 %8237  ;;  %8467 = vrot.lane.b32.xlu2 %v8466_v23, %s9938_s13  ;;  %v8486_v23 = vpack.i.bf16 %v2775_v11, %v2774_v2  ;;  %v8476_v48 = vpack.i.bf16 %v2098_v7, %v2097_v27  ;;  %v2784_v2 = vld [vmem:[#allocation2 + $0xc1] sm:$0xff]  ;;  %v2785_v7 = vld [vmem:[#allocation2 + $0xc9] sm:$0xff] }
 0x238   : > { %15338 = vst [vmem:[#allocation122_spill] sm:$0xff] %v10737_v33 }
 0x239   : > { %v10740_v37 = vpop.permute.xlu2 %8302 }
 0x23a   : > { %15339 = vst [vmem:[#allocation123_spill] sm:$0xff] %v10740_v37  ;;  %v2777_v37 = vld [vmem:[#allocation2 + $0x69] sm:$0xff] }
 0x23b   : > { %8472 = vrot.lane.b32.xlu0 %v8471_v24, %s9938_s13  ;;  %v8496_v24 = vpack.i.bf16 %v2779_v60, %v2778_v45  ;;  %v2786_v45 = vld [vmem:[#allocation2 + $0xd9] sm:$0xff]  ;;  %v2787_v60 = vld [vmem:[#allocation2 + $0xe1] sm:$0xff] }
 0x23d   : > { %8462 = vrot.lane.b32.xlu1 %v8461_v30, %s9938_s13  ;;  %v10744_v16 = vpop.permute.xlu0 %8262 }
 0x23e   : > { %15340 = vst [vmem:[#allocation124_spill] sm:$0xff] %v10744_v16  ;;  %v2776_v16 = vld [vmem:[#allocation2 + $0x61] sm:$0xff] }
 0x23f   : > { %v10746_v33 = vpop.permute.xlu1 %8252  ;;  %8482 = vrot.lane.b32.xlu2 %v8481_v34, %s9938_s13  ;;  %v8501_v34 = vpack.i.bf16 %v2781_v53, %v2780_v22  ;;  %v8491_v27 = vpack.i.bf16 %v2777_v37, %v2776_v16  ;;  %v2790_v22 = vld [vmem:[#allocation2 + $0x109] sm:$0xff]  ;;  %v2791_v37 = vld [vmem:[#allocation2 + $0x111] sm:$0xff] }
 0x240   : > { %15341 = vst [vmem:[#allocation125_spill] sm:$0xff] %v10746_v33 }
 0x241   : > { %v10749_v6 = vpop.permute.xlu2 %8317 }
 0x242   : > { %15342 = vst [vmem:[#allocation126_spill] sm:$0xff] %v10749_v6  ;;  %v2783_v6 = vld [vmem:[#allocation2 + $0xb1] sm:$0xff] }
 0x243   : > { %8487 = vrot.lane.b32.xlu0 %v8486_v23, %s9935_s10  ;;  %v8511_v23 = vpack.i.bf16 %v2785_v7, %v2784_v2  ;;  %v2792_v2 = vld [vmem:[#allocation2 + $0x121] sm:$0xff]  ;;  %v2793_v7 = vld [vmem:[#allocation2 + $0x129] sm:$0xff] }
 0x245   : > { %8477 = vrot.lane.b32.xlu1 %v8476_v48, %s9938_s13  ;;  %v10753_v30 = vpop.permute.xlu0 %8277 }
 0x246   : > { %15343 = vst [vmem:[#allocation127_spill] sm:$0xff] %v10753_v30  ;;  %v2782_v30 = vld [vmem:[#allocation2 + $0xa9] sm:$0xff] }
 0x247   : > { %v10755_v33 = vpop.permute.xlu1 %8267  ;;  %8497 = vrot.lane.b32.xlu2 %v8496_v24, %s9935_s10  ;;  %v8516_v24 = vpack.i.bf16 %v2787_v60, %v2786_v45  ;;  %v8506_v16 = vpack.i.bf16 %v2783_v6, %v2782_v30  ;;  %v2796_v45 = vld [vmem:[#allocation2 + $0x151] sm:$0xff]  ;;  %v2797_v6 = vld [vmem:[#allocation2 + $0x159] sm:$0xff] }
 0x248   : > { %15344 = vst [vmem:[#allocation128_spill] sm:$0xff] %v10755_v33 }
 0x249   : > { %v10758_v11 = vpop.permute.xlu2 %8332 }
 0x24a   : > { %15345 = vst [vmem:[#allocation129_spill] sm:$0xff] %v10758_v11  ;;  %v2789_v11 = vld [vmem:[#allocation2 + $0xf9] sm:$0xff] }
 0x24b   : > { %8502 = vrot.lane.b32.xlu0 %v8501_v34, %s9935_s10  ;;  %v8526_v34 = vpack.i.bf16 %v2791_v37, %v2790_v22  ;;  %v2798_v22 = vld [vmem:[#allocation2 + $0x169] sm:$0xff]  ;;  %v2799_v37 = vld [vmem:[#allocation2 + $0x171] sm:$0xff] }
 0x24d   : > { %8492 = vrot.lane.b32.xlu1 %v8491_v27, %s9935_s10  ;;  %v10762_v48 = vpop.permute.xlu0 %8292 }
 0x24e   : > { %15346 = vst [vmem:[#allocation130_spill] sm:$0xff] %v10762_v48  ;;  %v2788_v48 = vld [vmem:[#allocation2 + $0xf1] sm:$0xff] }
 0x24f   : > { %v10764_v33 = vpop.permute.xlu1 %8282  ;;  %8512 = vrot.lane.b32.xlu2 %v8511_v23, %s9935_s10  ;;  %v8531_v23 = vpack.i.bf16 %v2793_v7, %v2792_v2  ;;  %v8521_v30 = vpack.i.bf16 %v2789_v11, %v2788_v48  ;;  %v2802_v2 = vld [vmem:[#allocation2 + $0x199] sm:$0xff]  ;;  %v2803_v11 = vld [vmem:[#allocation2 + $0x1a1] sm:$0xff] }
 0x250   : > { %15347 = vst [vmem:[#allocation131_spill] sm:$0xff] %v10764_v33 }
 0x251   : > { %v10767_v53 = vpop.permute.xlu2 %8347 }
 0x252   : > { %15348 = vst [vmem:[#allocation132_spill] sm:$0xff] %v10767_v53  ;;  %v2795_v53 = vld [vmem:[#allocation2 + $0x141] sm:$0xff] }
 0x253   : > { %8517 = vrot.lane.b32.xlu0 %v8516_v24, %s9935_s10  ;;  %v8541_v24 = vpack.i.bf16 %v2797_v6, %v2796_v45  ;;  %v2804_v45 = vld [vmem:[#allocation2 + $0x1b1] sm:$0xff]  ;;  %v2805_v6 = vld [vmem:[#allocation2 + $0x1b9] sm:$0xff] }
 0x255   : > { %8507 = vrot.lane.b32.xlu1 %v8506_v16, %s9935_s10  ;;  %v10771_v27 = vpop.permute.xlu0 %8307 }
 0x256   : > { %15349 = vst [vmem:[#allocation133_spill] sm:$0xff] %v10771_v27  ;;  %v2794_v27 = vld [vmem:[#allocation2 + $0x139] sm:$0xff] }
 0x257   : > { %v10773_v33 = vpop.permute.xlu1 %8297  ;;  %8527 = vrot.lane.b32.xlu2 %v8526_v34, %s9935_s10  ;;  %v8546_v34 = vpack.i.bf16 %v2799_v37, %v2798_v22  ;;  %v8536_v48 = vpack.i.bf16 %v2795_v53, %v2794_v27  ;;  %v2808_v22 = vld [vmem:[#allocation2 + $0x62] sm:$0xff]  ;;  %v2809_v53 = vld [vmem:[#allocation2 + $0x6a] sm:$0xff] }
 0x258   : > { %15350 = vst [vmem:[#allocation134_spill] sm:$0xff] %v10773_v33 }
 0x259   : > { %v10776_v60 = vpop.permute.xlu2 %8362 }
 0x25a   : > { %15351 = vst [vmem:[#allocation135_spill] sm:$0xff] %v10776_v60  ;;  %v2801_v60 = vld [vmem:[#allocation2 + $0x189] sm:$0xff] }
 0x25b   : > { %8532 = vrot.lane.b32.xlu0 %v8531_v23, %s9935_s10  ;;  %v8556_v23 = vpack.i.bf16 %v2803_v11, %v2802_v2  ;;  %v2810_v2 = vld [vmem:[#allocation2 + $0x7a] sm:$0xff]  ;;  %v2811_v11 = vld [vmem:[#allocation2 + $0x82] sm:$0xff] }
 0x25d   : > { %8522 = vrot.lane.b32.xlu1 %v8521_v30, %s9935_s10  ;;  %v10780_v16 = vpop.permute.xlu0 %8322 }
 0x25e   : > { %15352 = vst [vmem:[#allocation136_spill] sm:$0xff] %v10780_v16  ;;  %v2800_v16 = vld [vmem:[#allocation2 + $0x181] sm:$0xff] }
 0x25f   : > { %v10782_v33 = vpop.permute.xlu1 %8312  ;;  %8542 = vrot.lane.b32.xlu2 %v8541_v24, %s9935_s10  ;;  %v8561_v24 = vpack.i.bf16 %v2805_v6, %v2804_v45  ;;  %v8551_v27 = vpack.i.bf16 %v2801_v60, %v2800_v16  ;;  %v2814_v45 = vld [vmem:[#allocation2 + $0xaa] sm:$0xff]  ;;  %v2815_v60 = vld [vmem:[#allocation2 + $0xb2] sm:$0xff] }
 0x260   : > { %15353 = vst [vmem:[#allocation137_spill] sm:$0xff] %v10782_v33 }
 0x261   : > { %v10785_v7 = vpop.permute.xlu2 %8377 }
 0x262   : > { %15354 = vst [vmem:[#allocation138_spill] sm:$0xff] %v10785_v7  ;;  %v2807_v7 = vld [vmem:[#allocation2 + $0x52] sm:$0xff] }
 0x263   : > { %8547 = vrot.lane.b32.xlu0 %v8546_v34, %s9935_s10  ;;  %v8571_v34 = vpack.i.bf16 %v2809_v53, %v2808_v22  ;;  %v2816_v22 = vld [vmem:[#allocation2 + $0xc2] sm:$0xff]  ;;  %v2817_v53 = vld [vmem:[#allocation2 + $0xca] sm:$0xff] }
 0x265   : > { %8537 = vrot.lane.b32.xlu1 %v8536_v48, %s9935_s10  ;;  %v10789_v30 = vpop.permute.xlu0 %8337 }
 0x266   : > { %15355 = vst [vmem:[#allocation139_spill] sm:$0xff] %v10789_v30  ;;  %v2806_v30 = vld [vmem:[#allocation2 + $0x4a] sm:$0xff] }
 0x267   : > { %v10791_v33 = vpop.permute.xlu1 %8327  ;;  %8557 = vrot.lane.b32.xlu2 %v8556_v23, %s9935_s10  ;;  %v8576_v23 = vpack.i.bf16 %v2811_v11, %v2810_v2  ;;  %v8566_v16 = vpack.i.bf16 %v2807_v7, %v2806_v30  ;;  %v2820_v2 = vld [vmem:[#allocation2 + $0xf2] sm:$0xff]  ;;  %v2821_v7 = vld [vmem:[#allocation2 + $0xfa] sm:$0xff] }
 0x268   : > { %15356 = vst [vmem:[#allocation140_spill] sm:$0xff] %v10791_v33 }
 0x269   : > { %v10794_v37 = vpop.permute.xlu2 %8392 }
 0x26a   : > { %15357 = vst [vmem:[#allocation141_spill] sm:$0xff] %v10794_v37  ;;  %v2813_v37 = vld [vmem:[#allocation2 + $0x9a] sm:$0xff] }
 0x26b   : > { %8562 = vrot.lane.b32.xlu0 %v8561_v24, %s9935_s10  ;;  %v8586_v24 = vpack.i.bf16 %v2815_v60, %v2814_v45  ;;  %v2822_v45 = vld [vmem:[#allocation2 + $0x10a] sm:$0xff]  ;;  %v2823_v60 = vld [vmem:[#allocation2 + $0x112] sm:$0xff] }
 0x26d   : > { %8552 = vrot.lane.b32.xlu1 %v8551_v27, %s9935_s10  ;;  %v10798_v48 = vpop.permute.xlu0 %8352 }
 0x26e   : > { %15358 = vst [vmem:[#allocation142_spill] sm:$0xff] %v10798_v48  ;;  %v2812_v48 = vld [vmem:[#allocation2 + $0x92] sm:$0xff] }
 0x26f   : > { %v10800_v33 = vpop.permute.xlu1 %8342  ;;  %8572 = vrot.lane.b32.xlu2 %v8571_v34, %s9936_s11  ;;  %v8591_v34 = vpack.i.bf16 %v2817_v53, %v2816_v22  ;;  %v8581_v30 = vpack.i.bf16 %v2813_v37, %v2812_v48  ;;  %v2826_v22 = vld [vmem:[#allocation2 + $0x13a] sm:$0xff]  ;;  %v2827_v37 = vld [vmem:[#allocation2 + $0x142] sm:$0xff] }
 0x270   : > { %15359 = vst [vmem:[#allocation143_spill] sm:$0xff] %v10800_v33 }
 0x271   : > { %v10803_v6 = vpop.permute.xlu2 %8407 }
 0x272   : > { %15360 = vst [vmem:[#allocation144_spill] sm:$0xff] %v10803_v6  ;;  %v2819_v6 = vld [vmem:[#allocation2 + $0xe2] sm:$0xff] }
 0x273   : > { %8577 = vrot.lane.b32.xlu0 %v8576_v23, %s9936_s11  ;;  %v8601_v23 = vpack.i.bf16 %v2821_v7, %v2820_v2  ;;  %v2828_v2 = vld [vmem:[#allocation2 + $0x152] sm:$0xff]  ;;  %v2829_v7 = vld [vmem:[#allocation2 + $0x15a] sm:$0xff] }
 0x275   : > { %8567 = vrot.lane.b32.xlu1 %v8566_v16, %s9936_s11  ;;  %v10807_v27 = vpop.permute.xlu0 %8367 }
 0x276   : > { %15361 = vst [vmem:[#allocation145_spill] sm:$0xff] %v10807_v27  ;;  %v2818_v27 = vld [vmem:[#allocation2 + $0xda] sm:$0xff] }
 0x277   : > { %v10809_v33 = vpop.permute.xlu1 %8357  ;;  %8587 = vrot.lane.b32.xlu2 %v8586_v24, %s9936_s11  ;;  %v8606_v24 = vpack.i.bf16 %v2823_v60, %v2822_v45  ;;  %v8596_v48 = vpack.i.bf16 %v2819_v6, %v2818_v27  ;;  %v2832_v45 = vld [vmem:[#allocation2 + $0x182] sm:$0xff]  ;;  %v2833_v6 = vld [vmem:[#allocation2 + $0x18a] sm:$0xff] }
 0x278   : > { %15362 = vst [vmem:[#allocation146_spill] sm:$0xff] %v10809_v33 }
 0x279   : > { %v10812_v11 = vpop.permute.xlu2 %8422 }
 0x27a   : > { %15363 = vst [vmem:[#allocation147_spill] sm:$0xff] %v10812_v11  ;;  %v2825_v11 = vld [vmem:[#allocation2 + $0x12a] sm:$0xff] }
 0x27b   : > { %8592 = vrot.lane.b32.xlu0 %v8591_v34, %s9936_s11  ;;  %v8616_v34 = vpack.i.bf16 %v2827_v37, %v2826_v22  ;;  %v2834_v22 = vld [vmem:[#allocation2 + $0x19a] sm:$0xff]  ;;  %v2835_v37 = vld [vmem:[#allocation2 + $0x1a2] sm:$0xff] }
 0x27d   : > { %8582 = vrot.lane.b32.xlu1 %v8581_v30, %s9936_s11  ;;  %v10816_v16 = vpop.permute.xlu0 %8382 }
 0x27e   : > { %15364 = vst [vmem:[#allocation148_spill] sm:$0xff] %v10816_v16  ;;  %v2824_v16 = vld [vmem:[#allocation2 + $0x122] sm:$0xff] }
 0x27f   : > { %v10818_v33 = vpop.permute.xlu1 %8372  ;;  %8602 = vrot.lane.b32.xlu2 %v8601_v23, %s9936_s11  ;;  %v8621_v23 = vpack.i.bf16 %v2829_v7, %v2828_v2  ;;  %v8611_v27 = vpack.i.bf16 %v2825_v11, %v2824_v16  ;;  %v2838_v2 = vld [vmem:[#allocation2 + $0x4b] sm:$0xff]  ;;  %v2839_v11 = vld [vmem:[#allocation2 + $0x53] sm:$0xff] }
 0x280   : > { %15365 = vst [vmem:[#allocation149_spill] sm:$0xff] %v10818_v33 }
 0x281   : > { %v10821_v53 = vpop.permute.xlu2 %8437 }
 0x282   : > { %15366 = vst [vmem:[#allocation150_spill] sm:$0xff] %v10821_v53  ;;  %v2831_v53 = vld [vmem:[#allocation2 + $0x172] sm:$0xff] }
 0x283   : > { %8607 = vrot.lane.b32.xlu0 %v8606_v24, %s9936_s11  ;;  %v8631_v24 = vpack.i.bf16 %v2833_v6, %v2832_v45  ;;  %v2840_v45 = vld [vmem:[#allocation2 + $0x63] sm:$0xff]  ;;  %v2841_v6 = vld [vmem:[#allocation2 + $0x6b] sm:$0xff] }
 0x285   : > { %8597 = vrot.lane.b32.xlu1 %v8596_v48, %s9936_s11  ;;  %v10825_v30 = vpop.permute.xlu0 %8397 }
 0x286   : > { %15367 = vst [vmem:[#allocation151_spill] sm:$0xff] %v10825_v30  ;;  %v2830_v30 = vld [vmem:[#allocation2 + $0x16a] sm:$0xff] }
 0x287   : > { %v10827_v33 = vpop.permute.xlu1 %8387  ;;  %8617 = vrot.lane.b32.xlu2 %v8616_v34, %s9936_s11  ;;  %v8636_v34 = vpack.i.bf16 %v2835_v37, %v2834_v22  ;;  %v8626_v16 = vpack.i.bf16 %v2831_v53, %v2830_v30  ;;  %v2844_v22 = vld [vmem:[#allocation2 + $0x93] sm:$0xff]  ;;  %v2845_v53 = vld [vmem:[#allocation2 + $0x9b] sm:$0xff] }
 0x288   : > { %15368 = vst [vmem:[#allocation152_spill] sm:$0xff] %v10827_v33 }
 0x289   : > { %v10830_v60 = vpop.permute.xlu2 %8452 }
 0x28a   : > { %15369 = vst [vmem:[#allocation153_spill] sm:$0xff] %v10830_v60  ;;  %v2837_v60 = vld [vmem:[#allocation2 + $0x1ba] sm:$0xff] }
 0x28b   : > { %8622 = vrot.lane.b32.xlu0 %v8621_v23, %s9936_s11  ;;  %v8646_v23 = vpack.i.bf16 %v2839_v11, %v2838_v2  ;;  %v2846_v2 = vld [vmem:[#allocation2 + $0xab] sm:$0xff]  ;;  %v2847_v11 = vld [vmem:[#allocation2 + $0xb3] sm:$0xff] }
 0x28d   : > { %8612 = vrot.lane.b32.xlu1 %v8611_v27, %s9936_s11  ;;  %v10834_v48 = vpop.permute.xlu0 %8412 }
 0x28e   : > { %15370 = vst [vmem:[#allocation154_spill] sm:$0xff] %v10834_v48  ;;  %v2836_v48 = vld [vmem:[#allocation2 + $0x1b2] sm:$0xff] }
 0x28f   : > { %v10836_v33 = vpop.permute.xlu1 %8402  ;;  %8632 = vrot.lane.b32.xlu2 %v8631_v24, %s9936_s11  ;;  %v8651_v24 = vpack.i.bf16 %v2841_v6, %v2840_v45  ;;  %v8641_v30 = vpack.i.bf16 %v2837_v60, %v2836_v48  ;;  %v2850_v45 = vld [vmem:[#allocation2 + $0xdb] sm:$0xff]  ;;  %v2851_v60 = vld [vmem:[#allocation2 + $0xe3] sm:$0xff] }
 0x290   : > { %15371 = vst [vmem:[#allocation155_spill] sm:$0xff] %v10836_v33 }
 0x291   : > { %v10839_v7 = vpop.permute.xlu2 %8467 }
 0x292   : > { %15372 = vst [vmem:[#allocation156_spill] sm:$0xff] %v10839_v7  ;;  %v2843_v7 = vld [vmem:[#allocation2 + $0x83] sm:$0xff] }
 0x293   : > { %8637 = vrot.lane.b32.xlu0 %v8636_v34, %s9936_s11  ;;  %v8661_v34 = vpack.i.bf16 %v2845_v53, %v2844_v22  ;;  %v2852_v22 = vld [vmem:[#allocation2 + $0xf3] sm:$0xff]  ;;  %v2853_v53 = vld [vmem:[#allocation2 + $0xfb] sm:$0xff] }
 0x295   : > { %8627 = vrot.lane.b32.xlu1 %v8626_v16, %s9936_s11  ;;  %v10843_v27 = vpop.permute.xlu0 %8427 }
 0x296   : > { %15373 = vst [vmem:[#allocation157_spill] sm:$0xff] %v10843_v27  ;;  %v2842_v27 = vld [vmem:[#allocation2 + $0x7b] sm:$0xff] }
 0x297   : > { %v10845_v33 = vpop.permute.xlu1 %8417  ;;  %8647 = vrot.lane.b32.xlu2 %v8646_v23, %s9937_s12  ;;  %v8666_v23 = vpack.i.bf16 %v2847_v11, %v2846_v2  ;;  %v8656_v48 = vpack.i.bf16 %v2843_v7, %v2842_v27  ;;  %v2856_v2 = vld [vmem:[#allocation2 + $0x123] sm:$0xff]  ;;  %v2857_v7 = vld [vmem:[#allocation2 + $0x12b] sm:$0xff] }
 0x298   : > { %15374 = vst [vmem:[#allocation158_spill] sm:$0xff] %v10845_v33 }
 0x299   : > { %v10848_v37 = vpop.permute.xlu2 %8482 }
 0x29a   : > { %15375 = vst [vmem:[#allocation159_spill] sm:$0xff] %v10848_v37  ;;  %v2848_v37 = vld [vmem:[#allocation2 + $0xc3] sm:$0xff] }
 0x29b   : > { %8652 = vrot.lane.b32.xlu0 %v8651_v24, %s9937_s12  ;;  %v8676_v24 = vpack.i.bf16 %v2851_v60, %v2850_v45  ;;  %v2858_v45 = vld [vmem:[#allocation2 + $0x13b] sm:$0xff]  ;;  %v2859_v60 = vld [vmem:[#allocation2 + $0x143] sm:$0xff] }
 0x29d   : > { %8642 = vrot.lane.b32.xlu1 %v8641_v30, %s9936_s11  ;;  %v10852_v16 = vpop.permute.xlu0 %8442 }
 0x29e   : > { %15376 = vst [vmem:[#allocation160_spill] sm:$0xff] %v10852_v16  ;;  %v2849_v16 = vld [vmem:[#allocation2 + $0xcb] sm:$0xff] }
 0x29f   : > { %v10854_v33 = vpop.permute.xlu1 %8432  ;;  %8662 = vrot.lane.b32.xlu2 %v8661_v34, %s9937_s12  ;;  %v8681_v34 = vpack.i.bf16 %v2853_v53, %v2852_v22  ;;  %v8671_v27 = vpack.i.bf16 %v2849_v16, %v2848_v37  ;;  %v2862_v22 = vld [vmem:[#allocation2 + $0x16b] sm:$0xff]  ;;  %v2863_v37 = vld [vmem:[#allocation2 + $0x173] sm:$0xff] }
 0x2a0   : > { %15377 = vst [vmem:[#allocation161_spill] sm:$0xff] %v10854_v33 }
 0x2a1   : > { %v10857_v6 = vpop.permute.xlu2 %8497 }
 0x2a2   : > { %15378 = vst [vmem:[#allocation162_spill] sm:$0xff] %v10857_v6  ;;  %v2855_v6 = vld [vmem:[#allocation2 + $0x113] sm:$0xff] }
 0x2a3   : > { %8667 = vrot.lane.b32.xlu0 %v8666_v23, %s9937_s12  ;;  %v8691_v23 = vpack.i.bf16 %v2857_v7, %v2856_v2  ;;  %v2864_v2 = vld [vmem:[#allocation2 + $0x183] sm:$0xff]  ;;  %v2865_v7 = vld [vmem:[#allocation2 + $0x18b] sm:$0xff] }
 0x2a5   : > { %8657 = vrot.lane.b32.xlu1 %v8656_v48, %s9937_s12  ;;  %v10861_v30 = vpop.permute.xlu0 %8457 }
 0x2a6   : > { %15379 = vst [vmem:[#allocation163_spill] sm:$0xff] %v10861_v30  ;;  %v2854_v30 = vld [vmem:[#allocation2 + $0x10b] sm:$0xff] }
 0x2a7   : > { %v10863_v33 = vpop.permute.xlu1 %8447  ;;  %8677 = vrot.lane.b32.xlu2 %v8676_v24, %s9937_s12  ;;  %v8696_v24 = vpack.i.bf16 %v2859_v60, %v2858_v45  ;;  %v8686_v16 = vpack.i.bf16 %v2855_v6, %v2854_v30  ;;  %v2868_v45 = vld [vmem:[#allocation2 + $0x1b3] sm:$0xff]  ;;  %v2869_v6 = vld [vmem:[#allocation2 + $0x1bb] sm:$0xff] }
 0x2a8   : > { %15380 = vst [vmem:[#allocation164_spill] sm:$0xff] %v10863_v33 }
 0x2a9   : > { %v10866_v11 = vpop.permute.xlu2 %8512 }
 0x2aa   : > { %15381 = vst [vmem:[#allocation165_spill] sm:$0xff] %v10866_v11  ;;  %v2860_v11 = vld [vmem:[#allocation2 + $0x153] sm:$0xff] }
 0x2ab   : > { %8682 = vrot.lane.b32.xlu0 %v8681_v34, %s9937_s12  ;;  %v8706_v34 = vpack.i.bf16 %v2863_v37, %v2862_v22  ;;  %v2870_v22 = vld [vmem:[#allocation2 + $0x4c] sm:$0xff]  ;;  %v2871_v37 = vld [vmem:[#allocation2 + $0x54] sm:$0xff] }
 0x2ad   : > { %8672 = vrot.lane.b32.xlu1 %v8671_v27, %s9937_s12  ;;  %v10870_v48 = vpop.permute.xlu0 %8472 }
 0x2ae   : > { %15382 = vst [vmem:[#allocation166_spill] sm:$0xff] %v10870_v48  ;;  %v2861_v48 = vld [vmem:[#allocation2 + $0x15b] sm:$0xff] }
 0x2af   : > { %v10872_v33 = vpop.permute.xlu1 %8462  ;;  %8692 = vrot.lane.b32.xlu2 %v8691_v23, %s9937_s12  ;;  %v8711_v23 = vpack.i.bf16 %v2865_v7, %v2864_v2  ;;  %v8701_v30 = vpack.i.bf16 %v2861_v48, %v2860_v11  ;;  %v2874_v2 = vld [vmem:[#allocation2 + $0x7c] sm:$0xff]  ;;  %v2875_v11 = vld [vmem:[#allocation2 + $0x84] sm:$0xff] }
 0x2b0   : > { %15383 = vst [vmem:[#allocation167_spill] sm:$0xff] %v10872_v33 }
 0x2b1   : > { %v10875_v53 = vpop.permute.xlu2 %8527 }
 0x2b2   : > { %15384 = vst [vmem:[#allocation168_spill] sm:$0xff] %v10875_v53  ;;  %v2867_v53 = vld [vmem:[#allocation2 + $0x1a3] sm:$0xff] }
 0x2b3   : > { %8697 = vrot.lane.b32.xlu0 %v8696_v24, %s9937_s12  ;;  %v8721_v24 = vpack.i.bf16 %v2869_v6, %v2868_v45  ;;  %v2876_v45 = vld [vmem:[#allocation2 + $0x94] sm:$0xff]  ;;  %v2877_v6 = vld [vmem:[#allocation2 + $0x9c] sm:$0xff] }
 0x2b5   : > { %8687 = vrot.lane.b32.xlu1 %v8686_v16, %s9937_s12  ;;  %v10879_v27 = vpop.permute.xlu0 %8487 }
 0x2b6   : > { %15385 = vst [vmem:[#allocation169_spill] sm:$0xff] %v10879_v27  ;;  %v2866_v27 = vld [vmem:[#allocation2 + $0x19b] sm:$0xff] }
 0x2b7   : > { %v10881_v33 = vpop.permute.xlu1 %8477  ;;  %8707 = vrot.lane.b32.xlu2 %v8706_v34, %s9937_s12  ;;  %v8726_v34 = vpack.i.bf16 %v2871_v37, %v2870_v22  ;;  %v8716_v48 = vpack.i.bf16 %v2867_v53, %v2866_v27  ;;  %v2880_v22 = vld [vmem:[#allocation2 + $0xc4] sm:$0xff]  ;;  %v2881_v53 = vld [vmem:[#allocation2 + $0xcc] sm:$0xff] }
 0x2b8   : > { %15386 = vst [vmem:[#allocation170_spill] sm:$0xff] %v10881_v33 }
 0x2b9   : > { %v10884_v60 = vpop.permute.xlu2 %8542 }
 0x2ba   : > { %15387 = vst [vmem:[#allocation171_spill] sm:$0xff] %v10884_v60  ;;  %v2873_v60 = vld [vmem:[#allocation2 + $0x6c] sm:$0xff] }
 0x2bb   : > { %8712 = vrot.lane.b32.xlu0 %v8711_v23, %s9937_s12  ;;  %v8736_v23 = vpack.i.bf16 %v2875_v11, %v2874_v2  ;;  %v2882_v2 = vld [vmem:[#allocation2 + $0xdc] sm:$0xff]  ;;  %v2883_v11 = vld [vmem:[#allocation2 + $0xe4] sm:$0xff] }
 0x2bd   : > { %8702 = vrot.lane.b32.xlu1 %v8701_v30, %s9937_s12  ;;  %v10888_v16 = vpop.permute.xlu0 %8502 }
 0x2be   : > { %15388 = vst [vmem:[#allocation172_spill] sm:$0xff] %v10888_v16  ;;  %v2872_v16 = vld [vmem:[#allocation2 + $0x64] sm:$0xff] }
 0x2bf   : > { %v10890_v33 = vpop.permute.xlu1 %8492  ;;  %8722 = vrot.lane.b32.xlu2 %v8721_v24, %s9937_s12  ;;  %v8741_v24 = vpack.i.bf16 %v2877_v6, %v2876_v45  ;;  %v8731_v27 = vpack.i.bf16 %v2873_v60, %v2872_v16  ;;  %v2886_v45 = vld [vmem:[#allocation2 + $0x10c] sm:$0xff]  ;;  %v2887_v60 = vld [vmem:[#allocation2 + $0x114] sm:$0xff] }
 0x2c0   : > { %15389 = vst [vmem:[#allocation173_spill] sm:$0xff] %v10890_v33 }
 0x2c1   : > { %v10893_v7 = vpop.permute.xlu2 %8557 }
 0x2c2   : > { %15390 = vst [vmem:[#allocation174_spill] sm:$0xff] %v10893_v7  ;;  %v2879_v7 = vld [vmem:[#allocation2 + $0xb4] sm:$0xff] }
 0x2c3   : > { %8727 = vrot.lane.b32.xlu0 %v8726_v34, %s9938_s13  ;;  %v8751_v34 = vpack.i.bf16 %v2881_v53, %v2880_v22  ;;  %v2888_v22 = vld [vmem:[#allocation2 + $0x124] sm:$0xff]  ;;  %v2889_v53 = vld [vmem:[#allocation2 + $0x12c] sm:$0xff] }
 0x2c5   : > { %8717 = vrot.lane.b32.xlu1 %v8716_v48, %s9937_s12  ;;  %v10897_v30 = vpop.permute.xlu0 %8517 }
 0x2c6   : > { %15391 = vst [vmem:[#allocation175_spill] sm:$0xff] %v10897_v30  ;;  %v2878_v30 = vld [vmem:[#allocation2 + $0xac] sm:$0xff] }
 0x2c7   : > { %v10899_v33 = vpop.permute.xlu1 %8507  ;;  %8737 = vrot.lane.b32.xlu2 %v8736_v23, %s9938_s13  ;;  %v8756_v23 = vpack.i.bf16 %v2883_v11, %v2882_v2  ;;  %v8746_v16 = vpack.i.bf16 %v2879_v7, %v2878_v30  ;;  %v2892_v2 = vld [vmem:[#allocation2 + $0x154] sm:$0xff]  ;;  %v2893_v7 = vld [vmem:[#allocation2 + $0x15c] sm:$0xff] }
 0x2c8   : > { %15392 = vst [vmem:[#allocation176_spill] sm:$0xff] %v10899_v33 }
 0x2c9   : > { %v10902_v37 = vpop.permute.xlu2 %8572 }
 0x2ca   : > { %15393 = vst [vmem:[#allocation177_spill] sm:$0xff] %v10902_v37  ;;  %v2885_v37 = vld [vmem:[#allocation2 + $0xfc] sm:$0xff] }
 0x2cb   : > { %8742 = vrot.lane.b32.xlu0 %v8741_v24, %s9938_s13  ;;  %v8766_v24 = vpack.i.bf16 %v2887_v60, %v2886_v45  ;;  %v2894_v45 = vld [vmem:[#allocation2 + $0x16c] sm:$0xff]  ;;  %v2895_v60 = vld [vmem:[#allocation2 + $0x174] sm:$0xff] }
 0x2cd   : > { %8732 = vrot.lane.b32.xlu1 %v8731_v27, %s9938_s13  ;;  %v10906_v48 = vpop.permute.xlu0 %8532 }
 0x2ce   : > { %15394 = vst [vmem:[#allocation178_spill] sm:$0xff] %v10906_v48  ;;  %v2884_v48 = vld [vmem:[#allocation2 + $0xf4] sm:$0xff] }
 0x2cf   : > { %v10908_v33 = vpop.permute.xlu1 %8522  ;;  %8752 = vrot.lane.b32.xlu2 %v8751_v34, %s9938_s13  ;;  %v8771_v34 = vpack.i.bf16 %v2889_v53, %v2888_v22  ;;  %v8761_v30 = vpack.i.bf16 %v2885_v37, %v2884_v48  ;;  %v2898_v22 = vld [vmem:[#allocation2 + $0x19c] sm:$0xff]  ;;  %v2899_v37 = vld [vmem:[#allocation2 + $0x1a4] sm:$0xff] }
 0x2d0   : > { %15395 = vst [vmem:[#allocation179_spill] sm:$0xff] %v10908_v33 }
 0x2d1   : > { %v10911_v6 = vpop.permute.xlu2 %8587 }
 0x2d2   : > { %15396 = vst [vmem:[#allocation180_spill] sm:$0xff] %v10911_v6  ;;  %v2891_v6 = vld [vmem:[#allocation2 + $0x144] sm:$0xff] }
 0x2d3   : > { %8757 = vrot.lane.b32.xlu0 %v8756_v23, %s9938_s13  ;;  %v8781_v23 = vpack.i.bf16 %v2893_v7, %v2892_v2  ;;  %v2900_v2 = vld [vmem:[#allocation2 + $0x1b4] sm:$0xff]  ;;  %v2901_v7 = vld [vmem:[#allocation2 + $0x1bc] sm:$0xff] }
 0x2d5   : > { %8747 = vrot.lane.b32.xlu1 %v8746_v16, %s9938_s13  ;;  %v10915_v27 = vpop.permute.xlu0 %8547 }
 0x2d6   : > { %15397 = vst [vmem:[#allocation181_spill] sm:$0xff] %v10915_v27  ;;  %v2890_v27 = vld [vmem:[#allocation2 + $0x13c] sm:$0xff] }
 0x2d7   : > { %v10917_v33 = vpop.permute.xlu1 %8537  ;;  %8767 = vrot.lane.b32.xlu2 %v8766_v24, %s9938_s13  ;;  %v8786_v24 = vpack.i.bf16 %v2895_v60, %v2894_v45  ;;  %v8776_v48 = vpack.i.bf16 %v2891_v6, %v2890_v27  ;;  %v3577_v45 = vld [vmem:[#allocation2 + $0x79] sm:$0xff]  ;;  %v3578_v6 = vld [vmem:[#allocation2 + $0x81] sm:$0xff] }
 0x2d8   : > { %15398 = vst [vmem:[#allocation182_spill] sm:$0xff] %v10917_v33 }
 0x2d9   : > { %v10920_v11 = vpop.permute.xlu2 %8602 }
 0x2da   : > { %15399 = vst [vmem:[#allocation183_spill] sm:$0xff] %v10920_v11  ;;  %v2897_v11 = vld [vmem:[#allocation2 + $0x18c] sm:$0xff] }
 0x2db   : > { %8772 = vrot.lane.b32.xlu0 %v8771_v34, %s9938_s13  ;;  %v8796_v34 = vpack.i.bf16 %v2899_v37, %v2898_v22  ;;  %v3579_v22 = vld [vmem:[#allocation2 + $0x91] sm:$0xff]  ;;  %v3580_v37 = vld [vmem:[#allocation2 + $0x99] sm:$0xff] }
 0x2dd   : > { %8762 = vrot.lane.b32.xlu1 %v8761_v30, %s9938_s13  ;;  %v10924_v16 = vpop.permute.xlu0 %8562 }
 0x2de   : > { %15400 = vst [vmem:[#allocation184_spill] sm:$0xff] %v10924_v16  ;;  %v2896_v16 = vld [vmem:[#allocation2 + $0x184] sm:$0xff] }
 0x2df   : > { %v10926_v33 = vpop.permute.xlu1 %8552  ;;  %8782 = vrot.lane.b32.xlu2 %v8781_v23, %s9938_s13  ;;  %v8801_v23 = vpack.i.bf16 %v2901_v7, %v2900_v2  ;;  %v8791_v27 = vpack.i.bf16 %v2897_v11, %v2896_v16  ;;  %v3583_v2 = vld [vmem:[#allocation2 + $0xc1] sm:$0xff]  ;;  %v3584_v11 = vld [vmem:[#allocation2 + $0xc9] sm:$0xff] }
 0x2e0   : > { %15401 = vst [vmem:[#allocation185_spill] sm:$0xff] %v10926_v33 }
 0x2e1   : > { %v10929_v53 = vpop.permute.xlu2 %8617 }
 0x2e2   : > { %15402 = vst [vmem:[#allocation186_spill] sm:$0xff] %v10929_v53  ;;  %v3576_v53 = vld [vmem:[#allocation2 + $0x69] sm:$0xff] }
 0x2e3   : > { %8787 = vrot.lane.b32.xlu0 %v8786_v24, %s9938_s13  ;;  %v8811_v24 = vpack.i.bf16 %v3578_v6, %v3577_v45  ;;  %v3585_v45 = vld [vmem:[#allocation2 + $0xd9] sm:$0xff]  ;;  %v3586_v6 = vld [vmem:[#allocation2 + $0xe1] sm:$0xff] }
 0x2e5   : > { %8777 = vrot.lane.b32.xlu1 %v8776_v48, %s9938_s13  ;;  %v10933_v30 = vpop.permute.xlu0 %8577 }
 0x2e6   : > { %15403 = vst [vmem:[#allocation187_spill] sm:$0xff] %v10933_v30  ;;  %v3575_v30 = vld [vmem:[#allocation2 + $0x61] sm:$0xff] }
 0x2e7   : > { %v10935_v33 = vpop.permute.xlu1 %8567  ;;  %8797 = vrot.lane.b32.xlu2 %v8796_v34, %s9938_s13  ;;  %v8816_v34 = vpack.i.bf16 %v3580_v37, %v3579_v22  ;;  %v8806_v16 = vpack.i.bf16 %v3576_v53, %v3575_v30  ;;  %v3589_v22 = vld [vmem:[#allocation2 + $0x109] sm:$0xff]  ;;  %v3590_v53 = vld [vmem:[#allocation2 + $0x111] sm:$0xff] }
 0x2e8   : > { %15404 = vst [vmem:[#allocation188_spill] sm:$0xff] %v10935_v33 }
 0x2e9   : > { %v10938_v60 = vpop.permute.xlu2 %8632 }
 0x2ea   : > { %15405 = vst [vmem:[#allocation189_spill] sm:$0xff] %v10938_v60  ;;  %v3582_v60 = vld [vmem:[#allocation2 + $0xb1] sm:$0xff] }
 0x2eb   : > { %8802 = vrot.lane.b32.xlu0 %v8801_v23, %s9938_s13  ;;  %v8826_v23 = vpack.i.bf16 %v3584_v11, %v3583_v2  ;;  %v3591_v2 = vld [vmem:[#allocation2 + $0x121] sm:$0xff]  ;;  %v3592_v11 = vld [vmem:[#allocation2 + $0x129] sm:$0xff] }
 0x2ed   : > { %8792 = vrot.lane.b32.xlu1 %v8791_v27, %s9938_s13  ;;  %v10942_v48 = vpop.permute.xlu0 %8592 }
 0x2ee   : > { %15406 = vst [vmem:[#allocation190_spill] sm:$0xff] %v10942_v48  ;;  %v3581_v48 = vld [vmem:[#allocation2 + $0xa9] sm:$0xff] }
 0x2ef   : > { %v10944_v33 = vpop.permute.xlu1 %8582  ;;  %8812 = vrot.lane.b32.xlu2 %v8811_v24, %s9935_s10  ;;  %v8831_v24 = vpack.i.bf16 %v3586_v6, %v3585_v45  ;;  %v8821_v30 = vpack.i.bf16 %v3582_v60, %v3581_v48  ;;  %v3595_v45 = vld [vmem:[#allocation2 + $0x151] sm:$0xff]  ;;  %v3596_v60 = vld [vmem:[#allocation2 + $0x159] sm:$0xff] }
 0x2f0   : > { %15407 = vst [vmem:[#allocation191_spill] sm:$0xff] %v10944_v33 }
 0x2f1   : > { %v10947_v7 = vpop.permute.xlu2 %8647 }
 0x2f2   : > { %15408 = vst [vmem:[#allocation192_spill] sm:$0xff] %v10947_v7  ;;  %v3588_v7 = vld [vmem:[#allocation2 + $0xf9] sm:$0xff] }
 0x2f3   : > { %8817 = vrot.lane.b32.xlu0 %v8816_v34, %s9935_s10  ;;  %v8841_v34 = vpack.i.bf16 %v3590_v53, %v3589_v22  ;;  %v3597_v22 = vld [vmem:[#allocation2 + $0x169] sm:$0xff]  ;;  %v3598_v53 = vld [vmem:[#allocation2 + $0x171] sm:$0xff] }
 0x2f5   : > { %8807 = vrot.lane.b32.xlu1 %v8806_v16, %s9935_s10  ;;  %v10951_v27 = vpop.permute.xlu0 %8607 }
 0x2f6   : > { %15409 = vst [vmem:[#allocation193_spill] sm:$0xff] %v10951_v27  ;;  %v3587_v27 = vld [vmem:[#allocation2 + $0xf1] sm:$0xff] }
 0x2f7   : > { %v10953_v33 = vpop.permute.xlu1 %8597  ;;  %8827 = vrot.lane.b32.xlu2 %v8826_v23, %s9935_s10  ;;  %v8846_v23 = vpack.i.bf16 %v3592_v11, %v3591_v2  ;;  %v8836_v48 = vpack.i.bf16 %v3588_v7, %v3587_v27  ;;  %v3601_v2 = vld [vmem:[#allocation2 + $0x199] sm:$0xff]  ;;  %v3602_v7 = vld [vmem:[#allocation2 + $0x1a1] sm:$0xff] }
 0x2f8   : > { %15410 = vst [vmem:[#allocation194_spill] sm:$0xff] %v10953_v33 }
 0x2f9   : > { %v10956_v37 = vpop.permute.xlu2 %8662 }
 0x2fa   : > { %15411 = vst [vmem:[#allocation195_spill] sm:$0xff] %v10956_v37  ;;  %v3594_v37 = vld [vmem:[#allocation2 + $0x141] sm:$0xff] }
 0x2fb   : > { %8832 = vrot.lane.b32.xlu0 %v8831_v24, %s9935_s10  ;;  %v8856_v24 = vpack.i.bf16 %v3596_v60, %v3595_v45  ;;  %v3603_v45 = vld [vmem:[#allocation2 + $0x1b1] sm:$0xff]  ;;  %v3604_v60 = vld [vmem:[#allocation2 + $0x1b9] sm:$0xff] }
 0x2fd   : > { %8822 = vrot.lane.b32.xlu1 %v8821_v30, %s9935_s10  ;;  %v10960_v16 = vpop.permute.xlu0 %8622 }
 0x2fe   : > { %15412 = vst [vmem:[#allocation196_spill] sm:$0xff] %v10960_v16  ;;  %v3593_v16 = vld [vmem:[#allocation2 + $0x139] sm:$0xff] }
 0x2ff   : > { %v10962_v33 = vpop.permute.xlu1 %8612  ;;  %8842 = vrot.lane.b32.xlu2 %v8841_v34, %s9935_s10  ;;  %v8861_v34 = vpack.i.bf16 %v3598_v53, %v3597_v22  ;;  %v8851_v27 = vpack.i.bf16 %v3594_v37, %v3593_v16  ;;  %v3607_v22 = vld [vmem:[#allocation2 + $0x62] sm:$0xff]  ;;  %v3608_v37 = vld [vmem:[#allocation2 + $0x6a] sm:$0xff]  ;;  %v7549_v16 = vunpack.i.l.bf16 %v10265_v32 }
 0x300   : > { %15413 = vst [vmem:[#allocation197_spill] sm:$0xff] %v10962_v33 }
 0x301   : > { %v10965_v6 = vpop.permute.xlu2 %8677 }
 0x302   : > { %15414 = vst [vmem:[#allocation198_spill] sm:$0xff] %v10965_v6  ;;  %v3600_v6 = vld [vmem:[#allocation2 + $0x189] sm:$0xff] }
 0x303   : > { %8847 = vrot.lane.b32.xlu0 %v8846_v23, %s9935_s10  ;;  %v8871_v23 = vpack.i.bf16 %v3602_v7, %v3601_v2  ;;  %v7550_v2 = vunpack.i.h.bf16 %v10265_v32  ;;  %v345_v7 = vld [vmem:[#allocation2 + $0x60] sm:$0xff] }
 0x304   : > { %v3610_v32 = vld [vmem:[#allocation2 + $0x82] sm:$0xff]  ;;  %v1017_v54 = vsel %vm256_vm0, %v345_v7, %v7549_v16  ;;  %v3606_v16 = vld [vmem:[#allocation2 + $0x1d1] sm:$0xff] }
 0x305   : > { %8837 = vrot.lane.b32.xlu1 %v8836_v48, %s9935_s10  ;;  %v10969_v30 = vpop.permute.xlu0 %8637  ;;  %v353_v7 = vld [vmem:[#allocation2 + $0xc0] sm:$0xff] }
 0x306   : > { %15415 = vst [vmem:[#allocation199_spill] sm:$0xff] %v10969_v30  ;;  %v3599_v30 = vld [vmem:[#allocation2 + $0x181] sm:$0xff] }
 0x307   : > { %v10971_v33 = vpop.permute.xlu1 %8627  ;;  %8857 = vrot.lane.b32.xlu2 %v8856_v24, %s9935_s10  ;;  %v8876_v24 = vpack.i.bf16 %v3604_v60, %v3603_v45  ;;  %v8866_v53 = vpack.i.bf16 %v3600_v6, %v3599_v30  ;;  %v8886_v45 = vpack.i.bf16 %v3608_v37, %v3607_v22  ;;  %v7555_v60 = vunpack.i.h.bf16 %v10270_v50  ;;  %v340_v6 = vld [vmem:[#allocation2 + $0x20] sm:$0xff]  ;;  %v347_v22 = vld [vmem:[#allocation2 + $0x78] sm:$0xff] }
 0x308   : > { %15416 = vst [vmem:[#allocation200_spill] sm:$0xff] %v10971_v33  ;;  %v7534_v30 = vunpack.i.l.bf16 %v10285_v19  ;;  %v7570_v37 = vunpack.i.h.bf16 %v10275_v63 }
 0x309   : > { %v10974_v11 = vpop.permute.xlu2 %8692 }
 0x30a   : > { %15417 = vst [vmem:[#allocation201_spill] sm:$0xff] %v10974_v11  ;;  %v346_v11 = vld [vmem:[#allocation2 + $0x68] sm:$0xff] }
 0x30b   : > { %8862 = vrot.lane.b32.xlu0 %v8861_v34, %s9935_s10 }
 0x30d   : > { %8852 = vrot.lane.b32.xlu1 %v8851_v27, %s9935_s10  ;;  %v10978_v48 = vpop.permute.xlu0 %8652  ;;  %v7530_v27 = vunpack.i.h.bf16 %v10277_v1 }
 0x30e   : > { %15418 = vst [vmem:[#allocation202_spill] sm:$0xff] %v10978_v48  ;;  %v338_v48 = vld [vmem:[#allocation2 + $0x8] sm:$0xff] }
 0x30f   : > { %v10980_v33 = vpop.permute.xlu1 %8642  ;;  %8872 = vrot.lane.b32.xlu2 %v8871_v23, %s9935_s10  ;;  %v7535_v23 = vunpack.i.h.bf16 %v10285_v19  ;;  %v11002_v19 = vsel %vm256_vm0, %v338_v48, %v7530_v27  ;;  %v1020_v48 = vsel %vm256_vm0, %v348_v5, %v7555_v60  ;;  %v11016_v27 = vsel %vm256_vm0, %v339_v55, %v7534_v30  ;;  %v3620_v30 = vld [vmem:[#allocation2 + $0xfa] sm:$0xff] }
 0x310   : > { %15419 = vst [vmem:[#allocation203_spill] sm:$0xff] %v10980_v33  ;;  %v337_v33 = vld [vmem:[#allocation2] sm:$0xff]  ;;  %v11025_v5 = vsel %vm256_vm0, %v354_v4, %v7570_v37  ;;  %v11028_v55 = vsel %vm256_vm0, %v353_v7, %v7569_v15  ;;  %v7630_v60 = vunpack.i.h.bf16 %v10309_v9  ;;  %v7720_v15 = vunpack.i.h.bf16 %v10373_v44 }
 0x311   : > { %v10984_v34 = vpop.permute.xlu2 %8707  ;;  %15422 = vst [vmem:[#allocation206_spill] sm:$0xff] %v11002_v19  ;;  %v11005_v50 = vsel %vm256_vm0, %v337_v33, %v7529_v8  ;;  %v7560_v19 = vunpack.i.h.bf16 %v10295_v42  ;;  %v7559_v33 = vunpack.i.l.bf16 %v10295_v42  ;;  %v3613_v8 = vld [vmem:[#allocation2 + $0xaa] sm:$0xff]  ;;  %v3615_v7 = vld [vmem:[#allocation2 + $0xc2] sm:$0xff]  ;;  %v7719_v42 = vunpack.i.l.bf16 %v10373_v44 }
 0x312   : > { %15420 = vst [vmem:[#allocation204_spill] sm:$0xff] %v10984_v34  ;;  %v3609_v34 = vld [vmem:[#allocation2 + $0x7a] sm:$0xff]  ;;  %v7794_v44 = vunpack.i.l.bf16 %v10430_v49 }
 0x313   : > { %8877 = vrot.lane.b32.xlu0 %v8876_v24, %s9935_s10  ;;  %v1018_v24 = vsel %vm256_vm0, %v346_v11, %v7550_v2  ;;  %15423 = vst [vmem:[#allocation207_spill] sm:$0xff] %v11005_v50  ;;  %v8891_v63 = vpack.i.bf16 %v3610_v32, %v3609_v34  ;;  %v360_v2 = vld [vmem:[#allocation2 + $0x110] sm:$0xff]  ;;  %v8881_v34 = vpack.i.bf16 %v3606_v16, %v3605_v29  ;;  %v7635_v16 = vunpack.i.h.bf16 %v10340_v20 }
 0x314   : > { %15426 = vst [vmem:[#allocation210_spill] sm:$0xff] %v11016_v27  ;;  %v3614_v50 = vld [vmem:[#allocation2 + $0xb2] sm:$0xff] }
 0x315   : > { %8867 = vrot.lane.b32.xlu1 %v8866_v53, %s9935_s10  ;;  %v10996_v1 = vpop.permute.xlu0 %8667  ;;  %v7585_v53 = vunpack.i.h.bf16 %v10282_v18  ;;  %15428 = vst [vmem:[#allocation212_spill] sm:$0xff] %v11025_v5  ;;  %v8901_v29 = vpack.i.bf16 %v3614_v50, %v3613_v8  ;;  %v3612_v8 = vld [vmem:[#allocation2 + $0x9a] sm:$0xff]  ;;  %v1145_v5 = vld [vmem:[#allocation2 + $0x48] sm:$0xff] }
 0x316   : > { %15421 = vst [vmem:[#allocation205_spill] sm:$0xff] %v10996_v1  ;;  %v11009_v1 = vsel %vm256_vm0, %v340_v6, %v7535_v23  ;;  %v1019_v23 = vsel %vm256_vm0, %v347_v22, %v7554_v51  ;;  %v349_v6 = vld [vmem:[#allocation2 + $0x90] sm:$0xff] }
 0x317   : > { %15424 = vst [vmem:[#allocation208_spill] sm:$0xff] %v11009_v1  ;;  %v11011_v11 = vpop.permute.xlu1 %8657  ;;  %8887 = vrot.lane.b32.xlu2 %v8886_v45, %s9936_s11  ;;  %v350_v1 = vld [vmem:[#allocation2 + $0x98] sm:$0xff]  ;;  %v7629_v45 = vunpack.i.l.bf16 %v10309_v9  ;;  %v11033_v51 = vsel %vm256_vm0, %v360_v2, %v7585_v53  ;;  %v1021_v4 = vsel %vm256_vm0, %v349_v6, %v7559_v33  ;;  %v3616_v9 = vld [vmem:[#allocation2 + $0xca] sm:$0xff]  ;;  %v7634_v6 = vunpack.i.l.bf16 %v10340_v20 }
 0x318   : > { %15425 = vst [vmem:[#allocation209_spill] sm:$0xff] %v11011_v11  ;;  %v1022_v37 = vsel %vm256_vm0, %v350_v1, %v7560_v19  ;;  %v1051_v1 = vsel %vm1041_vm3, %v1018_v24, %v7630_v60  ;;  %v7640_v19 = vunpack.i.h.bf16 %v10358_v38  ;;  %v3611_v33 = vld [vmem:[#allocation2 + $0x92] sm:$0xff]  ;;  %v1053_v24 = vsel %vm1041_vm3, %v1020_v48, %v7635_v16  ;;  %v3681_v11 = vld [vmem:[#allocation2 + $0xdc] sm:$0xff] }
 0x319   : > { %v11022_v32 = vpop.permute.xlu2 %8722  ;;  %15429 = vst [vmem:[#allocation213_spill] sm:$0xff] %v11028_v55  ;;  %v1050_v22 = vsel %vm1041_vm3, %v1017_v54, %v7629_v45  ;;  %v8906_v45 = vpack.i.bf16 %v3616_v9, %v3615_v7  ;;  %v7715_v60 = vunpack.i.h.bf16 %v10416_v56  ;;  %v3619_v53 = vld [vmem:[#allocation2 + $0xf2] sm:$0xff]  ;;  %v7709_v20 = vunpack.i.l.bf16 %v10403_v61 }
 0x31a   : > { %15427 = vst [vmem:[#allocation211_spill] sm:$0xff] %v11022_v32  ;;  %v7795_v2 = vunpack.i.h.bf16 %v10430_v49  ;;  %v7800_v16 = vunpack.i.h.bf16 %v10461_v58  ;;  %v7799_v7 = vunpack.i.l.bf16 %v10461_v58  ;;  %v8916_v49 = vpack.i.bf16 %v3620_v30, %v3619_v53  ;;  %v15489_v32 = vld [vmem:[#allocation86_spill] sm:$0xff] }
 0x31b   : > { %15430 = vst [vmem:[#allocation214_spill] sm:$0xff] %v11033_v51  ;;  %8892 = vrot.lane.b32.xlu0 %v8891_v63, %s9936_s11  ;;  %v7639_v63 = vunpack.i.l.bf16 %v10358_v38  ;;  %v7714_v38 = vunpack.i.l.bf16 %v10416_v56  ;;  %v8896_v51 = vpack.i.bf16 %v3612_v8, %v3611_v33  ;;  %v1052_v56 = vsel %vm1041_vm3, %v1019_v23, %v7634_v6  ;;  %v3617_v6 = vld [vmem:[#allocation2 + $0xda] sm:$0xff] }
 0x31c   : > { %v1086_v8 = vsel %vm1074_vm4, %v1053_v24, %v7715_v60  ;;  %v1083_v58 = vsel %vm1074_vm4, %v1050_v22, %v7709_v20  ;;  %v7789_v53 = vunpack.i.l.bf16 %v10463_v14  ;;  %v7855_v22 = vunpack.i.h.bf16 %v10466_v10  ;;  %v1149_v24 = vld [vmem:[#allocation2 + $0x78] sm:$0xff]  ;;  %v341_v20 = vld [vmem:[#allocation2 + $0x30] sm:$0xff] }
 0x31d   : > { %8882 = vrot.lane.b32.xlu1 %v8881_v34, %s9935_s10  ;;  %v11047_v50 = vpop.permute.xlu0 %8682  ;;  %v7710_v34 = vunpack.i.h.bf16 %v10403_v61  ;;  %v1054_v48 = vsel %vm1041_vm3, %v1021_v4, %v7639_v63  ;;  %v3621_v4 = vld [vmem:[#allocation2 + $0x10a] sm:$0xff]  ;;  %v7869_v60 = vunpack.i.l.bf16 %v10475_v13  ;;  %v7849_v55 = vunpack.i.l.bf16 %v10499_v21  ;;  %s9944_s10 = smov 32  }
 0x31e   : > { %15431 = vst [vmem:[#allocation215_spill] sm:$0xff] %v11047_v50  ;;  %v1087_v9 = vsel %vm1074_vm4, %v1054_v48, %v7719_v42  ;;  %v11083_v42 = vsel %vm1107_vm5, %v1086_v8, %v7795_v2  ;;  %v7854_v2 = vunpack.i.l.bf16 %v10466_v10  ;;  %v7885_v48 = vunpack.i.h.bf16 %v10484_v0  ;;  %v1162_v8 = vld [vmem:[#allocation2 + $0x110] sm:$0xff] }
 0x31f   : > { %v11055_v54 = vpop.permute.xlu1 %8672  ;;  %8902 = vrot.lane.b32.xlu2 %v8901_v29, %s9936_s11  ;;  %v1055_v29 = vsel %vm1041_vm3, %v1022_v37, %v7640_v19  ;;  %v1084_v33 = vsel %vm1074_vm4, %v1051_v1, %v7710_v34  ;;  %v1085_v37 = vsel %vm1074_vm4, %v1052_v56, %v7714_v38  ;;  %v3622_v19 = vld [vmem:[#allocation2 + $0x112] sm:$0xff]  ;;  %15435 = vst [vmem:[#allocation219_spill] sm:$0xff] %v11083_v42  ;;  %v1150_v34 = vld [vmem:[#allocation2 + $0x80] sm:$0xff]  ;;  %v7900_v10 = vunpack.i.h.bf16 %v10493_v39 }
 0x320   : > { %15432 = vst [vmem:[#allocation216_spill] sm:$0xff] %v11055_v54  ;;  %v1088_v61 = vsel %vm1074_vm4, %v1055_v29, %v7720_v15  ;;  %v11080_v23 = vsel %vm1107_vm5, %v1085_v37, %v7794_v44  ;;  %v7790_v15 = vunpack.i.h.bf16 %v10463_v14  ;;  %v11091_v1 = vsel %vm1107_vm5, %v1087_v9, %v7799_v7  ;;  %v342_v44 = vld [vmem:[#allocation2 + $0x38] sm:$0xff]  ;;  %v1155_v29 = vld [vmem:[#allocation2 + $0xc0] sm:$0xff] }
 0x321   : > { %v11065_v27 = vpop.permute.xlu2 %8737  ;;  %15434 = vst [vmem:[#allocation218_spill] sm:$0xff] %v11080_v23  ;;  %v11094_v63 = vsel %vm1107_vm5, %v1088_v61, %v7800_v16  ;;  %v8921_v14 = vpack.i.bf16 %v3622_v19, %v3621_v4  ;;  %v7884_v16 = vunpack.i.l.bf16 %v10484_v0  ;;  %v7899_v7 = vunpack.i.l.bf16 %v10493_v39  ;;  %v3625_v56 = vld [vmem:[#allocation2 + $0x13a] sm:$0xff]  ;;  %v3626_v9 = vld [vmem:[#allocation2 + $0x142] sm:$0xff] }
 0x322   : > { %15433 = vst [vmem:[#allocation217_spill] sm:$0xff] %v11065_v27  ;;  %v1156_v61 = vld [vmem:[#allocation2 + $0xc8] sm:$0xff]  ;;  %v7850_v37 = vunpack.i.h.bf16 %v10499_v21  ;;  %v7859_v4 = vunpack.i.l.bf16 %v10497_v26  ;;  %v11113_v0 = vsel %vm1107_vm5, %v1084_v33, %v7790_v15  ;;  %v11116_v18 = vsel %vm1107_vm5, %v1083_v58, %v7789_v53  ;;  %v1142_v39 = vld [vmem:[#allocation2 + $0x20] sm:$0xff]  ;;  %v1141_v33 = vld [vmem:[#allocation2 + $0x18] sm:$0xff] }
 0x323   : > { %8907 = vrot.lane.b32.xlu0 %v8906_v45, %s9936_s11  ;;  %15437 = vst [vmem:[#allocation221_spill] sm:$0xff] %v11091_v1  ;;  %v3618_v45 = vld [vmem:[#allocation2 + $0xe2] sm:$0xff]  ;;  %v1168_v15 = vld [vmem:[#allocation2 + $0x158] sm:$0xff]  ;;  %v8931_v58 = vpack.i.bf16 %v3626_v9, %v3625_v56  ;;  %v11131_v21 = vsel %vm256_vm0, %v1149_v24, %v7869_v60  ;;  %v11134_v53 = vsel %vm256_vm0, %v1156_v61, %v7885_v48  ;;  %v7864_v61 = vunpack.i.l.bf16 %v10508_v12 }
 0x324   : > { %15438 = vst [vmem:[#allocation222_spill] sm:$0xff] %v11094_v63  ;;  %v8911_v19 = vpack.i.bf16 %v3618_v45, %v3617_v6  ;;  %v11121_v63 = vsel %vm256_vm0, %v342_v44, %v7855_v22  ;;  %v11137_v22 = vsel %vm256_vm0, %v1155_v29, %v7884_v16  ;;  %v11140_v45 = vsel %vm256_vm0, %v1162_v8, %v7900_v10  ;;  %v1167_v29 = vld [vmem:[#allocation2 + $0x150] sm:$0xff]  ;;  %v1147_v56 = vld [vmem:[#allocation2 + $0x60] sm:$0xff]  ;;  %v1148_v9 = vld [vmem:[#allocation2 + $0x68] sm:$0xff] }
 0x325   : > { %8897 = vrot.lane.b32.xlu1 %v8896_v51, %s9936_s11  ;;  %v11087_v30 = vpop.permute.xlu0 %8697  ;;  %v7870_v51 = vunpack.i.h.bf16 %v10475_v13  ;;  %v1161_v13 = vld [vmem:[#allocation2 + $0x108] sm:$0xff]  ;;  %15441 = vst [vmem:[#allocation225_spill] sm:$0xff] %v11113_v0  ;;  %v11150_v24 = vsel %vm256_vm0, %v1145_v5, %v7859_v4  ;;  %v1813_v44 = vsel %vm256_vm0, %v1141_v33, %v7849_v55  ;;  %v11157_v48 = vsel %vm256_vm0, %v1168_v15, %v7915_v52  ;;  %v1158_v15 = vld [vmem:[#allocation2 + $0xe0] sm:$0xff]  ;;  %v1157_v1 = vld [vmem:[#allocation2 + $0xd8] sm:$0xff] }
 0x326   : > { %15436 = vst [vmem:[#allocation220_spill] sm:$0xff] %v11087_v30  ;;  %v7914_v16 = vunpack.i.l.bf16 %v10502_v35  ;;  %v7875_v10 = vunpack.i.h.bf16 %v10506_v25  ;;  %v7865_v5 = vunpack.i.h.bf16 %v10508_v12  ;;  %v7874_v8 = vunpack.i.l.bf16 %v10506_v25  ;;  %v3632_v33 = vld [vmem:[#allocation2 + $0x18a] sm:$0xff] }
 0x327   : > { %v11100_v38 = vpop.permute.xlu1 %8687  ;;  %8917 = vrot.lane.b32.xlu2 %v8916_v49, %s9936_s11  ;;  %v7860_v49 = vunpack.i.h.bf16 %v10497_v26  ;;  %15442 = vst [vmem:[#allocation226_spill] sm:$0xff] %v11116_v18  ;;  %v11124_v26 = vsel %vm256_vm0, %v341_v20, %v7854_v2  ;;  %v11127_v6 = vsel %vm256_vm0, %v1150_v34, %v7870_v51  ;;  %v3627_v2 = vld [vmem:[#allocation2 + $0x152] sm:$0xff]  ;;  %v3628_v34 = vld [vmem:[#allocation2 + $0x15a] sm:$0xff]  ;;  %v11143_v51 = vsel %vm256_vm0, %v1161_v13, %v7899_v7  ;;  %v3623_v7 = vld [vmem:[#allocation2 + $0x122] sm:$0xff] }
 0x328   : > { %15439 = vst [vmem:[#allocation223_spill] sm:$0xff] %v11100_v38  ;;  %v1152_v13 = vld [vmem:[#allocation2 + $0x98] sm:$0xff]  ;;  %v8936_v52 = vpack.i.bf16 %v3628_v34, %v3627_v2  ;;  %v7930_v35 = vunpack.i.h.bf16 %v10511_v47  ;;  %v7890_v4 = vunpack.i.h.bf16 %v10515_v31  ;;  %v7880_v12 = vunpack.i.h.bf16 %v10517_v40  ;;  %v1153_v18 = vld [vmem:[#allocation2 + $0xa8] sm:$0xff] }
 0x329   : > { %v11110_v28 = vpop.permute.xlu2 %8752  ;;  %v11147_v20 = vsel %vm256_vm0, %v1146_v57, %v7860_v49  ;;  %v3624_v57 = vld [vmem:[#allocation2 + $0x12a] sm:$0xff]  ;;  %v7929_v49 = vunpack.i.l.bf16 %v10511_v47  ;;  %v7879_v25 = vunpack.i.l.bf16 %v10517_v40  ;;  %v7944_v0 = vunpack.i.l.bf16 %v10520_v41 }
 0x32a   : > { %15440 = vst [vmem:[#allocation224_spill] sm:$0xff] %v11110_v28  ;;  %v11177_v34 = vsel %vm256_vm0, %v1167_v29, %v7914_v16  ;;  %v11180_v47 = vsel %vm256_vm0, %v1152_v13, %v7875_v10  ;;  %v7905_v42 = vunpack.i.h.bf16 %v10524_v36  ;;  %v1820_v40 = vsel %vm256_vm0, %v1148_v9, %v7865_v5  ;;  %v3633_v5 = vld [vmem:[#allocation2 + $0x19a] sm:$0xff]  ;;  %v15458_v30 = vld [vmem:[#allocation64_spill] sm:$0xff] }
 0x32b   : > { %8922 = vrot.lane.b32.xlu0 %v8921_v14, %s9936_s11  ;;  %v1814_v14 = vsel %vm256_vm0, %v1142_v39, %v7850_v37  ;;  %v1151_v37 = vld [vmem:[#allocation2 + $0x90] sm:$0xff]  ;;  %v3631_v39 = vld [vmem:[#allocation2 + $0x182] sm:$0xff]  ;;  %v1819_v23 = vsel %vm256_vm0, %v1147_v56, %v7864_v61  ;;  %v11191_v16 = vsel %vm1041_vm3, %v1813_v44, %v7929_v49  ;;  %v11197_v41 = vsel %vm256_vm0, %v1158_v15, %v7890_v4 }
 0x32c   : > { %v8946_v29 = vpack.i.bf16 %v3632_v33, %v3631_v39  ;;  %v11194_v10 = vsel %vm1041_vm3, %v1814_v14, %v7930_v35  ;;  %v7904_v9 = vunpack.i.l.bf16 %v10524_v36  ;;  %v3634_v56 = vld [vmem:[#allocation2 + $0x1a2] sm:$0xff]  ;;  %v1825_v13 = vsel %vm256_vm0, %v1153_v18, %v7879_v25  ;;  %v3630_v49 = vld [vmem:[#allocation2 + $0x172] sm:$0xff] }
 0x32d   : > { %8912 = vrot.lane.b32.xlu1 %v8911_v19, %s9936_s11  ;;  %v11153_v60 = vpop.permute.xlu0 %8712  ;;  %v7889_v19 = vunpack.i.l.bf16 %v10515_v31  ;;  %v1154_v31 = vld [vmem:[#allocation2 + $0xb0] sm:$0xff]  ;;  %v11206_v44 = vsel %vm1041_vm3, %v1819_v23, %v7944_v0  ;;  %v7895_v36 = vunpack.i.h.bf16 %v10526_v46  ;;  %v7894_v35 = vunpack.i.l.bf16 %v10526_v46  ;;  %v1160_v23 = vld [vmem:[#allocation2 + $0xf8] sm:$0xff] }
 0x32e   : > { %15443 = vst [vmem:[#allocation227_spill] sm:$0xff] %v11153_v60  ;;  %v1826_v61 = vsel %vm256_vm0, %v1154_v31, %v7880_v12  ;;  %v1159_v4 = vld [vmem:[#allocation2 + $0xf0] sm:$0xff]  ;;  %v7960_v0 = vunpack.i.h.bf16 %v10529_v43  ;;  %v7920_v39 = vunpack.i.h.bf16 %v10533_v17  ;;  %v7909_v12 = vunpack.i.l.bf16 %v10535_v3 }
 0x32f   : > { %v11164_v55 = vpop.permute.xlu1 %8702  ;;  %8932 = vrot.lane.b32.xlu2 %v8931_v58, %s9936_s11  ;;  %v8926_v58 = vpack.i.bf16 %v3624_v57, %v3623_v7  ;;  %v11187_v7 = vsel %vm256_vm0, %v1151_v37, %v7874_v8  ;;  %v1164_v57 = vld [vmem:[#allocation2 + $0x128] sm:$0xff]  ;;  %v11203_v8 = vsel %vm256_vm0, %v1157_v1, %v7889_v19  ;;  %v11212_v37 = vsel %vm1041_vm3, %v1820_v40, %v7945_v62  ;;  %v1170_v25 = vld [vmem:[#allocation2 + $0x170] sm:$0xff] }
 0x330   : > { %15444 = vst [vmem:[#allocation228_spill] sm:$0xff] %v11164_v55  ;;  %v11217_v18 = vsel %vm256_vm0, %v1164_v57, %v7905_v42  ;;  %v3629_v1 = vld [vmem:[#allocation2 + $0x16a] sm:$0xff]  ;;  %v7959_v19 = vunpack.i.l.bf16 %v10529_v43  ;;  %v8951_v62 = vpack.i.bf16 %v3634_v56, %v3633_v5  ;;  %v7910_v42 = vunpack.i.h.bf16 %v10535_v3  ;;  %v3638_v31 = vld [vmem:[#allocation2 + $0x1d2] sm:$0xff]  ;;  %v1166_v43 = vld [vmem:[#allocation2 + $0x140] sm:$0xff] }
 0x331   : > { %v11174_v2 = vpop.permute.xlu2 %8767  ;;  %v7919_v15 = vunpack.i.l.bf16 %v10533_v17  ;;  %v1169_v40 = vld [vmem:[#allocation2 + $0x168] sm:$0xff]  ;;  %v7975_v57 = vunpack.i.h.bf16 %v10538_v59  ;;  %v8941_v56 = vpack.i.bf16 %v3630_v49, %v3629_v1  ;;  %v1831_v3 = vsel %vm256_vm0, %v1159_v4, %v7894_v35  ;;  %v15450_v55 = vld [vmem:[#allocation59_spill] sm:$0xff] }
 0x332   : > { %15445 = vst [vmem:[#allocation229_spill] sm:$0xff] %v11174_v2  ;;  %v1165_v2 = vld [vmem:[#allocation2 + $0x138] sm:$0xff]  ;;  %v7925_v17 = vunpack.i.h.bf16 %v15450_v55  ;;  %v11241_v38 = vsel %vm1041_vm3, %v1825_v13, %v7959_v19  ;;  %v11244_v28 = vsel %vm1041_vm3, %v1826_v61, %v7960_v0  ;;  %v1172_v1 = vld [vmem:[#allocation2 + $0x188] sm:$0xff]  ;;  %v1838_v35 = vsel %vm256_vm0, %v1166_v43, %v7910_v42 }
 0x333   : > { %8937 = vrot.lane.b32.xlu0 %v8936_v52, %s9936_s11  ;;  %v1163_v52 = vld [vmem:[#allocation2 + $0x120] sm:$0xff]  ;;  %v11252_v49 = vsel %vm256_vm0, %v1169_v40, %v7919_v15  ;;  %v7924_v4 = vunpack.i.l.bf16 %v15450_v55  ;;  %v1837_v61 = vsel %vm256_vm0, %v1165_v2, %v7909_v12  ;;  %v15453_v12 = vld [vmem:[#allocation61_spill] sm:$0xff]  ;;  %v15454_v43 = vld [vmem:[#allocation62_spill] sm:$0xff]  ;;  %v7964_v54 = vunpack.i.l.bf16 %v15458_v30 }
 0x334   : > { %v11226_v46 = vsel %vm256_vm0, %v1163_v52, %v7904_v9  ;;  %v1832_v52 = vsel %vm256_vm0, %v1160_v23, %v7895_v36  ;;  %v15451_v23 = vld [vmem:[#allocation60_spill] sm:$0xff]  ;;  %v7950_v15 = vunpack.i.h.bf16 %v15453_v12  ;;  %v7940_v40 = vunpack.i.h.bf16 %v15454_v43 }
 0x335   : > { %8927 = vrot.lane.b32.xlu1 %v8926_v58, %s9936_s11  ;;  %v11209_v14 = vpop.permute.xlu0 %8727  ;;  %v3637_v58 = vld [vmem:[#allocation2 + $0x1ca] sm:$0xff]  ;;  %v7989_v13 = vunpack.i.l.bf16 %v15451_v23 }
 0x336   : > { %15446 = vst [vmem:[#allocation230_spill] sm:$0xff] %v11209_v14  ;;  %v8961_v36 = vpack.i.bf16 %v3638_v31, %v3637_v58  ;;  %v3639_v19 = vld [vmem:[#allocation2 + $0x63] sm:$0xff]  ;;  %v3635_v58 = vld [vmem:[#allocation2 + $0x1b2] sm:$0xff]  ;;  %v3636_v31 = vld [vmem:[#allocation2 + $0x1ba] sm:$0xff] }
 0x337   : > { %v11222_v33 = vpop.permute.xlu1 %8717  ;;  %8947 = vrot.lane.b32.xlu2 %v8946_v29, %s9936_s11  ;;  %v15448_v29 = vld [vmem:[#allocation58_spill] sm:$0xff]  ;;  %v8956_v50 = vpack.i.bf16 %v3636_v31, %v3635_v58  ;;  %v1946_v14 = vld [vmem:[#allocation2 + $0x68] sm:$0xff] }
 0x338   : > { %15447 = vst [vmem:[#allocation231_spill] sm:$0xff] %v11222_v33  ;;  %v7974_v33 = vunpack.i.l.bf16 %v10538_v59  ;;  %v7935_v5 = vunpack.i.h.bf16 %v15448_v29  ;;  %v7934_v60 = vunpack.i.l.bf16 %v15448_v29  ;;  %v11247_v59 = vsel %vm256_vm0, %v1170_v25, %v7920_v39  ;;  %v3640_v29 = vld [vmem:[#allocation2 + $0x6b] sm:$0xff] }
 0x339   : > { %v11234_v9 = vpop.permute.xlu2 %8782  ;;  %v11261_v39 = vsel %vm1041_vm3, %v1832_v52, %v7975_v57  ;;  %v1844_v25 = vsel %vm256_vm0, %v1172_v1, %v7925_v17  ;;  %v7949_v57 = vunpack.i.l.bf16 %v15453_v12  ;;  %v15456_v52 = vld [vmem:[#allocation63_spill] sm:$0xff]  ;;  %v3643_v1 = vld [vmem:[#allocation2 + $0x93] sm:$0xff]  ;;  %v7965_v12 = vunpack.i.h.bf16 %v15458_v30 }
 0x33a   : > { %15449 = vst [vmem:[#allocation58_spill] sm:$0xff] %v11234_v9  ;;  %v11258_v0 = vsel %vm1041_vm3, %v1831_v3, %v7974_v33  ;;  %v11265_v42 = vsel %vm1041_vm3, %v11121_v63, %v7935_v5  ;;  %v11273_v2 = vsel %vm1041_vm3, %v11124_v26, %v7934_v60  ;;  %v7990_v33 = vunpack.i.h.bf16 %v15451_v23  ;;  %v3644_v23 = vld [vmem:[#allocation2 + $0x9b] sm:$0xff]  ;;  %v15457_v9 = vld [vmem:[#allocation65_spill] sm:$0xff] }
 0x33b   : > { %8952 = vrot.lane.b32.xlu0 %v8951_v62, %s9936_s11  ;;  %v1171_v62 = vld [vmem:[#allocation2 + $0x180] sm:$0xff]  ;;  %v7939_v63 = vunpack.i.l.bf16 %v15454_v43  ;;  %v11285_v60 = vsel %vm1041_vm3, %v1837_v61, %v7989_v13  ;;  %v8005_v3 = vunpack.i.h.bf16 %v15456_v52  ;;  %v8004_v17 = vunpack.i.l.bf16 %v15456_v52  ;;  %v15463_v52 = vld [vmem:[#allocation68_spill] sm:$0xff] }
 0x33c   : > { %v1843_v26 = vsel %vm256_vm0, %v1171_v62, %v7924_v4  ;;  %v7955_v43 = vunpack.i.h.bf16 %v15457_v9  ;;  %v11295_v4 = vsel %vm1041_vm3, %v1838_v35, %v7990_v33  ;;  %v11299_v13 = vsel %vm1041_vm3, %v11127_v6, %v7950_v15  ;;  %v15461_v33 = vld [vmem:[#allocation67_spill] sm:$0xff] }
 0x33d   : > { %8942 = vrot.lane.b32.xlu1 %v8941_v56, %s9936_s11  ;;  %v11268_v55 = vpop.permute.xlu0 %8742  ;;  %v8966_v56 = vpack.i.bf16 %v3640_v29, %v3639_v19  ;;  %v7954_v19 = vunpack.i.l.bf16 %v15457_v9  ;;  %v15460_v29 = vld [vmem:[#allocation66_spill] sm:$0xff]  ;;  %v1850_v62 = vsel %vm1041_vm3, %v11147_v20, %v7940_v40  ;;  %v1849_v30 = vsel %vm1041_vm3, %v11150_v24, %v7939_v63  ;;  %v3645_v20 = vld [vmem:[#allocation2 + $0xab] sm:$0xff] }
 0x33e   : > { %15452 = vst [vmem:[#allocation59_spill] sm:$0xff] %v11268_v55  ;;  %v8019_v61 = vunpack.i.l.bf16 %v15460_v29  ;;  %v11309_v58 = vsel %vm1041_vm3, %v11131_v21, %v7949_v57  ;;  %v8976_v35 = vpack.i.bf16 %v3644_v23, %v3643_v1  ;;  %v11313_v6 = vsel %vm1041_vm3, %v1843_v26, %v8004_v17  ;;  %v3646_v40 = vld [vmem:[#allocation2 + $0xb3] sm:$0xff]  ;;  %v3642_v17 = vld [vmem:[#allocation2 + $0x83] sm:$0xff] }
 0x33f   : > { %v11280_v5 = vpop.permute.xlu1 %8732  ;;  %8962 = vrot.lane.b32.xlu2 %v8961_v36, %s9936_s11  ;;  %v8020_v9 = vunpack.i.h.bf16 %v15460_v29  ;;  %v7980_v15 = vunpack.i.h.bf16 %v15461_v33  ;;  %v7979_v31 = vunpack.i.l.bf16 %v15461_v33  ;;  %v11319_v24 = vsel %vm1041_vm3, %v1844_v25, %v8005_v3  ;;  %v15464_v1 = vld [vmem:[#allocation69_spill] sm:$0xff]  ;;  %v3650_v33 = vld [vmem:[#allocation2 + $0xe3] sm:$0xff] }
 0x340   : > { %15455 = vst [vmem:[#allocation60_spill] sm:$0xff] %v11280_v5  ;;  %v1856_v21 = vsel %vm1041_vm3, %v11180_v47, %v7955_v43  ;;  %v11325_v63 = vsel %vm1041_vm3, %v11134_v53, %v7965_v12  ;;  %v11329_v57 = vsel %vm1041_vm3, %v11137_v22, %v7964_v54  ;;  %v1855_v26 = vsel %vm1041_vm3, %v11187_v7, %v7954_v19  ;;  %v3641_v53 = vld [vmem:[#allocation2 + $0x7b] sm:$0xff]  ;;  %v3682_v5 = vld [vmem:[#allocation2 + $0xe4] sm:$0xff] }
 0x341   : > { %v11292_v36 = vpop.permute.xlu2 %8797  ;;  %v11337_v25 = vsel %vm1074_vm4, %v1849_v30, %v8019_v61  ;;  %v7970_v47 = vunpack.i.h.bf16 %v15463_v52  ;;  %v7969_v3 = vunpack.i.l.bf16 %v15463_v52  ;;  %v8035_v23 = vunpack.i.h.bf16 %v15464_v1  ;;  %v15465_v22 = vld [vmem:[#allocation70_spill] sm:$0xff]  ;;  %v15467_v52 = vld [vmem:[#allocation71_spill] sm:$0xff] }
 0x342   : > { %15459 = vst [vmem:[#allocation61_spill] sm:$0xff] %v11292_v36  ;;  %v8034_v54 = vunpack.i.l.bf16 %v15464_v1  ;;  %v8981_v7 = vpack.i.bf16 %v3646_v40, %v3645_v20  ;;  %v11348_v12 = vsel %vm1074_vm4, %v1850_v62, %v8020_v9  ;;  %v11352_v19 = vsel %vm1041_vm3, %v11140_v45, %v7980_v15  ;;  %v3649_v30 = vld [vmem:[#allocation2 + $0xdb] sm:$0xff]  ;;  %v15468_v20 = vld [vmem:[#allocation72_spill] sm:$0xff] }
 0x343   : > { %8967 = vrot.lane.b32.xlu0 %v8966_v56, %s9937_s12  ;;  %v11356_v29 = vsel %vm1041_vm3, %v11143_v51, %v7979_v31  ;;  %v7994_v61 = vunpack.i.l.bf16 %v15465_v22  ;;  %v7985_v1 = vunpack.i.h.bf16 %v15467_v52  ;;  %v8049_v40 = vunpack.i.l.bf16 %v15468_v20  ;;  %v15470_v31 = vld [vmem:[#allocation73_spill] sm:$0xff] }
 0x344   : > { %v8971_v62 = vpack.i.bf16 %v3642_v17, %v3641_v53  ;;  %v1862_v45 = vsel %vm1041_vm3, %v11197_v41, %v7970_v47  ;;  %v1861_v51 = vsel %vm1041_vm3, %v11203_v8, %v7969_v3  ;;  %v8050_v15 = vunpack.i.h.bf16 %v15468_v20  ;;  %v15471_v47 = vld [vmem:[#allocation74_spill] sm:$0xff]  ;;  %v3648_v20 = vld [vmem:[#allocation2 + $0xcb] sm:$0xff] }
 0x345   : > { %8957 = vrot.lane.b32.xlu1 %v8956_v50, %s9936_s11  ;;  %v11332_v56 = vpop.permute.xlu0 %8757  ;;  %v7995_v50 = vunpack.i.h.bf16 %v15465_v22  ;;  %v8009_v22 = vunpack.i.l.bf16 %v15470_v31  ;;  %v11371_v36 = vsel %vm1074_vm4, %v1855_v26, %v8034_v54  ;;  %v8991_v41 = vpack.i.bf16 %v3650_v33, %v3649_v30  ;;  %v3651_v54 = vld [vmem:[#allocation2 + $0xf3] sm:$0xff]  ;;  %s9945_s11 = smov 64  }
 0x346   : > { %15462 = vst [vmem:[#allocation62_spill] sm:$0xff] %v11332_v56  ;;  %v11383_v8 = vsel %vm1041_vm3, %v11177_v34, %v7994_v61  ;;  %v8000_v3 = vunpack.i.h.bf16 %v15471_v47  ;;  %v7999_v17 = vunpack.i.l.bf16 %v15471_v47  ;;  %v8010_v26 = vunpack.i.h.bf16 %v15470_v31  ;;  %v3656_v56 = vld [vmem:[#allocation2 + $0x12b] sm:$0xff] }
 0x347   : > { %v11344_v43 = vpop.permute.xlu1 %8747  ;;  %8977 = vrot.lane.b32.xlu2 %v8976_v35, %s9937_s12  ;;  %v7984_v35 = vunpack.i.l.bf16 %v15467_v52  ;;  %v11374_v52 = vsel %vm1074_vm4, %v1856_v21, %v8035_v23  ;;  %v11378_v53 = vsel %vm1041_vm3, %v11157_v48, %v7995_v50  ;;  %v3652_v21 = vld [vmem:[#allocation2 + $0xfb] sm:$0xff]  ;;  %v1868_v23 = vsel %vm1041_vm3, %v11217_v18, %v7985_v1  ;;  %v15474_v1 = vld [vmem:[#allocation76_spill] sm:$0xff] }
 0x348   : > { %15466 = vst [vmem:[#allocation63_spill] sm:$0xff] %v11344_v43  ;;  %v11393_v50 = vsel %vm1074_vm4, %v1861_v51, %v8049_v40  ;;  %v11400_v30 = vsel %vm1074_vm4, %v1862_v45, %v8050_v15  ;;  %v11404_v33 = vsel %vm1074_vm4, %v11191_v16, %v8009_v22  ;;  %v15475_v40 = vld [vmem:[#allocation77_spill] sm:$0xff]  ;;  %v8996_v45 = vpack.i.bf16 %v3652_v21, %v3651_v54 }
 0x349   : > { %v11362_v9 = vpop.permute.xlu2 %8812  ;;  %v1867_v48 = vsel %vm1041_vm3, %v11226_v46, %v7984_v35  ;;  %v8024_v46 = vunpack.i.l.bf16 %v15474_v1  ;;  %v3647_v35 = vld [vmem:[#allocation2 + $0xc3] sm:$0xff]  ;;  %v8015_v51 = vunpack.i.h.bf16 %v15475_v40  ;;  %v8014_v31 = vunpack.i.l.bf16 %v15475_v40  ;;  %v3662_v43 = vld [vmem:[#allocation2 + $0x173] sm:$0xff] }
 0x34a   : > { %15469 = vst [vmem:[#allocation65_spill] sm:$0xff] %v11362_v9  ;;  %v1874_v16 = vsel %vm1041_vm3, %v11247_v59, %v8000_v3  ;;  %v1873_v15 = vsel %vm1041_vm3, %v11252_v49, %v7999_v17  ;;  %v11420_v22 = vsel %vm1074_vm4, %v11194_v10, %v8010_v26  ;;  %v3655_v40 = vld [vmem:[#allocation2 + $0x123] sm:$0xff]  ;;  %v8986_v21 = vpack.i.bf16 %v3648_v20, %v3647_v35  ;;  %v15480_v3 = vld [vmem:[#allocation81_spill] sm:$0xff] }
 0x34b   : > { %8982 = vrot.lane.b32.xlu0 %v8981_v7, %s9937_s12  ;;  %v15472_v7 = vld [vmem:[#allocation75_spill] sm:$0xff]  ;;  %v11435_v10 = vsel %vm1074_vm4, %v11206_v44, %v8024_v46  ;;  %v8095_v17 = vunpack.i.h.bf16 %v15480_v3  ;;  %v8094_v26 = vunpack.i.l.bf16 %v15480_v3  ;;  %v15481_v46 = vld [vmem:[#allocation84_spill] sm:$0xff]  ;;  %v8060_v55 = vunpack.i.h.bf16 %v15489_v32 }
 0x34c   : > { %v8064_v34 = vunpack.i.l.bf16 %v15472_v7  ;;  %v8065_v18 = vunpack.i.h.bf16 %v15472_v7  ;;  %v15477_v7 = vld [vmem:[#allocation78_spill] sm:$0xff]  ;;  %v8110_v20 = vunpack.i.h.bf16 %v15481_v46  ;;  %v3661_v9 = vld [vmem:[#allocation2 + $0x16b] sm:$0xff] }
 0x34d   : > { %8972 = vrot.lane.b32.xlu1 %v8971_v62, %s9937_s12  ;;  %v11397_v61 = vpop.permute.xlu0 %8772  ;;  %v8025_v62 = vunpack.i.h.bf16 %v15474_v1  ;;  %v8080_v44 = vunpack.i.h.bf16 %v15477_v7 }
 0x34e   : > { %15473 = vst [vmem:[#allocation64_spill] sm:$0xff] %v11397_v61  ;;  %v8079_v61 = vunpack.i.l.bf16 %v15477_v7  ;;  %v11424_v1 = vsel %vm1074_vm4, %v1867_v48, %v8064_v34  ;;  %v11431_v49 = vsel %vm1074_vm4, %v1868_v23, %v8065_v18  ;;  %v1880_v48 = vsel %vm1074_vm4, %v11265_v42, %v8015_v51  ;;  %v3657_v42 = vld [vmem:[#allocation2 + $0x13b] sm:$0xff]  ;;  %v3658_v51 = vld [vmem:[#allocation2 + $0x143] sm:$0xff] }
 0x34f   : > { %v11411_v47 = vpop.permute.xlu1 %8762  ;;  %8992 = vrot.lane.b32.xlu2 %v8991_v41, %s9937_s12  ;;  %v1879_v34 = vsel %vm1074_vm4, %v11273_v2, %v8014_v31  ;;  %v11445_v35 = vsel %vm1074_vm4, %v11212_v37, %v8025_v62  ;;  %v9006_v23 = vpack.i.bf16 %v3656_v56, %v3655_v40  ;;  %v15482_v31 = vld [vmem:[#allocation79_spill] sm:$0xff] }
 0x350   : > { %15476 = vst [vmem:[#allocation66_spill] sm:$0xff] %v11411_v47  ;;  %v15478_v47 = vld [vmem:[#allocation80_spill] sm:$0xff]  ;;  %v11450_v18 = vsel %vm1074_vm4, %v1873_v15, %v8079_v61  ;;  %v8040_v62 = vunpack.i.h.bf16 %v15482_v31  ;;  %v8039_v56 = vunpack.i.l.bf16 %v15482_v31  ;;  %v11467_v15 = vsel %vm1107_vm5, %v1880_v48, %v8095_v17  ;;  %v15484_v7 = vld [vmem:[#allocation83_spill] sm:$0xff] }
 0x351   : > { %v8030_v41 = vunpack.i.h.bf16 %v15478_v47  ;;  %v8029_v54 = vunpack.i.l.bf16 %v15478_v47  ;;  %v11428_v59 = vpop.permute.xlu2 %8827  ;;  %v8109_v47 = vunpack.i.l.bf16 %v15481_v46  ;;  %v8045_v40 = vunpack.i.h.bf16 %v15484_v7  ;;  %v15486_v46 = vld [vmem:[#allocation87_spill] sm:$0xff] }
 0x352   : > { %15479 = vst [vmem:[#allocation67_spill] sm:$0xff] %v11428_v59  ;;  %v8125_v31 = vunpack.i.h.bf16 %v15486_v46 }
 0x353   : > { %8997 = vrot.lane.b32.xlu0 %v8996_v45, %s9937_s12  ;;  %v1886_v2 = vsel %vm1074_vm4, %v11299_v13, %v8030_v41  ;;  %v1885_v37 = vsel %vm1074_vm4, %v11309_v58, %v8029_v54  ;;  %v11464_v45 = vsel %vm1107_vm5, %v1879_v34, %v8094_v26  ;;  %v8044_v13 = vunpack.i.l.bf16 %v15484_v7  ;;  %v3653_v41 = vld [vmem:[#allocation2 + $0x10b] sm:$0xff]  ;;  %v3654_v58 = vld [vmem:[#allocation2 + $0x113] sm:$0xff] }
 0x354   : > { %v15485_v54 = vld [vmem:[#allocation82_spill] sm:$0xff]  ;;  %v9011_v26 = vpack.i.bf16 %v3658_v51, %v3657_v42  ;;  %v11479_v48 = vsel %vm1107_vm5, %v1885_v37, %v8109_v47  ;;  %v11482_v34 = vsel %vm1107_vm5, %v1886_v2, %v8110_v20  ;;  %v15488_v7 = vld [vmem:[#allocation85_spill] sm:$0xff]  ;;  %v11491_v51 = vsel %vm1074_vm4, %v1874_v16, %v8080_v44 }
 0x355   : > { %8987 = vrot.lane.b32.xlu1 %v8986_v21, %s9937_s12  ;;  %v11461_v61 = vpop.permute.xlu0 %8787  ;;  %v8055_v3 = vunpack.i.h.bf16 %v15485_v54  ;;  %v8124_v21 = vunpack.i.l.bf16 %v15486_v46  ;;  %v8054_v17 = vunpack.i.l.bf16 %v15485_v54  ;;  %v8059_v46 = vunpack.i.l.bf16 %v15489_v32  ;;  %v3659_v54 = vld [vmem:[#allocation2 + $0x153] sm:$0xff] }
 0x356   : > { %15483 = vst [vmem:[#allocation68_spill] sm:$0xff] %v11461_v61  ;;  %v8070_v61 = vunpack.i.h.bf16 %v15488_v7  ;;  %v11495_v20 = vsel %vm1074_vm4, %v11241_v38, %v8039_v56  ;;  %v1892_v47 = vsel %vm1074_vm4, %v11325_v63, %v8045_v40  ;;  %v1891_v2 = vsel %vm1074_vm4, %v11329_v57, %v8044_v13  ;;  %v3663_v57 = vld [vmem:[#allocation2 + $0x183] sm:$0xff]  ;;  %v15494_v13 = vld [vmem:[#allocation89_spill] sm:$0xff] }
 0x357   : > { %v11474_v59 = vpop.permute.xlu1 %8777  ;;  %9007 = vrot.lane.b32.xlu2 %v9006_v23, %s9937_s12  ;;  %v9001_v23 = vpack.i.bf16 %v3654_v58, %v3653_v41  ;;  %v11503_v32 = vsel %vm1074_vm4, %v11244_v28, %v8040_v62  ;;  %v11506_v37 = vsel %vm1107_vm5, %v1891_v2, %v8124_v21  ;;  %v11509_v16 = vsel %vm1107_vm5, %v1892_v47, %v8125_v31  ;;  %v3664_v28 = vld [vmem:[#allocation2 + $0x18b] sm:$0xff] }
 0x358   : > { %15487 = vst [vmem:[#allocation69_spill] sm:$0xff] %v11474_v59  ;;  %v8069_v59 = vunpack.i.l.bf16 %v15488_v7  ;;  %v9021_v38 = vpack.i.bf16 %v3662_v43, %v3661_v9  ;;  %v11514_v44 = vsel %vm1074_vm4, %v11258_v0, %v8054_v17  ;;  %v11518_v63 = vsel %vm1074_vm4, %v11261_v39, %v8055_v3  ;;  %v15499_v17 = vld [vmem:[#allocation92_spill] sm:$0xff]  ;;  %v15500_v47 = vld [vmem:[#allocation93_spill] sm:$0xff] }
 0x359   : > { %v11488_v42 = vpop.permute.xlu2 %8842  ;;  %15491 = vst [vmem:[#allocation71_spill] sm:$0xff] %v11506_v37  ;;  %v1898_v40 = vsel %vm1074_vm4, %v11352_v19, %v8060_v55  ;;  %v1897_v43 = vsel %vm1074_vm4, %v11356_v29, %v8059_v46  ;;  %v11534_v39 = vsel %vm1074_vm4, %v11295_v4, %v8070_v61  ;;  %v8075_v41 = vunpack.i.h.bf16 %v15494_v13  ;;  %v15495_v55 = vld [vmem:[#allocation88_spill] sm:$0xff]  ;;  %v3660_v29 = vld [vmem:[#allocation2 + $0x15b] sm:$0xff]  ;;  %v15562_v37 = vld [vmem:[#allocation121_spill] sm:$0xff] }
 0x35a   : > { %15490 = vst [vmem:[#allocation70_spill] sm:$0xff] %v11488_v42  ;;  %v11530_v0 = vsel %vm1074_vm4, %v11285_v60, %v8069_v59  ;;  %v8074_v58 = vunpack.i.l.bf16 %v15494_v13  ;;  %v8085_v19 = vunpack.i.h.bf16 %v15495_v55  ;;  %v15496_v59 = vld [vmem:[#allocation90_spill] sm:$0xff]  ;;  %v15497_v61 = vld [vmem:[#allocation91_spill] sm:$0xff]  ;;  %v8090_v7 = vunpack.i.h.bf16 %v15499_v17 }
 0x35b   : > { %15492 = vst [vmem:[#allocation72_spill] sm:$0xff] %v11509_v16  ;;  %9012 = vrot.lane.b32.xlu0 %v9011_v26, %s9937_s12  ;;  %v8140_v3 = vunpack.i.h.bf16 %v15496_v59  ;;  %v8139_v4 = vunpack.i.l.bf16 %v15496_v59  ;;  %v8100_v31 = vunpack.i.h.bf16 %v15497_v61  ;;  %v9026_v26 = vpack.i.bf16 %v3664_v28, %v3663_v57  ;;  %v3667_v13 = vld [vmem:[#allocation2 + $0x1b3] sm:$0xff]  ;;  %v3668_v60 = vld [vmem:[#allocation2 + $0x1bb] sm:$0xff] }
 0x35c   : > { %v8089_v46 = vunpack.i.l.bf16 %v15499_v17  ;;  %v8155_v2 = vunpack.i.h.bf16 %v15500_v47  ;;  %v8154_v56 = vunpack.i.l.bf16 %v15500_v47  ;;  %v15501_v59 = vld [vmem:[#allocation94_spill] sm:$0xff]  ;;  %v8084_v57 = vunpack.i.l.bf16 %v15495_v55  ;;  %v15503_v28 = vld [vmem:[#allocation95_spill] sm:$0xff] }
 0x35d   : > { %9002 = vrot.lane.b32.xlu1 %v9001_v23, %s9937_s12  ;;  %v11537_v9 = vpop.permute.xlu0 %8802  ;;  %v8099_v23 = vunpack.i.l.bf16 %v15497_v61  ;;  %v8115_v62 = vunpack.i.h.bf16 %v15501_v59  ;;  %v8105_v61 = vunpack.i.h.bf16 %v15503_v28  ;;  %v8104_v17 = vunpack.i.l.bf16 %v15503_v28 }
 0x35e   : > { %15493 = vst [vmem:[#allocation73_spill] sm:$0xff] %v11537_v9  ;;  %v8114_v9 = vunpack.i.l.bf16 %v15501_v59  ;;  %v1903_v27 = vsel %vm1074_vm4, %v11383_v8, %v8074_v58  ;;  %v11567_v47 = vsel %vm1107_vm5, %v1897_v43, %v8139_v4  ;;  %v11570_v59 = vsel %vm1107_vm5, %v1898_v40, %v8140_v3  ;;  %v3669_v40 = vld [vmem:[#allocation2 + $0x1cb] sm:$0xff]  ;;  %v3670_v58 = vld [vmem:[#allocation2 + $0x1d3] sm:$0xff]  ;;  %v3666_v3 = vld [vmem:[#allocation2 + $0x1a3] sm:$0xff] }
 0x35f   : > { %v11547_v21 = vpop.permute.xlu1 %8792  ;;  %9022 = vrot.lane.b32.xlu2 %v9021_v38, %s9937_s12  ;;  %v1904_v38 = vsel %vm1074_vm4, %v11378_v53, %v8075_v41  ;;  %15504 = vst [vmem:[#allocation76_spill] sm:$0xff] %v11567_v47  ;;  %v11575_v53 = vsel %vm1107_vm5, %v11404_v33, %v8089_v46  ;;  %v11579_v41 = vsel %vm1107_vm5, %v11420_v22, %v8090_v7  ;;  %v3673_v7 = vld [vmem:[#allocation2 + $0x7c] sm:$0xff]  ;;  %v3674_v46 = vld [vmem:[#allocation2 + $0x84] sm:$0xff]  ;;  %v8250_v16 = vunpack.i.h.bf16 %v15562_v37 }
 0x360   : > { %15498 = vst [vmem:[#allocation74_spill] sm:$0xff] %v11547_v21  ;;  %v9016_v21 = vpack.i.bf16 %v3660_v29, %v3659_v54  ;;  %v9036_v54 = vpack.i.bf16 %v3668_v60, %v3667_v13  ;;  %v11583_v8 = vsel %vm1107_vm5, %v11337_v25, %v8099_v23  ;;  %v11587_v43 = vsel %vm1107_vm5, %v11348_v12, %v8100_v31  ;;  %v15514_v31 = vld [vmem:[#allocation96_spill] sm:$0xff]  ;;  %v1942_v23 = vld [vmem:[#allocation2 + $0x38] sm:$0xff] }
 0x361   : > { %v11557_v42 = vpop.permute.xlu2 %8857  ;;  %15505 = vst [vmem:[#allocation77_spill] sm:$0xff] %v11570_v59  ;;  %v11590_v55 = vsel %vm1107_vm5, %v1903_v27, %v8154_v56  ;;  %v11593_v33 = vsel %vm1107_vm5, %v1904_v38, %v8155_v2  ;;  %v11597_v22 = vsel %vm1107_vm5, %v11371_v36, %v8114_v9  ;;  %v11601_v25 = vsel %vm1107_vm5, %v11374_v52, %v8115_v62  ;;  %v15512_v56 = vld [vmem:[#allocation97_spill] sm:$0xff]  ;;  %v3665_v9 = vld [vmem:[#allocation2 + $0x19b] sm:$0xff]  ;;  %v15522_v38 = vld [vmem:[#allocation104_spill] sm:$0xff] }
 0x362   : > { %15502 = vst [vmem:[#allocation75_spill] sm:$0xff] %v11557_v42  ;;  %v11608_v29 = vsel %vm1107_vm5, %v11435_v10, %v8104_v17  ;;  %v11612_v27 = vsel %vm1107_vm5, %v11445_v35, %v8105_v61  ;;  %v8130_v60 = vunpack.i.h.bf16 %v15512_v56  ;;  %v8129_v36 = vunpack.i.l.bf16 %v15512_v56  ;;  %v15516_v61 = vld [vmem:[#allocation98_spill] sm:$0xff]  ;;  %v15519_v56 = vld [vmem:[#allocation101_spill] sm:$0xff] }
 0x363   : > { %9027 = vrot.lane.b32.xlu0 %v9026_v26, %s9937_s12  ;;  %15506 = vst [vmem:[#allocation78_spill] sm:$0xff] %v11583_v8  ;;  %v11618_v52 = vsel %vm1074_vm4, %v11313_v6, %v8084_v57  ;;  %v11622_v62 = vsel %vm1074_vm4, %v11319_v24, %v8085_v19  ;;  %v9041_v35 = vpack.i.bf16 %v3670_v58, %v3669_v40  ;;  %v8169_v26 = vunpack.i.l.bf16 %v15514_v31  ;;  %v1941_v19 = vld [vmem:[#allocation2 + $0x30] sm:$0xff]  ;;  %v3676_v24 = vld [vmem:[#allocation2 + $0x9c] sm:$0xff] }
 0x364   : > { %15507 = vst [vmem:[#allocation80_spill] sm:$0xff] %v11590_v55  ;;  %v9031_v2 = vpack.i.bf16 %v3666_v3, %v3665_v9  ;;  %v8120_v17 = vunpack.i.h.bf16 %v15516_v61  ;;  %v11647_v40 = vsel %vm1107_vm5, %v11393_v50, %v8129_v36  ;;  %v11651_v58 = vsel %vm1107_vm5, %v11400_v30, %v8130_v60  ;;  %v15520_v3 = vld [vmem:[#allocation100_spill] sm:$0xff]  ;;  %v15521_v36 = vld [vmem:[#allocation103_spill] sm:$0xff]  ;;  %v3675_v60 = vld [vmem:[#allocation2 + $0x94] sm:$0xff] }
 0x365   : > { %15508 = vst [vmem:[#allocation81_spill] sm:$0xff] %v11593_v33  ;;  %9017 = vrot.lane.b32.xlu1 %v9016_v21, %s9937_s12  ;;  %v11604_v12 = vpop.permute.xlu0 %8817  ;;  %v8170_v21 = vunpack.i.h.bf16 %v15514_v31  ;;  %v8134_v9 = vunpack.i.l.bf16 %v15519_v56  ;;  %v8145_v31 = vunpack.i.h.bf16 %v15520_v3  ;;  %v8144_v4 = vunpack.i.l.bf16 %v15520_v3  ;;  %v1956_v33 = vld [vmem:[#allocation2 + $0xe0] sm:$0xff]  ;;  %v3694_v8 = vld [vmem:[#allocation2 + $0x174] sm:$0xff] }
 0x366   : > { %15509 = vst [vmem:[#allocation84_spill] sm:$0xff] %v11597_v22  ;;  %v9051_v28 = vpack.i.bf16 %v3674_v46, %v3673_v7  ;;  %v8135_v50 = vunpack.i.h.bf16 %v15519_v56  ;;  %v8159_v30 = vunpack.i.l.bf16 %v15521_v36  ;;  %v8150_v6 = vunpack.i.h.bf16 %v15522_v38  ;;  %v15526_v46 = vld [vmem:[#allocation99_spill] sm:$0xff]  ;;  %v3672_v56 = vld [vmem:[#allocation2 + $0x6c] sm:$0xff] }
 0x367   : > { %15510 = vst [vmem:[#allocation79_spill] sm:$0xff] %v11601_v25  ;;  %v11624_v10 = vpop.permute.xlu1 %8807  ;;  %9037 = vrot.lane.b32.xlu2 %v9036_v54, %s9937_s12  ;;  %v8119_v54 = vunpack.i.l.bf16 %v15516_v61  ;;  %v11658_v57 = vsel %vm256_vm0, %v1942_v23, %v8170_v21  ;;  %v11661_v61 = vsel %vm256_vm0, %v1941_v19, %v8169_v26  ;;  %v8160_v3 = vunpack.i.h.bf16 %v15521_v36  ;;  %v3692_v59 = vld [vmem:[#allocation2 + $0x15c] sm:$0xff] }
 0x368   : > { %15511 = vst [vmem:[#allocation83_spill] sm:$0xff] %v11604_v12  ;;  %v11679_v7 = vsel %vm1107_vm5, %v11503_v32, %v8120_v17  ;;  %v8185_v19 = vunpack.i.h.bf16 %v15526_v46  ;;  %v8184_v23 = vunpack.i.l.bf16 %v15526_v46  ;;  %v11689_v36 = vsel %vm1107_vm5, %v11424_v1, %v8144_v4  ;;  %v3680_v4 = vld [vmem:[#allocation2 + $0xcc] sm:$0xff]  ;;  %v15539_v12 = vld [vmem:[#allocation107_spill] sm:$0xff] }
 0x369   : > { %15513 = vst [vmem:[#allocation82_spill] sm:$0xff] %v11624_v10  ;;  %v11635_v13 = vpop.permute.xlu2 %8872  ;;  %v11675_v26 = vsel %vm1107_vm5, %v11495_v20, %v8119_v54  ;;  %v11693_v20 = vsel %vm1107_vm5, %v11431_v49, %v8145_v31  ;;  %v9056_v17 = vpack.i.bf16 %v3676_v24, %v3675_v60  ;;  %v1948_v54 = vld [vmem:[#allocation2 + $0x80] sm:$0xff]  ;;  %v11700_v46 = vsel %vm1107_vm5, %v11518_v63, %v8135_v50  ;;  %v1947_v31 = vld [vmem:[#allocation2 + $0x78] sm:$0xff]  ;;  %v1960_v10 = vld [vmem:[#allocation2 + $0x110] sm:$0xff] }
 0x36a   : > { %15515 = vst [vmem:[#allocation87_spill] sm:$0xff] %v11635_v13  ;;  %v8149_v13 = vunpack.i.l.bf16 %v15522_v38  ;;  %v3671_v38 = vld [vmem:[#allocation2 + $0x64] sm:$0xff]  ;;  %v11706_v1 = vsel %vm1107_vm5, %v11450_v18, %v8159_v30  ;;  %v11714_v24 = vsel %vm1107_vm5, %v11534_v39, %v8150_v6  ;;  %v11718_v63 = vsel %vm1107_vm5, %v11491_v51, %v8160_v3  ;;  %v1944_v3 = vld [vmem:[#allocation2 + $0x50] sm:$0xff] }
 0x36b   : > { %15517 = vst [vmem:[#allocation85_spill] sm:$0xff] %v11647_v40  ;;  %9042 = vrot.lane.b32.xlu0 %v9041_v35, %s9937_s12  ;;  %v3679_v49 = vld [vmem:[#allocation2 + $0xc4] sm:$0xff]  ;;  %v9046_v50 = vpack.i.bf16 %v3672_v56, %v3671_v38  ;;  %v11727_v39 = vsel %vm256_vm0, %v1948_v54, %v8185_v19  ;;  %v8165_v51 = vunpack.i.h.bf16 %v15539_v12  ;;  %v15547_v19 = vld [vmem:[#allocation109_spill] sm:$0xff] }
 0x36c   : > { %15518 = vst [vmem:[#allocation86_spill] sm:$0xff] %v11651_v58  ;;  %v1953_v18 = vld [vmem:[#allocation2 + $0xc0] sm:$0xff]  ;;  %v1954_v30 = vld [vmem:[#allocation2 + $0xc8] sm:$0xff]  ;;  %v9066_v38 = vpack.i.bf16 %v3680_v4, %v3679_v49  ;;  %v8190_v56 = vunpack.i.h.bf16 %v15547_v19 }
 0x36d   : > { %9032 = vrot.lane.b32.xlu1 %v9031_v2, %s9937_s12  ;;  %v11669_v35 = vpop.permute.xlu0 %8832  ;;  %15524 = vst [vmem:[#allocation88_spill] sm:$0xff] %v11675_v26  ;;  %v11685_v2 = vsel %vm1107_vm5, %v11514_v44, %v8134_v9  ;;  %v15532_v44 = vld [vmem:[#allocation102_spill] sm:$0xff]  ;;  %v1959_v6 = vld [vmem:[#allocation2 + $0x108] sm:$0xff]  ;;  %s9946_s12 = smov 96  }
 0x36e   : > { %15523 = vst [vmem:[#allocation89_spill] sm:$0xff] %v11669_v35  ;;  %v8200_v9 = vunpack.i.h.bf16 %v15532_v44  ;;  %v8199_v21 = vunpack.i.l.bf16 %v15532_v44  ;;  %v15538_v44 = vld [vmem:[#allocation105_spill] sm:$0xff]  ;;  %v1943_v49 = vld [vmem:[#allocation2 + $0x48] sm:$0xff] }
 0x36f   : > { %15525 = vst [vmem:[#allocation90_spill] sm:$0xff] %v11679_v7  ;;  %v11695_v32 = vpop.permute.xlu1 %8822  ;;  %9052 = vrot.lane.b32.xlu2 %v9051_v28, %s9938_s13  ;;  %v11710_v28 = vsel %vm1107_vm5, %v11530_v0, %v8149_v13  ;;  %v8215_v42 = vunpack.i.h.bf16 %v15538_v44  ;;  %v8214_v35 = vunpack.i.l.bf16 %v15538_v44  ;;  %v8164_v0 = vunpack.i.l.bf16 %v15539_v12  ;;  %v15540_v13 = vld [vmem:[#allocation106_spill] sm:$0xff]  ;;  %v15544_v4 = vld [vmem:[#allocation108_spill] sm:$0xff] }
 0x370   : > { %15527 = vst [vmem:[#allocation91_spill] sm:$0xff] %v11685_v2  ;;  %v11734_v44 = vsel %vm256_vm0, %v1947_v31, %v8184_v23  ;;  %v11742_v54 = vsel %vm256_vm0, %v1954_v30, %v8200_v9  ;;  %v3678_v30 = vld [vmem:[#allocation2 + $0xb4] sm:$0xff]  ;;  %v11769_v12 = vsel %vm1107_vm5, %v11622_v62, %v8165_v51  ;;  %v8189_v62 = vunpack.i.l.bf16 %v15547_v19  ;;  %v3685_v51 = vld [vmem:[#allocation2 + $0x10c] sm:$0xff] }
 0x371   : > { %15528 = vst [vmem:[#allocation92_spill] sm:$0xff] %v11689_v36  ;;  %v11720_v60 = vpop.permute.xlu2 %8887  ;;  %v11758_v9 = vsel %vm256_vm0, %v1959_v6, %v8214_v35  ;;  %v1965_v31 = vld [vmem:[#allocation2 + $0x150] sm:$0xff]  ;;  %v15546_v6 = vld [vmem:[#allocation110_spill] sm:$0xff]  ;;  %v1967_v2 = vld [vmem:[#allocation2 + $0x168] sm:$0xff] }
 0x372   : > { %15529 = vst [vmem:[#allocation93_spill] sm:$0xff] %v11693_v20  ;;  %v15550_v36 = vld [vmem:[#allocation113_spill] sm:$0xff]  ;;  %v1955_v19 = vld [vmem:[#allocation2 + $0xd8] sm:$0xff] }
 0x373   : > { %15530 = vst [vmem:[#allocation94_spill] sm:$0xff] %v11695_v32  ;;  %v8175_v32 = vunpack.i.h.bf16 %v15540_v13  ;;  %9057 = vrot.lane.b32.xlu0 %v9056_v17, %s9938_s13  ;;  %v11745_v17 = vsel %vm256_vm0, %v1953_v18, %v8199_v21  ;;  %v11762_v21 = vsel %vm1107_vm5, %v11618_v52, %v8164_v0  ;;  %v3677_v18 = vld [vmem:[#allocation2 + $0xac] sm:$0xff]  ;;  %v9071_v52 = vpack.i.bf16 %v3682_v5, %v3681_v11 }
 0x374   : > { %15531 = vst [vmem:[#allocation95_spill] sm:$0xff] %v11700_v46  ;;  %v9061_v5 = vpack.i.bf16 %v3678_v30, %v3677_v18  ;;  %v8195_v20 = vunpack.i.h.bf16 %v15550_v36  ;;  %v8194_v55 = vunpack.i.l.bf16 %v15550_v36  ;;  %v1951_v18 = vld [vmem:[#allocation2 + $0xa8] sm:$0xff]  ;;  %v1952_v30 = vld [vmem:[#allocation2 + $0xb0] sm:$0xff] }
 0x375   : > { %15533 = vst [vmem:[#allocation97_spill] sm:$0xff] %v11706_v1  ;;  %9047 = vrot.lane.b32.xlu1 %v9046_v50, %s9938_s13  ;;  %v11748_v23 = vpop.permute.xlu0 %8847  ;;  %v11765_v50 = vsel %vm256_vm0, %v1944_v3, %v8175_v32  ;;  %v1966_v32 = vld [vmem:[#allocation2 + $0x158] sm:$0xff]  ;;  %v8180_v3 = vunpack.i.h.bf16 %v15546_v6  ;;  %v1949_v1 = vld [vmem:[#allocation2 + $0x90] sm:$0xff]  ;;  %v15561_v46 = vld [vmem:[#allocation120_spill] sm:$0xff] }
 0x376   : > { %15534 = vst [vmem:[#allocation96_spill] sm:$0xff] %v11710_v28  ;;  %v15551_v28 = vld [vmem:[#allocation114_spill] sm:$0xff]  ;;  %v8290_v22 = vunpack.i.h.bf16 %v15561_v46  ;;  %v8289_v25 = vunpack.i.l.bf16 %v15561_v46  ;;  %v3693_v7 = vld [vmem:[#allocation2 + $0x16c] sm:$0xff] }
 0x377   : > { %15535 = vst [vmem:[#allocation98_spill] sm:$0xff] %v11714_v24  ;;  %v11773_v35 = vpop.permute.xlu1 %8837  ;;  %9067 = vrot.lane.b32.xlu2 %v9066_v38, %s9938_s13  ;;  %v8259_v24 = vunpack.i.l.bf16 %v15551_v28  ;;  %v2618_v58 = vsel %vm256_vm0, %v1946_v14, %v8180_v3  ;;  %v1962_v14 = vld [vmem:[#allocation2 + $0x128] sm:$0xff] }
 0x378   : > { %15536 = vst [vmem:[#allocation101_spill] sm:$0xff] %v11718_v63  ;;  %v15548_v63 = vld [vmem:[#allocation112_spill] sm:$0xff] }
 0x379   : > { %15537 = vst [vmem:[#allocation100_spill] sm:$0xff] %v11720_v60  ;;  %v8174_v60 = vunpack.i.l.bf16 %v15540_v13  ;;  %v11755_v13 = vsel %vm256_vm0, %v1960_v10, %v8215_v42  ;;  %v8230_v42 = vunpack.i.h.bf16 %v15544_v4  ;;  %v8229_v10 = vunpack.i.l.bf16 %v15544_v4 }
 0x37a   : > { %15541 = vst [vmem:[#allocation103_spill] sm:$0xff] %v11748_v23  ;;  %v3686_v23 = vld [vmem:[#allocation2 + $0x114] sm:$0xff]  ;;  %v8179_v4 = vunpack.i.l.bf16 %v15546_v6  ;;  %v8205_v38 = vunpack.i.h.bf16 %v15548_v63  ;;  %v8204_v11 = vunpack.i.l.bf16 %v15548_v63  ;;  %v11805_v6 = vsel %vm256_vm0, %v1949_v1, %v8189_v62 }
 0x37b   : > { %15542 = vst [vmem:[#allocation104_spill] sm:$0xff] %v11762_v21  ;;  %v11777_v0 = vsel %vm256_vm0, %v1943_v49, %v8174_v60  ;;  %v11785_v60 = vpop.permute.xlu2 %8902  ;;  %v1945_v49 = vld [vmem:[#allocation2 + $0x60] sm:$0xff]  ;;  %v11793_v40 = vsel %vm256_vm0, %v1966_v32, %v8230_v42  ;;  %v11796_v63 = vsel %vm256_vm0, %v1965_v31, %v8229_v10  ;;  %9072 = vrot.lane.b32.xlu0 %v9071_v52, %s9938_s13  ;;  %v3688_v31 = vld [vmem:[#allocation2 + $0x12c] sm:$0xff]  ;;  %v3683_v62 = vld [vmem:[#allocation2 + $0xf4] sm:$0xff] }
 0x37c   : > { %15543 = vst [vmem:[#allocation99_spill] sm:$0xff] %v11769_v12  ;;  %v9081_v36 = vpack.i.bf16 %v3686_v23, %v3685_v51  ;;  %v15552_v42 = vld [vmem:[#allocation115_spill] sm:$0xff]  ;;  %v2617_v10 = vsel %vm256_vm0, %v1945_v49, %v8179_v4  ;;  %v11814_v23 = vsel %vm256_vm0, %v1955_v19, %v8204_v11  ;;  %v2624_v1 = vsel %vm256_vm0, %v1952_v30, %v8195_v20  ;;  %v1957_v4 = vld [vmem:[#allocation2 + $0xf0] sm:$0xff]  ;;  %v1958_v20 = vld [vmem:[#allocation2 + $0xf8] sm:$0xff] }
 0x37d   : > { %15545 = vst [vmem:[#allocation102_spill] sm:$0xff] %v11773_v35  ;;  %v1950_v35 = vld [vmem:[#allocation2 + $0x98] sm:$0xff]  ;;  %v8220_v32 = vunpack.i.h.bf16 %v15552_v42  ;;  %v3687_v21 = vld [vmem:[#allocation2 + $0x124] sm:$0xff]  ;;  %9062 = vrot.lane.b32.xlu1 %v9061_v5, %s9938_s13  ;;  %v11822_v52 = vsel %vm1041_vm3, %v2617_v10, %v8259_v24  ;;  %v8219_v3 = vunpack.i.l.bf16 %v15552_v42 }
 0x37e   : > { %15549 = vst [vmem:[#allocation105_spill] sm:$0xff] %v11785_v60  ;;  %v8260_v60 = vunpack.i.h.bf16 %v15551_v28  ;;  %v11802_v47 = vsel %vm256_vm0, %v1950_v35, %v8190_v56  ;;  %v11811_v28 = vsel %vm256_vm0, %v1956_v33, %v8205_v38  ;;  %v11817_v56 = vpop.permute.xlu0 %8862  ;;  %v2623_v35 = vsel %vm256_vm0, %v1951_v18, %v8194_v55  ;;  %v3684_v33 = vld [vmem:[#allocation2 + $0xfc] sm:$0xff]  ;;  %v15555_v38 = vld [vmem:[#allocation116_spill] sm:$0xff]  ;;  %v15557_v18 = vld [vmem:[#allocation117_spill] sm:$0xff] }
 0x37f   : > { %15554 = vst [vmem:[#allocation107_spill] sm:$0xff] %v11817_v56  ;;  %v8210_v11 = vunpack.i.h.bf16 %v15555_v38  ;;  %v8209_v5 = vunpack.i.l.bf16 %v15555_v38  ;;  %v1961_v49 = vld [vmem:[#allocation2 + $0x120] sm:$0xff]  ;;  %v11830_v19 = vpop.permute.xlu1 %8852  ;;  %9082 = vrot.lane.b32.xlu2 %v9081_v36, %s9938_s13  ;;  %v9086_v55 = vpack.i.bf16 %v3688_v31, %v3687_v21  ;;  %v11834_v24 = vsel %vm256_vm0, %v1962_v14, %v8220_v32  ;;  %v3691_v10 = vld [vmem:[#allocation2 + $0x154] sm:$0xff] }
 0x380   : > { %v11826_v51 = vsel %vm1041_vm3, %v2618_v58, %v8260_v60  ;;  %15556 = vst [vmem:[#allocation106_spill] sm:$0xff] %v11830_v19  ;;  %v8275_v30 = vunpack.i.h.bf16 %v15557_v18  ;;  %v8274_v58 = vunpack.i.l.bf16 %v15557_v18  ;;  %v15558_v60 = vld [vmem:[#allocation118_spill] sm:$0xff]  ;;  %v15559_v38 = vld [vmem:[#allocation119_spill] sm:$0xff]  ;;  %v9076_v21 = vpack.i.bf16 %v3684_v33, %v3683_v62  ;;  %v1968_v18 = vld [vmem:[#allocation2 + $0x170] sm:$0xff] }
 0x381   : > { %v8235_v42 = vunpack.i.h.bf16 %v15558_v60  ;;  %v1963_v12 = vld [vmem:[#allocation2 + $0x138] sm:$0xff]  ;;  %v8225_v56 = vunpack.i.h.bf16 %v15559_v38  ;;  %v8224_v19 = vunpack.i.l.bf16 %v15559_v38  ;;  %v8234_v36 = vunpack.i.l.bf16 %v15558_v60  ;;  %v1964_v14 = vld [vmem:[#allocation2 + $0x140] sm:$0xff] }
 0x382   : > { %v11845_v32 = vsel %vm256_vm0, %v1961_v49, %v8219_v3  ;;  %v2630_v26 = vsel %vm256_vm0, %v1958_v20, %v8210_v11  ;;  %v2629_v38 = vsel %vm256_vm0, %v1957_v4, %v8209_v5  ;;  %v8249_v62 = vunpack.i.l.bf16 %v15562_v37  ;;  %v15563_v60 = vld [vmem:[#allocation122_spill] sm:$0xff]  ;;  %v1970_v5 = vld [vmem:[#allocation2 + $0x188] sm:$0xff] }
 0x383   : > { %v11842_v31 = vpop.permute.xlu2 %8917  ;;  %9087 = vrot.lane.b32.xlu0 %v9086_v55, %s9938_s13  ;;  %v9096_v33 = vpack.i.bf16 %v3692_v59, %v3691_v10  ;;  %v11855_v3 = vsel %vm1041_vm3, %v2623_v35, %v8274_v58  ;;  %v11858_v49 = vsel %vm1041_vm3, %v2624_v1, %v8275_v30  ;;  %v8239_v46 = vunpack.i.l.bf16 %v15563_v60  ;;  %v1969_v35 = vld [vmem:[#allocation2 + $0x180] sm:$0xff]  ;;  %v15566_v10 = vld [vmem:[#allocation124_spill] sm:$0xff] }
 0x384   : > { %15560 = vst [vmem:[#allocation108_spill] sm:$0xff] %v11842_v31  ;;  %v8240_v31 = vunpack.i.h.bf16 %v15563_v60  ;;  %v2636_v11 = vsel %vm256_vm0, %v1964_v14, %v8225_v56  ;;  %v2635_v4 = vsel %vm256_vm0, %v1963_v12, %v8224_v19  ;;  %v11865_v37 = vsel %vm256_vm0, %v1968_v18, %v8235_v42  ;;  %v15565_v56 = vld [vmem:[#allocation123_spill] sm:$0xff] }
 0x385   : > { %v11868_v59 = vsel %vm256_vm0, %v1967_v2, %v8234_v36  ;;  %9077 = vrot.lane.b32.xlu1 %v9076_v21, %s9938_s13  ;;  %v11874_v55 = vsel %vm1041_vm3, %v2629_v38, %v8289_v25  ;;  %v11877_v20 = vsel %vm1041_vm3, %v2630_v26, %v8290_v22  ;;  %v11881_v12 = vsel %vm1041_vm3, %v11658_v57, %v8250_v16  ;;  %v3689_v2 = vld [vmem:[#allocation2 + $0x13c] sm:$0xff]  ;;  %v3690_v30 = vld [vmem:[#allocation2 + $0x144] sm:$0xff]  ;;  %v15568_v26 = vld [vmem:[#allocation125_spill] sm:$0xff] }
 0x386   : > { %v11871_v1 = vpop.permute.xlu0 %8877  ;;  %v8304_v19 = vunpack.i.l.bf16 %v15565_v56  ;;  %v11886_v58 = vsel %vm1041_vm3, %v11661_v61, %v8249_v62  ;;  %v8305_v42 = vunpack.i.h.bf16 %v15565_v56  ;;  %v8265_v25 = vunpack.i.h.bf16 %v15566_v10  ;;  %v3697_v18 = vld [vmem:[#allocation2 + $0x19c] sm:$0xff]  ;;  %v3698_v61 = vld [vmem:[#allocation2 + $0x1a4] sm:$0xff] }
 0x387   : > { %15564 = vst [vmem:[#allocation110_spill] sm:$0xff] %v11871_v1  ;;  %v11890_v36 = vpop.permute.xlu1 %8867  ;;  %9097 = vrot.lane.b32.xlu2 %v9096_v33, %s9938_s13  ;;  %v9101_v22 = vpack.i.bf16 %v3694_v8, %v3693_v7  ;;  %v2642_v16 = vsel %vm256_vm0, %v1970_v5, %v8240_v31  ;;  %v2641_v57 = vsel %vm256_vm0, %v1969_v35, %v8239_v46  ;;  %v8255_v21 = vunpack.i.h.bf16 %v15568_v26  ;;  %v15569_v62 = vld [vmem:[#allocation126_spill] sm:$0xff]  ;;  %v15571_v7 = vld [vmem:[#allocation128_spill] sm:$0xff]  ;;  %v15572_v33 = vld [vmem:[#allocation127_spill] sm:$0xff] }
 0x388   : > { %15567 = vst [vmem:[#allocation109_spill] sm:$0xff] %v11890_v36  ;;  %v8264_v14 = vunpack.i.l.bf16 %v15566_v10  ;;  %v8254_v38 = vunpack.i.l.bf16 %v15568_v26  ;;  %v8320_v60 = vunpack.i.h.bf16 %v15569_v62  ;;  %v8319_v56 = vunpack.i.l.bf16 %v15569_v62  ;;  %v15573_v26 = vld [vmem:[#allocation129_spill] sm:$0xff] }
 0x389   : > { %v9091_v1 = vpack.i.bf16 %v3690_v30, %v3689_v2  ;;  %v11903_v8 = vsel %vm1041_vm3, %v2635_v4, %v8304_v19  ;;  %v8270_v31 = vunpack.i.h.bf16 %v15571_v7  ;;  %v8280_v46 = vunpack.i.h.bf16 %v15572_v33 }
 0x38a   : > { %v8279_v35 = vunpack.i.l.bf16 %v15572_v33  ;;  %v11909_v5 = vsel %vm1041_vm3, %v2636_v11, %v8305_v42  ;;  %v11913_v10 = vsel %vm1041_vm3, %v11727_v39, %v8265_v25  ;;  %v8269_v2 = vunpack.i.l.bf16 %v15571_v7  ;;  %v3699_v42 = vld [vmem:[#allocation2 + $0x1b4] sm:$0xff]  ;;  %v3700_v33 = vld [vmem:[#allocation2 + $0x1bc] sm:$0xff] }
 0x38b   : > { %v11900_v36 = vpop.permute.xlu2 %8932  ;;  %9102 = vrot.lane.b32.xlu0 %v9101_v22, %s9938_s13  ;;  %v9111_v30 = vpack.i.bf16 %v3698_v61, %v3697_v18  ;;  %v2648_v4 = vsel %vm1041_vm3, %v11765_v50, %v8255_v21  ;;  %v11921_v19 = vsel %vm1041_vm3, %v11734_v44, %v8264_v14  ;;  %v8335_v62 = vunpack.i.h.bf16 %v15573_v26  ;;  %v15574_v50 = vld [vmem:[#allocation130_spill] sm:$0xff]  ;;  %v3696_v61 = vld [vmem:[#allocation2 + $0x18c] sm:$0xff] }
 0x38c   : > { %15570 = vst [vmem:[#allocation112_spill] sm:$0xff] %v11900_v36  ;;  %v8334_v11 = vunpack.i.l.bf16 %v15573_v26  ;;  %v2647_v39 = vsel %vm1041_vm3, %v11777_v0, %v8254_v38  ;;  %v11928_v25 = vsel %vm1041_vm3, %v2641_v57, %v8319_v56  ;;  %v11931_v22 = vsel %vm1041_vm3, %v2642_v16, %v8320_v60  ;;  %v3695_v57 = vld [vmem:[#allocation2 + $0x184] sm:$0xff] }
 0x38d   : > { %v8295_v21 = vunpack.i.h.bf16 %v15574_v50  ;;  %9092 = vrot.lane.b32.xlu1 %v9091_v1, %s9938_s13  ;;  %v2654_v14 = vsel %vm1041_vm3, %v11802_v47, %v8270_v31  ;;  %v11941_v18 = vsel %vm1041_vm3, %v11742_v54, %v8280_v46  ;;  %v11945_v0 = vsel %vm1041_vm3, %v11745_v17, %v8279_v35  ;;  %v15576_v38 = vld [vmem:[#allocation131_spill] sm:$0xff]  ;;  %v15578_v31 = vld [vmem:[#allocation132_spill] sm:$0xff] }
 0x38e   : > { %v11935_v44 = vpop.permute.xlu0 %8892  ;;  %v8294_v16 = vunpack.i.l.bf16 %v15574_v50  ;;  %v2653_v1 = vsel %vm1041_vm3, %v11805_v6, %v8269_v2  ;;  %v8285_v60 = vunpack.i.h.bf16 %v15576_v38  ;;  %v8284_v56 = vunpack.i.l.bf16 %v15576_v38  ;;  %v15579_v2 = vld [vmem:[#allocation133_spill] sm:$0xff]  ;;  %v15666_v36 = vld [vmem:[#allocation171_spill] sm:$0xff] }
 0x38f   : > { %15575 = vst [vmem:[#allocation113_spill] sm:$0xff] %v11935_v44  ;;  %v11952_v47 = vpop.permute.xlu1 %8882  ;;  %9112 = vrot.lane.b32.xlu2 %v9111_v30, %s9938_s13  ;;  %v9116_v54 = vpack.i.bf16 %v3700_v33, %v3699_v42  ;;  %v11956_v7 = vsel %vm1074_vm4, %v2647_v39, %v8334_v11  ;;  %v11959_v17 = vsel %vm1074_vm4, %v2648_v4, %v8335_v62  ;;  %v8350_v46 = vunpack.i.h.bf16 %v15578_v31  ;;  %v15581_v4 = vld [vmem:[#allocation134_spill] sm:$0xff]  ;;  %v15582_v39 = vld [vmem:[#allocation135_spill] sm:$0xff] }
 0x390   : > { %15577 = vst [vmem:[#allocation114_spill] sm:$0xff] %v11952_v47  ;;  %v8349_v35 = vunpack.i.l.bf16 %v15578_v31  ;;  %v11965_v6 = vsel %vm1041_vm3, %v11755_v13, %v8295_v21  ;;  %v8310_v26 = vunpack.i.h.bf16 %v15579_v2  ;;  %v8309_v50 = vunpack.i.l.bf16 %v15579_v2 }
 0x391   : > { %v9106_v30 = vpack.i.bf16 %v3696_v61, %v3695_v57  ;;  %v11973_v11 = vsel %vm1041_vm3, %v11758_v9, %v8294_v16  ;;  %v8300_v62 = vunpack.i.h.bf16 %v15581_v4  ;;  %v8299_v33 = vunpack.i.l.bf16 %v15581_v4  ;;  %v15583_v61 = vld [vmem:[#allocation137_spill] sm:$0xff]  ;;  %v15584_v4 = vld [vmem:[#allocation138_spill] sm:$0xff] }
 0x392   : > { %v8364_v38 = vunpack.i.l.bf16 %v15582_v39  ;;  %v2660_v13 = vsel %vm1041_vm3, %v11811_v28, %v8285_v60  ;;  %v2659_v21 = vsel %vm1041_vm3, %v11814_v23, %v8284_v56  ;;  %v8365_v57 = vunpack.i.h.bf16 %v15582_v39  ;;  %v15585_v56 = vld [vmem:[#allocation139_spill] sm:$0xff]  ;;  %v15587_v39 = vld [vmem:[#allocation140_spill] sm:$0xff] }
 0x393   : > { %v11969_v42 = vpop.permute.xlu2 %8947  ;;  %v8315_v31 = vunpack.i.h.bf16 %v15583_v61  ;;  %9117 = vrot.lane.b32.xlu0 %v9116_v54, %s9938_s13  ;;  %v11986_v9 = vsel %vm1074_vm4, %v2653_v1, %v8349_v35  ;;  %v11989_v16 = vsel %vm1074_vm4, %v2654_v14, %v8350_v46  ;;  %v8314_v2 = vunpack.i.l.bf16 %v15583_v61  ;;  %v3701_v35 = vld [vmem:[#allocation2 + $0x1cc] sm:$0xff] }
 0x394   : > { %15580 = vst [vmem:[#allocation115_spill] sm:$0xff] %v11969_v42  ;;  %v8379_v47 = vunpack.i.l.bf16 %v15584_v4  ;;  %v11995_v28 = vsel %vm1041_vm3, %v11793_v40, %v8310_v26  ;;  %v11999_v23 = vsel %vm1041_vm3, %v11796_v63, %v8309_v50  ;;  %v8380_v60 = vunpack.i.h.bf16 %v15584_v4  ;;  %v3702_v26 = vld [vmem:[#allocation2 + $0x1d4] sm:$0xff] }
 0x395   : > { %v8339_v1 = vunpack.i.l.bf16 %v15585_v56  ;;  %9107 = vrot.lane.b32.xlu1 %v9106_v30, %s9938_s13  ;;  %v2666_v54 = vsel %vm1041_vm3, %v11834_v24, %v8300_v62  ;;  %v2665_v46 = vsel %vm1041_vm3, %v11845_v32, %v8299_v33  ;;  %v12011_v40 = vsel %vm1074_vm4, %v2659_v21, %v8364_v38  ;;  %v15591_v4 = vld [vmem:[#allocation142_spill] sm:$0xff]  ;;  %v2764_v42 = vld [vmem:[#allocation2 + $0x150] sm:$0xff] }
 0x396   : > { %v12004_v14 = vpop.permute.xlu0 %8907  ;;  %v8340_v63 = vunpack.i.h.bf16 %v15585_v56  ;;  %v12015_v50 = vsel %vm1074_vm4, %v2660_v13, %v8365_v57  ;;  %v2672_v30 = vsel %vm1041_vm3, %v11865_v37, %v8315_v31  ;;  %v8330_v61 = vunpack.i.h.bf16 %v15587_v39  ;;  %v15590_v13 = vld [vmem:[#allocation141_spill] sm:$0xff] }
 0x397   : > { %15586 = vst [vmem:[#allocation116_spill] sm:$0xff] %v12004_v14  ;;  %v8329_v24 = vunpack.i.l.bf16 %v15587_v39  ;;  %v12021_v62 = vpop.permute.xlu1 %8897  ;;  %v15589_v32 = vpack.i.bf16 %v11579_v41, %v11575_v53  ;;  %v2671_v33 = vsel %vm1041_vm3, %v11868_v59, %v8314_v2  ;;  %v12030_v38 = vsel %vm1074_vm4, %v2665_v46, %v8379_v47  ;;  %v15593_v47 = vld [vmem:[#allocation143_spill] sm:$0xff]  ;;  %v15594_v39 = vld [vmem:[#allocation144_spill] sm:$0xff] }
 0x398   : > { %15588 = vst [vmem:[#allocation117_spill] sm:$0xff] %v12021_v62  ;;  %v8395_v37 = vunpack.i.h.bf16 %v15590_v13  ;;  %v8394_v21 = vunpack.i.l.bf16 %v15590_v13  ;;  %v12035_v57 = vsel %vm1074_vm4, %v2666_v54, %v8380_v60  ;;  %v12039_v31 = vsel %vm1074_vm4, %v11822_v52, %v8339_v1 }
 0x399   : > { %9127 = vrot.lane.b32.xlu2 %v15589_v32, %s9939_s14  ;;  %v8354_v53 = vunpack.i.l.bf16 %v15591_v4  ;;  %v9121_v41 = vpack.i.bf16 %v3702_v26, %v3701_v35  ;;  %v12046_v59 = vsel %vm1074_vm4, %v11826_v51, %v8340_v63  ;;  %v8345_v2 = vunpack.i.h.bf16 %v15593_v47  ;;  %v15595_v35 = vld [vmem:[#allocation146_spill] sm:$0xff] }
 0x39a   : > { %v8344_v46 = vunpack.i.l.bf16 %v15593_v47  ;;  %v8409_v60 = vunpack.i.l.bf16 %v15594_v39  ;;  %v2678_v54 = vsel %vm1074_vm4, %v11881_v12, %v8330_v61  ;;  %v2677_v52 = vsel %vm1074_vm4, %v11886_v58, %v8329_v24  ;;  %v15597_v24 = vld [vmem:[#allocation147_spill] sm:$0xff] }
 0x39b   : > { %v12042_v56 = vpop.permute.xlu2 %8962  ;;  %v8410_v1 = vunpack.i.h.bf16 %v15594_v39  ;;  %v8360_v26 = vunpack.i.h.bf16 %v15595_v35  ;;  %v15596_v51 = vpack.i.bf16 %v11467_v15, %v11464_v45  ;;  %v12062_v63 = vsel %vm1074_vm4, %v2671_v33, %v8394_v21  ;;  %v15598_v45 = vld [vmem:[#allocation150_spill] sm:$0xff] }
 0x39c   : > { %15592 = vst [vmem:[#allocation118_spill] sm:$0xff] %v12042_v56  ;;  %v12065_v32 = vsel %vm1074_vm4, %v2672_v30, %v8395_v37  ;;  %v8355_v12 = vunpack.i.h.bf16 %v15591_v4  ;;  %v8359_v61 = vunpack.i.l.bf16 %v15595_v35  ;;  %v12071_v58 = vsel %vm1074_vm4, %v11855_v3, %v8354_v53  ;;  %v15665_v56 = vld [vmem:[#allocation170_spill] sm:$0xff] }
 0x39d   : > { %9132 = vrot.lane.b32.xlu0 %v15596_v51, %s9939_s14  ;;  %v8425_v13 = vunpack.i.h.bf16 %v15597_v24  ;;  %v8424_v47 = vunpack.i.l.bf16 %v15597_v24  ;;  %v8439_v15 = vunpack.i.l.bf16 %v15598_v45  ;;  %9122 = vrot.lane.b32.xlu1 %v9121_v41, %s9938_s13  ;;  %v2684_v30 = vsel %vm1074_vm4, %v11913_v10, %v8345_v2  ;;  %v15600_v41 = vld [vmem:[#allocation145_spill] sm:$0xff] }
 0x39e   : > { %v12077_v33 = vpop.permute.xlu0 %8922  ;;  %v2683_v37 = vsel %vm1074_vm4, %v11921_v19, %v8344_v46  ;;  %v12084_v21 = vsel %vm1107_vm5, %v2677_v52, %v8409_v60  ;;  %v8440_v3 = vunpack.i.h.bf16 %v15598_v45  ;;  %v12088_v4 = vsel %vm1107_vm5, %v2678_v54, %v8410_v1  ;;  %v15603_v2 = vld [vmem:[#allocation149_spill] sm:$0xff]  ;;  %v15604_v60 = vld [vmem:[#allocation148_spill] sm:$0xff] }
 0x39f   : > { %15599 = vst [vmem:[#allocation119_spill] sm:$0xff] %v12077_v33  ;;  %v2690_v53 = vsel %vm1074_vm4, %v11941_v18, %v8360_v26  ;;  %v8370_v39 = vunpack.i.h.bf16 %v15600_v41  ;;  %v8369_v35 = vunpack.i.l.bf16 %v15600_v41  ;;  %v12094_v51 = vpop.permute.xlu1 %8912  ;;  %v15602_v10 = vpack.i.bf16 %v11612_v27, %v11608_v29  ;;  %v15607_v45 = vld [vmem:[#allocation153_spill] sm:$0xff]  ;;  %v15671_v33 = vld [vmem:[#allocation172_spill] sm:$0xff] }
 0x3a0   : > { %15601 = vst [vmem:[#allocation120_spill] sm:$0xff] %v12094_v51  ;;  %v2689_v19 = vsel %vm1074_vm4, %v11945_v0, %v8359_v61  ;;  %v8375_v46 = vunpack.i.h.bf16 %v15603_v2  ;;  %v8385_v54 = vunpack.i.h.bf16 %v15604_v60  ;;  %v8384_v18 = vunpack.i.l.bf16 %v15604_v60  ;;  %v15606_v61 = vld [vmem:[#allocation151_spill] sm:$0xff] }
 0x3a1   : > { %9142 = vrot.lane.b32.xlu2 %v15602_v10, %s9939_s14  ;;  %v12106_v52 = vsel %vm1107_vm5, %v2683_v37, %v8424_v47  ;;  %v12109_v1 = vsel %vm1107_vm5, %v2684_v30, %v8425_v13  ;;  %v8374_v26 = vunpack.i.l.bf16 %v15603_v2  ;;  %v12113_v29 = vsel %vm1107_vm5, %v2689_v19, %v8439_v15 }
 0x3a2   : > { %v12118_v0 = vsel %vm1107_vm5, %v2690_v53, %v8440_v3  ;;  %v8399_v24 = vunpack.i.l.bf16 %v15606_v61  ;;  %v8455_v41 = vunpack.i.h.bf16 %v15607_v45  ;;  %v8454_v47 = vunpack.i.l.bf16 %v15607_v45  ;;  %v15618_v45 = vld [vmem:[#allocation90_spill] sm:$0xff] }
 0x3a3   : > { %v12115_v27 = vpop.permute.xlu2 %8977  ;;  %v2688_v13 = vsel %vm1074_vm4, %v11858_v49, %v8355_v12  ;;  %v12127_v30 = vsel %vm1074_vm4, %v11874_v55, %v8369_v35  ;;  %v12131_v15 = vsel %vm1074_vm4, %v11877_v20, %v8370_v39  ;;  %v15608_v37 = vpack.i.bf16 %v11482_v34, %v11479_v48  ;;  %v15609_v34 = vld [vmem:[#allocation152_spill] sm:$0xff] }
 0x3a4   : > { %15605 = vst [vmem:[#allocation121_spill] sm:$0xff] %v12115_v27  ;;  %v2696_v53 = vsel %vm1074_vm4, %v11965_v6, %v8375_v46  ;;  %v12143_v49 = vsel %vm1074_vm4, %v11903_v8, %v8384_v18  ;;  %v12147_v55 = vsel %vm1074_vm4, %v11909_v5, %v8385_v54  ;;  %v2695_v48 = vsel %vm1074_vm4, %v11973_v11, %v8374_v26  ;;  %v15610_v6 = vld [vmem:[#allocation78_spill] sm:$0xff]  ;;  %v15616_v54 = vld [vmem:[#allocation156_spill] sm:$0xff] }
 0x3a5   : > { %9147 = vrot.lane.b32.xlu0 %v15608_v37, %s9939_s14  ;;  %v8390_v12 = vunpack.i.h.bf16 %v15609_v34  ;;  %v8400_v39 = vunpack.i.h.bf16 %v15606_v61  ;;  %v15611_v35 = vpack.i.bf16 %v11587_v43, %v15610_v6  ;;  %v8389_v10 = vunpack.i.l.bf16 %v15609_v34  ;;  %v15615_v46 = vld [vmem:[#allocation154_spill] sm:$0xff]  ;;  %v15623_v6 = vld [vmem:[#allocation161_spill] sm:$0xff] }
 0x3a6   : > { %v12159_v8 = vpop.permute.xlu0 %8937  ;;  %v12166_v19 = vsel %vm1074_vm4, %v11928_v25, %v8399_v24  ;;  %v12169_v11 = vsel %vm1107_vm5, %v2695_v48, %v8454_v47  ;;  %v12172_v2 = vsel %vm1107_vm5, %v2696_v53, %v8455_v41  ;;  %v8415_v43 = vunpack.i.h.bf16 %v15615_v46  ;;  %v15619_v25 = vld [vmem:[#allocation88_spill] sm:$0xff]  ;;  %v15621_v47 = vld [vmem:[#allocation158_spill] sm:$0xff]  ;;  %v15622_v53 = vld [vmem:[#allocation157_spill] sm:$0xff] }
 0x3a7   : > { %9137 = vrot.lane.b32.xlu1 %v15611_v35, %s9939_s14  ;;  %15612 = vst [vmem:[#allocation122_spill] sm:$0xff] %v12159_v8  ;;  %v8414_v60 = vunpack.i.l.bf16 %v15615_v46  ;;  %v8470_v18 = vunpack.i.h.bf16 %v15616_v54  ;;  %v8469_v26 = vunpack.i.l.bf16 %v15616_v54  ;;  %v12178_v61 = vpop.permute.xlu1 %8927  ;;  %v15620_v24 = vpack.i.bf16 %v15618_v45, %v15619_v25  ;;  %v15624_v54 = vld [vmem:[#allocation160_spill] sm:$0xff]  ;;  %v2743_v8 = vld [vmem:[#allocation2 + $0x50] sm:$0xff] }
 0x3a8   : > { %15613 = vst [vmem:[#allocation123_spill] sm:$0xff] %v12169_v11  ;;  %v8420_v37 = vunpack.i.h.bf16 %v15621_v47  ;;  %v8419_v41 = vunpack.i.l.bf16 %v15621_v47  ;;  %v8430_v48 = vunpack.i.h.bf16 %v15622_v53  ;;  %v8429_v34 = vunpack.i.l.bf16 %v15622_v53 }
 0x3a9   : > { %15614 = vst [vmem:[#allocation124_spill] sm:$0xff] %v12172_v2  ;;  %9157 = vrot.lane.b32.xlu2 %v15620_v24, %s9939_s14  ;;  %v8435_v35 = vunpack.i.h.bf16 %v15623_v6  ;;  %v8434_v46 = vunpack.i.l.bf16 %v15623_v6  ;;  %v8445_v5 = vunpack.i.h.bf16 %v15624_v54  ;;  %v8444_v20 = vunpack.i.l.bf16 %v15624_v54  ;;  %v15690_v2 = vld [vmem:[#allocation99_spill] sm:$0xff] }
 0x3aa   : > { %15617 = vst [vmem:[#allocation125_spill] sm:$0xff] %v12178_v61  ;;  %v2702_v45 = vsel %vm1074_vm4, %v11995_v28, %v8390_v12  ;;  %v2701_v25 = vsel %vm1074_vm4, %v11999_v23, %v8389_v10  ;;  %v12200_v24 = vsel %vm1074_vm4, %v11931_v22, %v8400_v39  ;;  %v12206_v53 = vsel %vm1107_vm5, %v11956_v7, %v8414_v60  ;;  %v15628_v22 = vld [vmem:[#allocation72_spill] sm:$0xff]  ;;  %v15629_v12 = vld [vmem:[#allocation71_spill] sm:$0xff] }
 0x3ab   : > { %v12192_v3 = vpop.permute.xlu2 %8992  ;;  %v12210_v6 = vsel %vm1107_vm5, %v11959_v17, %v8415_v43  ;;  %v12213_v28 = vsel %vm1107_vm5, %v2701_v25, %v8469_v26  ;;  %v12216_v23 = vsel %vm1107_vm5, %v2702_v45, %v8470_v18  ;;  %v15630_v39 = vpack.i.bf16 %v15628_v22, %v15629_v12  ;;  %v15634_v26 = vld [vmem:[#allocation84_spill] sm:$0xff]  ;;  %v15641_v45 = vld [vmem:[#allocation95_spill] sm:$0xff] }
 0x3ac   : > { %15625 = vst [vmem:[#allocation126_spill] sm:$0xff] %v12192_v3  ;;  %v12224_v10 = vsel %vm1107_vm5, %v12039_v31, %v8419_v41  ;;  %v12228_v7 = vsel %vm1107_vm5, %v12046_v59, %v8420_v37  ;;  %v12232_v17 = vsel %vm1107_vm5, %v11986_v9, %v8429_v34  ;;  %v12236_v43 = vsel %vm1107_vm5, %v11989_v16, %v8430_v48  ;;  %v15633_v9 = vld [vmem:[#allocation79_spill] sm:$0xff]  ;;  %v15669_v61 = vld [vmem:[#allocation96_spill] sm:$0xff] }
 0x3ad   : > { %15626 = vst [vmem:[#allocation128_spill] sm:$0xff] %v12213_v28  ;;  %9162 = vrot.lane.b32.xlu0 %v15630_v39, %s9939_s14  ;;  %v12240_v60 = vsel %vm1107_vm5, %v12071_v58, %v8434_v46  ;;  %v12243_v18 = vsel %vm1107_vm5, %v2688_v13, %v8435_v35  ;;  %v12247_v31 = vsel %vm1107_vm5, %v12011_v40, %v8444_v20  ;;  %v15637_v58 = vld [vmem:[#allocation162_spill] sm:$0xff]  ;;  %v15638_v48 = vld [vmem:[#allocation163_spill] sm:$0xff]  ;;  %v15639_v46 = vld [vmem:[#allocation164_spill] sm:$0xff] }
 0x3ae   : > { %15627 = vst [vmem:[#allocation127_spill] sm:$0xff] %v12216_v23  ;;  %v12251_v59 = vsel %vm1107_vm5, %v12015_v50, %v8445_v5  ;;  %v15635_v16 = vpack.i.bf16 %v15633_v9, %v15634_v26  ;;  %v12257_v37 = vpop.permute.xlu0 %8952  ;;  %v8500_v41 = vunpack.i.h.bf16 %v15637_v58  ;;  %v8499_v13 = vunpack.i.l.bf16 %v15637_v58  ;;  %v2746_v20 = vld [vmem:[#allocation2 + $0x78] sm:$0xff]  ;;  %v2747_v35 = vld [vmem:[#allocation2 + $0x80] sm:$0xff]  ;;  %v2748_v23 = vld [vmem:[#allocation2 + $0x90] sm:$0xff] }
 0x3af   : > { %15631 = vst [vmem:[#allocation129_spill] sm:$0xff] %v12247_v31  ;;  %v8460_v34 = vunpack.i.h.bf16 %v15638_v48  ;;  %v8459_v40 = vunpack.i.l.bf16 %v15638_v48  ;;  %v8450_v50 = vunpack.i.h.bf16 %v15639_v46  ;;  %v8449_v5 = vunpack.i.l.bf16 %v15639_v46  ;;  %v12265_v54 = vpop.permute.xlu1 %8942  ;;  %v15642_v25 = vld [vmem:[#allocation91_spill] sm:$0xff]  ;;  %v15645_v58 = vld [vmem:[#allocation166_spill] sm:$0xff] }
 0x3b0   : > { %15632 = vst [vmem:[#allocation130_spill] sm:$0xff] %v12251_v59  ;;  %9152 = vrot.lane.b32.xlu1 %v15635_v16, %s9939_s14  ;;  %v15643_v22 = vpack.i.bf16 %v15641_v45, %v15642_v25  ;;  %v15644_v9 = vld [vmem:[#allocation167_spill] sm:$0xff]  ;;  %v8475_v48 = vunpack.i.h.bf16 %v15645_v58  ;;  %v8474_v46 = vunpack.i.l.bf16 %v15645_v58  ;;  %v12293_v12 = vsel %vm256_vm0, %v2746_v20, %v8499_v13  ;;  %v15652_v20 = vld [vmem:[#allocation77_spill] sm:$0xff] }
 0x3b1   : > { %15636 = vst [vmem:[#allocation131_spill] sm:$0xff] %v12257_v37  ;;  %v8465_v26 = vunpack.i.h.bf16 %v15644_v9  ;;  %v8464_v16 = vunpack.i.l.bf16 %v15644_v9  ;;  %v12290_v9 = vsel %vm256_vm0, %v2747_v35, %v8500_v41  ;;  %v12297_v58 = vsel %vm1107_vm5, %v12030_v38, %v8459_v40  ;;  %v15651_v41 = vld [vmem:[#allocation165_spill] sm:$0xff]  ;;  %v15653_v38 = vld [vmem:[#allocation76_spill] sm:$0xff]  ;;  %v15687_v3 = vld [vmem:[#allocation179_spill] sm:$0xff] }
 0x3b2   : > { %15640 = vst [vmem:[#allocation132_spill] sm:$0xff] %v12265_v54  ;;  %9172 = vrot.lane.b32.xlu2 %v15643_v22, %s9939_s14  ;;  %v12301_v45 = vsel %vm1107_vm5, %v12035_v57, %v8460_v34  ;;  %v12305_v25 = vsel %vm1107_vm5, %v12127_v30, %v8449_v5  ;;  %v12309_v39 = vsel %vm1107_vm5, %v12131_v15, %v8450_v50  ;;  %v8515_v35 = vunpack.i.h.bf16 %v15651_v41  ;;  %v2752_v22 = vld [vmem:[#allocation2 + $0xc0] sm:$0xff]  ;;  %v2753_v57 = vld [vmem:[#allocation2 + $0xc8] sm:$0xff] }
 0x3b3   : > { %v12279_v47 = vpop.permute.xlu2 %9007  ;;  %15647 = vst [vmem:[#allocation134_spill] sm:$0xff] %v12297_v58  ;;  %v8514_v13 = vunpack.i.l.bf16 %v15651_v41  ;;  %v15654_v40 = vpack.i.bf16 %v15652_v20, %v15653_v38  ;;  %v12319_v34 = vsel %vm1107_vm5, %v12143_v49, %v8464_v16  ;;  %v12323_v30 = vsel %vm1107_vm5, %v12147_v55, %v8465_v26  ;;  %v2758_v5 = vld [vmem:[#allocation2 + $0x108] sm:$0xff]  ;;  %v15661_v55 = vld [vmem:[#allocation86_spill] sm:$0xff]  ;;  %v15662_v26 = vld [vmem:[#allocation85_spill] sm:$0xff] }
 0x3b4   : > { %15646 = vst [vmem:[#allocation133_spill] sm:$0xff] %v12279_v47  ;;  %v12327_v15 = vsel %vm1107_vm5, %v12062_v63, %v8474_v46  ;;  %v12331_v50 = vsel %vm1107_vm5, %v12065_v32, %v8475_v48  ;;  %v15659_v41 = vld [vmem:[#allocation168_spill] sm:$0xff]  ;;  %v15663_v54 = vpack.i.bf16 %v15661_v55, %v15662_v26  ;;  %v2759_v46 = vld [vmem:[#allocation2 + $0x110] sm:$0xff]  ;;  %v8480_v32 = vunpack.i.h.bf16 %v15665_v56 }
 0x3b5   : > { %15648 = vst [vmem:[#allocation135_spill] sm:$0xff] %v12301_v45  ;;  %9177 = vrot.lane.b32.xlu0 %v15654_v40, %s9939_s14  ;;  %v8530_v20 = vunpack.i.h.bf16 %v15659_v41  ;;  %v8529_v38 = vunpack.i.l.bf16 %v15659_v41  ;;  %v15660_v40 = vld [vmem:[#allocation169_spill] sm:$0xff]  ;;  %v8479_v48 = vunpack.i.l.bf16 %v15665_v56  ;;  %v2742_v37 = vld [vmem:[#allocation2 + $0x48] sm:$0xff]  ;;  %v8545_v41 = vunpack.i.h.bf16 %v15666_v36  ;;  %v15668_v56 = vld [vmem:[#allocation98_spill] sm:$0xff] }
 0x3b6   : > { %15649 = vst [vmem:[#allocation137_spill] sm:$0xff] %v12305_v25  ;;  %v8490_v49 = vunpack.i.h.bf16 %v15660_v40  ;;  %v8489_v16 = vunpack.i.l.bf16 %v15660_v40  ;;  %v12341_v63 = vpop.permute.xlu0 %8967  ;;  %v12349_v40 = vsel %vm256_vm0, %v2753_v57, %v8515_v35  ;;  %v12352_v55 = vsel %vm256_vm0, %v2752_v22, %v8514_v13  ;;  %v2751_v45 = vld [vmem:[#allocation2 + $0xb0] sm:$0xff] }
 0x3b7   : > { %15650 = vst [vmem:[#allocation138_spill] sm:$0xff] %v12309_v39  ;;  %v8544_v26 = vunpack.i.l.bf16 %v15666_v36  ;;  %v12355_v47 = vpop.permute.xlu1 %8957  ;;  %v15670_v28 = vpack.i.bf16 %v15668_v56, %v15669_v61  ;;  %v8505_v35 = vunpack.i.h.bf16 %v15671_v33  ;;  %v8504_v57 = vunpack.i.l.bf16 %v15671_v33  ;;  %v2749_v33 = vld [vmem:[#allocation2 + $0x98] sm:$0xff]  ;;  %v2772_v25 = vld [vmem:[#allocation2 + $0x1b0] sm:$0xff] }
 0x3b8   : > { %15655 = vst [vmem:[#allocation139_spill] sm:$0xff] %v12319_v34  ;;  %9167 = vrot.lane.b32.xlu1 %v15663_v54, %s9939_s14  ;;  %v2765_v54 = vld [vmem:[#allocation2 + $0x158] sm:$0xff]  ;;  %v12370_v13 = vsel %vm256_vm0, %v2759_v46, %v8530_v20  ;;  %v12373_v61 = vsel %vm256_vm0, %v2758_v5, %v8529_v38  ;;  %v12379_v56 = vsel %vm256_vm0, %v2742_v37, %v8489_v16  ;;  %v8525_v51 = vunpack.i.h.bf16 %v15687_v3 }
 0x3b9   : > { %15656 = vst [vmem:[#allocation140_spill] sm:$0xff] %v12323_v30  ;;  %v12385_v22 = vsel %vm1107_vm5, %v12166_v19, %v8479_v48  ;;  %v12389_v20 = vsel %vm1107_vm5, %v12200_v24, %v8480_v32  ;;  %v12392_v5 = vsel %vm256_vm0, %v2765_v54, %v8545_v41  ;;  %v12396_v37 = vsel %vm256_vm0, %v2764_v42, %v8544_v26  ;;  %v15676_v46 = vld [vmem:[#allocation174_spill] sm:$0xff]  ;;  %v15677_v48 = vld [vmem:[#allocation81_spill] sm:$0xff]  ;;  %v2744_v32 = vld [vmem:[#allocation2 + $0x60] sm:$0xff] }
 0x3ba   : > { %15657 = vst [vmem:[#allocation141_spill] sm:$0xff] %v12327_v15  ;;  %9187 = vrot.lane.b32.xlu2 %v15670_v28, %s9939_s14  ;;  %v12376_v28 = vsel %vm256_vm0, %v2743_v8, %v8490_v49  ;;  %v15675_v8 = vld [vmem:[#allocation173_spill] sm:$0xff]  ;;  %v2745_v49 = vld [vmem:[#allocation2 + $0x68] sm:$0xff]  ;;  %v8560_v36 = vunpack.i.h.bf16 %v15676_v46  ;;  %v8559_v19 = vunpack.i.l.bf16 %v15676_v46  ;;  %v12406_v41 = vsel %vm256_vm0, %v2749_v33, %v8505_v35  ;;  %v2770_v42 = vld [vmem:[#allocation2 + $0x198] sm:$0xff] }
 0x3bb   : > { %15658 = vst [vmem:[#allocation142_spill] sm:$0xff] %v12331_v50  ;;  %v8495_v38 = vunpack.i.h.bf16 %v15675_v8  ;;  %v8494_v16 = vunpack.i.l.bf16 %v15675_v8  ;;  %v12409_v54 = vsel %vm256_vm0, %v2748_v23, %v8504_v57  ;;  %v2771_v26 = vld [vmem:[#allocation2 + $0x1a0] sm:$0xff]  ;;  %v15681_v15 = vld [vmem:[#allocation176_spill] sm:$0xff]  ;;  %v2754_v34 = vld [vmem:[#allocation2 + $0xd8] sm:$0xff] }
 0x3bc   : > { %15664 = vst [vmem:[#allocation143_spill] sm:$0xff] %v12341_v63  ;;  %v8510_v46 = vunpack.i.h.bf16 %v15681_v15  ;;  %v8509_v50 = vunpack.i.l.bf16 %v15681_v15  ;;  %v15683_v33 = vld [vmem:[#allocation93_spill] sm:$0xff]  ;;  %v15684_v23 = vld [vmem:[#allocation92_spill] sm:$0xff]  ;;  %v15688_v15 = vld [vmem:[#allocation178_spill] sm:$0xff] }
 0x3bd   : > { %15667 = vst [vmem:[#allocation144_spill] sm:$0xff] %v12355_v47  ;;  %v12381_v47 = vpop.permute.xlu2 %9022  ;;  %v15685_v57 = vpack.i.bf16 %v15683_v33, %v15684_v23  ;;  %v3417_v58 = vsel %vm256_vm0, %v2745_v49, %v8495_v38  ;;  %v8535_v27 = vunpack.i.h.bf16 %v15688_v15  ;;  %v8534_v62 = vunpack.i.l.bf16 %v15688_v15  ;;  %v2757_v23 = vld [vmem:[#allocation2 + $0xf8] sm:$0xff]  ;;  %v2760_v38 = vld [vmem:[#allocation2 + $0x120] sm:$0xff]  ;;  %v2761_v49 = vld [vmem:[#allocation2 + $0x128] sm:$0xff] }
 0x3be   : > { %15672 = vst [vmem:[#allocation146_spill] sm:$0xff] %v12381_v47  ;;  %v15678_v47 = vld [vmem:[#allocation80_spill] sm:$0xff]  ;;  %v12421_v30 = vpop.permute.xlu0 %8982  ;;  %v3416_v14 = vsel %vm256_vm0, %v2744_v32, %v8494_v16  ;;  %v12432_v33 = vsel %vm256_vm0, %v2770_v42, %v8559_v19  ;;  %v2756_v19 = vld [vmem:[#allocation2 + $0xf0] sm:$0xff]  ;;  %v2773_v39 = vld [vmem:[#allocation2 + $0x1b8] sm:$0xff] }
 0x3bf   : > { %15673 = vst [vmem:[#allocation147_spill] sm:$0xff] %v12385_v22  ;;  %v15679_v24 = vpack.i.bf16 %v15677_v48, %v15678_v47  ;;  %v2755_v47 = vld [vmem:[#allocation2 + $0xe0] sm:$0xff]  ;;  %v15682_v48 = vld [vmem:[#allocation177_spill] sm:$0xff]  ;;  %v12435_v11 = vpop.permute.xlu1 %8972  ;;  %v15693_v32 = vld [vmem:[#allocation180_spill] sm:$0xff] }
 0x3c0   : > { %15674 = vst [vmem:[#allocation150_spill] sm:$0xff] %v12389_v20  ;;  %v15680_v20 = vld [vmem:[#allocation175_spill] sm:$0xff]  ;;  %v8574_v35 = vunpack.i.l.bf16 %v15682_v48  ;;  %9182 = vrot.lane.b32.xlu1 %v15685_v57, %s9939_s14  ;;  %v8524_v57 = vunpack.i.l.bf16 %v15687_v3  ;;  %v8590_v42 = vunpack.i.h.bf16 %v15693_v32  ;;  %v8589_v3 = vunpack.i.l.bf16 %v15693_v32  ;;  %v15701_v32 = vld [vmem:[#allocation185_spill] sm:$0xff]  ;;  %v15706_v63 = vld [vmem:[#allocation186_spill] sm:$0xff] }
 0x3c1   : > { %9192 = vrot.lane.b32.xlu0 %v15679_v24, %s9939_s14  ;;  %v8520_v8 = vunpack.i.h.bf16 %v15680_v20  ;;  %v8519_v22 = vunpack.i.l.bf16 %v15680_v20  ;;  %v8575_v24 = vunpack.i.h.bf16 %v15682_v48  ;;  %15686 = vst [vmem:[#allocation145_spill] sm:$0xff] %v12421_v30  ;;  %v2750_v20 = vld [vmem:[#allocation2 + $0xa8] sm:$0xff]  ;;  %v12429_v48 = vsel %vm256_vm0, %v2771_v26, %v8560_v36 }
 0x3c2   : > { %15689 = vst [vmem:[#allocation149_spill] sm:$0xff] %v12435_v11  ;;  %v15691_v30 = vld [vmem:[#allocation104_spill] sm:$0xff]  ;;  %v3423_v26 = vsel %vm256_vm0, %v2751_v45, %v8510_v46  ;;  %v3422_v15 = vsel %vm256_vm0, %v2750_v20, %v8509_v50  ;;  %v12452_v11 = vsel %vm1041_vm3, %v3416_v14, %v8574_v35  ;;  %v3428_v50 = vsel %vm256_vm0, %v2756_v19, %v8524_v57  ;;  %v15696_v46 = vld [vmem:[#allocation182_spill] sm:$0xff]  ;;  %v2763_v20 = vld [vmem:[#allocation2 + $0x140] sm:$0xff] }
 0x3c3   : > { %v15692_v44 = vpack.i.bf16 %v15690_v2, %v15691_v30  ;;  %v12442_v16 = vsel %vm256_vm0, %v2755_v47, %v8520_v8  ;;  %v12445_v36 = vsel %vm256_vm0, %v2754_v34, %v8519_v22  ;;  %v3429_v34 = vsel %vm256_vm0, %v2757_v23, %v8525_v51  ;;  %v15695_v8 = vld [vmem:[#allocation181_spill] sm:$0xff]  ;;  %v2762_v35 = vld [vmem:[#allocation2 + $0x138] sm:$0xff]  ;;  %v2766_v23 = vld [vmem:[#allocation2 + $0x168] sm:$0xff] }
 0x3c4   : > { %v12461_v30 = vsel %vm256_vm0, %v2761_v49, %v8535_v27  ;;  %v12464_v22 = vsel %vm256_vm0, %v2760_v38, %v8534_v62  ;;  %v8550_v45 = vunpack.i.h.bf16 %v15695_v8  ;;  %v8540_v14 = vunpack.i.h.bf16 %v15696_v46  ;;  %v15700_v57 = vld [vmem:[#allocation183_spill] sm:$0xff] }
 0x3c5   : > { %9202 = vrot.lane.b32.xlu2 %v15692_v44, %s9939_s14  ;;  %v12455_v44 = vsel %vm1041_vm3, %v3417_v58, %v8575_v24  ;;  %v12457_v2 = vpop.permute.xlu2 %9037  ;;  %v8539_v47 = vunpack.i.l.bf16 %v15696_v46  ;;  %v2767_v58 = vld [vmem:[#allocation2 + $0x170] sm:$0xff]  ;;  %v8549_v24 = vunpack.i.l.bf16 %v15695_v8  ;;  %v15697_v51 = vpack.i.bf16 %v12088_v4, %v12084_v21  ;;  %v2768_v19 = vld [vmem:[#allocation2 + $0x180] sm:$0xff]  ;;  %v15702_v21 = vld [vmem:[#allocation184_spill] sm:$0xff] }
 0x3c6   : > { %15694 = vst [vmem:[#allocation148_spill] sm:$0xff] %v12457_v2  ;;  %v12476_v62 = vsel %vm1041_vm3, %v3422_v15, %v8589_v3  ;;  %v12479_v27 = vsel %vm1041_vm3, %v3423_v26, %v8590_v42  ;;  %v8605_v38 = vunpack.i.h.bf16 %v15700_v57  ;;  %v8604_v49 = vunpack.i.l.bf16 %v15700_v57  ;;  %v15703_v15 = vld [vmem:[#allocation101_spill] sm:$0xff]  ;;  %v2769_v57 = vld [vmem:[#allocation2 + $0x188] sm:$0xff] }
 0x3c7   : > { %15698 = vst [vmem:[#allocation151_spill] sm:$0xff] %v12476_v62  ;;  %v8555_v8 = vunpack.i.h.bf16 %v15701_v32  ;;  %v8554_v46 = vunpack.i.l.bf16 %v15701_v32  ;;  %v8565_v4 = vunpack.i.h.bf16 %v15702_v21  ;;  %v8564_v3 = vunpack.i.l.bf16 %v15702_v21  ;;  %v15704_v42 = vld [vmem:[#allocation97_spill] sm:$0xff]  ;;  %v15707_v62 = vld [vmem:[#allocation187_spill] sm:$0xff] }
 0x3c8   : > { %15699 = vst [vmem:[#allocation153_spill] sm:$0xff] %v12479_v27  ;;  %v15705_v26 = vpack.i.bf16 %v15703_v15, %v15704_v42  ;;  %v12494_v2 = vsel %vm256_vm0, %v2767_v58, %v8550_v45  ;;  %v8620_v27 = vunpack.i.h.bf16 %v15706_v63  ;;  %v8619_v32 = vunpack.i.l.bf16 %v15706_v63  ;;  %v12505_v45 = vpop.permute.xlu1 %8987 }
 0x3c9   : > { %9207 = vrot.lane.b32.xlu0 %v15697_v51, %s9940_s15  ;;  %v12491_v51 = vpop.permute.xlu0 %8997  ;;  %v8580_v31 = vunpack.i.h.bf16 %v15707_v62  ;;  %v3435_v21 = vsel %vm256_vm0, %v2763_v20, %v8540_v14  ;;  %v3434_v59 = vsel %vm256_vm0, %v2762_v35, %v8539_v47  ;;  %v12502_v15 = vsel %vm256_vm0, %v2766_v23, %v8549_v24  ;;  %v15709_v14 = vld [vmem:[#allocation188_spill] sm:$0xff] }
 0x3ca   : > { %9197 = vrot.lane.b32.xlu1 %v15705_v26, %s9939_s14  ;;  %v8579_v42 = vunpack.i.l.bf16 %v15707_v62  ;;  %v15708_v58 = vpack.i.bf16 %v12228_v7, %v12224_v10  ;;  %v12512_v63 = vsel %vm1041_vm3, %v3428_v50, %v8604_v49  ;;  %v12515_v26 = vsel %vm1041_vm3, %v3429_v34, %v8605_v38  ;;  %v15712_v38 = vld [vmem:[#allocation189_spill] sm:$0xff]  ;;  %s7108_s14 = sshll.u32 %s217_s7, 4  ;;  %s7109_s14 = int_to_ptr.vmem [resolvable:$true] %s7108_s14 }
 0x3cb   : > { %v8570_v47 = vunpack.i.h.bf16 %v15709_v14  ;;  %v8569_v24 = vunpack.i.l.bf16 %v15709_v14  ;;  %v3441_v35 = vsel %vm256_vm0, %v2769_v57, %v8555_v8  ;;  %v3440_v62 = vsel %vm256_vm0, %v2768_v19, %v8554_v46  ;;  %v15713_v19 = vld [vmem:[#allocation190_spill] sm:$0xff]  ;;  %v15715_v46 = vld [vmem:[#allocation191_spill] sm:$0xff] }
 0x3cc   : > { %v12522_v20 = vsel %vm256_vm0, %v2773_v39, %v8565_v4  ;;  %v12525_v10 = vsel %vm256_vm0, %v2772_v25, %v8564_v3  ;;  %v12530_v50 = vsel %vm1041_vm3, %v3434_v59, %v8619_v32  ;;  %v12533_v34 = vsel %vm1041_vm3, %v3435_v21, %v8620_v27  ;;  %v15716_v3 = vld [vmem:[#allocation192_spill] sm:$0xff]  ;;  %v15717_v21 = vld [vmem:[#allocation193_spill] sm:$0xff] }
 0x3cd   : > { %9217 = vrot.lane.b32.xlu2 %v15708_v58, %s9940_s15  ;;  %15710 = vst [vmem:[#allocation152_spill] sm:$0xff] %v12522_v20  ;;  %v12527_v7 = vpop.permute.xlu2 %9052  ;;  %v12537_v23 = vsel %vm1041_vm3, %v12290_v9, %v8580_v31  ;;  %v8634_v49 = vunpack.i.l.bf16 %v15712_v38  ;;  %v12542_v39 = vsel %vm1041_vm3, %v12293_v12, %v8579_v42  ;;  %v8635_v25 = vunpack.i.h.bf16 %v15712_v38 }
 0x3ce   : > { %15711 = vst [vmem:[#allocation78_spill] sm:$0xff] %v12525_v10  ;;  %v8595_v8 = vunpack.i.h.bf16 %v15713_v19  ;;  %v8594_v59 = vunpack.i.l.bf16 %v15713_v19  ;;  %v15714_v27 = vpack.i.bf16 %v12109_v1, %v12106_v52  ;;  %v3447_v31 = vsel %vm1041_vm3, %v12376_v28, %v8570_v47  ;;  %v15721_v47 = vld [vmem:[#allocation230_spill] sm:$0xff] }
 0x3cf   : > { %v3446_v9 = vsel %vm1041_vm3, %v12379_v56, %v8569_v24  ;;  %v8585_v12 = vunpack.i.h.bf16 %v15715_v46  ;;  %v8584_v4 = vunpack.i.l.bf16 %v15715_v46  ;;  %v8650_v57 = vunpack.i.h.bf16 %v15716_v3  ;;  %v15720_v56 = vld [vmem:[#allocation194_spill] sm:$0xff] }
 0x3d0   : > { %v8649_v32 = vunpack.i.l.bf16 %v15716_v3  ;;  %v8610_v42 = vunpack.i.h.bf16 %v15717_v21  ;;  %v8609_v58 = vunpack.i.l.bf16 %v15717_v21  ;;  %v15718_v52 = vpack.i.bf16 %v12210_v6, %v12206_v53 }
 0x3d1   : > { %9222 = vrot.lane.b32.xlu0 %v15714_v27, %s9940_s15  ;;  %v12565_v1 = vpop.permute.xlu0 %9012  ;;  %v12568_v28 = vsel %vm1041_vm3, %v3440_v62, %v8634_v49  ;;  %v8600_v14 = vunpack.i.h.bf16 %v15720_v56  ;;  %v8730_v24 = vunpack.i.h.bf16 %v15721_v47  ;;  %v8729_v38 = vunpack.i.l.bf16 %v15721_v47  ;;  %v12585_v62 = vpop.permute.xlu1 %9002  ;;  %v15729_v47 = vld [vmem:[#allocation202_spill] sm:$0xff] }
 0x3d2   : > { %9212 = vrot.lane.b32.xlu1 %v15718_v52, %s9940_s15  ;;  %15719 = vst [vmem:[#allocation154_spill] sm:$0xff] %v12565_v1  ;;  %v12574_v19 = vsel %vm1041_vm3, %v3441_v35, %v8635_v25  ;;  %v12578_v27 = vsel %vm1041_vm3, %v12349_v40, %v8595_v8  ;;  %v12582_v53 = vsel %vm1041_vm3, %v12352_v55, %v8594_v59  ;;  %v8599_v6 = vunpack.i.l.bf16 %v15720_v56  ;;  %v15723_v25 = vld [vmem:[#allocation195_spill] sm:$0xff] }
 0x3d3   : > { %v15722_v49 = vpack.i.bf16 %v12243_v18, %v12240_v60  ;;  %v3453_v35 = vsel %vm1041_vm3, %v12406_v41, %v8585_v12  ;;  %v3452_v40 = vsel %vm1041_vm3, %v12409_v54, %v8584_v4  ;;  %v8665_v8 = vunpack.i.h.bf16 %v15723_v25  ;;  %v15724_v54 = vld [vmem:[#allocation196_spill] sm:$0xff]  ;;  %v15728_v56 = vld [vmem:[#allocation199_spill] sm:$0xff] }
 0x3d4   : > { %v8664_v55 = vunpack.i.l.bf16 %v15723_v25  ;;  %v3478_v59 = vsel %vm1074_vm4, %v3446_v9, %v8649_v32  ;;  %v3479_v46 = vsel %vm1074_vm4, %v3447_v31, %v8650_v57  ;;  %v12601_v3 = vsel %vm1041_vm3, %v12370_v13, %v8610_v42  ;;  %v15725_v13 = vld [vmem:[#allocation197_spill] sm:$0xff] }
 0x3d5   : > { %9232 = vrot.lane.b32.xlu2 %v15722_v49, %s9940_s15  ;;  %v12605_v60 = vsel %vm1041_vm3, %v12373_v61, %v8609_v58  ;;  %v12607_v18 = vpop.permute.xlu2 %9067  ;;  %v3459_v41 = vsel %vm1041_vm3, %v12442_v16, %v8600_v14  ;;  %v8625_v12 = vunpack.i.h.bf16 %v15724_v54  ;;  %v3510_v4 = vsel %vm1107_vm5, %v3478_v59, %v8729_v38  ;;  %v15727_v58 = vld [vmem:[#allocation198_spill] sm:$0xff]  ;;  %v15733_v59 = vld [vmem:[#allocation200_spill] sm:$0xff] }
 0x3d6   : > { %v3511_v9 = vsel %vm1107_vm5, %v3479_v46, %v8730_v24  ;;  %v3458_v31 = vsel %vm1041_vm3, %v12445_v36, %v8599_v6  ;;  %v8615_v57 = vunpack.i.h.bf16 %v15725_v13  ;;  %v8614_v32 = vunpack.i.l.bf16 %v15725_v13 }
 0x3d7   : > { %v8624_v61 = vunpack.i.l.bf16 %v15724_v54  ;;  %v15726_v21 = vpack.i.bf16 %v12118_v0, %v12113_v29  ;;  %v12624_v16 = vsel %vm1074_vm4, %v3452_v40, %v8664_v55  ;;  %v12627_v42 = vsel %vm1074_vm4, %v3453_v35, %v8665_v8  ;;  %v15732_v40 = vld [vmem:[#allocation60_spill] sm:$0xff] }
 0x3d8   : > { %v8680_v52 = vunpack.i.h.bf16 %v15727_v58  ;;  %v8679_v36 = vunpack.i.l.bf16 %v15727_v58  ;;  %v8640_v14 = vunpack.i.h.bf16 %v15728_v56  ;;  %v8655_v24 = vunpack.i.h.bf16 %v15729_v47 }
 0x3d9   : > { %9237 = vrot.lane.b32.xlu0 %v15726_v21, %s9940_s15  ;;  %v8654_v38 = vunpack.i.l.bf16 %v15729_v47  ;;  %v15730_v29 = vpack.i.bf16 %v12236_v43, %v12232_v17  ;;  %v12638_v0 = vpop.permute.xlu0 %9027  ;;  %v9246_v6 = vpack.i.bf16 %v3511_v9, %v3510_v4  ;;  %v12642_v49 = vsel %vm1041_vm3, %v12392_v5, %v8625_v12  ;;  %v12656_v5 = vpop.permute.xlu1 %9017 }
 0x3da   : > { %15731 = vst [vmem:[#allocation156_spill] sm:$0xff] %v12638_v0  ;;  %v8639_v35 = vunpack.i.l.bf16 %v15728_v56  ;;  %v8735_v25 = vunpack.i.h.bf16 %v15732_v40  ;;  %v8734_v8 = vunpack.i.l.bf16 %v15732_v40  ;;  %v3465_v55 = vsel %vm1041_vm3, %v12461_v30, %v8615_v57  ;;  %v15741_v40 = vld [vmem:[#allocation129_spill] sm:$0xff] }
 0x3db   : > { %9227 = vrot.lane.b32.xlu1 %v15730_v29, %s9940_s15  ;;  %v3464_v17 = vsel %vm1041_vm3, %v12464_v22, %v8614_v32  ;;  %v12653_v43 = vsel %vm1041_vm3, %v12396_v37, %v8624_v61  ;;  %v8630_v46 = vunpack.i.h.bf16 %v15733_v59  ;;  %15734 = vst [vmem:[#allocation90_spill] sm:$0xff] %v12656_v5  ;;  %v12660_v54 = vsel %vm1074_vm4, %v3458_v31, %v8679_v36  ;;  %v15735_v22 = vld [vmem:[#allocation201_spill] sm:$0xff]  ;;  %v15736_v32 = vld [vmem:[#allocation204_spill] sm:$0xff] }
 0x3dc   : > { %v12663_v12 = vsel %vm1074_vm4, %v3459_v41, %v8680_v52  ;;  %v8629_v30 = vunpack.i.l.bf16 %v15733_v59  ;;  %v8694_v4 = vunpack.i.l.bf16 %v15735_v22  ;;  %v12669_v37 = vsel %vm1041_vm3, %v12429_v48, %v8640_v14  ;;  %v15737_v52 = vld [vmem:[#allocation205_spill] sm:$0xff] }
 0x3dd   : > { %9247 = vrot.lane.b32.xlu2 %v9246_v6, %s9941_s16  ;;  %v8695_v9 = vunpack.i.h.bf16 %v15735_v22  ;;  %v3480_v13 = vsel %vm1074_vm4, %v12452_v11, %v8654_v38  ;;  %v3481_v31 = vsel %vm1074_vm4, %v12455_v44, %v8655_v24  ;;  %v12676_v57 = vpop.permute.xlu2 %9082  ;;  %v12680_v41 = vsel %vm1041_vm3, %v12432_v33, %v8639_v35  ;;  %v15738_v14 = vld [vmem:[#allocation209_spill] sm:$0xff]  ;;  %v15740_v35 = vld [vmem:[#allocation130_spill] sm:$0xff] }
 0x3de   : > { %v8709_v61 = vunpack.i.l.bf16 %v15736_v32  ;;  %v3512_v21 = vsel %vm1107_vm5, %v3480_v13, %v8734_v8  ;;  %v3513_v48 = vsel %vm1107_vm5, %v3481_v31, %v8735_v25  ;;  %v3471_v58 = vsel %vm1041_vm3, %v12494_v2, %v8630_v46  ;;  %v15739_v2 = vld [vmem:[#allocation217_spill] sm:$0xff]  ;;  %v15756_v46 = vld [vmem:[#allocation100_spill] sm:$0xff] }
 0x3df   : > { %v8710_v11 = vunpack.i.h.bf16 %v15736_v32  ;;  %v8670_v36 = vunpack.i.h.bf16 %v15737_v52  ;;  %v8669_v44 = vunpack.i.l.bf16 %v15737_v52  ;;  %v3470_v56 = vsel %vm1041_vm3, %v12502_v15, %v8629_v30  ;;  %v15747_v31 = vld [vmem:[#allocation153_spill] sm:$0xff] }
 0x3e0   : > { %v12693_v33 = vsel %vm1074_vm4, %v3464_v17, %v8694_v4  ;;  %v8660_v47 = vunpack.i.h.bf16 %v15738_v14  ;;  %v8659_v24 = vunpack.i.l.bf16 %v15738_v14  ;;  %v12698_v38 = vsel %vm1074_vm4, %v3465_v55, %v8695_v9  ;;  %v15745_v55 = vld [vmem:[#allocation59_spill] sm:$0xff] }
 0x3e1   : > { %v8740_v29 = vunpack.i.h.bf16 %v15739_v2  ;;  %v8739_v6 = vunpack.i.l.bf16 %v15739_v2  ;;  %v15742_v25 = vpack.i.bf16 %v15740_v35, %v15741_v40  ;;  %v12706_v15 = vpop.permute.xlu0 %9042  ;;  %v9261_v8 = vpack.i.bf16 %v3513_v48, %v3512_v21  ;;  %v15746_v9 = vld [vmem:[#allocation151_spill] sm:$0xff]  ;;  %v12722_v48 = vpop.permute.xlu1 %9032 }
 0x3e2   : > { %15743 = vst [vmem:[#allocation88_spill] sm:$0xff] %v12706_v15  ;;  %v12711_v30 = vsel %vm1074_vm4, %v3470_v56, %v8709_v61  ;;  %v8744_v22 = vunpack.i.l.bf16 %v15745_v55  ;;  %v12715_v4 = vsel %vm1074_vm4, %v3471_v58, %v8710_v11  ;;  %v3486_v13 = vsel %vm1074_vm4, %v15746_v9, %v8669_v44  ;;  %v15750_v44 = vld [vmem:[#allocation215_spill] sm:$0xff]  ;;  %v3545_v11 = vld [vmem:[#allocation2 + $0x78] sm:$0xff] }
 0x3e3   : > { %9242 = vrot.lane.b32.xlu1 %v15742_v25, %s9940_s15  ;;  %v3487_v32 = vsel %vm1074_vm4, %v15747_v31, %v8670_v36  ;;  %v8745_v21 = vunpack.i.h.bf16 %v15745_v55  ;;  %15748 = vst [vmem:[#allocation158_spill] sm:$0xff] %v12722_v48  ;;  %v3483_v61 = vsel %vm1074_vm4, %v12537_v23, %v8660_v47  ;;  %v3482_v52 = vsel %vm1074_vm4, %v12542_v39, %v8659_v24  ;;  %v15752_v47 = vld [vmem:[#allocation63_spill] sm:$0xff]  ;;  %v15753_v25 = vld [vmem:[#allocation65_spill] sm:$0xff] }
 0x3e4   : > { %v8684_v36 = vunpack.i.l.bf16 %v15750_v44  ;;  %v3514_v2 = vsel %vm1107_vm5, %v3482_v52, %v8739_v6  ;;  %v3515_v35 = vsel %vm1107_vm5, %v3483_v61, %v8740_v29  ;;  %v12739_v23 = vsel %vm1107_vm5, %v12624_v16, %v8744_v22  ;;  %v3546_v9 = vld [vmem:[#allocation2 + $0x80] sm:$0xff]  ;;  %v15754_v29 = vld [vmem:[#allocation82_spill] sm:$0xff]  ;;  %v15755_v52 = vld [vmem:[#allocation216_spill] sm:$0xff] }
 0x3e5   : > { %9262 = vrot.lane.b32.xlu2 %v9261_v8, %s9941_s16  ;;  %v12735_v40 = vpop.permute.xlu2 %9097  ;;  %v8750_v39 = vunpack.i.h.bf16 %v15752_v47  ;;  %v8749_v24 = vunpack.i.l.bf16 %v15752_v47  ;;  %v8815_v8 = vunpack.i.h.bf16 %v15753_v25  ;;  %v12746_v55 = vsel %vm1107_vm5, %v12627_v42, %v8745_v21  ;;  %v3543_v56 = vld [vmem:[#allocation2 + $0x60] sm:$0xff]  ;;  %v3544_v47 = vld [vmem:[#allocation2 + $0x68] sm:$0xff]  ;;  %v15759_v16 = vld [vmem:[#allocation137_spill] sm:$0xff] }
 0x3e6   : > { %15751 = vst [vmem:[#allocation157_spill] sm:$0xff] %v12735_v40  ;;  %v8814_v6 = vunpack.i.l.bf16 %v15753_v25  ;;  %v8810_v31 = vunpack.i.h.bf16 %v15754_v29  ;;  %v8809_v61 = vunpack.i.l.bf16 %v15754_v29  ;;  %v8890_v59 = vunpack.i.h.bf16 %v15756_v46  ;;  %v15757_v21 = vld [vmem:[#allocation143_spill] sm:$0xff]  ;;  %v15758_v29 = vld [vmem:[#allocation138_spill] sm:$0xff] }
 0x3e7   : > { %v8889_v14 = vunpack.i.l.bf16 %v15756_v46  ;;  %v12757_v42 = vsel %vm1074_vm4, %v12512_v63, %v8684_v36  ;;  %v8970_v25 = vunpack.i.h.bf16 %v15757_v21  ;;  %v8969_v15 = vunpack.i.l.bf16 %v15757_v21 }
 0x3e8   : > { %v15760_v48 = vpack.i.bf16 %v15758_v29, %v15759_v16  ;;  %v9276_v58 = vpack.i.bf16 %v3515_v35, %v3514_v2  ;;  %v12768_v10 = vsel %vm1107_vm5, %v3486_v13, %v8749_v24  ;;  %v12771_v46 = vsel %vm1107_vm5, %v3487_v32, %v8750_v39  ;;  %v15761_v16 = vld [vmem:[#allocation94_spill] sm:$0xff] }
 0x3e9   : > { %v12765_v22 = vpop.permute.xlu0 %9057  ;;  %v4218_v63 = vsel %vm256_vm0, %v3546_v9, %v8815_v8  ;;  %v4217_v21 = vsel %vm256_vm0, %v3545_v11, %v8814_v6  ;;  %v4216_v20 = vsel %vm256_vm0, %v3544_v47, %v8810_v31  ;;  %v8825_v29 = vunpack.i.h.bf16 %v15761_v16  ;;  %v9048_v2 = vpop.permute.xlu1 %9047  ;;  %v15762_v8 = vld [vmem:[#allocation105_spill] sm:$0xff] }
 0x3ea   : > { %v4248_v32 = vsel %vm1041_vm3, %v4216_v20, %v8890_v59  ;;  %v9050_v35 = vunpack.i.h.bf16 %v9048_v2  ;;  %v9049_v39 = vunpack.i.l.bf16 %v9048_v2  ;;  %v8824_v24 = vunpack.i.l.bf16 %v15761_v16  ;;  %v15764_v31 = vld [vmem:[#allocation113_spill] sm:$0xff]  ;;  %v3549_v59 = vld [vmem:[#allocation2 + $0xa8] sm:$0xff] }
 0x3eb   : > { %9257 = vrot.lane.b32.xlu1 %v15760_v48, %s9940_s15  ;;  %v4215_v48 = vsel %vm256_vm0, %v3543_v56, %v8809_v61  ;;  %v8905_v9 = vunpack.i.h.bf16 %v15762_v8  ;;  %v4280_v6 = vsel %vm1074_vm4, %v4248_v32, %v8970_v25  ;;  %v8895_v61 = vunpack.i.h.bf16 %v15764_v31  ;;  %v3550_v47 = vld [vmem:[#allocation2 + $0xb0] sm:$0xff]  ;;  %v15766_v25 = vld [vmem:[#allocation67_spill] sm:$0xff] }
 0x3ec   : > { %v4247_v13 = vsel %vm1041_vm3, %v4215_v48, %v8889_v14  ;;  %v4312_v20 = vsel %vm1107_vm5, %v4280_v6, %v9050_v35  ;;  %v8904_v48 = vunpack.i.l.bf16 %v15762_v8  ;;  %v15765_v16 = vld [vmem:[#allocation149_spill] sm:$0xff]  ;;  %v8830_v32 = vunpack.i.h.bf16 %v15766_v25 }
 0x3ed   : > { %9277 = vrot.lane.b32.xlu2 %v9276_v58, %s9941_s16  ;;  %v4279_v11 = vsel %vm1074_vm4, %v4247_v13, %v8969_v15  ;;  %v12787_v56 = vpop.permute.xlu2 %9112  ;;  %v8894_v58 = vunpack.i.l.bf16 %v15764_v31  ;;  %v8975_v2 = vunpack.i.h.bf16 %v15765_v16  ;;  %v8974_v15 = vunpack.i.l.bf16 %v15765_v16  ;;  %v15768_v6 = vld [vmem:[#allocation145_spill] sm:$0xff] }
 0x3ee   : > { %15763 = vst [vmem:[#allocation161_spill] sm:$0xff] %v12787_v56  ;;  %v4311_v14 = vsel %vm1107_vm5, %v4279_v11, %v9049_v39  ;;  %v8829_v36 = vunpack.i.l.bf16 %v15766_v25  ;;  %v9055_v56 = vunpack.i.h.bf16 %v12527_v7  ;;  %v9054_v31 = vunpack.i.l.bf16 %v12527_v7  ;;  %v15767_v39 = vld [vmem:[#allocation83_spill] sm:$0xff] }
 0x3ef   : > { %v9251_v13 = vpack.i.bf16 %v4312_v20, %v4311_v14  ;;  %v8820_v11 = vunpack.i.h.bf16 %v15767_v39  ;;  %v8819_v35 = vunpack.i.l.bf16 %v15767_v39  ;;  %v8985_v17 = vunpack.i.h.bf16 %v15768_v6  ;;  %v15769_v14 = vld [vmem:[#allocation124_spill] sm:$0xff]  ;;  %v15770_v20 = vld [vmem:[#allocation123_spill] sm:$0xff] }
 0x3f0   : > { %v8984_v8 = vunpack.i.l.bf16 %v15768_v6  ;;  %v15771_v16 = vpack.i.bf16 %v15769_v14, %v15770_v20  ;;  %v4222_v7 = vsel %vm256_vm0, %v3550_v47, %v8825_v29  ;;  %v4221_v40 = vsel %vm256_vm0, %v3549_v59, %v8824_v24  ;;  %v15772_v24 = vld [vmem:[#allocation116_spill] sm:$0xff] }
 0x3f1   : > { %9252 = vrot.lane.b32.xlu0 %v9251_v13, %s9942_s17  ;;  %v12809_v25 = vpop.permute.xlu0 %9072  ;;  %v4250_v39 = vsel %vm1041_vm3, %v4218_v63, %v8895_v61  ;;  %v4249_v5 = vsel %vm1041_vm3, %v4217_v21, %v8894_v58  ;;  %v4253_v6 = vsel %vm1041_vm3, %v4221_v40, %v8904_v48  ;;  %v4254_v1 = vsel %vm1041_vm3, %v4222_v7, %v8905_v9  ;;  %v9063_v14 = vpop.permute.xlu1 %9062  ;;  %v3547_v61 = vld [vmem:[#allocation2 + $0x90] sm:$0xff]  ;;  %v3548_v58 = vld [vmem:[#allocation2 + $0x98] sm:$0xff] }
 0x3f2   : > { %v4282_v13 = vsel %vm1074_vm4, %v4250_v39, %v8975_v2  ;;  %v4281_v0 = vsel %vm1074_vm4, %v4249_v5, %v8974_v15  ;;  %v9065_v29 = vunpack.i.h.bf16 %v9063_v14  ;;  %v9064_v47 = vunpack.i.l.bf16 %v9063_v14  ;;  %v15773_v5 = vld [vmem:[#allocation117_spill] sm:$0xff]  ;;  %v3551_v15 = vld [vmem:[#allocation2 + $0xc0] sm:$0xff] }
 0x3f3   : > { %9272 = vrot.lane.b32.xlu1 %v15771_v16, %s9940_s15  ;;  %v4313_v20 = vsel %vm1107_vm5, %v4281_v0, %v9054_v31  ;;  %v4314_v16 = vsel %vm1107_vm5, %v4282_v13, %v9055_v56  ;;  %v8910_v59 = vunpack.i.h.bf16 %v15772_v24  ;;  %v8909_v63 = vunpack.i.l.bf16 %v15772_v24  ;;  %v3552_v31 = vld [vmem:[#allocation2 + $0xc8] sm:$0xff]  ;;  %v15774_v7 = vld [vmem:[#allocation121_spill] sm:$0xff] }
 0x3f4   : > { %v4285_v21 = vsel %vm1074_vm4, %v4253_v6, %v8984_v8  ;;  %v4286_v40 = vsel %vm1074_vm4, %v4254_v1, %v8985_v17  ;;  %v8900_v48 = vunpack.i.h.bf16 %v15773_v5  ;;  %v8899_v0 = vunpack.i.l.bf16 %v15773_v5 }
 0x3f5   : > { %v12825_v9 = vpop.permute.xlu2 %9127  ;;  %v4317_v56 = vsel %vm1107_vm5, %v4285_v21, %v9064_v47  ;;  %v4318_v2 = vsel %vm1107_vm5, %v4286_v40, %v9065_v29  ;;  %v8980_v39 = vunpack.i.h.bf16 %v15774_v7  ;;  %v8979_v8 = vunpack.i.l.bf16 %v15774_v7  ;;  %v15778_v7 = vld [vmem:[#allocation224_spill] sm:$0xff] }
 0x3f6   : > { %v9266_v6 = vpack.i.bf16 %v4314_v16, %v4313_v20  ;;  %v9291_v1 = vpack.i.bf16 %v4318_v2, %v4317_v56  ;;  %v8990_v17 = vunpack.i.h.bf16 %v12505_v45  ;;  %v8989_v13 = vunpack.i.l.bf16 %v12505_v45 }
 0x3f7   : > { %v9060_v14 = vunpack.i.h.bf16 %v12765_v22  ;;  %v9059_v24 = vunpack.i.l.bf16 %v12765_v22  ;;  %v4220_v47 = vsel %vm256_vm0, %v3548_v58, %v8820_v11  ;;  %v4219_v29 = vsel %vm256_vm0, %v3547_v61, %v8819_v35 }
 0x3f8   : > { %v9070_v21 = vunpack.i.h.bf16 %v12607_v18  ;;  %v9069_v40 = vunpack.i.l.bf16 %v12607_v18  ;;  %v15775_v20 = vpack.i.bf16 %v12746_v55, %v12739_v23  ;;  %v4224_v16 = vsel %vm256_vm0, %v3552_v31, %v8830_v32  ;;  %9292 = vrot.lane.b32.xlu2 %v9291_v1, %s9942_s17 }
 0x3f9   : > { %9267 = vrot.lane.b32.xlu0 %v9266_v6, %s9942_s17  ;;  %v12846_v45 = vpop.permute.xlu0 %9087  ;;  %v4223_v22 = vsel %vm256_vm0, %v3551_v15, %v8829_v36  ;;  %v4252_v11 = vsel %vm1041_vm3, %v4220_v47, %v8900_v48  ;;  %v4251_v35 = vsel %vm1041_vm3, %v4219_v29, %v8899_v0  ;;  %v4256_v18 = vsel %vm1041_vm3, %v4224_v16, %v8910_v59  ;;  %v12857_v55 = vpop.permute.xlu1 %9077  ;;  %v15779_v6 = vld [vmem:[#allocation89_spill] sm:$0xff] }
 0x3fa   : > { %v4255_v61 = vsel %vm1041_vm3, %v4223_v22, %v8909_v63  ;;  %v4283_v58 = vsel %vm1074_vm4, %v4251_v35, %v8979_v8  ;;  %v4284_v23 = vsel %vm1074_vm4, %v4252_v11, %v8980_v39  ;;  %v4288_v32 = vsel %vm1074_vm4, %v4256_v18, %v8990_v17  ;;  %v15777_v63 = vld [vmem:[#allocation220_spill] sm:$0xff]  ;;  %v3553_v17 = vld [vmem:[#allocation2 + $0xd8] sm:$0xff] }
 0x3fb   : > { %9287 = vrot.lane.b32.xlu1 %v15775_v20, %s9941_s16  ;;  %v4287_v36 = vsel %vm1074_vm4, %v4255_v61, %v8989_v13  ;;  %v4315_v5 = vsel %vm1107_vm5, %v4283_v58, %v9059_v24  ;;  %v4316_v48 = vsel %vm1107_vm5, %v4284_v23, %v9060_v14  ;;  %v15776_v0 = vunpack.i.h.bf16 %v15750_v44  ;;  %v3554_v13 = vld [vmem:[#allocation2 + $0xe0] sm:$0xff] }
 0x3fc   : > { %v8700_v56 = vunpack.i.h.bf16 %v15777_v63  ;;  %v4319_v2 = vsel %vm1107_vm5, %v4287_v36, %v9069_v40  ;;  %v4320_v15 = vsel %vm1107_vm5, %v4288_v32, %v9070_v21  ;;  %v8755_v39 = vunpack.i.h.bf16 %v15778_v7  ;;  %v15781_v40 = vld [vmem:[#allocation126_spill] sm:$0xff]  ;;  %v15784_v23 = vld [vmem:[#allocation223_spill] sm:$0xff] }
 0x3fd   : > { %v12867_v59 = vsel %vm1074_vm4, %v12515_v26, %v15776_v0  ;;  %v12872_v31 = vpop.permute.xlu2 %9142  ;;  %v8754_v8 = vunpack.i.l.bf16 %v15778_v7  ;;  %v8835_v1 = vunpack.i.h.bf16 %v15779_v6  ;;  %v8834_v44 = vunpack.i.l.bf16 %v15779_v6  ;;  %v15780_v26 = vld [vmem:[#allocation120_spill] sm:$0xff] }
 0x3fe   : > { %v8915_v14 = vunpack.i.h.bf16 %v15780_v26  ;;  %v8914_v24 = vunpack.i.l.bf16 %v15780_v26  ;;  %v9281_v47 = vpack.i.bf16 %v4316_v48, %v4315_v5  ;;  %v9301_v29 = vpack.i.bf16 %v12771_v46, %v12768_v10  ;;  %v3555_v26 = vld [vmem:[#allocation2 + $0xf0] sm:$0xff] }
 0x3ff   : > { %v8699_v21 = vunpack.i.l.bf16 %v15777_v63  ;;  %v8995_v20 = vunpack.i.h.bf16 %v15781_v40  ;;  %v8994_v16 = vunpack.i.l.bf16 %v15781_v40  ;;  %v9306_v22 = vpack.i.bf16 %v4320_v15, %v4319_v2 }
 0x400   : > { %v15782_v11 = vunpack.i.h.bf16 %v15755_v52  ;;  %v15783_v18 = vunpack.i.l.bf16 %v15755_v52  ;;  %v9075_v58 = vunpack.i.h.bf16 %v12809_v25  ;;  %v9074_v10 = vunpack.i.l.bf16 %v12809_v25 }
 0x401   : > { %9282 = vrot.lane.b32.xlu0 %v9281_v47, %s9942_s17  ;;  %v12897_v46 = vpop.permute.xlu0 %9102  ;;  %v8690_v32 = vunpack.i.h.bf16 %v15784_v23  ;;  %v8689_v36 = vunpack.i.l.bf16 %v15784_v23  ;;  %v4225_v52 = vsel %vm256_vm0, %v3553_v17, %v8834_v44  ;;  %9307 = vrot.lane.b32.xlu2 %v9306_v22, %s9942_s17  ;;  %v12908_v0 = vpop.permute.xlu1 %9092  ;;  %v12912_v63 = vsel %vm1074_vm4, %v12530_v50, %v8699_v21  ;;  %v15786_v50 = vld [vmem:[#allocation227_spill] sm:$0xff]  ;;  %v15789_v22 = vld [vmem:[#allocation229_spill] sm:$0xff] }
 0x402   : > { %v3489_v35 = vsel %vm1074_vm4, %v12578_v27, %v15782_v11  ;;  %v3488_v61 = vsel %vm1074_vm4, %v12582_v53, %v15783_v18  ;;  %v4226_v27 = vsel %vm256_vm0, %v3554_v13, %v8835_v1  ;;  %v4257_v48 = vsel %vm1041_vm3, %v4225_v52, %v8914_v24  ;;  %v15790_v52 = vld [vmem:[#allocation135_spill] sm:$0xff] }
 0x403   : > { %9302 = vrot.lane.b32.xlu1 %v9301_v29, %s9941_s16  ;;  %v3520_v53 = vsel %vm1107_vm5, %v3488_v61, %v8754_v8  ;;  %v3521_v25 = vsel %vm1107_vm5, %v3489_v35, %v8755_v39  ;;  %v4258_v5 = vsel %vm1041_vm3, %v4226_v27, %v8915_v14  ;;  %v12916_v2 = vsel %vm1074_vm4, %v12533_v34, %v8700_v56  ;;  %v15785_v8 = vld [vmem:[#allocation102_spill] sm:$0xff]  ;;  %v15787_v34 = vld [vmem:[#allocation108_spill] sm:$0xff] }
 0x404   : > { %v4289_v15 = vsel %vm1074_vm4, %v4257_v48, %v8994_v16  ;;  %v4290_v7 = vsel %vm1074_vm4, %v4258_v5, %v8995_v20  ;;  %v8840_v39 = vunpack.i.h.bf16 %v15785_v8  ;;  %v8839_v6 = vunpack.i.l.bf16 %v15785_v8  ;;  %v3556_v14 = vld [vmem:[#allocation2 + $0xf8] sm:$0xff]  ;;  %v15788_v29 = vld [vmem:[#allocation228_spill] sm:$0xff] }
 0x405   : > { %v4321_v1 = vsel %vm1107_vm5, %v4289_v15, %v9074_v10  ;;  %v4322_v44 = vsel %vm1107_vm5, %v4290_v7, %v9075_v58  ;;  %v12924_v17 = vpop.permute.xlu2 %9157  ;;  %v8715_v13 = vunpack.i.h.bf16 %v15786_v50  ;;  %v8920_v56 = vunpack.i.h.bf16 %v15787_v34 }
 0x406   : > { %v8919_v24 = vunpack.i.l.bf16 %v15787_v34  ;;  %v9316_v47 = vpack.i.bf16 %v3521_v25, %v3520_v53  ;;  %v8705_v21 = vunpack.i.h.bf16 %v15788_v29  ;;  %v8714_v40 = vunpack.i.l.bf16 %v15786_v50  ;;  %v15791_v53 = vld [vmem:[#allocation134_spill] sm:$0xff] }
 0x407   : > { %v9000_v20 = vunpack.i.h.bf16 %v12491_v51  ;;  %v8999_v16 = vunpack.i.l.bf16 %v12491_v51  ;;  %v8769_v11 = vunpack.i.l.bf16 %v15789_v22  ;;  %v9080_v35 = vunpack.i.h.bf16 %v12857_v55  ;;  %v15794_v50 = vld [vmem:[#allocation70_spill] sm:$0xff] }
 0x408   : > { %v9079_v18 = vunpack.i.l.bf16 %v12857_v55  ;;  %v9321_v61 = vpack.i.bf16 %v4322_v44, %v4321_v1  ;;  %v3495_v58 = vsel %vm1074_vm4, %v12601_v3, %v8690_v32  ;;  %v8770_v10 = vunpack.i.h.bf16 %v15789_v22  ;;  %v15793_v1 = vld [vmem:[#allocation231_spill] sm:$0xff]  ;;  %v15795_v34 = vld [vmem:[#allocation62_spill] sm:$0xff] }
 0x409   : > { %v4228_v23 = vsel %vm256_vm0, %v3556_v14, %v8840_v39  ;;  %v4227_v27 = vsel %vm256_vm0, %v3555_v26, %v8839_v6  ;;  %v15792_v51 = vpack.i.bf16 %v15790_v52, %v15791_v53  ;;  %v12946_v25 = vpop.permute.xlu0 %9117  ;;  %v3494_v55 = vsel %vm1074_vm4, %v12605_v60, %v8689_v36  ;;  %v12964_v36 = vpop.permute.xlu1 %9107  ;;  %v15798_v53 = vld [vmem:[#allocation140_spill] sm:$0xff] }
 0x40a   : > { %v8704_v3 = vunpack.i.l.bf16 %v15788_v29  ;;  %v4259_v32 = vsel %vm1041_vm3, %v4227_v27, %v8919_v24  ;;  %v4260_v5 = vsel %vm1041_vm3, %v4228_v23, %v8920_v56  ;;  %9322 = vrot.lane.b32.xlu2 %v9321_v61, %s9942_s17  ;;  %v12956_v48 = vsel %vm1074_vm4, %v12568_v28, %v8714_v40  ;;  %v3557_v24 = vld [vmem:[#allocation2 + $0x108] sm:$0xff]  ;;  %v15796_v29 = vld [vmem:[#allocation119_spill] sm:$0xff]  ;;  %v15797_v23 = vld [vmem:[#allocation58_spill] sm:$0xff] }
 0x40b   : > { %9297 = vrot.lane.b32.xlu0 %v15792_v51, %s9940_s15  ;;  %9317 = vrot.lane.b32.xlu1 %v9316_v47, %s9941_s16  ;;  %v12960_v15 = vsel %vm1074_vm4, %v12574_v19, %v8715_v13  ;;  %v4291_v7 = vsel %vm1074_vm4, %v4259_v32, %v8999_v16  ;;  %v4292_v60 = vsel %vm1074_vm4, %v4260_v5, %v9000_v20  ;;  %v8720_v44 = vunpack.i.h.bf16 %v15793_v1  ;;  %v3558_v47 = vld [vmem:[#allocation2 + $0x110] sm:$0xff]  ;;  %v15801_v5 = vld [vmem:[#allocation127_spill] sm:$0xff] }
 0x40c   : > { %v12968_v8 = vsel %vm1074_vm4, %v12642_v49, %v8705_v21  ;;  %v12971_v39 = vsel %vm1107_vm5, %v3494_v55, %v8769_v11  ;;  %v4323_v28 = vsel %vm1107_vm5, %v4291_v7, %v9079_v18  ;;  %v4324_v6 = vsel %vm1107_vm5, %v4292_v60, %v9080_v35  ;;  %v15802_v7 = vld [vmem:[#allocation128_spill] sm:$0xff] }
 0x40d   : > { %v12976_v19 = vsel %vm1107_vm5, %v3495_v58, %v8770_v10  ;;  %v8845_v13 = vunpack.i.h.bf16 %v15794_v50  ;;  %v8844_v26 = vunpack.i.l.bf16 %v15794_v50  ;;  %v12981_v14 = vpop.permute.xlu2 %9172  ;;  %v8719_v49 = vunpack.i.l.bf16 %v15793_v1  ;;  %v15804_v50 = vld [vmem:[#allocation64_spill] sm:$0xff] }
 0x40e   : > { %v8760_v56 = vunpack.i.h.bf16 %v15795_v34  ;;  %v8925_v21 = vunpack.i.h.bf16 %v15796_v29  ;;  %v8924_v40 = vunpack.i.l.bf16 %v15796_v29  ;;  %v8759_v20 = vunpack.i.l.bf16 %v15795_v34 }
 0x40f   : > { %v9005_v16 = vunpack.i.h.bf16 %v12585_v62  ;;  %v9004_v22 = vunpack.i.l.bf16 %v12585_v62  ;;  %v9331_v11 = vpack.i.bf16 %v4324_v6, %v4323_v28  ;;  %v3500_v35 = vsel %vm1074_vm4, %v12653_v43, %v8704_v3  ;;  %v15799_v43 = vld [vmem:[#allocation139_spill] sm:$0xff] }
 0x410   : > { %v9085_v18 = vunpack.i.h.bf16 %v12676_v57  ;;  %v9084_v61 = vunpack.i.l.bf16 %v12676_v57  ;;  %v9356_v58 = vpack.i.bf16 %v12976_v19, %v12971_v39  ;;  %v12998_v10 = vsel %vm1074_vm4, %v12669_v37, %v8720_v44 }
 0x411   : > { %v8784_v27 = vunpack.i.l.bf16 %v15797_v23  ;;  %v4230_v52 = vsel %vm256_vm0, %v3558_v47, %v8845_v13  ;;  %v4229_v62 = vsel %vm256_vm0, %v3557_v24, %v8844_v26  ;;  %v15800_v51 = vpack.i.bf16 %v15798_v53, %v15799_v43  ;;  %v13008_v57 = vpop.permute.xlu0 %9132  ;;  %v13025_v44 = vpop.permute.xlu1 %9122 }
 0x412   : > { %v3506_v55 = vsel %vm1074_vm4, %v12680_v41, %v8719_v49  ;;  %v8785_v37 = vunpack.i.h.bf16 %v15797_v23  ;;  %v4262_v3 = vsel %vm1041_vm3, %v4230_v52, %v8925_v21  ;;  %v4261_v32 = vsel %vm1041_vm3, %v4229_v62, %v8924_v40  ;;  %v15807_v40 = vld [vmem:[#allocation66_spill] sm:$0xff] }
 0x413   : > { %9312 = vrot.lane.b32.xlu0 %v15800_v51, %s9940_s15  ;;  %9332 = vrot.lane.b32.xlu1 %v9331_v11, %s9942_s17  ;;  %v15803_v60 = vpack.i.bf16 %v15801_v5, %v15802_v7  ;;  %v3522_v28 = vsel %vm1107_vm5, %v12660_v54, %v8759_v20  ;;  %v3523_v6 = vsel %vm1107_vm5, %v12663_v12, %v8760_v56  ;;  %v8775_v13 = vunpack.i.h.bf16 %v15804_v50  ;;  %v15805_v54 = vld [vmem:[#allocation61_spill] sm:$0xff]  ;;  %v15806_v12 = vld [vmem:[#allocation103_spill] sm:$0xff]  ;;  %v15810_v5 = vld [vmem:[#allocation68_spill] sm:$0xff] }
 0x414   : > { %v4294_v1 = vsel %vm1074_vm4, %v4262_v3, %v9005_v16  ;;  %v4293_v41 = vsel %vm1074_vm4, %v4261_v32, %v9004_v22  ;;  %v8774_v26 = vunpack.i.l.bf16 %v15804_v50  ;;  %v13032_v24 = vsel %vm1107_vm5, %v3500_v35, %v8784_v27  ;;  %v3559_v16 = vld [vmem:[#allocation2 + $0x120] sm:$0xff]  ;;  %v3560_v22 = vld [vmem:[#allocation2 + $0x128] sm:$0xff]  ;;  %v15808_v11 = vld [vmem:[#allocation125_spill] sm:$0xff] }
 0x415   : > { %9337 = vrot.lane.b32.xlu2 %v15803_v60, %s9940_s15  ;;  %v4325_v49 = vsel %vm1107_vm5, %v4293_v41, %v9084_v61  ;;  %v4326_v34 = vsel %vm1107_vm5, %v4294_v1, %v9085_v18  ;;  %v8799_v47 = vunpack.i.l.bf16 %v15805_v54  ;;  %v8850_v56 = vunpack.i.h.bf16 %v15806_v12  ;;  %v13037_v21 = vpop.permute.xlu2 %9187  ;;  %v15809_v27 = vld [vmem:[#allocation133_spill] sm:$0xff]  ;;  %v15811_v50 = vld [vmem:[#allocation142_spill] sm:$0xff] }
 0x416   : > { %v8849_v29 = vunpack.i.l.bf16 %v15806_v12  ;;  %v8765_v20 = vunpack.i.h.bf16 %v15807_v40  ;;  %v8930_v23 = vunpack.i.h.bf16 %v15808_v11  ;;  %v8929_v61 = vunpack.i.l.bf16 %v15808_v11 }
 0x417   : > { %v9326_v18 = vpack.i.bf16 %v3523_v6, %v3522_v28  ;;  %v8764_v35 = vunpack.i.l.bf16 %v15807_v40  ;;  %v9010_v52 = vunpack.i.h.bf16 %v15809_v27  ;;  %v9009_v62 = vunpack.i.l.bf16 %v15809_v27 }
 0x418   : > { %v9346_v53 = vpack.i.bf16 %v4326_v34, %v4325_v49  ;;  %v3528_v43 = vsel %vm1107_vm5, %v12693_v33, %v8774_v26  ;;  %v3529_v51 = vsel %vm1107_vm5, %v12698_v38, %v8775_v13  ;;  %v9090_v3 = vunpack.i.h.bf16 %v12846_v45  ;;  %v15812_v13 = vld [vmem:[#allocation141_spill] sm:$0xff] }
 0x419   : > { %v9089_v32 = vunpack.i.l.bf16 %v12846_v45  ;;  %v8790_v7 = vunpack.i.h.bf16 %v15810_v5  ;;  %v8789_v60 = vunpack.i.l.bf16 %v15810_v5  ;;  %v4232_v28 = vsel %vm256_vm0, %v3560_v22, %v8850_v56  ;;  %v13057_v33 = vpop.permute.xlu0 %9147  ;;  %v15814_v22 = vld [vmem:[#allocation74_spill] sm:$0xff]  ;;  %v15818_v5 = vld [vmem:[#allocation69_spill] sm:$0xff] }
 0x41a   : > { %v4231_v6 = vsel %vm256_vm0, %v3559_v16, %v8849_v29  ;;  %v13061_v38 = vsel %vm1107_vm5, %v12968_v8, %v8785_v37  ;;  %v8800_v45 = vunpack.i.h.bf16 %v15805_v54  ;;  %v4264_v1 = vsel %vm1041_vm3, %v4232_v28, %v8930_v23  ;;  %v13075_v8 = vpop.permute.xlu1 %9137 }
 0x41b   : > { %9327 = vrot.lane.b32.xlu0 %v9326_v18, %s9941_s16  ;;  %9347 = vrot.lane.b32.xlu1 %v9346_v53, %s9942_s17  ;;  %v4263_v41 = vsel %vm1041_vm3, %v4231_v6, %v8929_v61  ;;  %v15813_v26 = vpack.i.bf16 %v15811_v50, %v15812_v13  ;;  %v13071_v49 = vsel %vm1107_vm5, %v3506_v55, %v8799_v47  ;;  %v8795_v11 = vunpack.i.h.bf16 %v15814_v22  ;;  %v3563_v61 = vld [vmem:[#allocation2 + $0x150] sm:$0xff]  ;;  %v3568_v53 = vld [vmem:[#allocation2 + $0x188] sm:$0xff] }
 0x41c   : > { %v4295_v34 = vsel %vm1074_vm4, %v4263_v41, %v9009_v62  ;;  %v4296_v12 = vsel %vm1074_vm4, %v4264_v1, %v9010_v52  ;;  %v9366_v37 = vpack.i.bf16 %v3529_v51, %v3528_v43  ;;  %v3524_v56 = vsel %vm1107_vm5, %v12757_v42, %v8764_v35  ;;  %v15816_v35 = vld [vmem:[#allocation109_spill] sm:$0xff]  ;;  %v3564_v52 = vld [vmem:[#allocation2 + $0x158] sm:$0xff]  ;;  %v3567_v62 = vld [vmem:[#allocation2 + $0x180] sm:$0xff] }
 0x41d   : > { %9352 = vrot.lane.b32.xlu2 %v15813_v26, %s9940_s15  ;;  %v3525_v29 = vsel %vm1107_vm5, %v12867_v59, %v8765_v20  ;;  %v4327_v40 = vsel %vm1107_vm5, %v4295_v34, %v9089_v32  ;;  %v4328_v16 = vsel %vm1107_vm5, %v4296_v12, %v9090_v3  ;;  %v13085_v55 = vsel %vm1107_vm5, %v12711_v30, %v8789_v60  ;;  %v15815_v59 = vld [vmem:[#allocation75_spill] sm:$0xff]  ;;  %v15819_v60 = vld [vmem:[#allocation156_spill] sm:$0xff] }
 0x41e   : > { %v13089_v47 = vsel %vm1107_vm5, %v12715_v4, %v8790_v7  ;;  %v8794_v23 = vunpack.i.l.bf16 %v15814_v22  ;;  %v8860_v20 = vunpack.i.h.bf16 %v15815_v59  ;;  %v8859_v18 = vunpack.i.l.bf16 %v15815_v59  ;;  %v15817_v4 = vld [vmem:[#allocation115_spill] sm:$0xff]  ;;  %v3561_v22 = vld [vmem:[#allocation2 + $0x138] sm:$0xff] }
 0x41f   : > { %v13093_v42 = vpop.permute.xlu2 %9202  ;;  %v8870_v27 = vunpack.i.h.bf16 %v15816_v35  ;;  %v8869_v30 = vunpack.i.l.bf16 %v15816_v35  ;;  %v8950_v43 = vunpack.i.h.bf16 %v15817_v4  ;;  %v8949_v51 = vunpack.i.l.bf16 %v15817_v4 }
 0x420   : > { %v9341_v3 = vpack.i.bf16 %v3525_v29, %v3524_v56  ;;  %v9361_v32 = vpack.i.bf16 %v4328_v16, %v4327_v40  ;;  %v8779_v7 = vunpack.i.l.bf16 %v15818_v5  ;;  %v9030_v28 = vunpack.i.h.bf16 %v15819_v60 }
 0x421   : > { %v9029_v6 = vunpack.i.l.bf16 %v15819_v60  ;;  %v9376_v1 = vpack.i.bf16 %v13089_v47, %v13085_v55  ;;  %v13108_v41 = vsel %vm1107_vm5, %v12956_v48, %v8794_v23  ;;  %v13112_v50 = vsel %vm1107_vm5, %v12960_v15, %v8795_v11  ;;  %v13118_v34 = vpop.permute.xlu0 %9162  ;;  %v15820_v15 = vld [vmem:[#allocation106_spill] sm:$0xff]  ;;  %v3562_v11 = vld [vmem:[#allocation2 + $0x140] sm:$0xff]  ;;  %v15821_v23 = vld [vmem:[#allocation112_spill] sm:$0xff] }
 0x422   : > { %v9110_v13 = vunpack.i.h.bf16 %v12964_v36  ;;  %v9109_v26 = vunpack.i.l.bf16 %v12964_v36  ;;  %v4236_v12 = vsel %vm256_vm0, %v3564_v52, %v8860_v20  ;;  %v4235_v56 = vsel %vm256_vm0, %v3563_v61, %v8859_v18  ;;  %v9153_v47 = vpop.permute.xlu1 %9152 }
 0x423   : > { %9342 = vrot.lane.b32.xlu0 %v9341_v3, %s9941_s16  ;;  %9362 = vrot.lane.b32.xlu1 %v9361_v32, %s9942_s17  ;;  %v4240_v48 = vsel %vm256_vm0, %v3568_v53, %v8870_v27  ;;  %v4239_v29 = vsel %vm256_vm0, %v3567_v62, %v8869_v30  ;;  %v8855_v40 = vunpack.i.h.bf16 %v15820_v15  ;;  %v8854_v36 = vunpack.i.l.bf16 %v15820_v15  ;;  %v15823_v53 = vld [vmem:[#allocation154_spill] sm:$0xff] }
 0x424   : > { %v4271_v16 = vsel %vm1041_vm3, %v4239_v29, %v8949_v51  ;;  %v4272_v55 = vsel %vm1041_vm3, %v4240_v48, %v8950_v43  ;;  %v8935_v59 = vunpack.i.h.bf16 %v15821_v23  ;;  %v8934_v61 = vunpack.i.l.bf16 %v15821_v23  ;;  %v15824_v51 = vld [vmem:[#allocation90_spill] sm:$0xff] }
 0x425   : > { %9367 = vrot.lane.b32.xlu2 %v9366_v37, %s9941_s16  ;;  %v4303_v20 = vsel %vm1074_vm4, %v4271_v16, %v9029_v6  ;;  %v4304_v18 = vsel %vm1074_vm4, %v4272_v55, %v9030_v28  ;;  %v15822_v37 = vld [vmem:[#allocation122_spill] sm:$0xff]  ;;  %v9015_v4 = vunpack.i.h.bf16 %v15823_v53  ;;  %v9014_v43 = vunpack.i.l.bf16 %v15823_v53  ;;  %v15825_v6 = vld [vmem:[#allocation157_spill] sm:$0xff]  ;;  %v15828_v53 = vld [vmem:[#allocation219_spill] sm:$0xff] }
 0x426   : > { %v8940_v35 = vunpack.i.h.bf16 %v15822_v37  ;;  %v8939_v27 = vunpack.i.l.bf16 %v15822_v37  ;;  %v4335_v30 = vsel %vm1107_vm5, %v4303_v20, %v9109_v26  ;;  %v4336_v52 = vsel %vm1107_vm5, %v4304_v18, %v9110_v13 }
 0x427   : > { %v13137_v62 = vpop.permute.xlu2 %9217  ;;  %v9020_v3 = vunpack.i.h.bf16 %v15824_v51  ;;  %v9019_v32 = vunpack.i.l.bf16 %v15824_v51  ;;  %v4234_v60 = vsel %vm256_vm0, %v3562_v11, %v8855_v40  ;;  %v4233_v28 = vsel %vm256_vm0, %v3561_v22, %v8854_v36 }
 0x428   : > { %v9100_v48 = vunpack.i.h.bf16 %v15825_v6  ;;  %v9099_v26 = vunpack.i.l.bf16 %v15825_v6  ;;  %v4265_v13 = vsel %vm1041_vm3, %v4233_v28, %v8934_v61  ;;  %v9095_v29 = vunpack.i.h.bf16 %v12908_v0  ;;  %v15832_v28 = vld [vmem:[#allocation152_spill] sm:$0xff] }
 0x429   : > { %v9094_v15 = vunpack.i.l.bf16 %v12908_v0  ;;  %v9381_v16 = vpack.i.bf16 %v4336_v52, %v4335_v30  ;;  %v8780_v55 = vunpack.i.h.bf16 %v15818_v5  ;;  %v4266_v23 = vsel %vm1041_vm3, %v4234_v60, %v8935_v59  ;;  %v13159_v36 = vpop.permute.xlu0 %9177  ;;  %v15827_v30 = vld [vmem:[#allocation218_spill] sm:$0xff] }
 0x42a   : > { %v4268_v20 = vsel %vm1041_vm3, %v4236_v12, %v8940_v35  ;;  %v4267_v40 = vsel %vm1041_vm3, %v4235_v56, %v8939_v27  ;;  %v4297_v0 = vsel %vm1074_vm4, %v4265_v13, %v9014_v43  ;;  %v4298_v22 = vsel %vm1074_vm4, %v4266_v23, %v9015_v4  ;;  %v15826_v35 = vld [vmem:[#allocation73_spill] sm:$0xff]  ;;  %v15829_v43 = vld [vmem:[#allocation87_spill] sm:$0xff] }
 0x42b   : > { %9357 = vrot.lane.b32.xlu0 %v9356_v58, %s9941_s16  ;;  %9377 = vrot.lane.b32.xlu1 %v9376_v1, %s9941_s16  ;;  %v4300_v11 = vsel %vm1074_vm4, %v4268_v20, %v9020_v3  ;;  %v4299_v59 = vsel %vm1074_vm4, %v4267_v40, %v9019_v32  ;;  %v9155_v39 = vunpack.i.h.bf16 %v9153_v47  ;;  %v9154_v19 = vunpack.i.l.bf16 %v9153_v47  ;;  %v13168_v58 = vpop.permute.xlu1 %9167  ;;  %v15836_v40 = vld [vmem:[#allocation211_spill] sm:$0xff] }
 0x42c   : > { %v4331_v12 = vsel %vm1107_vm5, %v4299_v59, %v9099_v26  ;;  %v4332_v56 = vsel %vm1107_vm5, %v4300_v11, %v9100_v48  ;;  %v13174_v1 = vsel %vm1107_vm5, %v12998_v10, %v8800_v45  ;;  %v13180_v61 = vsel %vm1107_vm5, %v12912_v63, %v8779_v7  ;;  %v15834_v26 = vld [vmem:[#allocation78_spill] sm:$0xff] }
 0x42d   : > { %9382 = vrot.lane.b32.xlu2 %v9381_v16, %s9942_s17  ;;  %v4329_v18 = vsel %vm1107_vm5, %v4297_v0, %v9094_v15  ;;  %v4330_v37 = vsel %vm1107_vm5, %v4298_v22, %v9095_v29  ;;  %v13186_v47 = vsel %vm1107_vm5, %v12916_v2, %v8780_v55  ;;  %v8805_v54 = vunpack.i.h.bf16 %v15826_v35  ;;  %v3569_v29 = vld [vmem:[#allocation2 + $0x198] sm:$0xff]  ;;  %v3570_v15 = vld [vmem:[#allocation2 + $0x1a0] sm:$0xff] }
 0x42e   : > { %v8804_v27 = vunpack.i.l.bf16 %v15826_v35  ;;  %v9396_v10 = vpack.i.bf16 %v13112_v50, %v13108_v41  ;;  %v9391_v5 = vpack.i.bf16 %v4332_v56, %v4331_v12  ;;  %v4866_v52 = vsel %vm4855_vm6, %v15827_v30, %v9154_v19  ;;  %v15830_v50 = vld [vmem:[#allocation203_spill] sm:$0xff]  ;;  %v3565_v12 = vld [vmem:[#allocation2 + $0x168] sm:$0xff]  ;;  %v3566_v56 = vld [vmem:[#allocation2 + $0x170] sm:$0xff] }
 0x42f   : > { %v9233_v45 = vpop.permute.xlu2 %9232  ;;  %v4867_v4 = vsel %vm4855_vm6, %v15828_v53, %v9155_v39  ;;  %v9371_v2 = vpack.i.bf16 %v4330_v37, %v4329_v18  ;;  %v8875_v51 = vunpack.i.h.bf16 %v15829_v43  ;;  %v8874_v3 = vunpack.i.l.bf16 %v15829_v43  ;;  %v15835_v16 = vld [vmem:[#allocation107_spill] sm:$0xff]  ;;  %v15839_v39 = vld [vmem:[#allocation110_spill] sm:$0xff] }
 0x430   : > { %v9235_v63 = vunpack.i.h.bf16 %v9233_v45  ;;  %v9234_v7 = vunpack.i.l.bf16 %v9233_v45  ;;  %v15831_v60 = vunpack.i.h.bf16 %v15830_v50  ;;  %v15833_v48 = vunpack.i.l.bf16 %v15830_v50  ;;  %v15840_v18 = vld [vmem:[#allocation147_spill] sm:$0xff]  ;;  %v15841_v37 = vld [vmem:[#allocation150_spill] sm:$0xff] }
 0x431   : > { %v8865_v55 = vunpack.i.h.bf16 %v15835_v16  ;;  %v8864_v23 = vunpack.i.l.bf16 %v15835_v16  ;;  %v15837_v0 = vunpack.i.l.bf16 %v15836_v40  ;;  %v15838_v11 = vunpack.i.h.bf16 %v15836_v40  ;;  %v15843_v50 = vld [vmem:[#allocation114_spill] sm:$0xff] }
 0x432   : > { %v13199_v32 = vsel %vm4888_vm7, %v4866_v52, %v9234_v7  ;;  %v13202_v41 = vsel %vm4888_vm7, %v4867_v4, %v9235_v63  ;;  %v3477_v6 = vsel %vm1041_vm3, %v15832_v28, %v15831_v60  ;;  %v3476_v13 = vsel %vm1041_vm3, %v15834_v26, %v15833_v48  ;;  %v3574_v48 = vld [vmem:[#allocation2 + $0x1d0] sm:$0xff]  ;;  %v15845_v26 = vld [vmem:[#allocation144_spill] sm:$0xff] }
 0x433   : > { %9372 = vrot.lane.b32.xlu0 %v9371_v2, %s9942_s17  ;;  %9392 = vrot.lane.b32.xlu1 %v9391_v5, %s9942_s17  ;;  %v13216_v20 = vpop.permute.xlu0 %9192  ;;  %v3508_v22 = vsel %vm1074_vm4, %v3476_v13, %v15837_v0  ;;  %v3509_v59 = vsel %vm1074_vm4, %v3477_v6, %v15838_v11  ;;  %v8880_v19 = vunpack.i.h.bf16 %v15839_v39  ;;  %v9411_v35 = vpack.i.bf16 %v15841_v37, %v15840_v18  ;;  %v3572_v5 = vld [vmem:[#allocation2 + $0x1b8] sm:$0xff]  ;;  %v13231_v63 = vpop.permute.xlu1 %9182  ;;  %v15847_v0 = vld [vmem:[#allocation148_spill] sm:$0xff] }
 0x434   : > { %v13229_v45 = vsel %vm1107_vm5, %v3508_v22, %v8804_v27  ;;  %v9386_v7 = vpack.i.bf16 %v13186_v47, %v13180_v61  ;;  %v9406_v30 = vpack.i.bf16 %v13061_v38, %v13032_v24  ;;  %v9421_v52 = vpack.i.bf16 %v13174_v1, %v13071_v49  ;;  %v3571_v47 = vld [vmem:[#allocation2 + $0x1b0] sm:$0xff]  ;;  %v15842_v24 = vld [vmem:[#allocation131_spill] sm:$0xff]  ;;  %v15848_v37 = vld [vmem:[#allocation118_spill] sm:$0xff] }
 0x435   : > { %9397 = vrot.lane.b32.xlu2 %v9396_v10, %s9941_s16  ;;  %v13240_v10 = vsel %vm1107_vm5, %v3509_v59, %v8805_v54  ;;  %v4242_v53 = vsel %vm256_vm0, %v3570_v15, %v8875_v51  ;;  %v4241_v27 = vsel %vm256_vm0, %v3569_v29, %v8874_v3  ;;  %v8879_v4 = vunpack.i.l.bf16 %v15839_v39  ;;  %v15844_v51 = vld [vmem:[#allocation158_spill] sm:$0xff]  ;;  %v15846_v15 = vld [vmem:[#allocation161_spill] sm:$0xff] }
 0x436   : > { %v13246_v2 = vsel %vm256_vm0, %v3566_v56, %v8865_v55  ;;  %v13249_v61 = vsel %vm256_vm0, %v3565_v12, %v8864_v23  ;;  %v8955_v38 = vunpack.i.h.bf16 %v15842_v24  ;;  %v8954_v43 = vunpack.i.l.bf16 %v15842_v24 }
 0x437   : > { %v4244_v54 = vsel %vm256_vm0, %v3572_v5, %v8880_v19  ;;  %v8885_v60 = vunpack.i.h.bf16 %v15843_v50  ;;  %v9035_v28 = vunpack.i.h.bf16 %v15844_v51  ;;  %v9034_v3 = vunpack.i.l.bf16 %v15844_v51  ;;  %v13257_v6 = vpop.permute.xlu2 %9247  ;;  %v15850_v51 = vld [vmem:[#allocation146_spill] sm:$0xff] }
 0x438   : > { %v8960_v13 = vunpack.i.h.bf16 %v15845_v26  ;;  %v8959_v29 = vunpack.i.l.bf16 %v15845_v26  ;;  %v9115_v16 = vunpack.i.h.bf16 %v15846_v15  ;;  %v9114_v55 = vunpack.i.l.bf16 %v15846_v15 }
 0x439   : > { %v4243_v23 = vsel %vm256_vm0, %v3571_v47, %v8879_v4  ;;  %v8884_v40 = vunpack.i.l.bf16 %v15843_v50  ;;  %v9040_v22 = vunpack.i.h.bf16 %v15847_v0  ;;  %v9039_v11 = vunpack.i.l.bf16 %v15847_v0 }
 0x43a   : > { %v4274_v59 = vsel %vm1041_vm3, %v4242_v53, %v8955_v38  ;;  %v4273_v12 = vsel %vm1041_vm3, %v4241_v27, %v8954_v43  ;;  %v9120_v56 = vunpack.i.h.bf16 %v12946_v25  ;;  %v9119_v39 = vunpack.i.l.bf16 %v12946_v25  ;;  %v15849_v38 = vld [vmem:[#allocation132_spill] sm:$0xff] }
 0x43b   : > { %9387 = vrot.lane.b32.xlu0 %v9386_v7, %s9941_s16  ;;  %9407 = vrot.lane.b32.xlu1 %v9406_v30, %s9941_s16  ;;  %v13273_v19 = vpop.permute.xlu0 %9207  ;;  %v4246_v18 = vsel %vm256_vm0, %v3574_v48, %v8885_v60  ;;  %v8965_v5 = vunpack.i.h.bf16 %v15848_v37  ;;  %v4306_v4 = vsel %vm1074_vm4, %v4274_v59, %v9035_v28  ;;  %v4305_v53 = vsel %vm1074_vm4, %v4273_v12, %v9034_v3  ;;  %v3573_v48 = vld [vmem:[#allocation2 + $0x1c8] sm:$0xff] }
 0x43c   : > { %v4276_v27 = vsel %vm1041_vm3, %v4244_v54, %v8960_v13  ;;  %v4275_v25 = vsel %vm1041_vm3, %v4243_v23, %v8959_v29  ;;  %v4337_v7 = vsel %vm1107_vm5, %v4305_v53, %v9114_v55  ;;  %v4338_v30 = vsel %vm1107_vm5, %v4306_v4, %v9115_v16  ;;  %v13284_v47 = vpop.permute.xlu1 %9197  ;;  %v15851_v13 = vld [vmem:[#allocation88_spill] sm:$0xff] }
 0x43d   : > { %9412 = vrot.lane.b32.xlu2 %v9411_v35, %s9940_s15  ;;  %v8964_v24 = vunpack.i.l.bf16 %v15848_v37  ;;  %v8945_v43 = vunpack.i.h.bf16 %v15849_v38  ;;  %v4307_v50 = vsel %vm1074_vm4, %v4275_v25, %v9039_v11  ;;  %v4308_v60 = vsel %vm1074_vm4, %v4276_v27, %v9040_v22  ;;  %v7183_v55 = vld [vmem:[%s14904_s1 + $0x8] sm:$0xf]  ;;  %v7412_v23 = vld [vmem:[%s14904_s1 + $0x8] sm:$0x10] }
 0x43e   : > { %v8944_v35 = vunpack.i.l.bf16 %v15849_v38  ;;  %v9025_v54 = vunpack.i.h.bf16 %v15850_v51  ;;  %v4339_v28 = vsel %vm1107_vm5, %v4307_v50, %v9119_v39  ;;  %v4340_v3 = vsel %vm1107_vm5, %v4308_v60, %v9120_v56  ;;  %v1971_v60 = vld [vmem:[#allocation2 + $0x198] sm:$0xff] }
 0x43f   : > { %v9024_v26 = vunpack.i.l.bf16 %v15850_v51  ;;  %v9045_v29 = vunpack.i.h.bf16 %v15851_v13  ;;  %v9044_v15 = vunpack.i.l.bf16 %v15851_v13  ;;  %v9401_v16 = vpack.i.bf16 %v4338_v30, %v4337_v7  ;;  %v13305_v12 = vpop.permute.xlu2 %9262 }
 0x440   : > { %v7184_v0 = vor.u32 %v7412_v23, %v7183_v55  ;;  %v9105_v22 = vunpack.i.h.bf16 %v12897_v46  ;;  %v9104_v11 = vunpack.i.l.bf16 %v12897_v46  ;;  %v9426_v59 = vpack.i.bf16 %v4340_v3, %v4339_v28  ;;  %v7411_v3 = vld [vmem:[%s14904_s1] sm:$0xff] }
 0x441   : > { %v9943_v56 = vmov 65535   ;;  %v4245_v37 = vsel %vm256_vm0, %v3573_v48, %v8884_v40  ;;  %v9125_v4 = vunpack.i.h.bf16 %v13025_v44  ;;  %v9124_v53 = vunpack.i.l.bf16 %v13025_v44  ;;  %v15854_v48 = vld [vmem:[#allocation155_spill] sm:$0xff] }
 0x442   : > { %v5073_v39 = vsel %vm5071_vm8, 4294967295, %v9943_v56  ;;  %v4277_v25 = vsel %vm1041_vm3, %v4245_v37, %v8964_v24  ;;  %v4270_v7 = vsel %vm1041_vm3, %v13246_v2, %v8945_v43  ;;  %v4269_v40 = vsel %vm1041_vm3, %v13249_v61, %v8944_v35  ;;  %v15852_v24 = vld [vmem:[#allocation111_spill] sm:$0xff] }
 0x443   : > { %9402 = vrot.lane.b32.xlu0 %v9401_v16, %s9942_s17  ;;  %9422 = vrot.lane.b32.xlu1 %v9421_v52, %s9941_s16  ;;  %v13315_v27 = vpop.permute.xlu0 %9222  ;;  %v5074_v46 = vsel %vm5072_vm9, %v5073_v39, 0  ;;  %v4278_v30 = vsel %vm1041_vm3, %v4246_v18, %v8965_v5  ;;  %v4301_v38 = vsel %vm1074_vm4, %v4269_v40, %v9024_v26  ;;  %v4302_v49 = vsel %vm1074_vm4, %v4270_v7, %v9025_v54  ;;  %v1972_v18 = vld [vmem:[#allocation2 + $0x1a0] sm:$0xff]  ;;  %v15853_v5 = vld [vmem:[#allocation136_spill] sm:$0xff] }
 0x444   : > { %v5076_v44 = vand.u32 %v7184_v0, %v5074_v46  ;;  %v4309_v1 = vsel %vm1074_vm4, %v4277_v25, %v9044_v15  ;;  %v13327_v52 = vpop.permute.xlu1 %9212  ;;  %v8244_v50 = vunpack.i.l.bf16 %v15852_v24  ;;  %v4310_v2 = vsel %vm1074_vm4, %v4278_v30, %v9045_v29  ;;  %v15855_v29 = vld [vmem:[#allocation159_spill] sm:$0xff] }
 0x445   : > { %9427 = vrot.lane.b32.xlu2 %v9426_v59, %s9942_s17  ;;  %v4333_v43 = vsel %vm1107_vm5, %v4301_v38, %v9104_v11  ;;  %v4334_v61 = vsel %vm1107_vm5, %v4302_v49, %v9105_v22  ;;  %v8325_v35 = vunpack.i.h.bf16 %v15853_v5  ;;  %v8324_v51 = vunpack.i.l.bf16 %v15853_v5  ;;  %v15856_v11 = vld [vmem:[#allocation15_spill] sm:$0xff] }
 0x446   : > { %5084 = vmatpush.bf16.msra.mxu0 %v5076_v44  ;;  %7464 = vmatpush.bf16.msra.mxu2 %v5076_v44  ;;  %v4341_v54 = vsel %vm1107_vm5, %v4309_v1, %v9124_v53  ;;  %v4342_v28 = vsel %vm1107_vm5, %v4310_v2, %v9125_v4  ;;  %v8405_v26 = vunpack.i.h.bf16 %v15854_v48  ;;  %v8404_v13 = vunpack.i.l.bf16 %v15854_v48  ;;  %v356_v38 = vld [vmem:[#allocation2 + $0xe0] sm:$0xff]  ;;  %v15858_v1 = vld [vmem:[#allocation221_spill] sm:$0xff]  ;;  %v15861_v48 = vld [vmem:[#allocation18_spill] sm:$0xff] }
 0x447   : > { %v8485_v15 = vunpack.i.h.bf16 %v15855_v29  ;;  %v8484_v16 = vunpack.i.l.bf16 %v15855_v29  ;;  %v9160_v55 = vunpack.i.h.bf16 %v12924_v17  ;;  %v9159_v23 = vunpack.i.l.bf16 %v12924_v17  ;;  %v13362_v40 = vpop.permute.xlu2 %9277 }
 0x448   : > { %v9416_v0 = vpack.i.bf16 %v4334_v61, %v4333_v43  ;;  %v9436_v22 = vpack.i.bf16 %v13240_v10, %v13229_v45  ;;  %v7564_v59 = vunpack.i.l.bf16 %v15856_v11  ;;  %v15857_v56 = vunpack.i.h.bf16 %v15852_v24  ;;  %v355_v61 = vld [vmem:[#allocation2 + $0xd8] sm:$0xff] }
 0x449   : > { %v2643_v37 = vsel %vm256_vm0, %v1971_v60, %v8244_v50  ;;  %v9441_v4 = vpack.i.bf16 %v4342_v28, %v4341_v54  ;;  %v9150_v17 = vunpack.i.h.bf16 %v13057_v33  ;;  %v9149_v25 = vunpack.i.l.bf16 %v13057_v33  ;;  %v15859_v50 = vld [vmem:[#allocation222_spill] sm:$0xff]  ;;  %v351_v28 = vld [vmem:[#allocation2 + $0xa8] sm:$0xff] }
 0x44a   : > { %v2644_v39 = vsel %vm256_vm0, %v1972_v18, %v15857_v56  ;;  %5085 = vmatpush.bf16.msra.mxu0 %v7411_v3  ;;  %7465 = vmatpush.bf16.msra.mxu2 %v7411_v3  ;;  %v2675_v46 = vsel %vm1041_vm3, %v2643_v37, %v8324_v51  ;;  %v4868_v24 = vsel %vm4855_vm6, %v15858_v1, %v9159_v23  ;;  %v15860_v51 = vld [vmem:[#allocation13_spill] sm:$0xff]  ;;  %vm7054_vm8 = vcmask 519168  }
 0x44b   : > { %v2676_v53 = vsel %vm1041_vm3, %v2644_v39, %v8325_v35  ;;  %9417 = vrot.lane.b32.xlu0 %v9416_v0, %s9942_s17  ;;  %9437 = vrot.lane.b32.xlu1 %v9436_v22, %s9941_s16  ;;  %v9238_v45 = vpop.permute.xlu0 %9237  ;;  %v2707_v7 = vsel %vm1074_vm4, %v2675_v46, %v8404_v13  ;;  %v4869_v2 = vsel %vm4855_vm6, %v15859_v50, %v9160_v55  ;;  %v7614_v54 = vunpack.i.l.bf16 %v15860_v51  ;;  %v352_v3 = vld [vmem:[#allocation2 + $0xb0] sm:$0xff]  ;;  %v15862_v13 = vld [vmem:[#allocation226_spill] sm:$0xff] }
 0x44c   : > { %v2708_v10 = vsel %vm1074_vm4, %v2676_v53, %v8405_v26  ;;  %v9240_v44 = vunpack.i.h.bf16 %v9238_v45  ;;  %v9239_v30 = vunpack.i.l.bf16 %v9238_v45  ;;  %v2739_v49 = vsel %vm1107_vm5, %v2707_v7, %v8484_v16  ;;  %v15864_v55 = vld [vmem:[#allocation14_spill] sm:$0xff]  ;;  %v15867_v53 = vld [vmem:[#allocation39_spill] sm:$0xff]  ;;  %v15870_v1 = vld [vmem:[#allocation17_spill] sm:$0xff] }
 0x44d   : > { %9442 = vrot.lane.b32.xlu2 %v9441_v4, %s9942_s17  ;;  %v2740_v33 = vsel %vm1107_vm5, %v2708_v10, %v8485_v15  ;;  %v9228_v43 = vpop.permute.xlu1 %9227  ;;  %v7644_v26 = vunpack.i.l.bf16 %v15861_v48  ;;  %v4864_v29 = vsel %vm4855_vm6, %v15862_v13, %v9149_v25  ;;  %v15863_v15 = vld [vmem:[#allocation225_spill] sm:$0xff]  ;;  %v15865_v23 = vunpack.i.h.bf16 %v15864_v55 }
 0x44e   : > { %v9230_v60 = vunpack.i.h.bf16 %v9228_v43  ;;  %v9229_v18 = vunpack.i.l.bf16 %v9228_v43  ;;  %v13371_v5 = vsel %vm4888_vm7, %v4868_v24, %v9239_v30  ;;  %v13374_v35 = vsel %vm4888_vm7, %v4869_v2, %v9240_v44  ;;  %v15869_v44 = vld [vmem:[#allocation53_spill] sm:$0xff] }
 0x44f   : > { %v4865_v16 = vsel %vm4855_vm6, %v15863_v15, %v9150_v17  ;;  %v13385_v0 = vsel %vm256_vm0, %v356_v38, %v15865_v23  ;;  %v7645_v22 = vunpack.i.h.bf16 %v15861_v48  ;;  %v15866_v37 = vunpack.i.l.bf16 %v15864_v55 }
 0x450   : > { %v13389_v56 = vsel %vm4888_vm7, %v4864_v29, %v9229_v18  ;;  %v13392_v39 = vsel %vm4888_vm7, %v4865_v16, %v9230_v60  ;;  %v7725_v46 = vunpack.i.h.bf16 %v15867_v53  ;;  %v7724_v17 = vunpack.i.l.bf16 %v15867_v53  ;;  %v15873_v18 = vld [vmem:[#allocation27_spill] sm:$0xff] }
 0x451   : > { %v13397_v4 = vsel %vm256_vm0, %v355_v61, %v15866_v37  ;;  %v9431_v25 = vpack.i.bf16 %v2740_v33, %v2739_v49  ;;  %v15868_v45 = vunpack.i.h.bf16 %v15856_v11  ;;  %v1023_v7 = vsel %vm256_vm0, %v351_v28, %v7564_v59  ;;  %v15871_v49 = vld [vmem:[#allocation23_spill] sm:$0xff]  ;;  %v15872_v61 = vld [vmem:[#allocation26_spill] sm:$0xff] }
 0x452   : > { %v7805_v30 = vunpack.i.h.bf16 %v15869_v44  ;;  %v7804_v38 = vunpack.i.l.bf16 %v15869_v44  ;;  %v7580_v24 = vunpack.i.h.bf16 %v15870_v1  ;;  %v1056_v50 = vsel %vm1041_vm3, %v1023_v7, %v7644_v26  ;;  %v13422_v55 = vpop.permute.xlu2 %9292  ;;  %v15876_v44 = vld [vmem:[#allocation206_spill] sm:$0xff] }
 0x453   : > { %v1024_v10 = vsel %vm256_vm0, %v352_v3, %v15868_v45  ;;  %v9165_v2 = vunpack.i.h.bf16 %v13118_v34  ;;  %v9164_v43 = vunpack.i.l.bf16 %v13118_v34  ;;  %9432 = vrot.lane.b32.xlu0 %v9431_v25, %s9940_s15  ;;  %v7610_v33 = vunpack.i.h.bf16 %v15871_v49 }
 0x454   : > { %v1057_v11 = vsel %vm1041_vm3, %v1024_v10, %v7645_v22  ;;  %v7609_v59 = vunpack.i.l.bf16 %v15871_v49  ;;  %v7689_v60 = vunpack.i.l.bf16 %v15872_v61  ;;  %v7650_v28 = vunpack.i.h.bf16 %v15873_v18  ;;  %v15874_v22 = vld [vmem:[#allocation21_spill] sm:$0xff] }
 0x455   : > { %v7649_v3 = vunpack.i.l.bf16 %v15873_v18  ;;  %v1089_v48 = vsel %vm1074_vm4, %v1056_v50, %v7724_v17  ;;  %v1090_v26 = vsel %vm1074_vm4, %v1057_v11, %v7725_v46  ;;  %v9243_v13 = vpop.permute.xlu1 %9242  ;;  %v7579_v23 = vunpack.i.l.bf16 %v15870_v1  ;;  %v15875_v17 = vld [vmem:[#allocation42_spill] sm:$0xff]  ;;  %v15878_v11 = vld [vmem:[#allocation45_spill] sm:$0xff] }
 0x456   : > { %v1122_v34 = vsel %vm1107_vm5, %v1089_v48, %v7804_v38  ;;  %v1123_v29 = vsel %vm1107_vm5, %v1090_v26, %v7805_v30  ;;  %v9245_v15 = vunpack.i.h.bf16 %v9243_v13  ;;  %v9244_v16 = vunpack.i.l.bf16 %v9243_v13  ;;  %v15877_v38 = vld [vmem:[#allocation207_spill] sm:$0xff]  ;;  %v15879_v48 = vld [vmem:[#allocation212_spill] sm:$0xff]  ;;  %v15880_v13 = vld [vmem:[#allocation213_spill] sm:$0xff] }
 0x457   : > { %v4870_v53 = vsel %vm4855_vm6, %v1122_v34, %v9164_v43  ;;  %v4871_v25 = vsel %vm4855_vm6, %v1123_v29, %v9165_v2  ;;  %v7730_v45 = vunpack.i.h.bf16 %v15875_v17  ;;  %v7729_v46 = vunpack.i.l.bf16 %v15875_v17  ;;  %v15881_v29 = vld [vmem:[#allocation30_spill] sm:$0xff] }
 0x458   : > { %v13431_v10 = vsel %vm4888_vm7, %v4870_v53, %v9244_v16  ;;  %v13434_v7 = vsel %vm4888_vm7, %v4871_v25, %v9245_v15  ;;  %v1043_v30 = vsel %vm1041_vm3, %v15876_v44, %v7610_v33  ;;  %v1042_v50 = vsel %vm1041_vm3, %v15877_v38, %v7609_v59  ;;  %v15882_v53 = vld [vmem:[#allocation33_spill] sm:$0xff]  ;;  %v15883_v44 = vld [vmem:[#allocation46_spill] sm:$0xff] }
 0x459   : > { %v7810_v43 = vunpack.i.h.bf16 %v15878_v11  ;;  %v7809_v2 = vunpack.i.l.bf16 %v15878_v11  ;;  %v7690_v49 = vunpack.i.h.bf16 %v15872_v61  ;;  %v1075_v18 = vsel %vm1074_vm4, %v1042_v50, %v7689_v60 }
 0x45a   : > { %v1059_v26 = vsel %vm1041_vm3, %v15879_v48, %v7650_v28  ;;  %v1058_v34 = vsel %vm1041_vm3, %v15880_v13, %v7649_v3  ;;  %v7655_v15 = vunpack.i.h.bf16 %v15881_v29  ;;  %v7654_v33 = vunpack.i.l.bf16 %v15881_v29  ;;  %v15884_v48 = vld [vmem:[#allocation52_spill] sm:$0xff] }
 0x45b   : > { %v9170_v59 = vunpack.i.h.bf16 %v13168_v58  ;;  %v9169_v16 = vunpack.i.l.bf16 %v13168_v58  ;;  %v7735_v25 = vunpack.i.h.bf16 %v15882_v53  ;;  %v7734_v61 = vunpack.i.l.bf16 %v15882_v53  ;;  %v13462_v53 = vpop.permute.xlu2 %9307 }
 0x45c   : > { %v1092_v60 = vsel %vm1074_vm4, %v1059_v26, %v7730_v45  ;;  %v1091_v17 = vsel %vm1074_vm4, %v1058_v34, %v7729_v46  ;;  %v7770_v38 = vunpack.i.h.bf16 %v15883_v44  ;;  %v7769_v50 = vunpack.i.l.bf16 %v15883_v44 }
 0x45d   : > { %v1124_v28 = vsel %vm1107_vm5, %v1091_v17, %v7809_v2  ;;  %v1125_v3 = vsel %vm1107_vm5, %v1092_v60, %v7810_v43  ;;  %v9258_v11 = vpop.permute.xlu1 %9257  ;;  %v7815_v13 = vunpack.i.h.bf16 %v15884_v48  ;;  %v7814_v58 = vunpack.i.l.bf16 %v15884_v48  ;;  %v359_v48 = vld [vmem:[#allocation2 + $0x108] sm:$0xff] }
 0x45e   : > { %v9260_v29 = vunpack.i.h.bf16 %v9258_v11  ;;  %v9259_v37 = vunpack.i.l.bf16 %v9258_v11  ;;  %v9130_v45 = vunpack.i.h.bf16 %v12825_v9  ;;  %v9129_v46 = vunpack.i.l.bf16 %v12825_v9 }
 0x45f   : > { %v4872_v2 = vsel %vm4855_vm6, %v1124_v28, %v9169_v16  ;;  %v4873_v43 = vsel %vm4855_vm6, %v1125_v3, %v9170_v59  ;;  %v9210_v26 = vunpack.i.h.bf16 %v13273_v19  ;;  %v9209_v34 = vunpack.i.l.bf16 %v13273_v19 }
 0x460   : > { %v13471_v60 = vsel %vm4888_vm7, %v4872_v2, %v9259_v37  ;;  %v13474_v17 = vsel %vm4888_vm7, %v4873_v43, %v9260_v29  ;;  %v1076_v44 = vsel %vm1074_vm4, %v1043_v30, %v7690_v49  ;;  %v1061_v11 = vsel %vm1041_vm3, %v13385_v0, %v7655_v15 }
 0x461   : > { %v1060_v9 = vsel %vm1041_vm3, %v13397_v4, %v7654_v33  ;;  %v9174_v59 = vunpack.i.l.bf16 %v12981_v14  ;;  %v1094_v19 = vsel %vm1074_vm4, %v1061_v11, %v7735_v25  ;;  %v1108_v37 = vsel %vm1107_vm5, %v1075_v18, %v7769_v50 }
 0x462   : > { %v1093_v16 = vsel %vm1074_vm4, %v1060_v9, %v7734_v61  ;;  %v1109_v28 = vsel %vm1107_vm5, %v1076_v44, %v7770_v38  ;;  %v4856_v30 = vsel %vm4855_vm6, %v1108_v37, %v9129_v46  ;;  %v9175_v0 = vunpack.i.h.bf16 %v12981_v14  ;;  %v15885_v9 = vld [vmem:[#allocation9_spill] sm:$0xff]  ;;  %v15887_v37 = vld [vmem:[#allocation10_spill] sm:$0xff] }
 0x463   : > { %v1126_v3 = vsel %vm1107_vm5, %v1093_v16, %v7814_v58  ;;  %v4857_v49 = vsel %vm4855_vm6, %v1109_v28, %v9130_v45  ;;  %v1127_v4 = vsel %vm1107_vm5, %v1094_v19, %v7815_v13  ;;  %v4889_v15 = vsel %vm4888_vm7, %v4856_v30, %v9209_v34  ;;  %v9253_v38 = vpop.permute.xlu0 %9252  ;;  %v9868_v19 = vld [vmem:[#allocation2 + $0x30] sm:$0xff]  ;;  %v358_v30 = vld [vmem:[#allocation2 + $0xf8] sm:$0xff] }
 0x464   : > { %v4890_v33 = vsel %vm4888_vm7, %v4857_v49, %v9210_v26  ;;  %v4874_v25 = vsel %vm4855_vm6, %v1126_v3, %v9174_v59  ;;  %v9250_v18 = vunpack.i.h.bf16 %v13257_v6  ;;  %v9249_v61 = vunpack.i.l.bf16 %v13257_v6  ;;  %v13496_v13 = vpop.permute.xlu2 %9322  ;;  %v357_v26 = vld [vmem:[#allocation2 + $0xf0] sm:$0xff] }
 0x465   : > { %v9273_v50 = vpop.permute.xlu1 %9272  ;;  %v9255_v58 = vunpack.i.h.bf16 %v9253_v38  ;;  %v9254_v29 = vunpack.i.l.bf16 %v9253_v38  ;;  %v4875_v46 = vsel %vm4855_vm6, %v1127_v4, %v9175_v0  ;;  %v15886_v59 = vunpack.i.l.bf16 %v15885_v9  ;;  %v9869_v4 = vld [vmem:[#allocation2 + $0x38] sm:$0xff] }
 0x466   : > { %v9275_v14 = vunpack.i.h.bf16 %v9273_v50  ;;  %v9274_v45 = vunpack.i.l.bf16 %v9273_v50  ;;  %v4922_v2 = vsel %vm4921_vm10, %v4889_v15, %v9249_v61  ;;  %v4923_v43 = vsel %vm4921_vm10, %v4890_v33, %v9250_v18  ;;  %v15892_v50 = vld [vmem:[#allocation208_spill] sm:$0xff] }
 0x467   : > { %v4955_v44 = vsel %vm4954_vm11, %v4922_v2, %v9254_v29  ;;  %v4956_v11 = vsel %vm4954_vm11, %v4923_v43, %v9255_v58  ;;  %v1031_v16 = vsel %vm256_vm0, %v359_v48, %v15886_v59  ;;  %v15888_v28 = vunpack.i.l.bf16 %v15887_v37  ;;  %v15893_v58 = vld [vmem:[#allocation210_spill] sm:$0xff] }
 0x468   : > { %v13502_v6 = vsel %vm4888_vm7, %v4874_v25, %v9274_v45  ;;  %v13505_v34 = vsel %vm4888_vm7, %v4875_v46, %v9275_v14  ;;  %v7660_v49 = vunpack.i.h.bf16 %v15874_v22  ;;  %v4987_v0 = vpack.c.bf16 %v4956_v11, %v4955_v44  ;;  %v15890_v25 = vld [vmem:[#allocation12_spill] sm:$0xff]  ;;  %v15894_v45 = vld [vmem:[#allocation34_spill] sm:$0xff] }
 0x469   : > { %v1013_v3 = vsel %vm256_vm0, %v9868_v19, %v15888_v28  ;;  %v15889_v15 = vunpack.i.h.bf16 %v15887_v37  ;;  %v7545_v18 = vunpack.i.h.bf16 %v15890_v25  ;;  %v15891_v38 = vunpack.i.h.bf16 %v15860_v51  ;;  %v15896_v11 = vld [vmem:[#allocation50_spill] sm:$0xff] }
 0x46a   : > { %v1044_v29 = vsel %vm1041_vm3, %v15893_v58, %v7614_v54  ;;  %v1029_v14 = vsel %vm256_vm0, %v357_v26, %v7579_v23  ;;  %v7695_v46 = vunpack.i.h.bf16 %v15894_v45  ;;  %v7694_v2 = vunpack.i.l.bf16 %v15894_v45  ;;  %7185 = vmatmul.msk.bf16.vlgmr.msra.gmra.mxu0 %vm5022_vm12, %v4987_v0  ;;  %v15897_v26 = vld [vmem:[#allocation22_spill] sm:$0xff]  ;;  %v15900_v45 = vld [vmem:[#allocation40_spill] sm:$0xff] }
 0x46b   : > { %v1014_v33 = vsel %vm256_vm0, %v9869_v4, %v15889_v15  ;;  %v1045_v48 = vsel %vm1041_vm3, %v15892_v50, %v15891_v38  ;;  %v1030_v43 = vsel %vm256_vm0, %v358_v30, %v7580_v24  ;;  %v15895_v44 = vunpack.i.l.bf16 %v15874_v22  ;;  %v9268_v28 = vpop.permute.xlu0 %9267  ;;  %v15898_v22 = vld [vmem:[#allocation29_spill] sm:$0xff] }
 0x46c   : > { %v7775_v54 = vunpack.i.h.bf16 %v15896_v11  ;;  %v7774_v9 = vunpack.i.l.bf16 %v15896_v11  ;;  %v1063_v23 = vsel %vm1041_vm3, %v1030_v43, %v7660_v49  ;;  %v7620_v59 = vunpack.i.h.bf16 %v15897_v26 }
 0x46d   : > { %v1062_v51 = vsel %vm1041_vm3, %v1029_v14, %v15895_v44  ;;  %v9135_v19 = vunpack.i.h.bf16 %v13008_v57  ;;  %v9134_v37 = vunpack.i.l.bf16 %v13008_v57  ;;  %v13547_v1 = vpop.permute.xlu1 %9287  ;;  %v7619_v24 = vunpack.i.l.bf16 %v15897_v26  ;;  %v15899_v57 = vld [vmem:[#allocation37_spill] sm:$0xff] }
 0x46e   : > { %v7665_v30 = vunpack.i.h.bf16 %v15898_v22  ;;  %v9215_v0 = vunpack.i.h.bf16 %v13327_v52  ;;  %v9214_v4 = vunpack.i.l.bf16 %v13327_v52  ;;  %v7664_v49 = vunpack.i.l.bf16 %v15898_v22 }
 0x46f   : > { %v13553_v15 = vpop.permute.xlu2 %9337  ;;  %v1078_v38 = vsel %vm1074_vm4, %v1045_v48, %v7695_v46  ;;  %v1077_v50 = vsel %vm1074_vm4, %v1044_v29, %v7694_v2  ;;  %v7700_v58 = vunpack.i.h.bf16 %v15899_v57  ;;  %v7699_v14 = vunpack.i.l.bf16 %v15899_v57 }
 0x470   : > { %v7779_v43 = vunpack.i.l.bf16 %v15900_v45  ;;  %v1111_v44 = vsel %vm1107_vm5, %v1078_v38, %v7775_v54  ;;  %v1110_v11 = vsel %vm1107_vm5, %v1077_v50, %v7774_v9  ;;  %v9265_v22 = vunpack.i.h.bf16 %v13305_v12  ;;  %v15901_v38 = vld [vmem:[#allocation214_spill] sm:$0xff] }
 0x471   : > { %v4858_v52 = vsel %vm4855_vm6, %v1110_v11, %v9134_v37  ;;  %v4859_v26 = vsel %vm4855_vm6, %v1111_v44, %v9135_v19  ;;  %v9264_v48 = vunpack.i.l.bf16 %v13305_v12  ;;  %v9270_v2 = vunpack.i.h.bf16 %v9268_v28  ;;  %v15902_v37 = vld [vmem:[#allocation41_spill] sm:$0xff] }
 0x472   : > { %v4891_v29 = vsel %vm4888_vm7, %v4858_v52, %v9214_v4  ;;  %v4892_v46 = vsel %vm4888_vm7, %v4859_v26, %v9215_v0  ;;  %v9269_v57 = vunpack.i.l.bf16 %v9268_v28  ;;  %v1046_v61 = vsel %vm1041_vm3, %v1013_v3, %v7619_v24 }
 0x473   : > { %v1047_v54 = vsel %vm1041_vm3, %v1014_v33, %v7620_v59  ;;  %v13573_v9 = vsel %vm1041_vm3, %v15901_v38, %v7665_v30  ;;  %v7739_v19 = vunpack.i.l.bf16 %v15902_v37  ;;  %v13577_v50 = vsel %vm1041_vm3, %v1031_v16, %v7664_v49  ;;  %v13588_v24 = vpop.permute.xlu0 %9282 }
 0x474   : > { %v1079_v12 = vsel %vm1074_vm4, %v1046_v61, %v7699_v14  ;;  %v1080_v4 = vsel %vm1074_vm4, %v1047_v54, %v7700_v58  ;;  %v7740_v0 = vunpack.i.h.bf16 %v15902_v37  ;;  %v7780_v28 = vunpack.i.h.bf16 %v15900_v45  ;;  %v15903_v45 = vld [vmem:[#allocation55_spill] sm:$0xff]  ;;  %v15904_v54 = vld [vmem:[#allocation44_spill] sm:$0xff] }
 0x475   : > { %v13584_v3 = vsel %vm1107_vm5, %v1079_v12, %v7779_v43  ;;  %v4924_v33 = vsel %vm4921_vm10, %v4891_v29, %v9264_v48  ;;  %v4925_v59 = vsel %vm4921_vm10, %v4892_v46, %v9265_v22  ;;  %v9303_v30 = vpop.permute.xlu1 %9302  ;;  %v1095_v14 = vsel %vm1074_vm4, %v1062_v51, %v7739_v19  ;;  %v15905_v37 = vld [vmem:[#allocation48_spill] sm:$0xff] }
 0x476   : > { %v9305_v16 = vunpack.i.h.bf16 %v9303_v30  ;;  %v9304_v49 = vunpack.i.l.bf16 %v9303_v30  ;;  %v4957_v61 = vsel %vm4954_vm11, %v4924_v33, %v9269_v57  ;;  %v4958_v58 = vsel %vm4954_vm11, %v4925_v59, %v9270_v2 }
 0x477   : > { %v13590_v44 = vpop.permute.xlu2 %9352  ;;  %v7820_v43 = vunpack.i.h.bf16 %v15903_v45  ;;  %v7819_v11 = vunpack.i.l.bf16 %v15903_v45  ;;  %v9309_v52 = vunpack.i.l.bf16 %v13462_v53  ;;  %v1096_v26 = vsel %vm1074_vm4, %v1063_v23, %v7740_v0 }
 0x478   : > { %v9310_v22 = vunpack.i.h.bf16 %v13462_v53  ;;  %v4930_v48 = vsel %vm4921_vm10, %v13389_v56, %v9304_v49  ;;  %v4931_v29 = vsel %vm4921_vm10, %v13392_v39, %v9305_v16  ;;  %v9180_v46 = vunpack.i.h.bf16 %v13159_v36 }
 0x479   : > { %v9179_v51 = vunpack.i.l.bf16 %v13159_v36  ;;  %v4988_v2 = vpack.c.bf16 %v4958_v58, %v4957_v61  ;;  %v13607_v57 = vsel %vm4954_vm11, %v4930_v48, %v9309_v52  ;;  %v7745_v38 = vunpack.i.h.bf16 %v15904_v54 }
 0x47a   : > { %v7744_v23 = vunpack.i.l.bf16 %v15904_v54  ;;  %v7825_v53 = vunpack.i.h.bf16 %v15905_v37  ;;  %v13613_v19 = vsel %vm4954_vm11, %v4931_v29, %v9310_v22  ;;  %v7824_v56 = vunpack.i.l.bf16 %v15905_v37 }
 0x47b   : > { %v1128_v39 = vsel %vm1107_vm5, %v1095_v14, %v7819_v11  ;;  %v1129_v12 = vsel %vm1107_vm5, %v1096_v26, %v7820_v43  ;;  %7186 = vmatmul.msk.bf16.gmra.mxu0 %vm5022_vm12, %v4988_v2  ;;  %v4991_v36 = vpack.c.bf16 %v13613_v19, %v13607_v57  ;;  %v9140_v0 = vunpack.i.h.bf16 %v13075_v8 }
 0x47c   : > { %v9139_v33 = vunpack.i.l.bf16 %v13075_v8  ;;  %v9220_v59 = vunpack.i.h.bf16 %v13137_v62  ;;  %v9219_v30 = vunpack.i.l.bf16 %v13137_v62  ;;  %v4876_v16 = vsel %vm4855_vm6, %v1128_v39, %v9179_v51 }
 0x47d   : > { %v4877_v49 = vsel %vm4855_vm6, %v1129_v12, %v9180_v46  ;;  %v9280_v61 = vunpack.i.h.bf16 %v13362_v40  ;;  %v9279_v58 = vunpack.i.l.bf16 %v13362_v40  ;;  %v9298_v14 = vpop.permute.xlu0 %9297  ;;  %v9318_v45 = vpop.permute.xlu1 %9317  ;;  %v9325_v8 = vunpack.i.h.bf16 %v13496_v13 }
 0x47e   : > { %v9300_v43 = vunpack.i.h.bf16 %v9298_v14  ;;  %v9299_v11 = vunpack.i.l.bf16 %v9298_v14  ;;  %v9320_v52 = vunpack.i.h.bf16 %v9318_v45  ;;  %v9319_v26 = vunpack.i.l.bf16 %v9318_v45 }
 0x47f   : > { %v9368_v22 = vpop.permute.xlu2 %9367  ;;  %v9324_v48 = vunpack.i.l.bf16 %v13496_v13  ;;  %v1113_v12 = vsel %vm1107_vm5, %v1080_v4, %v7780_v28  ;;  %v9184_v14 = vunpack.i.l.bf16 %v13231_v63  ;;  %v1098_v45 = vsel %vm1074_vm4, %v13573_v9, %v7745_v38  ;;  %v343_v38 = vld [vmem:[#allocation2 + $0x48] sm:$0xff] }
 0x480   : > { %v9370_v62 = vunpack.i.h.bf16 %v9368_v22  ;;  %v9369_v29 = vunpack.i.l.bf16 %v9368_v22  ;;  %v13632_v51 = vsel %vm4888_vm7, %v4876_v16, %v9299_v11  ;;  %v13635_v46 = vsel %vm4888_vm7, %v4877_v49, %v9300_v43  ;;  %v15907_v22 = vld [vmem:[#allocation28_spill] sm:$0xff] }
 0x481   : > { %v4932_v40 = vsel %vm4921_vm10, %v13199_v32, %v9319_v26  ;;  %v4933_v2 = vsel %vm4921_vm10, %v13202_v41, %v9320_v52  ;;  %v9285_v32 = vunpack.i.h.bf16 %v13588_v24  ;;  %v9284_v41 = vunpack.i.l.bf16 %v13588_v24 }
 0x482   : > { %v13643_v54 = vsel %vm4921_vm10, %v13502_v6, %v9369_v29  ;;  %v13647_v13 = vsel %vm4921_vm10, %v13505_v34, %v9370_v62  ;;  %v13650_v37 = vsel %vm4954_vm11, %v4932_v40, %v9324_v48  ;;  %v13653_v39 = vsel %vm4954_vm11, %v4933_v2, %v9325_v8 }
 0x483   : > { %v4992_v6 = vpack.c.bf16 %v13653_v39, %v13650_v37  ;;  %v4860_v16 = vsel %vm4855_vm6, %v13584_v3, %v9139_v33  ;;  %v4861_v34 = vsel %vm4855_vm6, %v1113_v12, %v9140_v0  ;;  %v9185_v49 = vunpack.i.h.bf16 %v13231_v63 }
 0x484   : > { %v1097_v4 = vsel %vm1074_vm4, %v13577_v50, %v7744_v23  ;;  %v4893_v28 = vsel %vm4888_vm7, %v4860_v16, %v9219_v30  ;;  %v4894_v24 = vsel %vm4888_vm7, %v4861_v34, %v9220_v59  ;;  %v1131_v3 = vsel %vm1107_vm5, %v1098_v45, %v7825_v53  ;;  %v344_v23 = vld [vmem:[#allocation2 + $0x50] sm:$0xff] }
 0x485   : > { %v1130_v43 = vsel %vm1107_vm5, %v1097_v4, %v7824_v56  ;;  %v4926_v0 = vsel %vm4921_vm10, %v4893_v28, %v9279_v58  ;;  %v4927_v33 = vsel %vm4921_vm10, %v4894_v24, %v9280_v61  ;;  %v9313_v11 = vpop.permute.xlu0 %9312  ;;  %v9333_v63 = vpop.permute.xlu1 %9332  ;;  %v15906_v30 = vld [vmem:[#allocation25_spill] sm:$0xff]  ;;  %v4879_v58 = vsel %vm4855_vm6, %v1131_v3, %v9185_v49  ;;  %v15911_v28 = vld [vmem:[#allocation32_spill] sm:$0xff] }
 0x486   : > { %v9315_v52 = vunpack.i.h.bf16 %v9313_v11  ;;  %v9314_v26 = vunpack.i.l.bf16 %v9313_v11  ;;  %v4959_v9 = vsel %vm4954_vm11, %v4926_v0, %v9284_v41  ;;  %v4960_v50 = vsel %vm4954_vm11, %v4927_v33, %v9285_v32  ;;  %v15909_v32 = vld [vmem:[#allocation16_spill] sm:$0xff]  ;;  %v15910_v4 = vld [vmem:[#allocation49_spill] sm:$0xff] }
 0x487   : > { %v7625_v59 = vunpack.i.h.bf16 %v15906_v30  ;;  %v7624_v56 = vunpack.i.l.bf16 %v15906_v30  ;;  %v4878_v53 = vsel %vm4855_vm6, %v1130_v43, %v9184_v14  ;;  %v7705_v61 = vunpack.i.h.bf16 %v15907_v22 }
 0x488   : > { %v7704_v8 = vunpack.i.l.bf16 %v15907_v22  ;;  %v13684_v48 = vsel %vm4888_vm7, %v4878_v53, %v9314_v26  ;;  %v13687_v62 = vsel %vm4888_vm7, %v4879_v58, %v9315_v52  ;;  %v4989_v29 = vpack.c.bf16 %v4960_v50, %v4959_v9 }
 0x489   : > { %v1016_v40 = vsel %vm256_vm0, %v344_v23, %v7545_v18  ;;  %v15908_v2 = vunpack.i.l.bf16 %v15890_v25  ;;  %v7590_v41 = vunpack.i.h.bf16 %v15909_v32  ;;  %v7589_v16 = vunpack.i.l.bf16 %v15909_v32 }
 0x48a   : > { %v1049_v49 = vsel %vm1041_vm3, %v1016_v40, %v7625_v59  ;;  %v7785_v18 = vunpack.i.h.bf16 %v15910_v4  ;;  %v7784_v25 = vunpack.i.l.bf16 %v15910_v4  ;;  %v7670_v24 = vunpack.i.h.bf16 %v15911_v28  ;;  %v15912_v4 = vld [vmem:[#allocation36_spill] sm:$0xff] }
 0x48b   : > { %v1015_v12 = vsel %vm256_vm0, %v343_v38, %v15908_v2  ;;  %7187 = vmatmul.msk.bf16.gmra.mxu0 %vm5022_vm12, %v4989_v29  ;;  %v1082_v45 = vsel %vm1074_vm4, %v1049_v49, %v7705_v61  ;;  %v7669_v43 = vunpack.i.l.bf16 %v15911_v28  ;;  %v9145_v3 = vunpack.i.h.bf16 %v12872_v31  ;;  %v15913_v28 = vld [vmem:[#allocation54_spill] sm:$0xff] }
 0x48c   : > { %v1048_v34 = vsel %vm1041_vm3, %v1015_v12, %v7624_v56  ;;  %v9144_v0 = vunpack.i.l.bf16 %v12872_v31  ;;  %v9225_v52 = vunpack.i.h.bf16 %v13315_v27  ;;  %v9224_v26 = vunpack.i.l.bf16 %v13315_v27  ;;  %v362_v56 = vld [vmem:[#allocation2 + $0x128] sm:$0xff]  ;;  %v361_v27 = vld [vmem:[#allocation2 + $0x120] sm:$0xff] }
 0x48d   : > { %v1081_v14 = vsel %vm1074_vm4, %v1048_v34, %v7704_v8  ;;  %v9328_v33 = vpop.permute.xlu0 %9327  ;;  %v9348_v11 = vpop.permute.xlu1 %9347  ;;  %v9290_v38 = vunpack.i.h.bf16 %v13547_v1  ;;  %v9289_v23 = vunpack.i.l.bf16 %v13547_v1  ;;  %v9335_v30 = vunpack.i.h.bf16 %v9333_v63 }
 0x48e   : > { %v9330_v9 = vunpack.i.h.bf16 %v9328_v33  ;;  %v9329_v50 = vunpack.i.l.bf16 %v9328_v33  ;;  %v9334_v59 = vunpack.i.l.bf16 %v9333_v63  ;;  %v1114_v53 = vsel %vm1107_vm5, %v1081_v14, %v7784_v25 }
 0x48f   : > { %v1115_v58 = vsel %vm1107_vm5, %v1082_v45, %v7785_v18  ;;  %v4862_v61 = vsel %vm4855_vm6, %v1114_v53, %v9144_v0  ;;  %v1033_v32 = vsel %vm256_vm0, %v361_v27, %v7589_v16  ;;  %v9295_v49 = vunpack.i.h.bf16 %v13422_v55  ;;  %v9383_v27 = vpop.permute.xlu2 %9382 }
 0x490   : > { %v4934_v31 = vsel %vm4921_vm10, %v13371_v5, %v9329_v50  ;;  %v4935_v22 = vsel %vm4921_vm10, %v13374_v35, %v9330_v9  ;;  %v4863_v8 = vsel %vm4855_vm6, %v1115_v58, %v9145_v3  ;;  %v4895_v29 = vsel %vm4888_vm7, %v4862_v61, %v9224_v26 }
 0x491   : > { %v13721_v1 = vsel %vm4954_vm11, %v4934_v31, %v9334_v59  ;;  %v13724_v63 = vsel %vm4954_vm11, %v4935_v22, %v9335_v30  ;;  %v4896_v40 = vsel %vm4888_vm7, %v4863_v8, %v9225_v52  ;;  %v1034_v35 = vsel %vm256_vm0, %v362_v56, %v7590_v41 }
 0x492   : > { %v4993_v5 = vpack.c.bf16 %v13724_v63, %v13721_v1  ;;  %v4928_v2 = vsel %vm4921_vm10, %v4895_v29, %v9289_v23  ;;  %v4929_v12 = vsel %vm4921_vm10, %v4896_v40, %v9290_v38  ;;  %v1067_v34 = vsel %vm1041_vm3, %v1034_v35, %v7670_v24 }
 0x493   : > { %v9294_v14 = vunpack.i.l.bf16 %v13422_v55  ;;  %v1066_v45 = vsel %vm1041_vm3, %v1033_v32, %v7669_v43  ;;  %v7750_v18 = vunpack.i.h.bf16 %v15912_v4  ;;  %v7749_v25 = vunpack.i.l.bf16 %v15912_v4 }
 0x494   : > { %v7830_v41 = vunpack.i.h.bf16 %v15913_v28  ;;  %v4962_v24 = vsel %vm4954_vm11, %v4929_v12, %v9295_v49  ;;  %v7829_v26 = vunpack.i.l.bf16 %v15913_v28  ;;  %v9190_v55 = vunpack.i.h.bf16 %v13037_v21 }
 0x495   : > { %v9343_v3 = vpop.permute.xlu0 %9342  ;;  %v9363_v0 = vpop.permute.xlu1 %9362  ;;  %v4961_v16 = vsel %vm4954_vm11, %v4928_v2, %v9294_v14  ;;  %v9350_v9 = vunpack.i.h.bf16 %v9348_v11  ;;  %v9349_v43 = vunpack.i.l.bf16 %v9348_v11  ;;  %v9189_v50 = vunpack.i.l.bf16 %v13037_v21 }
 0x496   : > { %v9345_v33 = vunpack.i.h.bf16 %v9343_v3  ;;  %v9344_v52 = vunpack.i.l.bf16 %v9343_v3  ;;  %v9340_v38 = vunpack.i.h.bf16 %v13553_v15  ;;  %v9339_v59 = vunpack.i.l.bf16 %v13553_v15 }
 0x497   : > { %v4990_v56 = vpack.c.bf16 %v4962_v24, %v4961_v16  ;;  %v1099_v11 = vsel %vm1074_vm4, %v1066_v45, %v7749_v25  ;;  %v1100_v21 = vsel %vm1074_vm4, %v1067_v34, %v7750_v18  ;;  %v9385_v34 = vunpack.i.h.bf16 %v9383_v27 }
 0x498   : > { %v4936_v23 = vsel %vm4921_vm10, %v13431_v10, %v9344_v52  ;;  %v4937_v30 = vsel %vm4921_vm10, %v13434_v7, %v9345_v33  ;;  %v1132_v10 = vsel %vm1107_vm5, %v1099_v11, %v7829_v26  ;;  %v1133_v7 = vsel %vm1107_vm5, %v1100_v21, %v7830_v41 }
 0x499   : > { %v13753_v53 = vsel %vm4954_vm11, %v4936_v23, %v9349_v43  ;;  %v13756_v58 = vsel %vm4954_vm11, %v4937_v30, %v9350_v9  ;;  %v4880_v15 = vsel %vm4855_vm6, %v1132_v10, %v9189_v50  ;;  %v4881_v22 = vsel %vm4855_vm6, %v1133_v7, %v9190_v55  ;;  %v15914_v55 = vld [vmem:[#allocation20_spill] sm:$0xff]  ;;  %v363_v23 = vld [vmem:[#allocation2 + $0x138] sm:$0xff]  ;;  %v364_v30 = vld [vmem:[#allocation2 + $0x140] sm:$0xff]  ;;  %v9398_v10 = vpop.permute.xlu2 %9397 }
 0x49a   : > { %v4994_v31 = vpack.c.bf16 %v13756_v58, %v13753_v53  ;;  %v4913_v61 = vsel %vm4888_vm7, %v4880_v15, %v9339_v59  ;;  %v4914_v8 = vsel %vm4888_vm7, %v4881_v22, %v9340_v38  ;;  %v9384_v49 = vunpack.i.l.bf16 %v9383_v27  ;;  %v15915_v59 = vld [vmem:[#allocation24_spill] sm:$0xff]  ;;  %v15916_v15 = vld [vmem:[#allocation43_spill] sm:$0xff] }
 0x49b   : > { %7188 = vmatmul.msk.bf16.gmra.mxu0 %vm5022_vm12, %v4990_v56  ;;  %v9365_v14 = vunpack.i.h.bf16 %v9363_v0  ;;  %v9364_v45 = vunpack.i.l.bf16 %v9363_v0  ;;  %v7595_v9 = vunpack.i.h.bf16 %v15914_v55  ;;  %v7594_v43 = vunpack.i.l.bf16 %v15914_v55  ;;  %v13936_v58 = vld [vmem:[%s14905_s2] ss:$0 sm:$0xff] }
 0x49c   : > { %v7674_v56 = vunpack.i.l.bf16 %v15915_v59  ;;  %v7755_v22 = vunpack.i.h.bf16 %v15916_v15  ;;  %v7754_v27 = vunpack.i.l.bf16 %v15916_v15  ;;  %v365_v15 = vld [vmem:[#allocation2 + $0x150] sm:$0xff]  ;;  %v9199_v37 = vunpack.i.l.bf16 %v13284_v47 }
 0x49d   : > { %v9358_v29 = vpop.permute.xlu0 %9357  ;;  %v9378_v40 = vpop.permute.xlu1 %9377  ;;  %v1036_v21 = vsel %vm256_vm0, %v364_v30, %v7595_v9  ;;  %vm7068_vm9 = vcmask 1043968  }
 0x49e   : > { %v9360_v35 = vunpack.i.h.bf16 %v9358_v29  ;;  %v9359_v2 = vunpack.i.l.bf16 %v9358_v29  ;;  %v9380_v12 = vunpack.i.h.bf16 %v9378_v40  ;;  %v9379_v32 = vunpack.i.l.bf16 %v9378_v40 }
 0x4a0   : > { %v4938_v4 = vsel %vm4921_vm10, %v13471_v60, %v9359_v2  ;;  %v4939_v18 = vsel %vm4921_vm10, %v13474_v17, %v9360_v35  ;;  %v4946_v25 = vsel %vm4921_vm10, %v4913_v61, %v9379_v32  ;;  %v4947_v28 = vsel %vm4921_vm10, %v4914_v8, %v9380_v12 }
 0x4a1   : > { %v4979_v41 = vsel %vm4954_vm11, %v4946_v25, %v9384_v49  ;;  %v4980_v3 = vsel %vm4954_vm11, %v4947_v28, %v9385_v34  ;;  %v13778_v33 = vsel %vm4954_vm11, %v4938_v4, %v9364_v45  ;;  %v13781_v52 = vsel %vm4954_vm11, %v4939_v18, %v9365_v14 }
 0x4a2   : > { %v4999_v0 = vpack.c.bf16 %v4980_v3, %v4979_v41  ;;  %v4995_v60 = vpack.c.bf16 %v13781_v52, %v13778_v33  ;;  %v9195_v4 = vunpack.i.h.bf16 %v13216_v20  ;;  %v9194_v18 = vunpack.i.l.bf16 %v13216_v20 }
 0x4a3   : > { %v9354_v41 = vunpack.i.l.bf16 %v13590_v44  ;;  %v9400_v20 = vunpack.i.h.bf16 %v9398_v10 }
 0x4a4   : > { %7197 = vmatmul.msk.bf16.vlgmr.msra.gmra.mxu2 %vm5022_vm12, %v4999_v0  ;;  %v9399_v0 = vunpack.i.l.bf16 %v9398_v10 }
 0x4a5   : > { %v9373_v17 = vpop.permute.xlu0 %9372  ;;  %v9393_v16 = vpop.permute.xlu1 %9392 }
 0x4a6   : > { %v9375_v24 = vunpack.i.h.bf16 %v9373_v17  ;;  %v9374_v26 = vunpack.i.l.bf16 %v9373_v17  ;;  %v9395_v12 = vunpack.i.h.bf16 %v9393_v16  ;;  %v9394_v32 = vunpack.i.l.bf16 %v9393_v16 }
 0x4a8   : > { %v13790_v50 = vsel %vm4954_vm11, %v13643_v54, %v9374_v26  ;;  %v13794_v38 = vsel %vm4954_vm11, %v13647_v13, %v9375_v24  ;;  %v1035_v54 = vsel %vm256_vm0, %v363_v23, %v7594_v43  ;;  %v7675_v13 = vunpack.i.h.bf16 %v15915_v59 }
 0x4a9   : > { %v4996_v11 = vpack.c.bf16 %v13794_v38, %v13790_v50  ;;  %v1068_v7 = vsel %vm1041_vm3, %v1035_v54, %v7674_v56  ;;  %v9413_v56 = vpop.permute.xlu2 %9412 }
 0x4ab   : > { %7189 = vmatmul.msk.bf16.gmra.mxu0 %vm5022_vm12, %v4991_v36  ;;  %v15917_v36 = vld [vmem:[#allocation57_spill] sm:$0xff] }
 0x4ac   : > { %v7835_v35 = vunpack.i.h.bf16 %v15917_v36  ;;  %v7834_v2 = vunpack.i.l.bf16 %v15917_v36 }
 0x4ad   : > { %v9388_v61 = vpop.permute.xlu0 %9387  ;;  %v9408_v8 = vpop.permute.xlu1 %9407 }
 0x4ae   : > { %v9390_v29 = vunpack.i.h.bf16 %v9388_v61  ;;  %v9389_v40 = vunpack.i.l.bf16 %v9388_v61  ;;  %v9410_v57 = vunpack.i.h.bf16 %v9408_v8  ;;  %v9409_v19 = vunpack.i.l.bf16 %v9408_v8 }
 0x4b0   : > { %v4942_v34 = vsel %vm4921_vm10, %v13632_v51, %v9389_v40  ;;  %v4943_v49 = vsel %vm4921_vm10, %v13635_v46, %v9390_v29  ;;  %v4944_v14 = vsel %vm4921_vm10, %v13684_v48, %v9409_v19  ;;  %v4945_v45 = vsel %vm4921_vm10, %v13687_v62, %v9410_v57  ;;  %v15920_v40 = vld [vmem:[#allocation47_spill] sm:$0xff] }
 0x4b1   : > { %v13822_v25 = vsel %vm4954_vm11, %v4942_v34, %v9394_v32  ;;  %v13825_v28 = vsel %vm4954_vm11, %v4943_v49, %v9395_v12  ;;  %v1069_v51 = vsel %vm1041_vm3, %v1036_v21, %v7675_v13  ;;  %v9355_v46 = vunpack.i.h.bf16 %v13590_v44  ;;  %v15918_v21 = vld [vmem:[#allocation11_spill] sm:$0xff] }
 0x4b2   : > { %v4997_v48 = vpack.c.bf16 %v13825_v28, %v13822_v25  ;;  %v1101_v62 = vsel %vm1074_vm4, %v1068_v7, %v7754_v27  ;;  %v1102_v3 = vsel %vm1074_vm4, %v1069_v51, %v7755_v22  ;;  %v7600_v54 = vunpack.i.h.bf16 %v15918_v21  ;;  %v366_v22 = vld [vmem:[#allocation2 + $0x158] sm:$0xff]  ;;  %v15919_v27 = vld [vmem:[#allocation31_spill] sm:$0xff] }
 0x4b3   : > { %v1134_v17 = vsel %vm1107_vm5, %v1101_v62, %v7834_v2  ;;  %v1135_v16 = vsel %vm1107_vm5, %v1102_v3, %v7835_v35  ;;  %v7599_v10 = vunpack.i.l.bf16 %v15918_v21  ;;  %v7680_v61 = vunpack.i.h.bf16 %v15919_v27  ;;  %v15921_v2 = vld [vmem:[#allocation51_spill] sm:$0xff] }
 0x4b4   : > { %v4882_v24 = vsel %vm4855_vm6, %v1134_v17, %v9194_v18  ;;  %v4883_v26 = vsel %vm4855_vm6, %v1135_v16, %v9195_v4  ;;  %v7679_v8 = vunpack.i.l.bf16 %v15919_v27  ;;  %v7760_v57 = vunpack.i.h.bf16 %v15920_v40 }
 0x4b5   : > { %v9403_v55 = vpop.permute.xlu0 %9402  ;;  %v4915_v44 = vsel %vm4888_vm7, %v4882_v24, %v9354_v41  ;;  %v4916_v9 = vsel %vm4888_vm7, %v4883_v26, %v9355_v46  ;;  %v7759_v19 = vunpack.i.l.bf16 %v15920_v40  ;;  %v1038_v36 = vsel %vm256_vm0, %v366_v22, %v7600_v54  ;;  %v9423_v34 = vpop.permute.xlu1 %9422  ;;  %v15922_v54 = vld [vmem:[#allocation19_spill] sm:$0xff] }
 0x4b6   : > { %v9405_v43 = vunpack.i.h.bf16 %v9403_v55  ;;  %v9404_v23 = vunpack.i.l.bf16 %v9403_v55  ;;  %v4948_v30 = vsel %vm4921_vm10, %v4915_v44, %v9399_v0  ;;  %v4949_v59 = vsel %vm4921_vm10, %v4916_v9, %v9400_v20  ;;  %v9428_v44 = vpop.permute.xlu2 %9427  ;;  %v15923_v22 = vld [vmem:[#allocation35_spill] sm:$0xff] }
 0x4b7   : > { %v1037_v35 = vsel %vm256_vm0, %v365_v15, %v7599_v10  ;;  %v7840_v12 = vunpack.i.h.bf16 %v15921_v2  ;;  %v7839_v32 = vunpack.i.l.bf16 %v15921_v2  ;;  %v1071_v49 = vsel %vm1041_vm3, %v1038_v36, %v7680_v61  ;;  %v368_v15 = vld [vmem:[#allocation2 + $0x170] sm:$0xff]  ;;  %v15925_v36 = vld [vmem:[#allocation56_spill] sm:$0xff] }
 0x4b8   : > { %v4981_v13 = vsel %vm4954_vm11, %v4948_v30, %v9404_v23  ;;  %v4982_v7 = vsel %vm4954_vm11, %v4949_v59, %v9405_v43  ;;  %v1070_v4 = vsel %vm1041_vm3, %v1037_v35, %v7679_v8  ;;  %v9200_v18 = vunpack.i.h.bf16 %v13284_v47  ;;  %v15924_v8 = vld [vmem:[#allocation38_spill] sm:$0xff] }
 0x4b9   : > { %v5000_v29 = vpack.c.bf16 %v4982_v7, %v4981_v13  ;;  %v9414_v51 = vunpack.i.l.bf16 %v9413_v56  ;;  %v1104_v62 = vsel %vm1074_vm4, %v1071_v49, %v7760_v57  ;;  %v1103_v3 = vsel %vm1074_vm4, %v1070_v4, %v7759_v19  ;;  %v367_v7 = vld [vmem:[#allocation2 + $0x168] sm:$0xff] }
 0x4ba   : > { %v9425_v20 = vunpack.i.h.bf16 %v9423_v34  ;;  %v9424_v0 = vunpack.i.l.bf16 %v9423_v34  ;;  %v1136_v17 = vsel %vm1107_vm5, %v1103_v3, %v7839_v32  ;;  %v1137_v16 = vsel %vm1107_vm5, %v1104_v62, %v7840_v12 }
 0x4bb   : > { %7190 = vmatmul.msk.bf16.gmra.mxu0 %vm5022_vm12, %v4992_v6  ;;  %7198 = vmatmul.msk.bf16.gmra.mxu2 %vm5022_vm12, %v5000_v29  ;;  %v9415_v6 = vunpack.i.h.bf16 %v9413_v56  ;;  %v4884_v26 = vsel %vm4855_vm6, %v1136_v17, %v9199_v37  ;;  %v4885_v55 = vsel %vm4855_vm6, %v1137_v16, %v9200_v18  ;;  %v9430_v59 = vunpack.i.h.bf16 %v9428_v44 }
 0x4bc   : > { %v4917_v43 = vsel %vm4888_vm7, %v4884_v26, %v9414_v51  ;;  %v9429_v56 = vunpack.i.l.bf16 %v9428_v44  ;;  %v7605_v10 = vunpack.i.h.bf16 %v15922_v54  ;;  %v7604_v13 = vunpack.i.l.bf16 %v15922_v54 }
 0x4bd   : > { %v9418_v39 = vpop.permute.xlu0 %9417  ;;  %v4918_v23 = vsel %vm4888_vm7, %v4885_v55, %v9415_v6  ;;  %v4950_v30 = vsel %vm4921_vm10, %v4917_v43, %v9424_v0  ;;  %v7685_v27 = vunpack.i.h.bf16 %v15923_v22  ;;  %v7684_v61 = vunpack.i.l.bf16 %v15923_v22 }
 0x4be   : > { %v9420_v46 = vunpack.i.h.bf16 %v9418_v39  ;;  %v9419_v41 = vunpack.i.l.bf16 %v9418_v39  ;;  %v7765_v29 = vunpack.i.h.bf16 %v15924_v8  ;;  %v7764_v40 = vunpack.i.l.bf16 %v15924_v8  ;;  %v9443_v3 = vpop.permute.xlu2 %9442 }
 0x4bf   : > { %v7845_v35 = vunpack.i.h.bf16 %v15925_v36  ;;  %v7844_v2 = vunpack.i.l.bf16 %v15925_v36  ;;  %v1040_v12 = vsel %vm256_vm0, %v368_v15, %v7605_v10  ;;  %v1039_v32 = vsel %vm256_vm0, %v367_v7, %v7604_v13 }
 0x4c0   : > { %v13868_v24 = vsel %vm4954_vm11, %v4944_v14, %v9419_v41  ;;  %v13871_v47 = vsel %vm4954_vm11, %v4945_v45, %v9420_v46  ;;  %v4951_v14 = vsel %vm4921_vm10, %v4918_v23, %v9425_v20  ;;  %v4983_v45 = vsel %vm4954_vm11, %v4950_v30, %v9429_v56  ;;  %v9438_v41 = vpop.permute.xlu1 %9437 }
 0x4c1   : > { %v4998_v9 = vpack.c.bf16 %v13871_v47, %v13868_v24  ;;  %v4984_v21 = vsel %vm4954_vm11, %v4951_v14, %v9430_v59  ;;  %v9205_v34 = vunpack.i.h.bf16 %v13093_v42  ;;  %v9204_v49 = vunpack.i.l.bf16 %v13093_v42 }
 0x4c2   : > { %v5001_v19 = vpack.c.bf16 %v4984_v21, %v4983_v45  ;;  %v1073_v4 = vsel %vm1041_vm3, %v1040_v12, %v7685_v27  ;;  %v1072_v18 = vsel %vm1041_vm3, %v1039_v32, %v7684_v61  ;;  %v9440_v20 = vunpack.i.h.bf16 %v9438_v41 }
 0x4c3   : > { %v1105_v6 = vsel %vm1074_vm4, %v1072_v18, %v7764_v40  ;;  %v1106_v51 = vsel %vm1074_vm4, %v1073_v4, %v7765_v29  ;;  %v9439_v0 = vunpack.i.l.bf16 %v9438_v41  ;;  %v9445_v26 = vunpack.i.h.bf16 %v9443_v3 }
 0x4c4   : > { %v1138_v46 = vsel %vm1107_vm5, %v1105_v6, %v7844_v2  ;;  %v1139_v42 = vsel %vm1107_vm5, %v1106_v51, %v7845_v35  ;;  %v9444_v55 = vunpack.i.l.bf16 %v9443_v3  ;;  %v15926_v30 = vmov 0.0  }
 0x4c5   : > { %v9433_v57 = vpop.permute.xlu0 %9432  ;;  %v4886_v1 = vsel %vm4855_vm6, %v1138_v46, %v9204_v49  ;;  %v4887_v63 = vsel %vm4855_vm6, %v1139_v42, %v9205_v34  ;;  %5271 = vst.msk [vmem:[#allocation4] sm:$0xff] %vm5215_vm13, %v15926_v30  ;;  %vm5451_vm0 = vcmask 523264   ;;  %vm7041_vm3 = vcmask 1045509  }
 0x4c6   : > { %v9435_v37 = vunpack.i.h.bf16 %v9433_v57  ;;  %v9434_v39 = vunpack.i.l.bf16 %v9433_v57  ;;  %5274 = vst.msk [vmem:[#allocation4 + $0x10] sm:$0xff] %vm5215_vm13, %v15926_v30  ;;  %vm7044_vm4 = vcmask 1042434   ;;  %vm7046_vm5 = vcmask 1046534  }
 0x4c7   : > { %5277 = vst.msk [vmem:[#allocation4 + $0xa0] sm:$0xff] %vm5215_vm13, %v15926_v30  ;;  %vm7049_vm6 = vcmask 1043459  }
 0x4c8   : > { %v4920_v62 = vsel %vm4888_vm7, %v4887_v63, %v9435_v37  ;;  %5279 = vst.msk [vmem:[#allocation4 + $0xb0] sm:$0xff] %vm5215_vm13, %v15926_v30 }
 0x4c9   : > { %v4953_v16 = vsel %vm4921_vm10, %v4920_v62, %v9440_v20  ;;  %5283 = vst.msk [vmem:[#allocation4 + $0x20] sm:$0x3] %vm5282_vm14, %v15926_v30 }
 0x4ca   : > { %v4986_v43 = vsel %vm4954_vm11, %v4953_v16, %v9445_v26  ;;  %5284 = vst.msk [vmem:[#allocation4 + $0x30] sm:$0x3] %vm5282_vm14, %v15926_v30 }
 0x4cb   : > { %7191 = vmatmul.msk.bf16.gmra.mxu0 %vm5022_vm12, %v4993_v5  ;;  %7199 = vmatmul.msk.bf16.gmra.mxu2 %vm5022_vm12, %v5001_v19  ;;  %v4919_v5 = vsel %vm4888_vm7, %v4886_v1, %v9434_v39  ;;  %5285 = vst.msk [vmem:[#allocation4 + $0x40] sm:$0x3] %vm5282_vm14, %v15926_v30  ;;  %vm7051_vm7 = vcmask 1047559  }
 0x4cc   : > { %v4952_v17 = vsel %vm4921_vm10, %v4919_v5, %v9439_v0  ;;  %5286 = vst.msk [vmem:[#allocation4 + $0x50] sm:$0x3] %vm5282_vm14, %v15926_v30 }
 0x4cd   : > { %v4985_v44 = vsel %vm4954_vm11, %v4952_v17, %v9444_v55  ;;  %5287 = vst.msk [vmem:[#allocation4 + $0x60] sm:$0x3] %vm5282_vm14, %v15926_v30 }
 0x4ce   : > { %v5002_v23 = vpack.c.bf16 %v4986_v43, %v4985_v44  ;;  %5288 = vst.msk [vmem:[#allocation4 + $0x70] sm:$0x3] %vm5282_vm14, %v15926_v30 }
 0x4cf   : > { %5289 = vst.msk [vmem:[#allocation4 + $0x80] sm:$0x3] %vm5282_vm14, %v15926_v30 }
 0x4d0   : > { %5290 = vst.msk [vmem:[#allocation4 + $0x90] sm:$0x3] %vm5282_vm14, %v15926_v30 }
 0x4d1   : > { %5291 = vst.msk [vmem:[#allocation4 + $0x2a] sm:$0x3] %vm5282_vm14, %v15926_v30 }
 0x4d2   : > { %5292 = vst.msk [vmem:[#allocation4 + $0x3a] sm:$0x3] %vm5282_vm14, %v15926_v30 }
 0x4d3   : > { %5293 = vst.msk [vmem:[#allocation4 + $0x4a] sm:$0x3] %vm5282_vm14, %v15926_v30 }
 0x4d4   : > { %5294 = vst.msk [vmem:[#allocation4 + $0x5a] sm:$0x3] %vm5282_vm14, %v15926_v30 }
 0x4d5   : > { %5295 = vst.msk [vmem:[#allocation4 + $0x6a] sm:$0x3] %vm5282_vm14, %v15926_v30 }
 0x4d6   : > { %5296 = vst.msk [vmem:[#allocation4 + $0x7a] sm:$0x3] %vm5282_vm14, %v15926_v30 }
 0x4d7   : > { %5297 = vst.msk [vmem:[#allocation4 + $0x8a] sm:$0x3] %vm5282_vm14, %v15926_v30 }
 0x4d8   : > { %5298 = vst.msk [vmem:[#allocation4 + $0x9a] sm:$0x3] %vm5282_vm14, %v15926_v30 }
 0x4d9   : > { %5273 = vst.msk [vmem:[#allocation4 + $0x8] sm:$0xf] %vm5272_vm15, %v15926_v30 }
 0x4da   : > { %5275 = vst.msk [vmem:[#allocation4 + $0x18] sm:$0xf] %vm5272_vm15, %v15926_v30 }
 0x4db   : > { %7192 = vmatmul.msk.bf16.gmra.mxu0 %vm5022_vm12, %v4994_v31  ;;  %7200 = vmatmul.msk.bf16.gmra.mxu2 %vm5022_vm12, %v5002_v23  ;;  %5278 = vst.msk [vmem:[#allocation4 + $0xa8] sm:$0xf] %vm5272_vm15, %v15926_v30 }
 0x4dc   : > { %5280 = vst.msk [vmem:[#allocation4 + $0xb8] sm:$0xf] %vm5272_vm15, %v15926_v30 }
 0x4e7   : > { %v5087_v14 = vpop.f32.mrf.mxu0 }
 0x4e8   : > { %v5088_v31 = vadd.f32 %v13936_v58, %v5087_v14 }
 0x4eb   : > { %7193 = vmatmul.msk.bf16.gmra.mxu0 %vm5022_vm12, %v4995_v60  ;;  %v5167_v60 = vmax.f32 %v5088_v31, 0.0 }
 0x4ef   : > { %v5089_v53 = vpop.f32.mrf.mxu0 }
 0x4f0   : > { %v5090_v45 = vadd.f32 %v13936_v58, %v5089_v53 }
 0x4f8   : > { %v5092_v33 = vpop.f32.mrf.mxu0 }
 0x4f9   : > { %v5093_v52 = vadd.f32 %v13936_v58, %v5092_v33 }
 0x4fb   : > { %v5169_v59 = vmax.f32 %v5093_v52, 0.0  ;;  %7194 = vmatmul.msk.bf16.gmra.mxu0 %vm5022_vm12, %v4996_v11  ;;  %v5168_v11 = vmax.f32 %v5090_v45, 0.0 }
 0x4fd   : > { %v5199_v56 = vmax.f32 %v5167_v60, %v5169_v59 }
 0x4ff   : > { %5216 = vst.msk [vmem:[#allocation3] sm:$0xff] %vm5215_vm13, %v5199_v56 }
 0x500   : > { %v5094_v50 = vpop.f32.mrf.mxu0 }
 0x501   : > { %v5095_v38 = vadd.f32 %v13936_v58, %v5094_v50 }
 0x503   : > { %v5170_v21 = vmax.f32 %v5095_v38, 0.0 }
 0x505   : > { %v5200_v54 = vmax.f32 %v5168_v11, %v5170_v21 }
 0x507   : > { %5217 = vst.msk [vmem:[#allocation3 + $0x8] sm:$0xff] %vm5215_vm13, %v5200_v54 }
 0x508   : > { %v5097_v10 = vpop.f32.mrf.mxu0 }
 0x509   : > { %v5098_v27 = vadd.f32 %v13936_v58, %v5097_v10 }
 0x50b   : > { %7195 = vmatmul.msk.bf16.gmra.mxu0 %vm5022_vm12, %v4997_v48  ;;  %v5171_v29 = vmax.f32 %v5098_v27, 0.0 }
 0x50e   : > { %v5232_v13 = vld [vmem:[#allocation3] ss:$2 sm:$0xff]  ;;  %v5248_v7 = vld [vmem:[#allocation3 + $0x1] ss:$2 sm:$0xff] }
 0x50f   : > { %v5263_v15 = vmax.f32 %v5232_v13, %v5248_v7 }
 0x510   : > { %v5099_v22 = vpop.f32.mrf.mxu0 }
 0x511   : > { %5299 = vst.msk [vmem:[#allocation4 + $0x22] sm:$0xff] %vm5215_vm13, %v5263_v15  ;;  %v5100_v28 = vadd.f32 %v13936_v58, %v5099_v22 }
 0x513   : > { %v5172_v19 = vmax.f32 %v5100_v28, 0.0 }
 0x518   : > { %v5102_v61 = vpop.f32.mrf.mxu0  ;;  %v13999_v18 = vld [vmem:[#allocation4 + $0x21] sm:$0xff] }
 0x519   : > { %v5103_v8 = vadd.f32 %v13936_v58, %v5102_v61 }
 0x51b   : > { %v5173_v40 = vmax.f32 %v5103_v8, 0.0  ;;  %7196 = vmatmul.msk.bf16.gmra.mxu0 %vm5022_vm12, %v4998_v9 }
 0x51d   : > { %v5201_v25 = vmax.f32 %v5171_v29, %v5173_v40 }
 0x51f   : > { %5218 = vst.msk [vmem:[#allocation3 + $0x10] sm:$0xff] %vm5215_vm13, %v5201_v25 }
 0x520   : > { %v5104_v48 = vpop.f32.mrf.mxu0 }
 0x521   : > { %v5105_v57 = vadd.f32 %v13936_v58, %v5104_v48 }
 0x523   : > { %v5174_v36 = vmax.f32 %v5105_v57, 0.0 }
 0x525   : > { %v5202_v35 = vmax.f32 %v5172_v19, %v5174_v36 }
 0x527   : > { %5219 = vst.msk [vmem:[#allocation3 + $0x18] sm:$0xff] %vm5215_vm13, %v5202_v35  ;;  %v5147_v12 = vpop.f32.mrf.mxu2 }
 0x528   : > { %v5107_v2 = vpop.f32.mrf.mxu0  ;;  %v5148_v42 = vadd.f32 %v13936_v58, %v5147_v12 }
 0x529   : > { %v5108_v49 = vadd.f32 %v13936_v58, %v5107_v2 }
 0x52a   : > { %v5191_v3 = vmax.f32 %v5148_v42, 0.0 }
 0x52b   : > { %v5175_v51 = vmax.f32 %v5108_v49, 0.0 }
 0x52e   : > { %v5234_v32 = vld [vmem:[#allocation3 + $0x10] ss:$2 sm:$0xff]  ;;  %v5250_v34 = vld [vmem:[#allocation3 + $0x11] ss:$2 sm:$0xff] }
 0x52f   : > { %v5264_v24 = vmax.f32 %v5234_v32, %v5250_v34  ;;  %v5149_v9 = vpop.f32.mrf.mxu2 }
 0x530   : > { %v5109_v47 = vpop.f32.mrf.mxu0  ;;  %v5150_v55 = vadd.f32 %v13936_v58, %v5149_v9 }
 0x531   : > { %5300 = vst.msk [vmem:[#allocation4 + $0x32] sm:$0xff] %vm5215_vm13, %v5264_v24  ;;  %v5110_v63 = vadd.f32 %v13936_v58, %v5109_v47 }
 0x532   : > { %v5192_v14 = vmax.f32 %v5150_v55, 0.0 }
 0x533   : > { %v5176_v17 = vmax.f32 %v5110_v63, 0.0 }
 0x538   : > { %v5112_v4 = vpop.f32.mrf.mxu0  ;;  %v5318_v37 = vld [vmem:[#allocation4 + $0x31] sm:$0xff] }
 0x539   : > { %v5113_v39 = vadd.f32 %v13936_v58, %v5112_v4  ;;  %v14003_v6 = vpack.i.bf16 %v5318_v37, %v13999_v18 }
 0x53b   : > { %v5177_v46 = vmax.f32 %v5113_v39, 0.0  ;;  %9452 = vrot.lane.b32.xlu1 %v14003_v6, %s9944_s10 }
 0x53d   : > { %v5203_v41 = vmax.f32 %v5175_v51, %v5177_v46 }
 0x53e   : > { %v5152_v1 = vpop.f32.mrf.mxu2 }
 0x53f   : > { %5220 = vst.msk [vmem:[#allocation3 + $0x20] sm:$0xff] %vm5215_vm13, %v5203_v41  ;;  %v5153_v5 = vadd.f32 %v13936_v58, %v5152_v1 }
 0x540   : > { %v5114_v62 = vpop.f32.mrf.mxu0 }
 0x541   : > { %v5193_v20 = vmax.f32 %v5153_v5, 0.0  ;;  %v5115_v0 = vadd.f32 %v13936_v58, %v5114_v62 }
 0x543   : > { %v5211_v16 = vmax.f32 %v5191_v3, %v5193_v20  ;;  %v5178_v26 = vmax.f32 %v5115_v0, 0.0 }
 0x545   : > { %5228 = vst.msk [vmem:[#allocation3 + $0x60] sm:$0xff] %vm5215_vm13, %v5211_v16  ;;  %v5204_v44 = vmax.f32 %v5176_v17, %v5178_v26  ;;  %v14044_v16 = vld [vmem:[#allocation4 + $0x32] sm:$0xff] }
 0x546   : > { %v5154_v43 = vpop.f32.mrf.mxu2 }
 0x547   : > { %5221 = vst.msk [vmem:[#allocation3 + $0x28] sm:$0xff] %vm5215_vm13, %v5204_v44  ;;  %v5155_v23 = vadd.f32 %v13936_v58, %v5154_v43  ;;  %v14048_v44 = vld [vmem:[#allocation4 + $0x22] sm:$0xff] }
 0x548   : > { %v5117_v30 = vpop.f32.mrf.mxu0 }
 0x549   : > { %v5194_v53 = vmax.f32 %v5155_v23, 0.0  ;;  %v5118_v21 = vadd.f32 %v13936_v58, %v5117_v30  ;;  %v14053_v23 = vpack.i.bf16 %v14044_v16, %v14048_v44 }
 0x54b   : > { %v5212_v31 = vmax.f32 %v5192_v14, %v5194_v53  ;;  %v5179_v15 = vmax.f32 %v5118_v21, 0.0 }
 0x54d   : > { %5229 = vst.msk [vmem:[#allocation3 + $0x68] sm:$0xff] %vm5215_vm13, %v5212_v31 }
 0x54e   : > { %v5236_v33 = vld [vmem:[#allocation3 + $0x20] ss:$2 sm:$0xff]  ;;  %v5252_v52 = vld [vmem:[#allocation3 + $0x21] ss:$2 sm:$0xff]  ;;  %v5157_v60 = vpop.f32.mrf.mxu2 }
 0x54f   : > { %v5265_v59 = vmax.f32 %v5236_v33, %v5252_v52  ;;  %v5158_v27 = vadd.f32 %v13936_v58, %v5157_v60  ;;  %v5315_v33 = vld [vmem:[#allocation4 + $0x1] sm:$0xff]  ;;  %v14058_v52 = vld [vmem:[#allocation4 + $0x11] sm:$0xff] }
 0x550   : > { %v5119_v56 = vpop.f32.mrf.mxu0  ;;  %v9446_v60 = vpack.i.bf16 %v14058_v52, %v5315_v33 }
 0x551   : > { %5301 = vst.msk [vmem:[#allocation4 + $0x42] sm:$0xff] %vm5215_vm13, %v5265_v59  ;;  %v5120_v29 = vadd.f32 %v13936_v58, %v5119_v56  ;;  %v5195_v28 = vmax.f32 %v5158_v27, 0.0  ;;  %v5323_v59 = vld [vmem:[#allocation4 + $0x2] sm:$0xff]  ;;  %v14061_v56 = vld [vmem:[#allocation4 + $0x12] sm:$0xff] }
 0x552   : > { %9447 = vrot.lane.b32.xlu0 %v9446_v60, %s9944_s10 }
 0x553   : > { %v5180_v19 = vmax.f32 %v5120_v29, 0.0 }
 0x554   : > { %v5244_v45 = vld [vmem:[#allocation3 + $0x60] ss:$2 sm:$0xff]  ;;  %v5260_v50 = vld [vmem:[#allocation3 + $0x61] ss:$2 sm:$0xff] }
 0x555   : > { %v5269_v38 = vmax.f32 %v5244_v45, %v5260_v50  ;;  %v9466_v45 = vpack.i.bf16 %v14061_v56, %v5323_v59 }
 0x556   : > { %v5159_v11 = vpop.f32.mrf.mxu2 }
 0x557   : > { %5305 = vst.msk [vmem:[#allocation4 + $0x82] sm:$0xff] %vm5215_vm13, %v5269_v38  ;;  %v5160_v2 = vadd.f32 %v13936_v58, %v5159_v11  ;;  %9467 = vrot.lane.b32.xlu1 %v9466_v45, %s9945_s11 }
 0x558   : > { %v5122_v54 = vpop.f32.mrf.mxu0  ;;  %v5319_v10 = vld [vmem:[#allocation4 + $0x41] sm:$0xff] }
 0x559   : > { %v5123_v13 = vadd.f32 %v13936_v58, %v5122_v54  ;;  %v14021_v7 = vpack.i.bf16 %v5319_v10, %v5318_v37  ;;  %v5196_v47 = vmax.f32 %v5160_v2, 0.0  ;;  %v5331_v54 = vld [vmem:[#allocation4 + $0x3] sm:$0xff] }
 0x55b   : > { %v5181_v22 = vmax.f32 %v5123_v13, 0.0 }
 0x55d   : > { %v5205_v61 = vmax.f32 %v5179_v15, %v5181_v22 }
 0x55e   : > { %v5162_v8 = vpop.f32.mrf.mxu2 }
 0x55f   : > { %5222 = vst.msk [vmem:[#allocation3 + $0x30] sm:$0xff] %vm5215_vm13, %v5205_v61  ;;  %v5163_v40 = vadd.f32 %v13936_v58, %v5162_v8 }
 0x560   : > { %v5124_v25 = vpop.f32.mrf.mxu0 }
 0x561   : > { %v5197_v48 = vmax.f32 %v5163_v40, 0.0  ;;  %v5125_v57 = vadd.f32 %v13936_v58, %v5124_v25 }
 0x563   : > { %v5213_v36 = vmax.f32 %v5195_v28, %v5197_v48  ;;  %v5182_v35 = vmax.f32 %v5125_v57, 0.0 }
 0x565   : > { %5230 = vst.msk [vmem:[#allocation3 + $0x70] sm:$0xff] %vm5215_vm13, %v5213_v36  ;;  %v5206_v12 = vmax.f32 %v5180_v19, %v5182_v35 }
 0x566   : > { %v5164_v32 = vpop.f32.mrf.mxu2 }
 0x567   : > { %5223 = vst.msk [vmem:[#allocation3 + $0x38] sm:$0xff] %vm5215_vm13, %v5206_v12  ;;  %v5165_v34 = vadd.f32 %v13936_v58, %v5164_v32 }
 0x568   : > { %v5127_v24 = vpop.f32.mrf.mxu0 }
 0x569   : > { %v5198_v9 = vmax.f32 %v5165_v34, 0.0  ;;  %v5128_v1 = vadd.f32 %v13936_v58, %v5127_v24 }
 0x56b   : > { %v5214_v49 = vmax.f32 %v5196_v47, %v5198_v9  ;;  %v5183_v20 = vmax.f32 %v5128_v1, 0.0 }
 0x56d   : > { %5231 = vst.msk [vmem:[#allocation3 + $0x78] sm:$0xff] %vm5215_vm13, %v5214_v49 }
 0x56e   : > { %v5238_v4 = vld [vmem:[#allocation3 + $0x30] ss:$2 sm:$0xff]  ;;  %v5254_v37 = vld [vmem:[#allocation3 + $0x31] ss:$2 sm:$0xff] }
 0x56f   : > { %v5266_v39 = vmax.f32 %v5238_v4, %v5254_v37 }
 0x570   : > { %v5129_v51 = vpop.f32.mrf.mxu0 }
 0x571   : > { %5302 = vst.msk [vmem:[#allocation4 + $0x52] sm:$0xff] %vm5215_vm13, %v5266_v39  ;;  %v5130_v26 = vadd.f32 %v13936_v58, %v5129_v51  ;;  %v5327_v51 = vld [vmem:[#allocation4 + $0x42] sm:$0xff] }
 0x573   : > { %v5184_v30 = vmax.f32 %v5130_v26, 0.0 }
 0x574   : > { %v5246_v46 = vld [vmem:[#allocation3 + $0x70] ss:$2 sm:$0xff]  ;;  %v5262_v42 = vld [vmem:[#allocation3 + $0x71] ss:$2 sm:$0xff] }
 0x575   : > { %v5270_v41 = vmax.f32 %v5246_v46, %v5262_v42 }
 0x577   : > { %5306 = vst.msk [vmem:[#allocation4 + $0x92] sm:$0xff] %vm5215_vm13, %v5270_v41  ;;  %v5335_v41 = vld [vmem:[#allocation4 + $0x43] sm:$0xff] }
 0x578   : > { %v5132_v63 = vpop.f32.mrf.mxu0  ;;  %v14036_v5 = vld [vmem:[#allocation4 + $0x51] sm:$0xff] }
 0x579   : > { %v5133_v62 = vadd.f32 %v13936_v58, %v5132_v63  ;;  %v14040_v3 = vpack.i.bf16 %v14036_v5, %v5319_v10  ;;  %v14067_v10 = vld [vmem:[#allocation4 + $0x13] sm:$0xff] }
 0x57a   : > { %v9486_v13 = vpack.i.bf16 %v14067_v10, %v5331_v54  ;;  %v5328_v37 = vld [vmem:[#allocation4 + $0x52] sm:$0xff] }
 0x57b   : > { %v5185_v0 = vmax.f32 %v5133_v62, 0.0  ;;  %9457 = vrot.lane.b32.xlu2 %v14040_v3, %s9944_s10  ;;  %v5336_v39 = vld [vmem:[#allocation4 + $0x53] sm:$0xff]  ;;  %v9476_v46 = vpack.i.bf16 %v5328_v37, %v5327_v51  ;;  %v5333_v62 = vld [vmem:[#allocation4 + $0x23] sm:$0xff] }
 0x57c   : > { %v9496_v1 = vpack.i.bf16 %v5336_v39, %v5335_v41  ;;  %v5334_v63 = vld [vmem:[#allocation4 + $0x33] sm:$0xff] }
 0x57d   : > { %v5207_v17 = vmax.f32 %v5183_v20, %v5185_v0  ;;  %v9491_v20 = vpack.i.bf16 %v5334_v63, %v5333_v62  ;;  %v9531_v0 = vpack.i.bf16 %v5327_v51, %v14044_v16  ;;  %v9576_v45 = vpack.i.bf16 %v5335_v41, %v5334_v63 }
 0x57e   : > { %v14214_v51 = vld [vmem:[#allocation4 + $0x92] sm:$0xff] }
 0x57f   : > { %5224 = vst.msk [vmem:[#allocation3 + $0x40] sm:$0xff] %vm5215_vm13, %v5207_v17  ;;  %v9526_v17 = vpack.i.bf16 %v14048_v44, %v14061_v56  ;;  %v14132_v44 = vld [vmem:[#allocation4 + $0x20] sm:$0xff] }
 0x580   : > { %v5134_v55 = vpop.f32.mrf.mxu0 }
 0x581   : > { %v5135_v43 = vadd.f32 %v13936_v58, %v5134_v55  ;;  %v14121_v55 = vld [vmem:[#allocation4 + $0x81] sm:$0xff] }
 0x583   : > { %v5186_v14 = vmax.f32 %v5135_v43, 0.0  ;;  %9472 = vrot.lane.b32.xlu2 %v14053_v23, %s9945_s11 }
 0x585   : > { %v5208_v53 = vmax.f32 %v5184_v30, %v5186_v14 }
 0x587   : > { %5225 = vst.msk [vmem:[#allocation3 + $0x48] sm:$0xff] %vm5215_vm13, %v5208_v53  ;;  %v14134_v53 = vld [vmem:[#allocation4 + $0x30] sm:$0xff] }
 0x588   : > { %v5137_v31 = vpop.f32.mrf.mxu0 }
 0x589   : > { %v5138_v15 = vadd.f32 %v13936_v58, %v5137_v31 }
 0x58b   : > { %9487 = vrot.lane.b32.xlu2 %v9486_v13, %s9946_s12  ;;  %v5187_v61 = vmax.f32 %v5138_v15, 0.0  ;;  %v7414_v13 = vld [vmem:[%s14906_s3 + $0x8] sm:$0xff] }
 0x58e   : > { %v5240_v50 = vld [vmem:[#allocation3 + $0x40] ss:$2 sm:$0xff]  ;;  %v5256_v38 = vld [vmem:[#allocation3 + $0x41] ss:$2 sm:$0xff] }
 0x58f   : > { %v5267_v11 = vmax.f32 %v5240_v50, %v5256_v38  ;;  %v7420_v50 = vld [vmem:[%s14906_s3 + $0x38] sm:$0xff]  ;;  %v7419_v38 = vld [vmem:[%s14906_s3 + $0x30] sm:$0xff] }
 0x590   : > { %v5139_v21 = vpop.f32.mrf.mxu0  ;;  %6796 = vmatpush.bf16.msra.mxu1 %v7420_v50  ;;  %7466 = vmatpush.bf16.msra.mxu3 %v7420_v50 }
 0x591   : > { %5303 = vst.msk [vmem:[#allocation4 + $0x62] sm:$0xff] %vm5215_vm13, %v5267_v11  ;;  %v5140_v40 = vadd.f32 %v13936_v58, %v5139_v21  ;;  %v7418_v11 = vld [vmem:[%s14906_s3 + $0x28] sm:$0xff]  ;;  %v7417_v21 = vld [vmem:[%s14906_s3 + $0x20] sm:$0xff] }
 0x593   : > { %v5188_v48 = vmax.f32 %v5140_v40, 0.0 }
 0x594   : > { %6797 = vmatpush.bf16.msra.mxu1 %v7419_v38  ;;  %7467 = vmatpush.bf16.msra.mxu3 %v7419_v38 }
 0x598   : > { %v5142_v22 = vpop.f32.mrf.mxu0  ;;  %v5321_v12 = vld [vmem:[#allocation4 + $0x61] sm:$0xff]  ;;  %6798 = vmatpush.bf16.msra.mxu1 %v7418_v11  ;;  %7468 = vmatpush.bf16.msra.mxu3 %v7418_v11 }
 0x599   : > { %v5143_v27 = vadd.f32 %v13936_v58, %v5142_v22  ;;  %v14078_v32 = vld [vmem:[#allocation4 + $0x63] sm:$0xff]  ;;  %v14100_v42 = vpack.i.bf16 %v5321_v12, %v14036_v5  ;;  %v9506_v5 = vpack.i.bf16 %v13999_v18, %v14058_v52  ;;  %v9541_v18 = vpack.i.bf16 %v5333_v62, %v14067_v10  ;;  %v7415_v10 = vld [vmem:[%s14906_s3 + $0x10] sm:$0xff] }
 0x59a   : > { %v5329_v34 = vld [vmem:[#allocation4 + $0x62] sm:$0xff]  ;;  %v9606_v54 = vpack.i.bf16 %v14078_v32, %v5336_v39  ;;  %v14220_v62 = vld [vmem:[#allocation4 + $0x50] sm:$0xff] }
 0x59b   : > { %v5189_v8 = vmax.f32 %v5143_v27, 0.0  ;;  %v9536_v56 = vpack.i.bf16 %v5329_v34, %v5328_v37  ;;  %v5307_v22 = vld [vmem:[#allocation4] sm:$0xff]  ;;  %v14183_v27 = vld [vmem:[#allocation4 + $0x10] sm:$0xff] }
 0x59c   : > { %6799 = vmatpush.bf16.msra.mxu1 %v7417_v21  ;;  %7469 = vmatpush.bf16.msra.mxu3 %v7417_v21  ;;  %v14234_v11 = vld [vmem:[#allocation4 + $0x60] sm:$0xff] }
 0x59d   : > { %v5209_v29 = vmax.f32 %v5187_v61, %v5189_v8 }
 0x59f   : > { %5226 = vst.msk [vmem:[#allocation3 + $0x50] sm:$0xff] %vm5215_vm13, %v5209_v29 }
 0x5a0   : > { %v5144_v25 = vpop.f32.mrf.mxu0 }
 0x5a1   : > { %v5145_v28 = vadd.f32 %v13936_v58, %v5144_v25 }
 0x5a3   : > { %v5190_v57 = vmax.f32 %v5145_v28, 0.0 }
 0x5a5   : > { %v5210_v19 = vmax.f32 %v5188_v48, %v5190_v57  ;;  %v7413_v57 = vld [vmem:[%s14906_s3] sm:$0xff] }
 0x5a7   : > { %5227 = vst.msk [vmem:[#allocation3 + $0x58] sm:$0xff] %vm5215_vm13, %v5210_v19 }
 0x5ad   : > { %v9453_v26 = vpop.permute.xlu1 %9452 }
 0x5ae   : > { %v5242_v36 = vld [vmem:[#allocation3 + $0x50] ss:$2 sm:$0xff]  ;;  %v5258_v35 = vld [vmem:[#allocation3 + $0x51] ss:$2 sm:$0xff]  ;;  %v9455_v30 = vunpack.i.h.bf16 %v9453_v26  ;;  %v9454_v14 = vunpack.i.l.bf16 %v9453_v26 }
 0x5af   : > { %v5268_v2 = vmax.f32 %v5242_v36, %v5258_v35 }
 0x5b0   : > { %v5445_v52 = vsel %vm5215_vm13, %v14132_v44, %v9454_v14  ;;  %v5446_v60 = vsel %vm5215_vm13, %v14134_v53, %v9455_v30 }
 0x5b1   : > { %5304 = vst.msk [vmem:[#allocation4 + $0x72] sm:$0xff] %vm5215_vm13, %v5268_v2 }
 0x5b8   : > { %v5322_v24 = vld [vmem:[#allocation4 + $0x71] sm:$0xff] }
 0x5b9   : > { %v14080_v47 = vld [vmem:[#allocation4 + $0x73] sm:$0xff]  ;;  %v14084_v58 = vpack.i.bf16 %v5322_v24, %v5321_v12  ;;  %v14124_v43 = vpack.i.bf16 %v14121_v55, %v5322_v24 }
 0x5ba   : > { %v14082_v9 = vld [vmem:[#allocation4 + $0x72] sm:$0xff]  ;;  %v14088_v49 = vpack.i.bf16 %v14080_v47, %v14078_v32 }
 0x5bb   : > { %v14091_v4 = vpack.i.bf16 %v14082_v9, %v5329_v34  ;;  %9462 = vrot.lane.b32.xlu0 %v14084_v58, %s9944_s10  ;;  %v14202_v24 = vld [vmem:[#allocation4 + $0x14] sm:$0xff] }
 0x5bc   : > { %9502 = vrot.lane.b32.xlu2 %v14088_v49, %s9946_s12 }
 0x5bd   : > { %9482 = vrot.lane.b32.xlu1 %v14091_v4, %s9945_s11 }
 0x5c3   : > { %9477 = vrot.lane.b32.xlu0 %v9476_v46, %s9945_s11 }
 0x5c4   : > { %9517 = vrot.lane.b32.xlu2 %v14100_v42, %s9944_s10  ;;  %v9448_v61 = vpop.permute.xlu0 %9447 }
 0x5c5   : > { %9497 = vrot.lane.b32.xlu1 %v9496_v1, %s9946_s12  ;;  %v9450_v40 = vunpack.i.h.bf16 %v9448_v61 }
 0x5c7   : > { %v5444_v19 = vsel %vm5215_vm13, %v14183_v27, %v9450_v40 }
 0x5c9   : > { %v9468_v25 = vpop.permute.xlu1 %9467 }
 0x5ca   : > { %v9470_v28 = vunpack.i.h.bf16 %v9468_v25  ;;  %v9469_v48 = vunpack.i.l.bf16 %v9468_v25 }
 0x5cb   : > { %9492 = vrot.lane.b32.xlu0 %v9491_v20, %s9946_s12 }
 0x5cc   : > { %9532 = vrot.lane.b32.xlu2 %v9531_v0, %s9945_s11  ;;  %v5453_v2 = vsel %vm5451_vm0, %v5444_v19, %v9470_v28 }
 0x5cd   : > { %9512 = vrot.lane.b32.xlu1 %v14021_v7, %s9944_s10 }
 0x5d3   : > { %9507 = vrot.lane.b32.xlu0 %v9506_v5, %s9944_s10 }
 0x5d4   : > { %9547 = vrot.lane.b32.xlu2 %v14003_v6, %s9944_s10 }
 0x5d5   : > { %9527 = vrot.lane.b32.xlu1 %v9526_v17, %s9945_s11  ;;  %v14119_v16 = vpop.permute.xlu2 %9457 }
 0x5db   : > { %9522 = vrot.lane.b32.xlu0 %v14124_v43, %s9944_s10 }
 0x5dc   : > { %9562 = vrot.lane.b32.xlu2 %v14021_v7, %s9944_s10 }
 0x5dd   : > { %9542 = vrot.lane.b32.xlu1 %v9541_v18, %s9946_s12  ;;  %v9473_v6 = vpop.permute.xlu2 %9472 }
 0x5de   : > { %v9475_v31 = vunpack.i.h.bf16 %v9473_v6  ;;  %v9474_v33 = vunpack.i.l.bf16 %v9473_v6 }
 0x5e0   : > { %v14141_v59 = vsel %vm5451_vm0, %v5445_v52, %v9474_v33  ;;  %v14144_v7 = vsel %vm5451_vm0, %v5446_v60, %v9475_v31 }
 0x5e3   : > { %9537 = vrot.lane.b32.xlu0 %v9536_v56, %s9945_s11 }
 0x5e4   : > { %9577 = vrot.lane.b32.xlu2 %v9576_v45, %s9946_s12 }
 0x5e5   : > { %9557 = vrot.lane.b32.xlu1 %v9491_v20, %s9946_s12  ;;  %v9488_v15 = vpop.permute.xlu2 %9487 }
 0x5e6   : > { %v9490_v8 = vunpack.i.h.bf16 %v9488_v15  ;;  %v9489_v29 = vunpack.i.l.bf16 %v9488_v15 }
 0x5e8   : > { %v5462_v32 = vsel %vm5460_vm1, %v5453_v2, %v9490_v8 }
 0x5eb   : > { %9552 = vrot.lane.b32.xlu0 %v14053_v23, %s9945_s11  ;;  %v7416_v23 = vld [vmem:[%s14906_s3 + $0x18] sm:$0xff] }
 0x5ec   : > { %9592 = vrot.lane.b32.xlu2 %v9496_v1, %s9946_s12  ;;  %6800 = vmatpush.bf16.msra.mxu1 %v7416_v23  ;;  %v9460_v1 = vunpack.i.h.bf16 %v14119_v16 }
 0x5ed   : > { %9572 = vrot.lane.b32.xlu1 %v9576_v45, %s9946_s12  ;;  %7470 = vmatpush.bf16.msra.mxu3 %v7416_v23 }
 0x5ee   : > { %v5448_v26 = vsel %vm5215_vm13, %v14220_v62, %v9460_v1 }
 0x5f0   : > { %6801 = vmatpush.bf16.msra.mxu1 %v7415_v10 }
 0x5f1   : > { %7471 = vmatpush.bf16.msra.mxu3 %v7415_v10 }
 0x5f3   : > { %9567 = vrot.lane.b32.xlu0 %v9531_v0, %s9945_s11 }
 0x5f4   : > { %9607 = vrot.lane.b32.xlu2 %v9606_v54, %s9946_s12  ;;  %6802 = vmatpush.bf16.msra.mxu1 %v7414_v13 }
 0x5f5   : > { %9587 = vrot.lane.b32.xlu1 %v9476_v46, %s9945_s11  ;;  %7472 = vmatpush.bf16.msra.mxu3 %v7414_v13 }
 0x5f8   : > { %6803 = vmatpush.bf16.msra.mxu1 %v7413_v57 }
 0x5f9   : > { %7473 = vmatpush.bf16.msra.mxu3 %v7413_v57 }
 0x5fb   : > { %9582 = vrot.lane.b32.xlu0 %v14040_v3, %s9944_s10  ;;  %v9449_v3 = vunpack.i.l.bf16 %v9448_v61 }
 0x5fc   : > { %9622 = vrot.lane.b32.xlu2 %v14091_v4, %s9945_s11  ;;  %v14204_v4 = vld [vmem:[#allocation4 + $0x24] sm:$0xff] }
 0x5fd   : > { %9602 = vrot.lane.b32.xlu1 %v9536_v56, %s9945_s11  ;;  %v5443_v36 = vsel %vm5215_vm13, %v5307_v22, %v9449_v3  ;;  %v9646_v37 = vpack.i.bf16 %v14204_v4, %v14202_v24 }
 0x5fe   : > { %v5452_v35 = vsel %vm5451_vm0, %v5443_v36, %v9469_v48 }
 0x5ff   : > { %v5461_v12 = vsel %vm5460_vm1, %v5452_v35, %v9489_v29 }
 0x600   : > { %v6352_v34 = vpack.c.bf16 %v5462_v32, %v5461_v12 }
 0x602   : > { %6804 = vmatmul.bf16.vlgmr.msra.gmra.mxu1 %v6352_v34 }
 0x603   : > { %9597 = vrot.lane.b32.xlu0 %v14100_v42, %s9944_s10 }
 0x605   : > { %9617 = vrot.lane.b32.xlu1 %v14084_v58, %s9944_s10  ;;  %v5812_v58 = vld [vmem:[#allocation4 + $0x82] sm:$0xff] }
 0x606   : > { %v9641_v39 = vpack.i.bf16 %v5812_v58, %v14082_v9  ;;  %v9676_v46 = vpack.i.bf16 %v14214_v51, %v5812_v58  ;;  %v14222_v9 = vld [vmem:[#allocation4 + $0x40] sm:$0xff] }
 0x60b   : > { %9612 = vrot.lane.b32.xlu0 %v9606_v54, %s9946_s12  ;;  %v14238_v54 = vld [vmem:[#allocation4 + $0x70] sm:$0xff] }
 0x60d   : > { %9632 = vrot.lane.b32.xlu1 %v14124_v43, %s9944_s10 }
 0x613   : > { %9627 = vrot.lane.b32.xlu0 %v14088_v49, %s9946_s12  ;;  %v9459_v49 = vunpack.i.l.bf16 %v14119_v16 }
 0x615   : > { %9647 = vrot.lane.b32.xlu1 %v9646_v37, %s9944_s10  ;;  %v5447_v43 = vsel %vm5215_vm13, %v14222_v9, %v9459_v49 }
 0x616   : > { %v9503_v20 = vpop.permute.xlu2 %9502 }
 0x617   : > { %v9505_v3 = vunpack.i.h.bf16 %v9503_v20  ;;  %v9504_v25 = vunpack.i.l.bf16 %v9503_v20 }
 0x61b   : > { %9642 = vrot.lane.b32.xlu0 %v9641_v39, %s9945_s11 }
 0x61d   : > { %9662 = vrot.lane.b32.xlu1 %v9641_v39, %s9945_s11 }
 0x61e   : > { %v14236_v21 = vpop.permute.xlu2 %9517 }
 0x625   : > { %9677 = vrot.lane.b32.xlu1 %v9676_v46, %s9945_s11 }
 0x626   : > { %v14252_v36 = vpop.permute.xlu2 %9532 }
 0x62d   : > { %v9463_v42 = vpop.permute.xlu0 %9462 }
 0x62e   : > { %v9465_v52 = vunpack.i.h.bf16 %v9463_v42  ;;  %v9464_v60 = vunpack.i.l.bf16 %v9463_v42  ;;  %v9548_v20 = vpop.permute.xlu2 %9547 }
 0x62f   : > { %v9483_v41 = vpop.permute.xlu1 %9482 }
 0x630   : > { %v9485_v23 = vunpack.i.h.bf16 %v9483_v41  ;;  %v9484_v10 = vunpack.i.l.bf16 %v9483_v41  ;;  %v5450_v22 = vsel %vm5215_vm13, %v14238_v54, %v9465_v52  ;;  %v5449_v61 = vsel %vm5215_vm13, %v14234_v11, %v9464_v60 }
 0x632   : > { %v5458_v29 = vsel %vm5451_vm0, %v5449_v61, %v9484_v10  ;;  %v5459_v40 = vsel %vm5451_vm0, %v5450_v22, %v9485_v23 }
 0x635   : > { %v9478_v63 = vpop.permute.xlu0 %9477 }
 0x636   : > { %v9480_v0 = vunpack.i.h.bf16 %v9478_v63  ;;  %v9479_v5 = vunpack.i.l.bf16 %v9478_v63 }
 0x637   : > { %v9498_v17 = vpop.permute.xlu1 %9497 }
 0x638   : > { %v9500_v18 = vunpack.i.h.bf16 %v9498_v17  ;;  %v9499_v30 = vunpack.i.l.bf16 %v9498_v17  ;;  %v5456_v14 = vsel %vm5451_vm0, %v5447_v43, %v9479_v5  ;;  %v5457_v16 = vsel %vm5451_vm0, %v5448_v26, %v9480_v0 }
 0x639   : > { %v9550_v26 = vunpack.i.h.bf16 %v9548_v20  ;;  %v9549_v43 = vunpack.i.l.bf16 %v9548_v20 }
 0x63a   : > { %v5465_v6 = vsel %vm5460_vm1, %v5456_v14, %v9499_v30  ;;  %v5466_v31 = vsel %vm5460_vm1, %v5457_v16, %v9500_v18  ;;  %v9563_v30 = vpop.permute.xlu2 %9562 }
 0x63b   : > { %v6366_v33 = vpack.c.bf16 %v5466_v31, %v5465_v6  ;;  %v5767_v6 = vsel %vm5215_vm13, %v14134_v53, %v9550_v26  ;;  %v5766_v31 = vsel %vm5215_vm13, %v14132_v44, %v9549_v43  ;;  %v9565_v23 = vunpack.i.h.bf16 %v9563_v30 }
 0x63c   : > { %v9564_v10 = vunpack.i.l.bf16 %v9563_v30  ;;  %v9534_v30 = vunpack.i.l.bf16 %v14252_v36 }
 0x63d   : > { %6814 = vmatmul.bf16.vlgmr.msra.gmra.mxu3 %v6366_v33  ;;  %v9493_v56 = vpop.permute.xlu0 %9492  ;;  %v5928_v61 = vsel %vm5215_vm13, %v14222_v9, %v9565_v23 }
 0x63e   : > { %v9495_v45 = vunpack.i.h.bf16 %v9493_v56  ;;  %v9494_v50 = vunpack.i.l.bf16 %v9493_v56 }
 0x63f   : > { %v14232_v38 = vpop.permute.xlu1 %9512 }
 0x640   : > { %v5463_v13 = vsel %vm5460_vm1, %v14141_v59, %v9494_v50  ;;  %v5464_v15 = vsel %vm5460_vm1, %v14144_v7, %v9495_v45  ;;  %v5467_v59 = vsel %vm5460_vm1, %v5458_v29, %v9504_v25  ;;  %v5468_v7 = vsel %vm5460_vm1, %v5459_v40, %v9505_v3  ;;  %v14286_v3 = vld [vmem:[#allocation4 + $0x34] sm:$0xff] }
 0x641   : > { %v6359_v8 = vpack.c.bf16 %v5464_v15, %v5463_v13  ;;  %v6373_v35 = vpack.c.bf16 %v5468_v7, %v5467_v59  ;;  %v14290_v59 = vld [vmem:[#allocation4 + $0x91] sm:$0xff] }
 0x642   : > { %v9578_v25 = vpop.permute.xlu2 %9577 }
 0x643   : > { %6809 = vmatmul.bf16.gmra.mxu1 %v6359_v8  ;;  %v5927_v8 = vsel %vm5215_vm13, %v14134_v53, %v9564_v10  ;;  %v9520_v10 = vunpack.i.h.bf16 %v14236_v21 }
 0x645   : > { %v9508_v28 = vpop.permute.xlu0 %9507 }
 0x646   : > { %v9510_v57 = vunpack.i.h.bf16 %v9508_v28  ;;  %v9509_v19 = vunpack.i.l.bf16 %v9508_v28 }
 0x647   : > { %v9528_v48 = vpop.permute.xlu1 %9527 }
 0x648   : > { %v9530_v2 = vunpack.i.h.bf16 %v9528_v48  ;;  %v9529_v12 = vunpack.i.l.bf16 %v9528_v48  ;;  %v5607_v32 = vsel %vm5215_vm13, %v14132_v44, %v9510_v57  ;;  %v5606_v34 = vsel %vm5215_vm13, %v14183_v27, %v9509_v19  ;;  %v14267_v27 = vld [vmem:[#allocation4 + $0x83] sm:$0xff] }
 0x649   : > { %v9651_v17 = vpack.i.bf16 %v14267_v27, %v14080_v47  ;;  %v9681_v19 = vpack.i.bf16 %v14286_v3, %v14204_v4  ;;  %v14305_v4 = vld [vmem:[#allocation4 + $0xa2] sm:$0xff] }
 0x64a   : > { %v5615_v42 = vsel %vm5451_vm0, %v5607_v32, %v9530_v2  ;;  %v5614_v41 = vsel %vm5451_vm0, %v5606_v34, %v9529_v12  ;;  %v9671_v2 = vpack.i.bf16 %v14290_v59, %v14121_v55  ;;  %v9515_v32 = vunpack.i.h.bf16 %v14232_v38 }
 0x64b   : > { %v9514_v34 = vunpack.i.l.bf16 %v14232_v38  ;;  %v9706_v38 = vpack.i.bf16 %v14305_v4, %v14214_v51 }
 0x64c   : > { %v5609_v20 = vsel %vm5215_vm13, %v14222_v9, %v9515_v32 }
 0x64d   : > { %6819 = vmatmul.bf16.gmra.mxu3 %v6373_v35  ;;  %v14258_v37 = vpop.permute.xlu0 %9522 }
 0x64f   : > { %v9543_v58 = vpop.permute.xlu1 %9542 }
 0x650   : > { %v9545_v39 = vunpack.i.h.bf16 %v9543_v58  ;;  %v9544_v46 = vunpack.i.l.bf16 %v9543_v58 }
 0x652   : > { %v5622_v1 = vsel %vm5460_vm1, %v5614_v41, %v9544_v46  ;;  %v5623_v49 = vsel %vm5460_vm1, %v5615_v42, %v9545_v39  ;;  %v14303_v46 = vld [vmem:[#allocation4 + $0xa1] sm:$0xff]  ;;  %v14307_v41 = vld [vmem:[#allocation4 + $0x93] sm:$0xff] }
 0x653   : > { %v9636_v63 = vpack.i.bf16 %v5623_v49, %v5622_v1  ;;  %v9696_v49 = vpack.i.bf16 %v14303_v46, %v14290_v59 }
 0x655   : > { %9637 = vrot.lane.b32.xlu2 %v9636_v63, %s9944_s10  ;;  %v14265_v0 = vpop.permute.xlu0 %9537  ;;  %v7428_v63 = vld [vmem:[%s14906_s3 + $0x78] sm:$0xff] }
 0x656   : > { %6825 = vmatpush.bf16.msrb.mxu2 %v7428_v63 }
 0x657   : > { %v9558_v5 = vpop.permute.xlu1 %9557 }
 0x658   : > { %v9560_v33 = vunpack.i.h.bf16 %v9558_v5  ;;  %v9559_v52 = vunpack.i.l.bf16 %v9558_v5  ;;  %v5608_v5 = vsel %vm5215_vm13, %v14134_v53, %v9514_v34 }
 0x65d   : > { %9652 = vrot.lane.b32.xlu2 %v9651_v17, %s9946_s12  ;;  %v9553_v18 = vpop.permute.xlu0 %9552 }
 0x65e   : > { %v9555_v14 = vunpack.i.h.bf16 %v9553_v18  ;;  %v9554_v16 = vunpack.i.l.bf16 %v9553_v18  ;;  %v9535_v18 = vunpack.i.h.bf16 %v14252_v36 }
 0x65f   : > { %v9573_v13 = vpop.permute.xlu1 %9572 }
 0x660   : > { %v5774_v60 = vsel %vm5451_vm0, %v5766_v31, %v9554_v16  ;;  %v5775_v47 = vsel %vm5451_vm0, %v5767_v6, %v9555_v14  ;;  %v9575_v29 = vunpack.i.h.bf16 %v9573_v13  ;;  %v9574_v40 = vunpack.i.l.bf16 %v9573_v13 }
 0x661   : > { %v5782_v56 = vsel %vm5460_vm1, %v5774_v60, %v9559_v52  ;;  %v5783_v45 = vsel %vm5460_vm1, %v5775_v47, %v9560_v33  ;;  %v14328_v14 = vpack.i.bf16 %v14307_v41, %v14267_v27  ;;  %v5617_v53 = vsel %vm5451_vm0, %v5609_v20, %v9535_v18  ;;  %v14338_v60 = vld [vmem:[#allocation4 + $0x44] sm:$0xff] }
 0x662   : > { %v9656_v50 = vpack.i.bf16 %v5783_v45, %v5782_v56  ;;  %v9580_v27 = vunpack.i.h.bf16 %v9578_v25  ;;  %v9579_v52 = vunpack.i.l.bf16 %v9578_v25  ;;  %v7427_v45 = vld [vmem:[%s14906_s3 + $0x70] sm:$0xff]  ;;  %v9519_v13 = vunpack.i.l.bf16 %v14236_v21 }
 0x663   : > { %6826 = vmatpush.bf16.msrb.mxu2 %v7427_v45  ;;  %v5611_v21 = vsel %vm5215_vm13, %v14234_v11, %v9520_v10 }
 0x664   : > { %9657 = vrot.lane.b32.xlu0 %v9656_v50, %s9945_s11  ;;  %v5625_v23 = vsel %vm5460_vm1, %v5617_v53, %v9580_v27  ;;  %v5610_v25 = vsel %vm5215_vm13, %v14220_v62, %v9519_v13 }
 0x665   : > { %9667 = vrot.lane.b32.xlu2 %v9651_v17, %s9946_s12  ;;  %v9568_v15 = vpop.permute.xlu0 %9567  ;;  %v9593_v17 = vpop.permute.xlu2 %9592 }
 0x666   : > { %v9570_v44 = vunpack.i.h.bf16 %v9568_v15  ;;  %v9569_v22 = vunpack.i.l.bf16 %v9568_v15  ;;  %v9595_v31 = vunpack.i.h.bf16 %v9593_v17  ;;  %v9594_v33 = vunpack.i.l.bf16 %v9593_v17  ;;  %v7426_v15 = vld [vmem:[%s14906_s3 + $0x68] sm:$0xff] }
 0x667   : > { %v9588_v42 = vpop.permute.xlu1 %9587  ;;  %6827 = vmatpush.bf16.msrb.mxu2 %v7426_v15 }
 0x668   : > { %v5935_v28 = vsel %vm5451_vm0, %v5927_v8, %v9569_v22  ;;  %v5936_v48 = vsel %vm5451_vm0, %v5928_v61, %v9570_v44  ;;  %v9590_v26 = vunpack.i.h.bf16 %v9588_v42  ;;  %v9589_v43 = vunpack.i.l.bf16 %v9588_v42 }
 0x669   : > { %v5943_v7 = vsel %vm5460_vm1, %v5935_v28, %v9574_v40  ;;  %v5944_v57 = vsel %vm5460_vm1, %v5936_v48, %v9575_v29  ;;  %v14354_v44 = vpack.i.bf16 %v14338_v60, %v14286_v3  ;;  %v9540_v61 = vunpack.i.h.bf16 %v14265_v0 }
 0x66a   : > { %v9691_v35 = vpack.i.bf16 %v5944_v57, %v5943_v7  ;;  %v9539_v8 = vunpack.i.l.bf16 %v14265_v0  ;;  %v7425_v0 = vld [vmem:[%s14906_s3 + $0x60] sm:$0xff] }
 0x66b   : > { %6828 = vmatpush.bf16.msrb.mxu2 %v7425_v0  ;;  %v7435_v0 = vld [vmem:[%s14906_s3 + $0xb0] sm:$0xff] }
 0x66c   : > { %9692 = vrot.lane.b32.xlu1 %v9691_v35, %s9946_s12  ;;  %9672 = vrot.lane.b32.xlu0 %v9671_v2, %s9944_s10  ;;  %v5618_v35 = vsel %vm5451_vm0, %v5610_v25, %v9539_v8  ;;  %v5619_v2 = vsel %vm5451_vm0, %v5611_v21, %v9540_v61 }
 0x66d   : > { %9682 = vrot.lane.b32.xlu2 %v9681_v19, %s9945_s11  ;;  %v9583_v12 = vpop.permute.xlu0 %9582  ;;  %v9608_v32 = vpop.permute.xlu2 %9607 }
 0x66e   : > { %v9585_v58 = vunpack.i.h.bf16 %v9583_v12  ;;  %v9584_v39 = vunpack.i.l.bf16 %v9583_v12  ;;  %v14371_v12 = vld [vmem:[#allocation4 + $0x54] sm:$0xff]  ;;  %v9610_v18 = vunpack.i.h.bf16 %v9608_v32 }
 0x66f   : > { %v9603_v29 = vpop.permute.xlu1 %9602 }
 0x670   : > { %v5769_v55 = vsel %vm5215_vm13, %v14220_v62, %v9585_v58  ;;  %v5768_v1 = vsel %vm5215_vm13, %v14222_v9, %v9584_v39  ;;  %v5616_v9 = vsel %vm5451_vm0, %v5608_v5, %v9534_v30  ;;  %v14375_v39 = vld [vmem:[#allocation4 + $0xa3] sm:$0xff]  ;;  %v9605_v63 = vunpack.i.h.bf16 %v9603_v29 }
 0x671   : > { %v5776_v16 = vsel %vm5451_vm0, %v5768_v1, %v9589_v43  ;;  %v5777_v6 = vsel %vm5451_vm0, %v5769_v55, %v9590_v26  ;;  %v5624_v50 = vsel %vm5460_vm1, %v5616_v9, %v9579_v52  ;;  %v7424_v55 = vld [vmem:[%s14906_s3 + $0x58] sm:$0xff]  ;;  %v9604_v20 = vunpack.i.l.bf16 %v9603_v29  ;;  %v7421_v29 = vld [vmem:[%s14906_s3 + $0x40] sm:$0xff] }
 0x672   : > { %v5784_v47 = vsel %vm5460_vm1, %v5776_v16, %v9594_v33  ;;  %v5785_v56 = vsel %vm5460_vm1, %v5777_v6, %v9595_v31  ;;  %v9701_v40 = vpack.i.bf16 %v5625_v23, %v5624_v50  ;;  %v9716_v5 = vpack.i.bf16 %v14375_v39, %v14307_v41  ;;  %6829 = vmatpush.bf16.msrb.mxu2 %v7424_v55  ;;  %v14396_v16 = vld [vmem:[#allocation4 + $0x64] sm:$0xff]  ;;  %v14398_v41 = vld [vmem:[#allocation4 + $0x74] sm:$0xff] }
 0x673   : > { %v9721_v22 = vpack.i.bf16 %v5785_v56, %v5784_v47  ;;  %v9609_v30 = vunpack.i.l.bf16 %v9608_v32  ;;  %v14407_v52 = vpack.i.bf16 %v14396_v16, %v14371_v12  ;;  %v9751_v47 = vpack.i.bf16 %v14398_v41, %v14396_v16  ;;  %v7442_v32 = vld [vmem:[%s14906_s3 + $0xe8] sm:$0xff] }
 0x674   : > { %9707 = vrot.lane.b32.xlu1 %v9706_v38, %s9945_s11  ;;  %9687 = vrot.lane.b32.xlu0 %v14328_v14, %s9946_s12  ;;  %v9726_v38 = vpack.i.bf16 %v14371_v12, %v14338_v60 }
 0x675   : > { %9697 = vrot.lane.b32.xlu2 %v9696_v49, %s9944_s10  ;;  %v9598_v36 = vpop.permute.xlu0 %9597  ;;  %v9623_v27 = vpop.permute.xlu2 %9622 }
 0x676   : > { %v9600_v48 = vunpack.i.h.bf16 %v9598_v36  ;;  %v9599_v7 = vunpack.i.l.bf16 %v9598_v36  ;;  %v7422_v36 = vld [vmem:[%s14906_s3 + $0x48] sm:$0xff]  ;;  %v9625_v13 = vunpack.i.h.bf16 %v9623_v27  ;;  %v9624_v15 = vunpack.i.l.bf16 %v9623_v27 }
 0x677   : > { %v9618_v43 = vpop.permute.xlu1 %9617 }
 0x678   : > { %v5930_v1 = vsel %vm5215_vm13, %v14234_v11, %v9600_v48  ;;  %v5929_v49 = vsel %vm5215_vm13, %v14220_v62, %v9599_v7  ;;  %v7423_v62 = vld [vmem:[%s14906_s3 + $0x50] sm:$0xff]  ;;  %v9620_v6 = vunpack.i.h.bf16 %v9618_v43  ;;  %v9619_v53 = vunpack.i.l.bf16 %v9618_v43  ;;  %v7434_v48 = vld [vmem:[%s14906_s3 + $0xa8] sm:$0xff]  ;;  %v7444_v7 = vld [vmem:[%s14906_s3 + $0xf8] sm:$0xff] }
 0x679   : > { %v5937_v17 = vsel %vm5451_vm0, %v5929_v49, %v9604_v20  ;;  %v5938_v26 = vsel %vm5451_vm0, %v5930_v1, %v9605_v63  ;;  %6830 = vmatpush.bf16.msrb.mxu2 %v7423_v62  ;;  %6883 = vmatpush.bf16.msrb.mxu1 %v7444_v7  ;;  %v7431_v20 = vld [vmem:[%s14906_s3 + $0x90] sm:$0xff] }
 0x67a   : > { %v5945_v9 = vsel %vm5460_vm1, %v5937_v17, %v9609_v30  ;;  %v5946_v31 = vsel %vm5460_vm1, %v5938_v26, %v9610_v18  ;;  %v5771_v45 = vsel %vm5215_vm13, %v14238_v54, %v9620_v6  ;;  %v5770_v50 = vsel %vm5215_vm13, %v14234_v11, %v9619_v53  ;;  %v7440_v30 = vld [vmem:[%s14906_s3 + $0xd8] sm:$0xff]  ;;  %v14484_v6 = vld [vmem:[#allocation4 + $0x80] sm:$0xff] }
 0x67b   : > { %v9731_v56 = vpack.i.bf16 %v5946_v31, %v5945_v9  ;;  %v5779_v61 = vsel %vm5451_vm0, %v5771_v45, %v9625_v13 }
 0x67c   : > { %9722 = vrot.lane.b32.xlu1 %v9721_v22, %s9945_s11  ;;  %9702 = vrot.lane.b32.xlu0 %v9701_v40, %s9944_s10  ;;  %v5778_v22 = vsel %vm5451_vm0, %v5770_v50, %v9624_v15  ;;  %v14426_v40 = vld [vmem:[#allocation4 + $0x84] sm:$0xff]  ;;  %v9525_v15 = vunpack.i.h.bf16 %v14258_v37 }
 0x67d   : > { %9712 = vrot.lane.b32.xlu2 %v14354_v44, %s9944_s10  ;;  %v9613_v28 = vpop.permute.xlu0 %9612  ;;  %6831 = vmatpush.bf16.msrb.mxu2 %v7422_v36  ;;  %v14430_v21 = vpack.i.bf16 %v14426_v40, %v14398_v41 }
 0x67e   : > { %v9615_v57 = vunpack.i.h.bf16 %v9613_v28  ;;  %v9614_v19 = vunpack.i.l.bf16 %v9613_v28  ;;  %v7436_v28 = vld [vmem:[%s14906_s3 + $0xb8] sm:$0xff] }
 0x67f   : > { %6854 = vmatpush.bf16.msrb.mxu3 %v7436_v28 }
 0x680   : > { %v5626_v34 = vsel %vm5460_vm1, %v5618_v35, %v9614_v19  ;;  %v5627_v58 = vsel %vm5460_vm1, %v5619_v2, %v9615_v57  ;;  %v9633_v57 = vpop.permute.xlu1 %9632  ;;  %v7433_v19 = vld [vmem:[%s14906_s3 + $0xa0] sm:$0xff]  ;;  %v7443_v35 = vld [vmem:[%s14906_s3 + $0xf0] sm:$0xff]  ;;  %v7432_v2 = vld [vmem:[%s14906_s3 + $0x98] sm:$0xff] }
 0x681   : > { %v9736_v42 = vpack.i.bf16 %v5627_v58, %v5626_v34  ;;  %6832 = vmatpush.bf16.msrb.mxu2 %v7421_v29  ;;  %6884 = vmatpush.bf16.msrb.mxu1 %v7443_v35  ;;  %v5339_v58 = vld [vmem:[#allocation4 + $0x4] sm:$0xff]  ;;  %v9635_v26 = vunpack.i.h.bf16 %v9633_v57  ;;  %v9634_v43 = vunpack.i.l.bf16 %v9633_v57 }
 0x682   : > { %v7437_v35 = vld [vmem:[%s14906_s3 + $0xc0] sm:$0xff] }
 0x683   : > { %6855 = vmatpush.bf16.msrb.mxu3 %v7435_v0  ;;  %v5932_v9 = vsel %vm5215_vm13, %v14484_v6, %v9635_v26  ;;  %v5931_v31 = vsel %vm5215_vm13, %v14238_v54, %v9634_v43 }
 0x684   : > { %9737 = vrot.lane.b32.xlu1 %v9736_v42, %s9944_s10  ;;  %9717 = vrot.lane.b32.xlu0 %v9716_v5, %s9946_s12  ;;  %v7441_v5 = vld [vmem:[%s14906_s3 + $0xe0] sm:$0xff] }
 0x685   : > { %9727 = vrot.lane.b32.xlu2 %v9726_v38, %s9945_s11  ;;  %v9628_v33 = vpop.permute.xlu0 %9627  ;;  %6885 = vmatpush.bf16.msrb.mxu1 %v7442_v32 }
 0x686   : > { %v9630_v23 = vunpack.i.h.bf16 %v9628_v33  ;;  %v9629_v10 = vunpack.i.l.bf16 %v9628_v33 }
 0x687   : > { %6856 = vmatpush.bf16.msrb.mxu3 %v7434_v48 }
 0x688   : > { %v5786_v8 = vsel %vm5460_vm1, %v5778_v22, %v9629_v10  ;;  %v5787_v11 = vsel %vm5460_vm1, %v5779_v61, %v9630_v23  ;;  %v14461_v42 = vpop.permute.xlu1 %9647  ;;  %v7429_v23 = vld [vmem:[%s14906_s3 + $0x80] sm:$0xff]  ;;  %v7439_v10 = vld [vmem:[%s14906_s3 + $0xd0] sm:$0xff]  ;;  %v9524_v22 = vunpack.i.l.bf16 %v14258_v37 }
 0x689   : > { %v9746_v25 = vpack.i.bf16 %v5787_v11, %v5786_v8  ;;  %6886 = vmatpush.bf16.msrb.mxu1 %v7441_v5  ;;  %v7438_v11 = vld [vmem:[%s14906_s3 + $0xc8] sm:$0xff] }
 0x68a   : > { %v5612_v28 = vsel %vm5215_vm13, %v14238_v54, %v9524_v22  ;;  %v14518_v54 = vld [vmem:[#allocation4 + $0x94] sm:$0xff] }
 0x68b   : > { %6857 = vmatpush.bf16.msrb.mxu3 %v7433_v19  ;;  %v9776_v32 = vpack.i.bf16 %v14518_v54, %v14426_v40 }
 0x68c   : > { %9752 = vrot.lane.b32.xlu1 %v9751_v47, %s9945_s11  ;;  %9732 = vrot.lane.b32.xlu0 %v9731_v56, %s9946_s12 }
 0x68d   : > { %9742 = vrot.lane.b32.xlu2 %v14407_v52, %s9944_s10  ;;  %v9643_v49 = vpop.permute.xlu0 %9642  ;;  %6887 = vmatpush.bf16.msrb.mxu1 %v7440_v30 }
 0x68e   : > { %v9645_v62 = vunpack.i.h.bf16 %v9643_v49  ;;  %v9644_v18 = vunpack.i.l.bf16 %v9643_v49  ;;  %v9649_v49 = vunpack.i.l.bf16 %v14461_v42 }
 0x68f   : > { %6858 = vmatpush.bf16.msrb.mxu3 %v7432_v2 }
 0x690   : > { %v5939_v27 = vsel %vm5451_vm0, %v5931_v31, %v9644_v18  ;;  %v5940_v47 = vsel %vm5451_vm0, %v5932_v9, %v9645_v62  ;;  %v9663_v56 = vpop.permute.xlu1 %9662  ;;  %v5962_v62 = vld [vmem:[#allocation4 + $0x61] sm:$0xff]  ;;  %v5979_v31 = vld [vmem:[#allocation4 + $0x73] sm:$0xff] }
 0x691   : > { %6888 = vmatpush.bf16.msrb.mxu1 %v7439_v10  ;;  %v9665_v61 = vunpack.i.h.bf16 %v9663_v56  ;;  %v9664_v8 = vunpack.i.l.bf16 %v9663_v56 }
 0x693   : > { %6859 = vmatpush.bf16.msrb.mxu3 %v7431_v20  ;;  %v5620_v7 = vsel %vm5451_vm0, %v5612_v28, %v9664_v8 }
 0x694   : > { %9767 = vrot.lane.b32.xlu1 %v14430_v21, %s9944_s10  ;;  %9747 = vrot.lane.b32.xlu0 %v9746_v25, %s9945_s11  ;;  %v5613_v25 = vsel %vm5215_vm13, %v14484_v6, %v9525_v15  ;;  %v14549_v15 = vld [vmem:[#allocation4 + $0x90] sm:$0xff] }
 0x695   : > { %6889 = vmatpush.bf16.msrb.mxu1 %v7438_v11  ;;  %v5621_v37 = vsel %vm5451_vm0, %v5613_v25, %v9665_v61 }
 0x699   : > { %6890 = vmatpush.bf16.msrb.mxu1 %v7437_v35 }
 0x6af   : > { %v14459_v34 = vpop.permute.xlu2 %9637 }
 0x6b0   : > { %v9640_v55 = vunpack.i.h.bf16 %v14459_v34  ;;  %v9639_v1 = vunpack.i.l.bf16 %v14459_v34 }
 0x6b2   : > { %v6328_v38 = vsel %vm5215_vm13, %v5339_v58, %v9639_v1  ;;  %v6329_v63 = vsel %vm5215_vm13, %v14202_v24, %v9640_v55  ;;  %v7430_v24 = vld [vmem:[%s14906_s3 + $0x88] sm:$0xff]  ;;  %v9650_v58 = vunpack.i.h.bf16 %v14461_v42  ;;  %v6160_v40 = vsel %vm5215_vm13, %v9639_v1, %v9649_v49 }
 0x6b3   : > { %v6353_v17 = vpack.c.bf16 %v6329_v63, %v6328_v38  ;;  %6860 = vmatpush.bf16.msrb.mxu3 %v7430_v24  ;;  %v9678_v38 = vpop.permute.xlu1 %9677 }
 0x6b4   : > { %v6161_v26 = vsel %vm5215_vm13, %v9640_v55, %v9650_v58  ;;  %v9680_v11 = vunpack.i.h.bf16 %v9678_v38  ;;  %v14564_v58 = vld [vmem:[#allocation4 + $0xa4] sm:$0xff] }
 0x6b5   : > { %6833 = vmatmul.bf16.vlgmr.msrb.gmra.mxu2 %v6353_v17  ;;  %v5963_v17 = vld [vmem:[#allocation4 + $0x71] sm:$0xff] }
 0x6b6   : > { %v9806_v42 = vpack.i.bf16 %v5963_v17, %v5962_v62  ;;  %v5960_v62 = vld [vmem:[#allocation4 + $0x41] sm:$0xff] }
 0x6b7   : > { %v9653_v53 = vpop.permute.xlu2 %9652  ;;  %6861 = vmatpush.bf16.msrb.mxu3 %v7429_v23 }
 0x6b8   : > { %v9655_v33 = vunpack.i.h.bf16 %v9653_v53  ;;  %v9654_v36 = vunpack.i.l.bf16 %v9653_v53 }
 0x6ba   : > { %v5948_v45 = vsel %vm5460_vm1, %v5940_v47, %v9655_v33  ;;  %v5947_v50 = vsel %vm5460_vm1, %v5939_v27, %v9654_v36  ;;  %v5978_v27 = vld [vmem:[#allocation4 + $0x63] sm:$0xff] }
 0x6bb   : > { %v9756_v13 = vpack.i.bf16 %v5948_v45, %v5947_v50  ;;  %v9821_v23 = vpack.i.bf16 %v5979_v31, %v5978_v27 }
 0x6bd   : > { %9757 = vrot.lane.b32.xlu2 %v9756_v13, %s9946_s12 }
 0x6bf   : > { %v9668_v29 = vpop.permute.xlu2 %9667 }
 0x6c0   : > { %v9670_v0 = vunpack.i.h.bf16 %v9668_v29  ;;  %v9669_v48 = vunpack.i.l.bf16 %v9668_v29  ;;  %v9679_v29 = vunpack.i.l.bf16 %v9678_v38 }
 0x6c2   : > { %v5629_v57 = vsel %vm5460_vm1, %v5621_v37, %v9670_v0  ;;  %v5628_v19 = vsel %vm5460_vm1, %v5620_v7, %v9669_v48  ;;  %v5972_v7 = vld [vmem:[#allocation4 + $0x82] sm:$0xff] }
 0x6c3   : > { %v9761_v2 = vpack.i.bf16 %v5629_v57, %v5628_v19  ;;  %v9836_v35 = vpack.i.bf16 %v14214_v51, %v5972_v7  ;;  %v5961_v51 = vld [vmem:[#allocation4 + $0x51] sm:$0xff] }
 0x6c5   : > { %9762 = vrot.lane.b32.xlu0 %v9761_v2, %s9944_s10 }
 0x6c7   : > { %v9683_v43 = vpop.permute.xlu2 %9682 }
 0x6c8   : > { %v9685_v30 = vunpack.i.h.bf16 %v9683_v43  ;;  %v9684_v53 = vunpack.i.l.bf16 %v9683_v43  ;;  %v5341_v43 = vld [vmem:[#allocation4 + $0x24] sm:$0xff] }
 0x6cd   : > { %9777 = vrot.lane.b32.xlu0 %v9776_v32, %s9945_s11 }
 0x6cf   : > { %v9698_v13 = vpop.permute.xlu2 %9697 }
 0x6d5   : > { %9792 = vrot.lane.b32.xlu0 %v14354_v44, %s9946_s12 }
 0x6d6   : > { %v9658_v63 = vpop.permute.xlu0 %9657 }
 0x6d7   : > { %v9660_v20 = vunpack.i.h.bf16 %v9658_v63  ;;  %v9659_v5 = vunpack.i.l.bf16 %v9658_v63 }
 0x6d9   : > { %v6336_v44 = vsel %vm5451_vm0, %v6160_v40, %v9659_v5  ;;  %v6337_v18 = vsel %vm5451_vm0, %v6161_v26, %v9660_v20  ;;  %v6232_v33 = vsel %vm5451_vm0, %v9659_v5, %v9684_v53  ;;  %v6233_v36 = vsel %vm5451_vm0, %v9660_v20, %v9685_v30 }
 0x6da   : > { %v6354_v24 = vpack.c.bf16 %v6337_v18, %v6336_v44  ;;  %v9851_v40 = vpack.i.bf16 %v14564_v58, %v14518_v54  ;;  %v9786_v30 = vpack.i.bf16 %v5961_v51, %v5960_v62  ;;  %v5968_v62 = vld [vmem:[#allocation4 + $0x42] sm:$0xff] }
 0x6dc   : > { %6862 = vmatmul.bf16.vlgmr.msrb.gmra.mxu3 %v6354_v24 }
 0x6dd   : > { %9807 = vrot.lane.b32.xlu0 %v9806_v42, %s9944_s10 }
 0x6de   : > { %v14536_v9 = vpop.permute.xlu1 %9692  ;;  %v9673_v1 = vpop.permute.xlu0 %9672 }
 0x6df   : > { %v9695_v55 = vunpack.i.h.bf16 %v14536_v9  ;;  %v9694_v34 = vunpack.i.l.bf16 %v14536_v9  ;;  %v9675_v45 = vunpack.i.h.bf16 %v9673_v1  ;;  %v9674_v50 = vunpack.i.l.bf16 %v9673_v1 }
 0x6e1   : > { %v6344_v47 = vsel %vm5460_vm1, %v6232_v33, %v9694_v34  ;;  %v6345_v56 = vsel %vm5460_vm1, %v6233_v36, %v9695_v55  ;;  %v5773_v22 = vsel %vm5215_vm13, %v14549_v15, %v9675_v45  ;;  %v5772_v61 = vsel %vm5215_vm13, %v14484_v6, %v9674_v50  ;;  %v9713_v6 = vpop.permute.xlu2 %9712 }
 0x6e2   : > { %v6355_v10 = vpack.c.bf16 %v6345_v56, %v6344_v47  ;;  %v5780_v48 = vsel %vm5451_vm0, %v5772_v61, %v9679_v29  ;;  %v5781_v37 = vsel %vm5451_vm0, %v5773_v22, %v9680_v11  ;;  %v9715_v20 = vunpack.i.h.bf16 %v9713_v6  ;;  %v14578_v47 = vld [vmem:[#allocation4 + $0xa0] sm:$0xff]  ;;  %v5977_v22 = vld [vmem:[#allocation4 + $0x53] sm:$0xff] }
 0x6e3   : > { %v9714_v5 = vunpack.i.l.bf16 %v9713_v6  ;;  %v9700_v33 = vunpack.i.h.bf16 %v9698_v13  ;;  %v9699_v36 = vunpack.i.l.bf16 %v9698_v13 }
 0x6e4   : > { %6891 = vmatmul.bf16.vlgmr.msrb.gmra.mxu1 %v6355_v10 }
 0x6e5   : > { %9822 = vrot.lane.b32.xlu0 %v9821_v23, %s9946_s12  ;;  %v5934_v50 = vsel %vm5215_vm13, %v14578_v47, %v9700_v33  ;;  %v5933_v23 = vsel %vm5215_vm13, %v14549_v15, %v9699_v36 }
 0x6e6   : > { %v9708_v8 = vpop.permute.xlu1 %9707  ;;  %v9688_v25 = vpop.permute.xlu0 %9687 }
 0x6e7   : > { %v9690_v28 = vunpack.i.h.bf16 %v9688_v25  ;;  %v9689_v0 = vunpack.i.l.bf16 %v9688_v25  ;;  %v9710_v56 = vunpack.i.h.bf16 %v9708_v8  ;;  %v9709_v45 = vunpack.i.l.bf16 %v9708_v8 }
 0x6e9   : > { %v5788_v57 = vsel %vm5460_vm1, %v5780_v48, %v9689_v0  ;;  %v5789_v19 = vsel %vm5460_vm1, %v5781_v37, %v9690_v28  ;;  %v5941_v61 = vsel %vm5451_vm0, %v5933_v23, %v9709_v45  ;;  %v5942_v11 = vsel %vm5451_vm0, %v5934_v50, %v9710_v56  ;;  %v9728_v29 = vpop.permute.xlu2 %9727  ;;  %v5976_v0 = vld [vmem:[#allocation4 + $0x43] sm:$0xff] }
 0x6ea   : > { %v9771_v2 = vpack.i.bf16 %v5789_v19, %v5788_v57  ;;  %v9801_v37 = vpack.i.bf16 %v5977_v22, %v5976_v0  ;;  %v7452_v19 = vld [vmem:[%s14906_s3 + $0x138] sm:$0xff]  ;;  %v5964_v23 = vld [vmem:[#allocation4 + $0x81] sm:$0xff] }
 0x6eb   : > { %6912 = vmatpush.bf16.msra.mxu2 %v7452_v19 }
 0x6ec   : > { %9772 = vrot.lane.b32.xlu2 %v9771_v2, %s9945_s11  ;;  %v9729_v2 = vunpack.i.l.bf16 %v9728_v29 }
 0x6ed   : > { %9837 = vrot.lane.b32.xlu0 %v9836_v35, %s9945_s11  ;;  %v9730_v35 = vunpack.i.h.bf16 %v9728_v29 }
 0x6ee   : > { %v14562_v32 = vpop.permute.xlu1 %9722  ;;  %v9703_v63 = vpop.permute.xlu0 %9702 }
 0x6ef   : > { %v9725_v49 = vunpack.i.h.bf16 %v14562_v32  ;;  %v9724_v38 = vunpack.i.l.bf16 %v14562_v32  ;;  %v9705_v17 = vunpack.i.h.bf16 %v9703_v63  ;;  %v9704_v26 = vunpack.i.l.bf16 %v9703_v63 }
 0x6f1   : > { %v6330_v44 = vsel %vm5215_vm13, %v5341_v43, %v9704_v26  ;;  %v6331_v18 = vsel %vm5215_vm13, %v14286_v3, %v9705_v17  ;;  %v6162_v42 = vsel %vm5215_vm13, %v9704_v26, %v9714_v5  ;;  %v6163_v24 = vsel %vm5215_vm13, %v9705_v17, %v9715_v20  ;;  %v5971_v20 = vld [vmem:[#allocation4 + $0x72] sm:$0xff]  ;;  %v5970_v43 = vld [vmem:[#allocation4 + $0x62] sm:$0xff] }
 0x6f2   : > { %v6360_v53 = vpack.c.bf16 %v6331_v18, %v6330_v44  ;;  %v6338_v1 = vsel %vm5451_vm0, %v6162_v42, %v9724_v38  ;;  %v6339_v31 = vsel %vm5451_vm0, %v6163_v24, %v9725_v49  ;;  %v5969_v5 = vld [vmem:[#allocation4 + $0x52] sm:$0xff]  ;;  %v6234_v51 = vsel %vm5451_vm0, %v9724_v38, %v9729_v2 }
 0x6f3   : > { %v6361_v27 = vpack.c.bf16 %v6339_v31, %v6338_v1  ;;  %v9816_v42 = vpack.i.bf16 %v5971_v20, %v5970_v43  ;;  %v9796_v24 = vpack.i.bf16 %v5969_v5, %v5968_v62  ;;  %v7450_v31 = vld [vmem:[%s14906_s3 + $0x128] sm:$0xff]  ;;  %v5983_v20 = vld [vmem:[#allocation4 + $0xb3] sm:$0xff]  ;;  %v7445_v5 = vld [vmem:[%s14906_s3 + $0x100] sm:$0xff] }
 0x6f4   : > { %9787 = vrot.lane.b32.xlu2 %v9786_v30, %s9944_s10  ;;  %6838 = vmatmul.bf16.gmra.mxu2 %v6360_v53  ;;  %v9743_v30 = vpop.permute.xlu2 %9742 }
 0x6f5   : > { %9852 = vrot.lane.b32.xlu0 %v9851_v40, %s9946_s12  ;;  %6867 = vmatmul.bf16.gmra.mxu3 %v6361_v27  ;;  %v6235_v40 = vsel %vm5451_vm0, %v9725_v49, %v9730_v35  ;;  %v9745_v49 = vunpack.i.h.bf16 %v9743_v30  ;;  %v9744_v38 = vunpack.i.l.bf16 %v9743_v30  ;;  %v7447_v35 = vld [vmem:[%s14906_s3 + $0x110] sm:$0xff] }
 0x6f6   : > { %v9718_v3 = vpop.permute.xlu0 %9717  ;;  %v9738_v8 = vpop.permute.xlu1 %9737 }
 0x6f7   : > { %v9720_v10 = vunpack.i.h.bf16 %v9718_v3  ;;  %v9719_v13 = vunpack.i.l.bf16 %v9718_v3  ;;  %v9740_v7 = vunpack.i.h.bf16 %v9738_v8  ;;  %v9739_v57 = vunpack.i.l.bf16 %v9738_v8 }
 0x6f9   : > { %v5950_v25 = vsel %vm5460_vm1, %v5942_v11, %v9720_v10  ;;  %v5949_v28 = vsel %vm5460_vm1, %v5941_v61, %v9719_v13  ;;  %v6332_v17 = vsel %vm5215_vm13, %v14338_v60, %v9739_v57  ;;  %v6333_v26 = vsel %vm5215_vm13, %v14371_v12, %v9740_v7  ;;  %v7451_v12 = vld [vmem:[%s14906_s3 + $0x130] sm:$0xff] }
 0x6fa   : > { %v9781_v48 = vpack.i.bf16 %v5950_v25, %v5949_v28  ;;  %v6367_v53 = vpack.c.bf16 %v6333_v26, %v6332_v17  ;;  %6913 = vmatpush.bf16.msra.mxu2 %v7451_v12  ;;  %v6164_v27 = vsel %vm5215_vm13, %v9739_v57, %v9744_v38  ;;  %v6165_v56 = vsel %vm5215_vm13, %v9740_v7, %v9745_v49  ;;  %v7460_v7 = vld [vmem:[%s14906_s3 + $0x178] sm:$0xff]  ;;  %v7462_v17 = vld [vmem:[%s14906_s3 + $0x188] sm:$0xff]  ;;  %v14678_v26 = vld [vmem:[%s14907_s4] ss:$0 sm:$0xff] }
 0x6fb   : > { %v9826_v13 = vpack.i.bf16 %v14290_v59, %v5964_v23  ;;  %v5967_v57 = vld [vmem:[#allocation4 + $0xb1] sm:$0xff]  ;;  %6941 = vmatpush.bf16.msra.mxu3 %v7460_v7  ;;  %6976 = vmatpush.bf16.msra.mxu1 %v7462_v17 }
 0x6fc   : > { %9802 = vrot.lane.b32.xlu2 %v9801_v37, %s9946_s12  ;;  %9782 = vrot.lane.b32.xlu1 %v9781_v48, %s9946_s12  ;;  %v7448_v48 = vld [vmem:[%s14906_s3 + $0x118] sm:$0xff]  ;;  %v9846_v19 = vpack.i.bf16 %v5967_v57, %v14303_v46  ;;  %v9861_v46 = vpack.i.bf16 %v5983_v20, %v14375_v39  ;;  %v7458_v39 = vld [vmem:[%s14906_s3 + $0x168] sm:$0xff] }
 0x6fd   : > { %v5975_v37 = vld [vmem:[#allocation4 + $0xb2] sm:$0xff] }
 0x6fe   : > { %v14594_v6 = vpop.permute.xlu0 %9732  ;;  %6914 = vmatpush.bf16.msra.mxu2 %v7450_v31  ;;  %v9753_v10 = vpop.permute.xlu1 %9752  ;;  %v9856_v2 = vpack.i.bf16 %v5975_v37, %v14305_v4  ;;  %v7459_v4 = vld [vmem:[%s14906_s3 + $0x170] sm:$0xff]  ;;  %v7456_v38 = vld [vmem:[%s14906_s3 + $0x158] sm:$0xff] }
 0x6ff   : > { %v9735_v32 = vunpack.i.h.bf16 %v14594_v6  ;;  %v9734_v63 = vunpack.i.l.bf16 %v14594_v6  ;;  %v9755_v22 = vunpack.i.h.bf16 %v9753_v10  ;;  %v9754_v61 = vunpack.i.l.bf16 %v9753_v10  ;;  %6942 = vmatpush.bf16.msra.mxu3 %v7459_v4 }
 0x701   : > { %v6346_v44 = vsel %vm5460_vm1, %v6234_v51, %v9734_v63  ;;  %v6347_v18 = vsel %vm5460_vm1, %v6235_v40, %v9735_v32  ;;  %v6805_v51 = vpop.f32.mrf.mxu1 }
 0x702   : > { %v6362_v60 = vpack.c.bf16 %v6347_v18, %v6346_v44  ;;  %v6806_v40 = vadd.f32 %v14678_v26, %v6805_v51 }
 0x703   : > { %6943 = vmatpush.bf16.msra.mxu3 %v7458_v39 }
 0x704   : > { %9817 = vrot.lane.b32.xlu2 %v9816_v42, %s9945_s11  ;;  %9797 = vrot.lane.b32.xlu1 %v9796_v24, %s9945_s11  ;;  %v7457_v42 = vld [vmem:[%s14906_s3 + $0x160] sm:$0xff] }
 0x705   : > { %6843 = vmatmul.bf16.gmra.mxu2 %v6367_v53  ;;  %6896 = vmatmul.bf16.gmra.mxu1 %v6362_v60  ;;  %v14684_v60 = vpop.f32.mrf.mxu3 }
 0x706   : > { %v9748_v1 = vpop.permute.xlu0 %9747  ;;  %v9768_v31 = vpop.permute.xlu1 %9767 }
 0x707   : > { %v9750_v33 = vunpack.i.h.bf16 %v9748_v1  ;;  %v9749_v36 = vunpack.i.l.bf16 %v9748_v1  ;;  %6944 = vmatpush.bf16.msra.mxu3 %v7457_v42 }
 0x709   : > { %v6340_v45 = vsel %vm5451_vm0, %v6164_v27, %v9749_v36  ;;  %v6341_v3 = vsel %vm5451_vm0, %v6165_v56, %v9750_v33  ;;  %v6237_v25 = vsel %vm5451_vm0, %v9750_v33, %v9755_v22  ;;  %v9769_v33 = vunpack.i.l.bf16 %v9768_v31  ;;  %v14695_v27 = vpop.f32.mrf.mxu1 }
 0x70a   : > { %v6368_v50 = vpack.c.bf16 %v6341_v3, %v6340_v45  ;;  %v7455_v3 = vld [vmem:[%s14906_s3 + $0x150] sm:$0xff] }
 0x70b   : > { %6945 = vmatpush.bf16.msra.mxu3 %v7456_v38 }
 0x70c   : > { %9832 = vrot.lane.b32.xlu2 %v14430_v21, %s9946_s12  ;;  %9812 = vrot.lane.b32.xlu1 %v14407_v52, %s9946_s12  ;;  %v6236_v21 = vsel %vm5451_vm0, %v9749_v36, %v9754_v61  ;;  %v7449_v52 = vld [vmem:[%s14906_s3 + $0x120] sm:$0xff] }
 0x70d   : > { %6872 = vmatmul.bf16.gmra.mxu3 %v6368_v50  ;;  %6915 = vmatpush.bf16.msra.mxu2 %v7449_v52  ;;  %v14693_v1 = vpop.f32.mrf.mxu3  ;;  %v7461_v50 = vld [vmem:[%s14906_s3 + $0x180] sm:$0xff] }
 0x70e   : > { %6977 = vmatpush.bf16.msra.mxu1 %v7461_v50 }
 0x70f   : > { %6946 = vmatpush.bf16.msra.mxu3 %v7455_v3 }
 0x711   : > { %6916 = vmatpush.bf16.msra.mxu2 %v7448_v48  ;;  %v6810_v9 = vpop.f32.mrf.mxu1 }
 0x714   : > { %9827 = vrot.lane.b32.xlu1 %v9826_v13, %s9944_s10  ;;  %9847 = vrot.lane.b32.xlu2 %v9846_v19, %s9944_s10  ;;  %s9890_s10 = scalar_lea.hbm %s14908_s5, 16 }
 0x715   : > { %6917 = vmatpush.bf16.msra.mxu2 %v7447_v35 }
 0x717   : > { %v14628_v11 = vpop.permute.xlu2 %9757 }
 0x718   : > { %v9760_v29 = vunpack.i.h.bf16 %v14628_v11  ;;  %v9759_v8 = vunpack.i.l.bf16 %v14628_v11 }
 0x719   : > { %v14723_v37 = vpop.f32.mrf.mxu1 }
 0x71a   : > { %v6348_v59 = vsel %vm5460_vm1, %v6236_v21, %v9759_v8  ;;  %v6349_v28 = vsel %vm5460_vm1, %v6237_v25, %v9760_v29 }
 0x71b   : > { %v6369_v0 = vpack.c.bf16 %v6349_v28, %v6348_v59  ;;  %v7454_v28 = vld [vmem:[%s14906_s3 + $0x148] sm:$0xff] }
 0x71c   : > { %9842 = vrot.lane.b32.xlu1 %v14328_v14, %s9946_s12  ;;  %v7446_v14 = vld [vmem:[%s14906_s3 + $0x108] sm:$0xff]  ;;  %9862 = vrot.lane.b32.xlu2 %v9861_v46, %s9946_s12  ;;  %s7463_s12 = sshll.u32 %s9998_s22, 3 }
 0x71d   : > { %6901 = vmatmul.bf16.gmra.mxu1 %v6369_v0  ;;  %6918 = vmatpush.bf16.msra.mxu2 %v7446_v14  ;;  %s7106_s13 = scalar_lea.hbm %s14908_s5, %s7463_s12 }
 0x71e   : > { %6947 = vmatpush.bf16.msra.mxu3 %v7454_v28  ;;  %s7110_s15 = sshll.u32 %s7106_s13, 4  ;;  %s7111_s15 = int_to_ptr.hbm [resolvable:$true] %s7110_s15 }
 0x71f   : > { %s9884_s16 = sshra.s32 %s7111_s15, 4  ;;  %s9885_s16 = int_to_ptr.hbm [resolvable:$true] %s9884_s16 }
 0x720   : > { %s9886_s17 = scalar_lea.hbm %s9885_s16, 8  ;;  %p9891_p0 = scmp.lt.s32.totalorder %s9885_s16, %s14908_s5 }
 0x721   : > { %6919 = vmatpush.bf16.msra.mxu2 %v7445_v5  ;;  %p9887_p11 = scmp.ne.s32.totalorder %s9885_s16, %s9886_s17  ;;  %p9892_p1 = scmp.lt.s32.totalorder %s9890_s10, %s9886_s17 }
 0x723   : > { %p9888_p12 = pnand %p9887_p11, %p10015_p5  ;;  %p9893_p2 = por %p9892_p1, %p9891_p0 }
 0x724   : > { %9857 = vrot.lane.b32.xlu1 %v9856_v2, %s9945_s11 }
 0x725   : > { %p9889_p13 = pneg %p9888_p12 }
 0x727   : > { %p9894_p3 = pnand %p9893_p2, %p9889_p13 }
 0x737   : > { %v9763_v43 = vpop.permute.xlu0 %9762 }
 0x738   : > { %v9765_v62 = vunpack.i.h.bf16 %v9763_v43  ;;  %v9764_v44 = vunpack.i.l.bf16 %v9763_v43  ;;  %v6834_v18 = vpop.f32.mrf.mxu2 }
 0x739   : > { %v6835_v24 = vadd.f32 %v6834_v18, %v6806_v40 }
 0x73a   : > { %v6334_v30 = vsel %vm5215_vm13, %v14396_v16, %v9764_v44  ;;  %v6335_v53 = vsel %vm5215_vm13, %v14398_v41, %v9765_v62  ;;  %v9770_v16 = vunpack.i.h.bf16 %v9768_v31  ;;  %v6166_v13 = vsel %vm5215_vm13, %v9764_v44, %v9769_v33 }
 0x73b   : > { %v6374_v12 = vpack.c.bf16 %v6335_v53, %v6334_v30  ;;  %v6811_v30 = vadd.f32 %v14678_v26, %v6810_v9  ;;  %v5953_v53 = vld [vmem:[#allocation4 + $0x50] sm:$0xff] }
 0x73c   : > { %v6167_v21 = vsel %vm5215_vm13, %v9765_v62, %v9770_v16 }
 0x73d   : > { %6848 = vmatmul.bf16.gmra.mxu2 %v6374_v12 }
 0x73f   : > { %v9778_v49 = vpop.permute.xlu0 %9777 }
 0x740   : > { %v9780_v14 = vunpack.i.h.bf16 %v9778_v49  ;;  %v9779_v20 = vunpack.i.l.bf16 %v9778_v49  ;;  %v14729_v5 = vpop.f32.mrf.mxu2  ;;  %v5952_v49 = vld [vmem:[#allocation4 + $0x40] sm:$0xff] }
 0x746   : > { %v9773_v41 = vpop.permute.xlu2 %9772 }
 0x747   : > { %v9793_v36 = vpop.permute.xlu0 %9792  ;;  %v9775_v23 = vunpack.i.h.bf16 %v9773_v41  ;;  %v9774_v10 = vunpack.i.l.bf16 %v9773_v41 }
 0x748   : > { %v9795_v56 = vunpack.i.h.bf16 %v9793_v36  ;;  %v9794_v45 = vunpack.i.l.bf16 %v9793_v36 }
 0x749   : > { %v6342_v52 = vsel %vm5451_vm0, %v6166_v13, %v9774_v10  ;;  %v6343_v59 = vsel %vm5451_vm0, %v6167_v21, %v9775_v23  ;;  %v6238_v51 = vsel %vm5451_vm0, %v9774_v10, %v9779_v20  ;;  %v6239_v40 = vsel %vm5451_vm0, %v9775_v23, %v9780_v14 }
 0x74a   : > { %v6305_v22 = vsel %vm5460_vm1, %v9695_v55, %v9795_v56  ;;  %v6304_v61 = vsel %vm5460_vm1, %v9694_v34, %v9794_v45  ;;  %v6375_v0 = vpack.c.bf16 %v6343_v59, %v6342_v52  ;;  %v14716_v55 = vpop.f32.mrf.mxu3  ;;  %v7453_v34 = vld [vmem:[%s14906_s3 + $0x140] sm:$0xff] }
 0x74b   : > { %v6356_v25 = vpack.c.bf16 %v6305_v22, %v6304_v61  ;;  %6948 = vmatpush.bf16.msra.mxu3 %v7453_v34  ;;  %v5985_v34 = vld [vmem:[#allocation4 + $0x54] sm:$0xff] }
 0x74c   : > { %6877 = vmatmul.bf16.gmra.mxu3 %v6375_v0 }
 0x74d   : > { %6920 = vmatmul.bf16.vlgmr.msra.gmra.mxu2 %v6356_v25 }
 0x74e   : > { %v9788_v2 = vpop.permute.xlu2 %9787 }
 0x74f   : > { %v9790_v18 = vunpack.i.h.bf16 %v9788_v2  ;;  %v9808_v50 = vpop.permute.xlu0 %9807 }
 0x751   : > { %v6089_v38 = vsel %vm5215_vm13, %v5953_v53, %v9790_v18  ;;  %v5955_v18 = vld [vmem:[#allocation4 + $0x70] sm:$0xff] }
 0x752   : > { %v14721_v48 = vpop.f32.mrf.mxu3 }
 0x756   : > { %v9803_v42 = vpop.permute.xlu2 %9802 }
 0x757   : > { %v9805_v56 = vunpack.i.h.bf16 %v9803_v42  ;;  %v9804_v45 = vunpack.i.l.bf16 %v9803_v42  ;;  %v9823_v42 = vpop.permute.xlu0 %9822 }
 0x75e   : > { %v9818_v52 = vpop.permute.xlu2 %9817 }
 0x75f   : > { %v6863_v7 = vpop.f32.mrf.mxu3 }
 0x760   : > { %v6864_v57 = vadd.f32 %v6863_v7, %v6835_v24  ;;  %v9789_v24 = vunpack.i.l.bf16 %v9788_v2  ;;  %v9810_v7 = vunpack.i.h.bf16 %v9808_v50  ;;  %v9819_v2 = vunpack.i.l.bf16 %v9818_v52 }
 0x761   : > { %v6892_v19 = vpop.f32.mrf.mxu1 }
 0x762   : > { %v14725_v35 = vadd.f32 %v6892_v19, %v6864_v57  ;;  %v6088_v16 = vsel %vm5215_vm13, %v5952_v49, %v9789_v24  ;;  %v9809_v57 = vunpack.i.l.bf16 %v9808_v50  ;;  %v9820_v19 = vunpack.i.h.bf16 %v9818_v52 }
 0x763   : > { %v6816_v49 = vadd.f32 %v14678_v26, %v14684_v60 }
 0x767   : > { %v14733_v39 = vpop.f32.mrf.mxu3 }
 0x769   : > { %v14748_v13 = vpop.f32.mrf.mxu1 }
 0x76e   : > { %v14727_v46 = vpop.permute.xlu1 %9782 }
 0x76f   : > { %v9785_v4 = vunpack.i.h.bf16 %v14727_v46  ;;  %v9784_v17 = vunpack.i.l.bf16 %v14727_v46 }
 0x771   : > { %v6350_v43 = vsel %vm5460_vm1, %v6238_v51, %v9784_v17  ;;  %v6351_v62 = vsel %vm5460_vm1, %v6239_v40, %v9785_v4  ;;  %v5984_v51 = vld [vmem:[#allocation4 + $0x44] sm:$0xff] }
 0x772   : > { %v6376_v44 = vpack.c.bf16 %v6351_v62, %v6350_v43  ;;  %v6358_v62 = vpack.c.bf16 %v5985_v34, %v5984_v51 }
 0x774   : > { %6906 = vmatmul.bf16.gmra.mxu1 %v6376_v44  ;;  %v5954_v44 = vld [vmem:[#allocation4 + $0x60] sm:$0xff] }
 0x775   : > { %v6090_v53 = vsel %vm5215_vm13, %v5954_v44, %v9809_v57  ;;  %v5956_v57 = vld [vmem:[#allocation4 + $0x80] sm:$0xff] }
 0x776   : > { %v9798_v12 = vpop.permute.xlu1 %9797  ;;  %v6098_v6 = vsel %vm5451_vm0, %v6090_v53, %v9819_v2 }
 0x777   : > { %v9800_v31 = vunpack.i.h.bf16 %v9798_v12  ;;  %v9799_v33 = vunpack.i.l.bf16 %v9798_v12  ;;  %v6839_v36 = vpop.f32.mrf.mxu2  ;;  %v9824_v12 = vunpack.i.l.bf16 %v9823_v42 }
 0x778   : > { %v6840_v41 = vadd.f32 %v6839_v36, %v6811_v30  ;;  %v6868_v3 = vpop.f32.mrf.mxu3  ;;  %v6091_v30 = vsel %vm5215_vm13, %v5955_v18, %v9810_v7 }
 0x779   : > { %v6097_v23 = vsel %vm5451_vm0, %v6089_v38, %v9800_v31  ;;  %v6096_v10 = vsel %vm5451_vm0, %v6088_v16, %v9799_v33  ;;  %v9833_v38 = vpop.permute.xlu2 %9832  ;;  %v6106_v16 = vsel %vm5460_vm1, %v6098_v6, %v9824_v12  ;;  %v5959_v12 = vld [vmem:[#allocation4 + $0xb0] sm:$0xff] }
 0x77a   : > { %v6869_v22 = vadd.f32 %v6868_v3, %v6840_v41  ;;  %v6104_v61 = vsel %vm5460_vm1, %v6096_v10, %v9804_v45  ;;  %v6105_v21 = vsel %vm5460_vm1, %v6097_v23, %v9805_v56  ;;  %v9835_v41 = vunpack.i.h.bf16 %v9833_v38  ;;  %v9838_v23 = vpop.permute.xlu0 %9837 }
 0x77b   : > { %v6357_v25 = vpack.c.bf16 %v6105_v21, %v6104_v61  ;;  %v9834_v3 = vunpack.i.l.bf16 %v9833_v38 }
 0x77c   : > { %v6309_v60 = vsel %vm5460_vm1, %v9760_v29, %v9835_v41  ;;  %v9840_v29 = vunpack.i.h.bf16 %v9838_v23 }
 0x77d   : > { %6949 = vmatmul.bf16.vlgmr.msra.gmra.mxu3 %v6357_v25  ;;  %v6308_v10 = vsel %vm5460_vm1, %v9759_v8, %v9834_v3 }
 0x77e   : > { %v9813_v59 = vpop.permute.xlu1 %9812  ;;  %v6370_v34 = vpack.c.bf16 %v6309_v60, %v6308_v10 }
 0x77f   : > { %v9815_v28 = vunpack.i.h.bf16 %v9813_v59  ;;  %v9814_v0 = vunpack.i.l.bf16 %v9813_v59  ;;  %v14752_v9 = vpop.f32.mrf.mxu2 }
 0x780   : > { %v14769_v33 = vpop.f32.mrf.mxu3 }
 0x781   : > { %v6306_v14 = vsel %vm5460_vm1, %v9734_v63, %v9814_v0  ;;  %v6307_v20 = vsel %vm5460_vm1, %v9735_v32, %v9815_v28  ;;  %v6099_v32 = vsel %vm5451_vm0, %v6091_v30, %v9820_v19  ;;  %v9825_v63 = vunpack.i.h.bf16 %v9823_v42  ;;  %v5986_v0 = vld [vmem:[#allocation4 + $0x64] sm:$0xff] }
 0x782   : > { %v6897_v40 = vpop.f32.mrf.mxu1  ;;  %v6363_v43 = vpack.c.bf16 %v6307_v20, %v6306_v14  ;;  %v9839_v14 = vunpack.i.l.bf16 %v9838_v23  ;;  %v9848_v20 = vpop.permute.xlu2 %9847 }
 0x783   : > { %v14760_v24 = vadd.f32 %v6897_v40, %v6869_v22  ;;  %v6107_v56 = vsel %vm5460_vm1, %v6099_v32, %v9825_v63  ;;  %v5987_v22 = vld [vmem:[#allocation4 + $0x74] sm:$0xff]  ;;  %v9853_v18 = vpop.permute.xlu0 %9852  ;;  %v9850_v6 = vunpack.i.h.bf16 %v9848_v20  ;;  %v9849_v32 = vunpack.i.l.bf16 %v9848_v20 }
 0x784   : > { %6925 = vmatmul.bf16.gmra.mxu2 %v6363_v43  ;;  %7401 = vmatmul.msk.bf16.vlgmr.msra.gmra.mxu1 %vm5215_vm13, %v6358_v62  ;;  %v6364_v50 = vpack.c.bf16 %v6107_v56, %v6106_v16  ;;  %v6365_v7 = vpack.c.bf16 %v5987_v22, %v5986_v0  ;;  %v9855_v30 = vunpack.i.h.bf16 %v9853_v18  ;;  %v9854_v53 = vunpack.i.l.bf16 %v9853_v18  ;;  %v5988_v56 = vld [vmem:[#allocation4 + $0x84] sm:$0xff] }
 0x785   : > { %v6094_v41 = vsel %vm5215_vm13, %v14578_v47, %v9849_v32 }
 0x786   : > { %v9828_v31 = vpop.permute.xlu1 %9827  ;;  %v6311_v38 = vsel %vm5460_vm1, %v9785_v4, %v9855_v30 }
 0x787   : > { %v9830_v61 = vunpack.i.h.bf16 %v9828_v31  ;;  %v9829_v21 = vunpack.i.l.bf16 %v9828_v31 }
 0x788   : > { %v6844_v36 = vpop.f32.mrf.mxu2 }
 0x789   : > { %v6845_v45 = vadd.f32 %v6844_v36, %v6816_v49  ;;  %v6093_v19 = vsel %vm5215_vm13, %v14549_v15, %v9830_v61  ;;  %v6092_v8 = vsel %vm5215_vm13, %v5956_v57, %v9829_v21  ;;  %v6310_v49 = vsel %vm5460_vm1, %v9784_v17, %v9854_v53  ;;  %v5991_v61 = vld [vmem:[#allocation4 + $0xb4] sm:$0xff] }
 0x78a   : > { %v14779_v25 = vpop.f32.mrf.mxu1  ;;  %v6100_v51 = vsel %vm5451_vm0, %v6092_v8, %v9839_v14  ;;  %v6101_v40 = vsel %vm5451_vm0, %v6093_v19, %v9840_v29  ;;  %v9863_v16 = vpop.permute.xlu2 %9862  ;;  %v6377_v3 = vpack.c.bf16 %v6311_v38, %v6310_v49  ;;  %v6379_v47 = vpack.c.bf16 %v5991_v61, %v14564_v58 }
 0x78b   : > { %v9865_v23 = vunpack.i.h.bf16 %v9863_v16  ;;  %v9864_v10 = vunpack.i.l.bf16 %v9863_v16  ;;  %v6821_v21 = vadd.f32 %v14678_v26, %v14716_v55  ;;  %v6808_v29 = vadd.f32 %v14678_v26, %v14695_v27 }
 0x78c   : > { %v6813_v27 = vadd.f32 %v14678_v26, %v14723_v37 }
 0x78d   : > { %6954 = vmatmul.bf16.gmra.mxu3 %v6364_v50  ;;  %v6372_v50 = vpack.c.bf16 %v14518_v54, %v5988_v56  ;;  %v6837_v55 = vadd.f32 %v14729_v5, %v6808_v29 }
 0x78e   : > { %v9843_v59 = vpop.permute.xlu1 %9842 }
 0x78f   : > { %v9845_v11 = vunpack.i.h.bf16 %v9843_v59  ;;  %v9844_v2 = vunpack.i.l.bf16 %v9843_v59 }
 0x790   : > { %v6873_v52 = vpop.f32.mrf.mxu3  ;;  %v6846_v54 = vpop.f32.mrf.mxu2 }
 0x791   : > { %v6874_v28 = vadd.f32 %v6873_v52, %v6845_v45  ;;  %v6108_v62 = vsel %vm5460_vm1, %v6100_v51, %v9844_v2  ;;  %v6109_v44 = vsel %vm5460_vm1, %v6101_v40, %v9845_v11  ;;  %v6095_v45 = vsel %vm5215_vm13, %v5959_v12, %v9850_v6 }
 0x792   : > { %v6371_v42 = vpack.c.bf16 %v6109_v44, %v6108_v62  ;;  %v6866_v51 = vadd.f32 %v14733_v39, %v6837_v55  ;;  %v6842_v39 = vadd.f32 %v14752_v9, %v6813_v27 }
 0x794   : > { %6930 = vmatmul.bf16.gmra.mxu2 %v6370_v34  ;;  %7402 = vmatmul.msk.bf16.gmra.mxu1 %vm5215_vm13, %v6365_v7  ;;  %v6895_v62 = vadd.f32 %v14748_v13, %v6866_v51 }
 0x796   : > { %v9858_v63 = vpop.permute.xlu1 %9857 }
 0x797   : > { %v9860_v31 = vunpack.i.h.bf16 %v9858_v63  ;;  %v9859_v36 = vunpack.i.l.bf16 %v9858_v63 }
 0x799   : > { %v6102_v46 = vsel %vm5451_vm0, %v6094_v41, %v9859_v36  ;;  %v6103_v4 = vsel %vm5451_vm0, %v6095_v45, %v9860_v31  ;;  %v6871_v31 = vadd.f32 %v14769_v33, %v6842_v39 }
 0x79a   : > { %v6902_v43 = vpop.f32.mrf.mxu1  ;;  %v6110_v17 = vsel %vm5460_vm1, %v6102_v46, %v9864_v10  ;;  %v6111_v60 = vsel %vm5460_vm1, %v6103_v4, %v9865_v23  ;;  %v6818_v4 = vadd.f32 %v14678_v26, %v14693_v1 }
 0x79b   : > { %v14789_v15 = vadd.f32 %v6902_v43, %v6874_v28  ;;  %v6378_v22 = vpack.c.bf16 %v6111_v60, %v6110_v17  ;;  %v6875_v28 = vpop.f32.mrf.mxu3  ;;  %v6900_v16 = vadd.f32 %v14779_v25, %v6871_v31 }
 0x79d   : > { %6959 = vmatmul.bf16.gmra.mxu3 %v6371_v42 }
 0x7a2   : > { %v6904_v7 = vpop.f32.mrf.mxu1 }
 0x7a4   : > { %6935 = vmatmul.bf16.gmra.mxu2 %v6377_v3  ;;  %7403 = vmatmul.msk.bf16.gmra.mxu1 %vm5215_vm13, %v6372_v50 }
 0x7ad   : > { %6964 = vmatmul.bf16.gmra.mxu3 %v6378_v22  ;;  %v6847_v22 = vadd.f32 %v6846_v54, %v6818_v4  ;;  %v6823_v54 = vadd.f32 %v14678_v26, %v14721_v48 }
 0x7af   : > { %v6876_v25 = vadd.f32 %v6875_v28, %v6847_v22 }
 0x7b4   : > { %7404 = vmatmul.msk.bf16.gmra.mxu1 %vm5215_vm13, %v6379_v47  ;;  %v6905_v47 = vadd.f32 %v6904_v7, %v6876_v25 }
 0x7c0   : > { %v6849_v52 = vpop.f32.mrf.mxu2 }
 0x7c1   : > { %v6850_v59 = vadd.f32 %v6849_v52, %v6821_v21 }
 0x7c8   : > { %v14810_v57 = vpop.f32.mrf.mxu2 }
 0x7c9   : > { %v6852_v28 = vadd.f32 %v14810_v57, %v6823_v54 }
 0x7cf   : > { %v6878_v0 = vpop.f32.mrf.mxu3 }
 0x7d0   : > { %v6879_v34 = vadd.f32 %v6878_v0, %v6850_v59  ;;  %v6921_v11 = vpop.f32.mrf.mxu2 }
 0x7d1   : > { %v6922_v43 = vadd.f32 %v6921_v11, %v14725_v35 }
 0x7d7   : > { %v14814_v2 = vpop.f32.mrf.mxu3 }
 0x7d8   : > { %v6923_v14 = vpop.f32.mrf.mxu2  ;;  %v6881_v7 = vadd.f32 %v14814_v2, %v6852_v28 }
 0x7d9   : > { %v6924_v18 = vadd.f32 %v6923_v14, %v6895_v62 }
 0x7f1   : > { %v6907_v19 = vpop.f32.mrf.mxu1 }
 0x7f2   : > { %v14812_v8 = vadd.f32 %v6907_v19, %v6879_v34 }
 0x7f9   : > { %v14816_v58 = vpop.f32.mrf.mxu1 }
 0x800   : > { %v6950_v20 = vpop.f32.mrf.mxu3 }
 0x801   : > { %v6979_v40 = vpop.f32.mrf.mxu1  ;;  %v6951_v44 = vadd.f32 %v6950_v20, %v6922_v43  ;;  %v6910_v43 = vadd.f32 %v14816_v58, %v6881_v7 }
 0x803   : > { %v6980_v53 = vadd.f32 %v6979_v40, %v6951_v44 }
 0x805   : > { %v6999_v5 = vmax.f32 %v6980_v53, 0.0 }
 0x807   : > { %v6926_v42 = vpop.f32.mrf.mxu2 }
 0x808   : > { %v6952_v30 = vpop.f32.mrf.mxu3  ;;  %v6927_v36 = vadd.f32 %v6926_v42, %v14760_v24 }
 0x809   : > { %v6953_v6 = vadd.f32 %v6952_v30, %v6924_v18  ;;  %v6981_v32 = vpop.f32.mrf.mxu1 }
 0x80b   : > { %v6982_v63 = vadd.f32 %v6981_v32, %v6953_v6 }
 0x80d   : > { %v7000_v12 = vmax.f32 %v6982_v63, 0.0 }
 0x80f   : > { %v7007_v49 = vmax.f32 %v6999_v5, %v7000_v12  ;;  %v6928_v38 = vpop.f32.mrf.mxu2 }
 0x810   : > { %v6955_v35 = vpop.f32.mrf.mxu3  ;;  %v6929_v45 = vadd.f32 %v6928_v38, %v6900_v16 }
 0x811   : > { %7011 = vst.msk [vmem:[#allocation5] sm:$0xff] %vm5451_vm0, %v7007_v49  ;;  %v6984_v13 = vpop.f32.mrf.mxu1  ;;  %v6956_v56 = vadd.f32 %v6955_v35, %v6927_v36 }
 0x813   : > { %v6985_v3 = vadd.f32 %v6984_v13, %v6956_v56 }
 0x815   : > { %v7001_v10 = vmax.f32 %v6985_v3, 0.0 }
 0x817   : > { %v6931_v41 = vpop.f32.mrf.mxu2 }
 0x818   : > { %v6957_v37 = vpop.f32.mrf.mxu3  ;;  %v6932_v61 = vadd.f32 %v6931_v41, %v14789_v15  ;;  %v7015_v6 = vld [vmem:[#allocation5] ss:$2 sm:$0xf]  ;;  %v7023_v57 = vld [vmem:[#allocation5 + $0x1] ss:$2 sm:$0xf] }
 0x819   : > { %v6958_v50 = vadd.f32 %v6957_v37, %v6929_v45  ;;  %v6986_v23 = vpop.f32.mrf.mxu1 }
 0x81b   : > { %v6987_v9 = vadd.f32 %v6986_v23, %v6958_v50 }
 0x81d   : > { %v7002_v46 = vmax.f32 %v6987_v9, 0.0 }
 0x81f   : > { %v7008_v17 = vmax.f32 %v7001_v10, %v7002_v46  ;;  %v6933_v60 = vpop.f32.mrf.mxu2 }
 0x820   : > { %v6960_v33 = vpop.f32.mrf.mxu3  ;;  %v6934_v52 = vadd.f32 %v6933_v60, %v6905_v47 }
 0x821   : > { %7012 = vst.msk [vmem:[#allocation5 + $0x8] sm:$0xff] %vm5451_vm0, %v7008_v17  ;;  %v6989_v24 = vpop.f32.mrf.mxu1  ;;  %v6961_v21 = vadd.f32 %v6960_v33, %v6932_v61 }
 0x823   : > { %v6990_v0 = vadd.f32 %v6989_v24, %v6961_v21 }
 0x825   : > { %v7003_v1 = vmax.f32 %v6990_v0, 0.0 }
 0x827   : > { %v6936_v11 = vpop.f32.mrf.mxu2 }
 0x828   : > { %v6962_v59 = vpop.f32.mrf.mxu3  ;;  %v6937_v51 = vadd.f32 %v6936_v11, %v14812_v8  ;;  %v7017_v42 = vld [vmem:[#allocation5 + $0x8] ss:$2 sm:$0xf]  ;;  %v7025_v30 = vld [vmem:[#allocation5 + $0x9] ss:$2 sm:$0xf]  ;;  %v7030_v8 = vmax.f32 %v7015_v6, %v7023_v57 }
 0x829   : > { %v6963_v34 = vadd.f32 %v6962_v59, %v6934_v52  ;;  %v6991_v19 = vpop.f32.mrf.mxu1  ;;  %v7031_v63 = vmax.f32 %v7017_v42, %v7025_v30 }
 0x82a   : > { %v7081_v38 = vrot.slane %v7030_v8, 3  ;;  %v7056_v31 = vrot.slane %v7030_v8, 1  ;;  %v7070_v56 = vrot.slane %v7030_v8, 2 }
 0x82b   : > { %v6992_v29 = vadd.f32 %v6991_v19, %v6963_v34  ;;  %v7082_v58 = vrot.slane %v7031_v63, 2  ;;  %v7071_v35 = vrot.slane %v7031_v63, 1  ;;  %v7038_v13 = vrot.slane %v7031_v63, 7 }
 0x82c   : > { %v7057_v45 = vsel %vm7039_vm2, %v7031_v63, %v7056_v31 }
 0x82d   : > { %v7004_v55 = vmax.f32 %v6992_v29, 0.0  ;;  %v7083_v36 = vsel %vm7039_vm2, %v7082_v58, %v7081_v38  ;;  %v7072_v37 = vsel %vm7039_vm2, %v7071_v35, %v7070_v56  ;;  %v7040_v50 = vsel %vm7039_vm2, %v7038_v13, %v7030_v8 }
 0x82e   : > { %v7084_v23 = vsel %vm7041_vm3, %v7082_v58, %v7083_v36  ;;  %v7058_v4 = vsel %vm7041_vm3, %v7031_v63, %v7057_v45  ;;  %v7073_v17 = vsel %vm7041_vm3, %v7071_v35, %v7072_v37  ;;  %v7042_v60 = vsel %vm7041_vm3, %v7038_v13, %v7040_v50 }
 0x82f   : > { %v7009_v14 = vmax.f32 %v7003_v1, %v7004_v55  ;;  %v6938_v40 = vpop.f32.mrf.mxu2 }
 0x830   : > { %v6965_v20 = vpop.f32.mrf.mxu3  ;;  %v6939_v44 = vadd.f32 %v6938_v40, %v6910_v43 }
 0x831   : > { %7013 = vst.msk [vmem:[#allocation5 + $0x10] sm:$0xff] %vm5451_vm0, %v7009_v14  ;;  %v6994_v15 = vpop.f32.mrf.mxu1  ;;  %v6966_v62 = vadd.f32 %v6965_v20, %v6937_v51 }
 0x833   : > { %v6995_v26 = vadd.f32 %v6994_v15, %v6966_v62 }
 0x835   : > { %v7005_v2 = vmax.f32 %v6995_v26, 0.0 }
 0x838   : > { %v6967_v18 = vpop.f32.mrf.mxu3  ;;  %v7019_v27 = vld [vmem:[#allocation5 + $0x10] ss:$2 sm:$0xf]  ;;  %v7027_v5 = vld [vmem:[#allocation5 + $0x11] ss:$2 sm:$0xf] }
 0x839   : > { %v6968_v48 = vadd.f32 %v6967_v18, %v6939_v44  ;;  %v6996_v53 = vpop.f32.mrf.mxu1  ;;  %v7032_v49 = vmax.f32 %v7019_v27, %v7027_v5 }
 0x83b   : > { %v6997_v32 = vadd.f32 %v6996_v53, %v6968_v48  ;;  %v7085_v16 = vrot.slane %v7032_v49, 1  ;;  %v7059_v41 = vrot.slane %v7032_v49, 7  ;;  %v7043_v3 = vrot.slane %v7032_v49, 6 }
 0x83c   : > { %v7074_v24 = vsel %vm7044_vm4, %v7032_v49, %v7073_v17 }
 0x83d   : > { %v7006_v12 = vmax.f32 %v6997_v32, 0.0  ;;  %v7086_v9 = vsel %vm7044_vm4, %v7085_v16, %v7084_v23  ;;  %v7060_v22 = vsel %vm7044_vm4, %v7059_v41, %v7058_v4  ;;  %v7045_v25 = vsel %vm7044_vm4, %v7043_v3, %v7042_v60 }
 0x83e   : > { %v7087_v61 = vsel %vm7046_vm5, %v7085_v16, %v7086_v9  ;;  %v7061_v34 = vsel %vm7046_vm5, %v7059_v41, %v7060_v22  ;;  %v7075_v19 = vsel %vm7046_vm5, %v7032_v49, %v7074_v24  ;;  %v7047_v11 = vsel %vm7046_vm5, %v7043_v3, %v7045_v25 }
 0x83f   : > { %v7010_v39 = vmax.f32 %v7005_v2, %v7006_v12 }
 0x841   : > { %7014 = vst.msk [vmem:[#allocation5 + $0x18] sm:$0xff] %vm5451_vm0, %v7010_v39 }
 0x848   : > { %v7021_v10 = vld [vmem:[#allocation5 + $0x18] ss:$2 sm:$0xf]  ;;  %v7029_v46 = vld [vmem:[#allocation5 + $0x19] ss:$2 sm:$0xf] }
 0x849   : > { %v7033_v33 = vmax.f32 %v7021_v10, %v7029_v46 }
 0x84b   : > { %v7088_v47 = vsel %vm7049_vm6, %v7033_v33, %v7087_v61  ;;  %v7062_v21 = vrot.slane %v7033_v33, 6  ;;  %v7076_v52 = vrot.slane %v7033_v33, 7  ;;  %v7048_v59 = vrot.slane %v7033_v33, 5 }
 0x84c   : > { %v7089_v0 = vsel %vm7051_vm7, %v7033_v33, %v7088_v47 }
 0x84d   : > { %7090 = vrot.lane.b32.xlu1 %v7089_v0, %s9945_s11  ;;  %v7063_v29 = vsel %vm7049_vm6, %v7062_v21, %v7061_v34  ;;  %v7077_v1 = vsel %vm7049_vm6, %v7076_v52, %v7075_v19  ;;  %v7050_v55 = vsel %vm7049_vm6, %v7048_v59, %v7047_v11 }
 0x84e   : > { %v7064_v54 = vsel %vm7051_vm7, %v7062_v21, %v7063_v29  ;;  %v7078_v14 = vsel %vm7051_vm7, %v7076_v52, %v7077_v1  ;;  %v7052_v20 = vsel %vm7051_vm7, %v7048_v59, %v7050_v55 }
 0x84f   : > { %7065 = vrot.lane.b32.xlu0 %v7064_v54, %s9945_s11  ;;  %7080 = vst.msk [vmem:[%s217_s7 + $0x4] sm:$0xf] %vm7054_vm8, %v7078_v14  ;;  %s7095_s11 = scalar_lea.sflag [#allocation7], %s215_s30 }
 0x850   : > { %7055 = vst.msk [vmem:[%s217_s7] sm:$0xf] %vm7054_vm8, %v7052_v20 }
 0x8bf   : > { %v7091_v28 = vpop.permute.xlu1 %7090 }
 0x8c0   : > { %7093 = vst.msk [vmem:[%s217_s7 + $0x4] sm:$0xf] %vm7068_vm9, %v7091_v28 }
 0x8c1   : > { %v7066_v15 = vpop.permute.xlu0 %7065 }
 0x8c2   : > { %7069 = vst.msk [vmem:[%s217_s7] sm:$0xf] %vm7068_vm9, %v7066_v15 }
 0x8c3   : > { %9897 = shalt.err (!%p9894_p3)
}
 0x8c4   : > { %7474 = dma.vmem_to_hbm [thread:$0]  (%p10015_p5), %s7109_s14, 128, %s7111_s15, %s7095_s11  }
 0x8c5 PF: > { %p7480_p4 = scmp.ge.s32.totalorder %s9932_s21, 2  ;;  %s7122_s30 = sand.u32 1, %s9920_s18  }
 0x8c6   : > { %s7123_s6 = scalar_lea.sflag [#allocation7], %s7122_s30 }
 0x8c7   : > { %p7477_p7 = pnand %p7480_p4, %p10019_p6 }
 0x8c9   : > { %p7478_p8 = pneg %p7477_p7 }
 0x8cb   : > { %9915 = dma.done.wait (%p7478_p8), %s7123_s6, 128  }
 0x8cc   : > { %9917 = vsyncadd (%p7478_p8), %s7123_s6, 4294967168  ;;  %p15_p9 = scmp.ge.s32.totalorder %s10002_s24, 4   ;;  %s15927_s18 = smov %s9924_s19 }
 0x8cd   : > { %s15928_s19 = smov %s9928_s20  ;;  %s15929_s20 = smov %s10013_s27 }
 0x8ce   : > { %s15930_s21 = smov %s10002_s24  ;;  %17 = sbr.rel (!%p15_p9) target bundleno = 3 (0x3), region = 107 }
 0x8d3   :  { %7129 = vsyncpa [#allocation7], 1 }
 0x8d4   :  { %7131 = vsyncpa [#allocation7 + $0x1], 1 }

</bundles_post_ra>
